<compile_context>
chip_gen: v7x
topology: tpu7x:2x2x1
jax: 0.10.0
libtpu: 0.0.40
codegen_flags: <defaults>
</compile_context>

<pallas_src>
import functools

import jax
import jax.numpy as jnp
from jax.experimental import pallas as pl
from jax.experimental.pallas import tpu as pltpu


_LRN = dict(size=4.0, alpha=0.001 / 9.0, beta=0.75, k=1.0)


# ---------------------------- Pallas kernels ----------------------------

def _conv1_kernel(p_ref, w1_ref, b1_ref, band_ref, sel_ref, o_ref, *, size, alpha, beta, k):
    # conv1 as one bf16 matmul over im2col patches (built in glue; K padded 75 -> 80).
    y = jnp.dot(p_ref[0], w1_ref[...], preferred_element_type=jnp.float32)   # [1024,64] f32
    y = jnp.maximum(y + b1_ref[...], 0.0)                                    # bias + ReLU

    # maxpool 3x3 stride 2 pad 1 over the [32,32,64] map (inputs >= 0 so 0-pad == -inf-pad)
    y3 = y.reshape(32, 32, 64)
    zrow = jnp.zeros((1, 32, 64), jnp.float32)
    yh = jnp.concatenate([zrow, y3, zrow], axis=0)                           # [34,32,64]
    rmax = jnp.maximum(jnp.maximum(yh[0:32], yh[1:33]), yh[2:34])            # [32,32,64]
    rmax = rmax.reshape(16, 2, 32, 64)[:, 0]                                 # even H rows
    xf = rmax.reshape(512, 64)
    # W-direction 3-tap max + stride-2 select via exact 0/1 selection matmuls (MXU).
    pooled = jnp.maximum(
        jnp.maximum(jnp.dot(sel_ref[0], xf, preferred_element_type=jnp.float32),
                    jnp.dot(sel_ref[1], xf, preferred_element_type=jnp.float32)),
        jnp.dot(sel_ref[2], xf, preferred_element_type=jnp.float32))         # [256,64]

    # LRN(size=4): x * (k + alpha/size * sum_win x^2)^(-beta), banded channel matmul.
    s = jnp.dot(pooled * pooled, band_ref[...], preferred_element_type=jnp.float32)
    z = pooled * jnp.exp(-beta * jnp.log(k + (alpha / size) * s))

    o_ref[0] = z.reshape(16, 16, 64)


def _conv2_kernel(x_ref, w2_ref, b2_ref, band_ref, sel_ref, o_ref, *, size, alpha, beta, k):
    # 5x5 conv with im2col fused in-kernel: 25 shifted-tap bf16 matmuls, f32 accumulation.
    # x_ref block is the zero-padded [20,20,64] LRN1 activation of one image.
    acc = jnp.zeros((256, 64), jnp.float32)
    for dj in range(5):
        xd = x_ref[0, :, dj:dj + 16, :].astype(jnp.bfloat16)                 # [20,16,64]
        for di in range(5):
            xt = xd[di:di + 16].reshape(256, 64)
            acc = acc + jnp.dot(xt, w2_ref[di * 5 + dj],
                                preferred_element_type=jnp.float32)
    y = jnp.maximum(acc + b2_ref[...], 0.0)                                  # bias + ReLU

    # LRN(size=4) -- applied before the pool, matching the PyTorch module order.
    s = jnp.dot(y * y, band_ref[...], preferred_element_type=jnp.float32)
    y = y * jnp.exp(-beta * jnp.log(k + (alpha / size) * s))

    # maxpool 3x3 stride 2 pad 1 over the [16,16,64] map (inputs >= 0)
    y3 = y.reshape(16, 16, 64)
    zrow = jnp.zeros((1, 16, 64), jnp.float32)
    yh = jnp.concatenate([zrow, y3, zrow], axis=0)                           # [18,16,64]
    rmax = jnp.maximum(jnp.maximum(yh[0:16], yh[1:17]), yh[2:18])            # [16,16,64]
    rmax = rmax.reshape(8, 2, 16, 64)[:, 0]                                  # even H rows
    xf = rmax.reshape(128, 64)
    pooled = jnp.maximum(
        jnp.maximum(jnp.dot(sel_ref[0], xf, preferred_element_type=jnp.float32),
                    jnp.dot(sel_ref[1], xf, preferred_element_type=jnp.float32)),
        jnp.dot(sel_ref[2], xf, preferred_element_type=jnp.float32))         # [64,64]

    o_ref[0] = pooled.astype(o_ref.dtype)


def _fc_kernel(x_ref, w1_ref, b1_ref, w2_ref, b2_ref, w3_ref, b3_ref, o_ref):
    # Whole classifier in one kernel: bf16 weights resident in VMEM, f32 accumulation,
    # intermediates never leave VMEM/registers.
    h = jnp.dot(x_ref[...], w1_ref[...], preferred_element_type=jnp.float32)
    h = jnp.maximum(h + b1_ref[...], 0.0)
    h = jnp.dot(h.astype(jnp.bfloat16), w2_ref[...], preferred_element_type=jnp.float32)
    h = jnp.maximum(h + b2_ref[...], 0.0)
    h = jnp.dot(h.astype(jnp.bfloat16), w3_ref[...], preferred_element_type=jnp.float32)
    o_ref[...] = h + b3_ref[...]


# ---------------------------- pallas_call wrappers ----------------------------

def conv1_block(patches, w1, b1, band, sel):
    B = patches.shape[0]
    kern = functools.partial(_conv1_kernel, **_LRN)
    return pl.pallas_call(
        kern,
        out_shape=jax.ShapeDtypeStruct((B, 16, 16, 64), jnp.float32),
        grid=(B,),
        in_specs=[
            pl.BlockSpec((1, 1024, 80), lambda i: (i, 0, 0)),
            pl.BlockSpec((80, 64), lambda i: (0, 0)),
            pl.BlockSpec((1, 64), lambda i: (0, 0)),
            pl.BlockSpec((64, 64), lambda i: (0, 0)),
            pl.BlockSpec((3, 256, 512), lambda i: (0, 0, 0)),
        ],
        out_specs=pl.BlockSpec((1, 16, 16, 64), lambda i: (i, 0, 0, 0)),
        compiler_params=pltpu.CompilerParams(dimension_semantics=("parallel",)),
    )(patches, w1, b1, band, sel)


def conv2_block(xpad, w2, b2, band, sel):
    B = xpad.shape[0]
    kern = functools.partial(_conv2_kernel, **_LRN)
    return pl.pallas_call(
        kern,
        out_shape=jax.ShapeDtypeStruct((B, 64, 64), jnp.bfloat16),
        grid=(B,),
        in_specs=[
            pl.BlockSpec((1, 20, 20, 64), lambda i: (i, 0, 0, 0)),
            pl.BlockSpec((25, 64, 64), lambda i: (0, 0, 0)),
            pl.BlockSpec((1, 64), lambda i: (0, 0)),
            pl.BlockSpec((64, 64), lambda i: (0, 0)),
            pl.BlockSpec((3, 64, 128), lambda i: (0, 0, 0)),
        ],
        out_specs=pl.BlockSpec((1, 64, 64), lambda i: (i, 0, 0)),
        compiler_params=pltpu.CompilerParams(dimension_semantics=("parallel",)),
    )(xpad, w2, b2, band, sel)


def fc_block(x, w1, b1, w2, b2, w3, b3):
    B = x.shape[0]
    bm = 256 if B % 256 == 0 else B
    return pl.pallas_call(
        _fc_kernel,
        out_shape=jax.ShapeDtypeStruct((B, 128), jnp.float32),
        grid=(B // bm,),
        in_specs=[
            pl.BlockSpec((bm, 4096), lambda i: (i, 0)),
            pl.BlockSpec((4096, 384), lambda i: (0, 0)),
            pl.BlockSpec((1, 384), lambda i: (0, 0)),
            pl.BlockSpec((384, 192), lambda i: (0, 0)),
            pl.BlockSpec((1, 192), lambda i: (0, 0)),
            pl.BlockSpec((192, 128), lambda i: (0, 0)),
            pl.BlockSpec((1, 128), lambda i: (0, 0)),
        ],
        out_specs=pl.BlockSpec((bm, 128), lambda i: (i, 0)),
        compiler_params=pltpu.CompilerParams(dimension_semantics=("parallel",)),
    )(x, w1, b1, w2, b2, w3, b3)


# ------------------------------ JAX glue ------------------------------

def _lrn_band(C, size):
    # PyTorch LRN window for channel c covers channels [c - size//2, c + (size-1-size//2)].
    c = jnp.arange(C)
    lo = c - size // 2
    hi = c + (size - 1 - size // 2)
    cp = c[:, None]
    return ((cp >= lo[None, :]) & (cp <= hi[None, :])).astype(jnp.float32)


def _pool_select(h, w):
    """[3, h*(w//2), h*w] 0/1 matrices: output row (r, jo) picks input col {2jo-1,2jo,2jo+1}
    of spatial row r (row-major flattened); out-of-range -> all-zero row (valid because the
    pooled inputs are >= 0)."""
    wo = w // 2
    rows = jnp.arange(h * wo)
    rh, rj = rows // wo, rows % wo
    mats = []
    for d in (-1, 0, 1):
        src_w = 2 * rj + d
        valid = (src_w >= 0) & (src_w < w)
        src = rh * w + src_w
        m = jax.nn.one_hot(src, h * w, dtype=jnp.float32) * valid[:, None].astype(jnp.float32)
        mats.append(m)
    return jnp.stack(mats)


def init_params(key):
    ks = jax.random.split(key, 10)

    def rn(k, shape, scale):
        return jax.random.normal(k, shape, jnp.float32) * scale

    p = {}
    # conv1: [kh,kw,cin,cout] flattened (di,dj,c) -> [75,64], K zero-padded to 80, bf16.
    w1 = rn(ks[0], (5, 5, 3, 64), 0.05).reshape(75, 64)
    p["w1"] = jnp.pad(w1, ((0, 5), (0, 0))).astype(jnp.bfloat16)
    p["b1"] = rn(ks[1], (64,), 0.01).reshape(1, 64)
    # conv2: per-tap layout [25, cin, cout], bf16.
    p["w2"] = rn(ks[2], (5, 5, 64, 64), 0.02).reshape(25, 64, 64).astype(jnp.bfloat16)
    p["b2"] = rn(ks[3], (64,), 0.01).reshape(1, 64)
    # fc1: created in PyTorch feature order (c*64 + h*8 + w), then row-permuted once so it
    # consumes the kernel-native NHWC flatten ((h*8+w)*64 + c) with no runtime relayout.
    fw1 = rn(ks[4], (4096, 384), 0.02)
    f = jnp.arange(4096)
    perm = (f % 64) * 64 + f // 64
    p["fw1"] = fw1[perm].astype(jnp.bfloat16)
    p["fb1"] = rn(ks[5], (384,), 0.01).reshape(1, 384)
    p["fw2"] = rn(ks[6], (384, 192), 0.05).astype(jnp.bfloat16)
    p["fb2"] = rn(ks[7], (192,), 0.01).reshape(1, 192)
    # fc3: output padded 10 -> 128 for a lane-dense store; logits sliced in glue.
    fw3 = rn(ks[8], (192, 10), 0.05)
    p["fw3"] = jnp.pad(fw3, ((0, 0), (0, 118))).astype(jnp.bfloat16)
    p["fb3"] = jnp.pad(rn(ks[9], (10,), 0.01), (0, 118)).reshape(1, 128)
    return p


def alexnet_forward(x, params):
    """x: [B, 3, 32, 32] NCHW float32 -> logits [B, 10]."""
    B = x.shape[0]
    y = jnp.transpose(x, (0, 2, 3, 1)).astype(jnp.float32)            # NCHW -> NHWC

    # conv1 im2col in glue (the 3-channel input is tiny); bf16 patch operand, K = 80.
    xp = jnp.pad(y, ((0, 0), (2, 2), (2, 2), (0, 0)))
    cols = [xp[:, di:di + 32, dj:dj + 32, :] for di in range(5) for dj in range(5)]
    patches = jnp.concatenate(cols, axis=-1)                          # [B,32,32,75]
    patches = jnp.pad(patches, ((0, 0), (0, 0), (0, 0), (0, 5)))
    patches = patches.reshape(B, 1024, 80).astype(jnp.bfloat16)

    band = _lrn_band(64, 4)
    sel1 = _pool_select(16, 32)                                       # [3,256,512]
    sel2 = _pool_select(8, 16)                                        # [3,64,128]

    # features (conv1+relu+pool+lrn fused; conv2+relu+lrn+pool fused, im2col in-kernel)
    a1 = conv1_block(patches, params["w1"], params["b1"], band, sel1)  # [B,16,16,64] f32
    a1p = jnp.pad(a1, ((0, 0), (2, 2), (2, 2), (0, 0)))                # zero pad for conv2
    a2 = conv2_block(a1p, params["w2"], params["b2"], band, sel2)      # [B,64,64] bf16

    # classifier (single fused kernel); fw1 rows were pre-permuted to this flatten order.
    feats = a2.reshape(B, 4096)
    logits = fc_block(feats, params["fw1"], params["fb1"], params["fw2"],
                      params["fb2"], params["fw3"], params["fb3"])     # [B,128]
    return logits[:, :10]


if __name__ == "__main__":
    key = jax.random.PRNGKey(0)
    kx, kp = jax.random.split(key)
    # Input size is forced by the module: view(B, 4096) requires 3x32x32 inputs.
    x = jax.random.normal(kx, (2, 3, 32, 32), jnp.float32)  # NCHW, like PyTorch
    params = init_params(kp)

    fwd = jax.jit(alexnet_forward)
    out = jax.block_until_ready(fwd(x, params))

    assert out.shape == (2, 10), out.shape
    assert bool(jnp.all(jnp.isfinite(out)))
    print("KERNEL_OK")
</pallas_src>

<mosaic_0001>
module attributes {stable_mosaic.version = 11 : i64} {
  func.func @_conv1_kernel(%arg0: i32, %arg1: memref<1x1024x80xbf16, #tpu.memory_space<vmem>>, %arg2: memref<80x64xbf16, #tpu.memory_space<vmem>>, %arg3: memref<1x64xf32, #tpu.memory_space<vmem>>, %arg4: memref<64x64xf32, #tpu.memory_space<vmem>>, %arg5: memref<3x256x512xf32, #tpu.memory_space<vmem>>, %arg6: memref<1x16x16x64xf32, #tpu.memory_space<vmem>>) attributes {dimension_semantics = [#tpu.dimension_semantics<parallel>], iteration_bounds = array<i64: 2>, scalar_prefetch = 0 : i64, scratch_operands = 0 : i64, tpu.core_type = #tpu.core_type<tc>, window_params = [{transform_indices = @transform_0, window_bounds = array<i64: 1, 1024, 80>}, {pipeline_mode = #tpu.pipeline_mode<synchronous>, transform_indices = @transform_1, window_bounds = array<i64: 80, 64>}, {pipeline_mode = #tpu.pipeline_mode<synchronous>, transform_indices = @transform_2, window_bounds = array<i64: 1, 64>}, {pipeline_mode = #tpu.pipeline_mode<synchronous>, transform_indices = @transform_3, window_bounds = array<i64: 64, 64>}, {pipeline_mode = #tpu.pipeline_mode<synchronous>, transform_indices = @transform_4, window_bounds = array<i64: 3, 256, 512>}, {transform_indices = @transform_5, window_bounds = array<i64: 1, 16, 16, 64>}]} {
    %c0 = arith.constant 0 : index
    %c0_0 = arith.constant 0 : index
    %c0_1 = arith.constant 0 : index
    %0 = vector.load %arg1[%c0, %c0_0, %c0_1] : memref<1x1024x80xbf16, #tpu.memory_space<vmem>>, vector<1x1024x80xbf16>
    %1 = vector.shape_cast %0 : vector<1x1024x80xbf16> to vector<1024x80xbf16>
    %c0_2 = arith.constant 0 : index
    %c0_3 = arith.constant 0 : index
    %2 = vector.load %arg2[%c0_2, %c0_3] : memref<80x64xbf16, #tpu.memory_space<vmem>>, vector<80x64xbf16>
    %cst = arith.constant dense<0.000000e+00> : vector<1024x64xf32>
    %3 = tpu.matmul %1, %2, %cst {dimension_numbers = #tpu.dot_dimension_numbers<[1], [0], [0], [1], [0, 0, 1, 1], [], []>} : vector<1024x80xbf16>, vector<80x64xbf16>, vector<1024x64xf32> -> vector<1024x64xf32>
    %c0_4 = arith.constant 0 : index
    %c0_5 = arith.constant 0 : index
    %4 = vector.load %arg3[%c0_4, %c0_5] : memref<1x64xf32, #tpu.memory_space<vmem>>, vector<1x64xf32>
    %5 = vector.broadcast %4 : vector<1x64xf32> to vector<1024x64xf32>
    %6 = arith.addf %3, %5 : vector<1024x64xf32>
    %cst_6 = arith.constant 0.000000e+00 : f32
    %7 = vector.broadcast %cst_6 : f32 to vector<1024x64xf32>
    %8 = arith.maximumf %6, %7 : vector<1024x64xf32>
    %9 = vector.shape_cast %8 : vector<1024x64xf32> to vector<32x32x64xf32>
    %cst_7 = arith.constant 0.000000e+00 : f32
    %10 = vector.broadcast %cst_7 : f32 to vector<1x32x64xf32>
    %11 = tpu.concatenate %10, %9, %10 in 0 : vector<1x32x64xf32>, vector<32x32x64xf32>, vector<1x32x64xf32> -> vector<34x32x64xf32>
    %12 = vector.extract_strided_slice %11 {offsets = [0, 0, 0], sizes = [32, 32, 64], strides = [1, 1, 1]} : vector<34x32x64xf32> to vector<32x32x64xf32>
    %13 = vector.extract_strided_slice %11 {offsets = [1, 0, 0], sizes = [32, 32, 64], strides = [1, 1, 1]} : vector<34x32x64xf32> to vector<32x32x64xf32>
    %14 = arith.maximumf %12, %13 : vector<32x32x64xf32>
    %15 = vector.extract_strided_slice %11 {offsets = [2, 0, 0], sizes = [32, 32, 64], strides = [1, 1, 1]} : vector<34x32x64xf32> to vector<32x32x64xf32>
    %16 = arith.maximumf %14, %15 : vector<32x32x64xf32>
    %17 = vector.shape_cast %16 : vector<32x32x64xf32> to vector<16x2x32x64xf32>
    %18 = vector.extract_strided_slice %17 {offsets = [0, 0, 0, 0], sizes = [16, 1, 32, 64], strides = [1, 1, 1, 1]} : vector<16x2x32x64xf32> to vector<16x1x32x64xf32>
    %19 = vector.shape_cast %18 : vector<16x1x32x64xf32> to vector<16x32x64xf32>
    %20 = vector.shape_cast %19 : vector<16x32x64xf32> to vector<512x64xf32>
    %c0_8 = arith.constant 0 : index
    %c0_9 = arith.constant 0 : index
    %c0_10 = arith.constant 0 : index
    %21 = vector.load %arg5[%c0_8, %c0_9, %c0_10] : memref<3x256x512xf32, #tpu.memory_space<vmem>>, vector<1x256x512xf32>
    %22 = vector.shape_cast %21 : vector<1x256x512xf32> to vector<256x512xf32>
    %cst_11 = arith.constant dense<0.000000e+00> : vector<256x64xf32>
    %23 = tpu.matmul %22, %20, %cst_11 {dimension_numbers = #tpu.dot_dimension_numbers<[1], [0], [0], [1], [0, 0, 1, 1], [], []>} : vector<256x512xf32>, vector<512x64xf32>, vector<256x64xf32> -> vector<256x64xf32>
    %c1 = arith.constant 1 : index
    %c0_12 = arith.constant 0 : index
    %c0_13 = arith.constant 0 : index
    %24 = vector.load %arg5[%c1, %c0_12, %c0_13] : memref<3x256x512xf32, #tpu.memory_space<vmem>>, vector<1x256x512xf32>
    %25 = vector.shape_cast %24 : vector<1x256x512xf32> to vector<256x512xf32>
    %cst_14 = arith.constant dense<0.000000e+00> : vector<256x64xf32>
    %26 = tpu.matmul %25, %20, %cst_14 {dimension_numbers = #tpu.dot_dimension_numbers<[1], [0], [0], [1], [0, 0, 1, 1], [], []>} : vector<256x512xf32>, vector<512x64xf32>, vector<256x64xf32> -> vector<256x64xf32>
    %27 = arith.maximumf %23, %26 : vector<256x64xf32>
    %c2 = arith.constant 2 : index
    %c0_15 = arith.constant 0 : index
    %c0_16 = arith.constant 0 : index
    %28 = vector.load %arg5[%c2, %c0_15, %c0_16] : memref<3x256x512xf32, #tpu.memory_space<vmem>>, vector<1x256x512xf32>
    %29 = vector.shape_cast %28 : vector<1x256x512xf32> to vector<256x512xf32>
    %cst_17 = arith.constant dense<0.000000e+00> : vector<256x64xf32>
    %30 = tpu.matmul %29, %20, %cst_17 {dimension_numbers = #tpu.dot_dimension_numbers<[1], [0], [0], [1], [0, 0, 1, 1], [], []>} : vector<256x512xf32>, vector<512x64xf32>, vector<256x64xf32> -> vector<256x64xf32>
    %31 = arith.maximumf %27, %30 : vector<256x64xf32>
    %32 = arith.mulf %31, %31 : vector<256x64xf32>
    %c0_18 = arith.constant 0 : index
    %c0_19 = arith.constant 0 : index
    %33 = vector.load %arg4[%c0_18, %c0_19] : memref<64x64xf32, #tpu.memory_space<vmem>>, vector<64x64xf32>
    %cst_20 = arith.constant dense<0.000000e+00> : vector<256x64xf32>
    %34 = tpu.matmul %32, %33, %cst_20 {dimension_numbers = #tpu.dot_dimension_numbers<[1], [0], [0], [1], [0, 0, 1, 1], [], []>} : vector<256x64xf32>, vector<64x64xf32>, vector<256x64xf32> -> vector<256x64xf32>
    %cst_21 = arith.constant 2.77777781E-5 : f32
    %35 = vector.broadcast %cst_21 : f32 to vector<256x64xf32>
    %36 = arith.mulf %35, %34 : vector<256x64xf32>
    %cst_22 = arith.constant 1.000000e+00 : f32
    %37 = vector.broadcast %cst_22 : f32 to vector<256x64xf32>
    %38 = arith.addf %37, %36 : vector<256x64xf32>
    %39 = math.log %38 : vector<256x64xf32>
    %cst_23 = arith.constant -7.500000e-01 : f32
    %40 = vector.broadcast %cst_23 : f32 to vector<256x64xf32>
    %41 = arith.mulf %40, %39 : vector<256x64xf32>
    %42 = math.exp %41 : vector<256x64xf32>
    %43 = arith.mulf %31, %42 : vector<256x64xf32>
    %44 = vector.shape_cast %43 : vector<256x64xf32> to vector<16x16x64xf32>
    %c0_24 = arith.constant 0 : index
    %c0_25 = arith.constant 0 : index
    %c0_26 = arith.constant 0 : index
    %c0_27 = arith.constant 0 : index
    %45 = vector.load %arg6[%c0_24, %c0_25, %c0_26, %c0_27] : memref<1x16x16x64xf32, #tpu.memory_space<vmem>>, vector<1x16x16x64xf32>
    %46 = vector.shape_cast %45 : vector<1x16x16x64xf32> to vector<16x16x64xf32>
    %47 = vector.shape_cast %44 : vector<16x16x64xf32> to vector<1x16x16x64xf32>
    tpu.vector_store %arg6[%c0_24, %c0_25, %c0_26, %c0_27], %47 {strides = array<i32>} : memref<1x16x16x64xf32, #tpu.memory_space<vmem>>, vector<1x16x16x64xf32>,
    return
  }
  func.func @transform_0(%arg0: i32) -> (i32, i32, i32) {
    %c0_i32 = arith.constant 0 : i32
    %c0_i32_0 = arith.constant 0 : i32
    %c0_i32_1 = arith.constant 0 : i32
    return %arg0, %c0_i32, %c0_i32_0 : i32, i32, i32
  }
  func.func @transform_1(%arg0: i32) -> (i32, i32) {
    %c0_i32 = arith.constant 0 : i32
    %c0_i32_0 = arith.constant 0 : i32
    %c0_i32_1 = arith.constant 0 : i32
    return %c0_i32, %c0_i32_0 : i32, i32
  }
  func.func @transform_2(%arg0: i32) -> (i32, i32) {
    %c0_i32 = arith.constant 0 : i32
    %c0_i32_0 = arith.constant 0 : i32
    %c0_i32_1 = arith.constant 0 : i32
    return %c0_i32, %c0_i32_0 : i32, i32
  }
  func.func @transform_3(%arg0: i32) -> (i32, i32) {
    %c0_i32 = arith.constant 0 : i32
    %c0_i32_0 = arith.constant 0 : i32
    %c0_i32_1 = arith.constant 0 : i32
    return %c0_i32, %c0_i32_0 : i32, i32
  }
  func.func @transform_4(%arg0: i32) -> (i32, i32, i32) {
    %c0_i32 = arith.constant 0 : i32
    %c0_i32_0 = arith.constant 0 : i32
    %c0_i32_1 = arith.constant 0 : i32
    %c0_i32_2 = arith.constant 0 : i32
    return %c0_i32, %c0_i32_0, %c0_i32_1 : i32, i32, i32
  }
  func.func @transform_5(%arg0: i32) -> (i32, i32, i32, i32) {
    %c0_i32 = arith.constant 0 : i32
    %c0_i32_0 = arith.constant 0 : i32
    %c0_i32_1 = arith.constant 0 : i32
    %c0_i32_2 = arith.constant 0 : i32
    return %arg0, %c0_i32, %c0_i32_0, %c0_i32_1 : i32, i32, i32, i32
  }
}

module attributes {stable_mosaic.version = 11 : i64} {
  func.func @_conv2_kernel(%arg0: i32, %arg1: memref<1x20x20x64xf32, #tpu.memory_space<vmem>>, %arg2: memref<25x64x64xbf16, #tpu.memory_space<vmem>>, %arg3: memref<1x64xf32, #tpu.memory_space<vmem>>, %arg4: memref<64x64xf32, #tpu.memory_space<vmem>>, %arg5: memref<3x64x128xf32, #tpu.memory_space<vmem>>, %arg6: memref<1x64x64xbf16, #tpu.memory_space<vmem>>) attributes {dimension_semantics = [#tpu.dimension_semantics<parallel>], iteration_bounds = array<i64: 2>, scalar_prefetch = 0 : i64, scratch_operands = 0 : i64, tpu.core_type = #tpu.core_type<tc>, window_params = [{transform_indices = @transform_0, window_bounds = array<i64: 1, 20, 20, 64>}, {pipeline_mode = #tpu.pipeline_mode<synchronous>, transform_indices = @transform_1, window_bounds = array<i64: 25, 64, 64>}, {pipeline_mode = #tpu.pipeline_mode<synchronous>, transform_indices = @transform_2, window_bounds = array<i64: 1, 64>}, {pipeline_mode = #tpu.pipeline_mode<synchronous>, transform_indices = @transform_3, window_bounds = array<i64: 64, 64>}, {pipeline_mode = #tpu.pipeline_mode<synchronous>, transform_indices = @transform_4, window_bounds = array<i64: 3, 64, 128>}, {transform_indices = @transform_5, window_bounds = array<i64: 1, 64, 64>}]} {
    %cst = arith.constant 0.000000e+00 : f32
    %0 = vector.broadcast %cst : f32 to vector<256x64xf32>
    %c0 = arith.constant 0 : index
    %c0_0 = arith.constant 0 : index
    %c0_1 = arith.constant 0 : index
    %c0_2 = arith.constant 0 : index
    %1 = vector.load %arg1[%c0, %c0_0, %c0_1, %c0_2] : memref<1x20x20x64xf32, #tpu.memory_space<vmem>>, vector<1x20x16x64xf32>
    %2 = vector.shape_cast %1 : vector<1x20x16x64xf32> to vector<20x16x64xf32>
    %3 = arith.truncf %2 : vector<20x16x64xf32> to vector<20x16x64xbf16>
    %4 = vector.extract_strided_slice %3 {offsets = [0, 0, 0], sizes = [16, 16, 64], strides = [1, 1, 1]} : vector<20x16x64xbf16> to vector<16x16x64xbf16>
    %5 = vector.shape_cast %4 : vector<16x16x64xbf16> to vector<256x64xbf16>
    %c0_3 = arith.constant 0 : index
    %c0_4 = arith.constant 0 : index
    %c0_5 = arith.constant 0 : index
    %6 = vector.load %arg2[%c0_3, %c0_4, %c0_5] : memref<25x64x64xbf16, #tpu.memory_space<vmem>>, vector<1x64x64xbf16>
    %7 = vector.shape_cast %6 : vector<1x64x64xbf16> to vector<64x64xbf16>
    %cst_6 = arith.constant dense<0.000000e+00> : vector<256x64xf32>
    %8 = tpu.matmul %5, %7, %cst_6 {dimension_numbers = #tpu.dot_dimension_numbers<[1], [0], [0], [1], [0, 0, 1, 1], [], []>} : vector<256x64xbf16>, vector<64x64xbf16>, vector<256x64xf32> -> vector<256x64xf32>
    %9 = arith.addf %0, %8 : vector<256x64xf32>
    %10 = vector.extract_strided_slice %3 {offsets = [1, 0, 0], sizes = [16, 16, 64], strides = [1, 1, 1]} : vector<20x16x64xbf16> to vector<16x16x64xbf16>
    %11 = vector.shape_cast %10 : vector<16x16x64xbf16> to vector<256x64xbf16>
    %c5 = arith.constant 5 : index
    %c0_7 = arith.constant 0 : index
    %c0_8 = arith.constant 0 : index
    %12 = vector.load %arg2[%c5, %c0_7, %c0_8] : memref<25x64x64xbf16, #tpu.memory_space<vmem>>, vector<1x64x64xbf16>
    %13 = vector.shape_cast %12 : vector<1x64x64xbf16> to vector<64x64xbf16>
    %cst_9 = arith.constant dense<0.000000e+00> : vector<256x64xf32>
    %14 = tpu.matmul %11, %13, %cst_9 {dimension_numbers = #tpu.dot_dimension_numbers<[1], [0], [0], [1], [0, 0, 1, 1], [], []>} : vector<256x64xbf16>, vector<64x64xbf16>, vector<256x64xf32> -> vector<256x64xf32>
    %15 = arith.addf %9, %14 : vector<256x64xf32>
    %16 = vector.extract_strided_slice %3 {offsets = [2, 0, 0], sizes = [16, 16, 64], strides = [1, 1, 1]} : vector<20x16x64xbf16> to vector<16x16x64xbf16>
    %17 = vector.shape_cast %16 : vector<16x16x64xbf16> to vector<256x64xbf16>
    %c10 = arith.constant 10 : index
    %c0_10 = arith.constant 0 : index
    %c0_11 = arith.constant 0 : index
    %18 = vector.load %arg2[%c10, %c0_10, %c0_11] : memref<25x64x64xbf16, #tpu.memory_space<vmem>>, vector<1x64x64xbf16>
    %19 = vector.shape_cast %18 : vector<1x64x64xbf16> to vector<64x64xbf16>
    %cst_12 = arith.constant dense<0.000000e+00> : vector<256x64xf32>
    %20 = tpu.matmul %17, %19, %cst_12 {dimension_numbers = #tpu.dot_dimension_numbers<[1], [0], [0], [1], [0, 0, 1, 1], [], []>} : vector<256x64xbf16>, vector<64x64xbf16>, vector<256x64xf32> -> vector<256x64xf32>
    %21 = arith.addf %15, %20 : vector<256x64xf32>
    %22 = vector.extract_strided_slice %3 {offsets = [3, 0, 0], sizes = [16, 16, 64], strides = [1, 1, 1]} : vector<20x16x64xbf16> to vector<16x16x64xbf16>
    %23 = vector.shape_cast %22 : vector<16x16x64xbf16> to vector<256x64xbf16>
    %c15 = arith.constant 15 : index
    %c0_13 = arith.constant 0 : index
    %c0_14 = arith.constant 0 : index
    %24 = vector.load %arg2[%c15, %c0_13, %c0_14] : memref<25x64x64xbf16, #tpu.memory_space<vmem>>, vector<1x64x64xbf16>
    %25 = vector.shape_cast %24 : vector<1x64x64xbf16> to vector<64x64xbf16>
    %cst_15 = arith.constant dense<0.000000e+00> : vector<256x64xf32>
    %26 = tpu.matmul %23, %25, %cst_15 {dimension_numbers = #tpu.dot_dimension_numbers<[1], [0], [0], [1], [0, 0, 1, 1], [], []>} : vector<256x64xbf16>, vector<64x64xbf16>, vector<256x64xf32> -> vector<256x64xf32>
    %27 = arith.addf %21, %26 : vector<256x64xf32>
    %28 = vector.extract_strided_slice %3 {offsets = [4, 0, 0], sizes = [16, 16, 64], strides = [1, 1, 1]} : vector<20x16x64xbf16> to vector<16x16x64xbf16>
    %29 = vector.shape_cast %28 : vector<16x16x64xbf16> to vector<256x64xbf16>
    %c20 = arith.constant 20 : index
    %c0_16 = arith.constant 0 : index
    %c0_17 = arith.constant 0 : index
    %30 = vector.load %arg2[%c20, %c0_16, %c0_17] : memref<25x64x64xbf16, #tpu.memory_space<vmem>>, vector<1x64x64xbf16>
    %31 = vector.shape_cast %30 : vector<1x64x64xbf16> to vector<64x64xbf16>
    %cst_18 = arith.constant dense<0.000000e+00> : vector<256x64xf32>
    %32 = tpu.matmul %29, %31, %cst_18 {dimension_numbers = #tpu.dot_dimension_numbers<[1], [0], [0], [1], [0, 0, 1, 1], [], []>} : vector<256x64xbf16>, vector<64x64xbf16>, vector<256x64xf32> -> vector<256x64xf32>
    %33 = arith.addf %27, %32 : vector<256x64xf32>
    %c0_19 = arith.constant 0 : index
    %c0_20 = arith.constant 0 : index
    %c1 = arith.constant 1 : index
    %c0_21 = arith.constant 0 : index
    %34 = vector.load %arg1[%c0_19, %c0_20, %c1, %c0_21] : memref<1x20x20x64xf32, #tpu.memory_space<vmem>>, vector<1x20x16x64xf32>
    %35 = vector.shape_cast %34 : vector<1x20x16x64xf32> to vector<20x16x64xf32>
    %36 = arith.truncf %35 : vector<20x16x64xf32> to vector<20x16x64xbf16>
    %37 = vector.extract_strided_slice %36 {offsets = [0, 0, 0], sizes = [16, 16, 64], strides = [1, 1, 1]} : vector<20x16x64xbf16> to vector<16x16x64xbf16>
    %38 = vector.shape_cast %37 : vector<16x16x64xbf16> to vector<256x64xbf16>
    %c1_22 = arith.constant 1 : index
    %c0_23 = arith.constant 0 : index
    %c0_24 = arith.constant 0 : index
    %39 = vector.load %arg2[%c1_22, %c0_23, %c0_24] : memref<25x64x64xbf16, #tpu.memory_space<vmem>>, vector<1x64x64xbf16>
    %40 = vector.shape_cast %39 : vector<1x64x64xbf16> to vector<64x64xbf16>
    %cst_25 = arith.constant dense<0.000000e+00> : vector<256x64xf32>
    %41 = tpu.matmul %38, %40, %cst_25 {dimension_numbers = #tpu.dot_dimension_numbers<[1], [0], [0], [1], [0, 0, 1, 1], [], []>} : vector<256x64xbf16>, vector<64x64xbf16>, vector<256x64xf32> -> vector<256x64xf32>
    %42 = arith.addf %33, %41 : vector<256x64xf32>
    %43 = vector.extract_strided_slice %36 {offsets = [1, 0, 0], sizes = [16, 16, 64], strides = [1, 1, 1]} : vector<20x16x64xbf16> to vector<16x16x64xbf16>
    %44 = vector.shape_cast %43 : vector<16x16x64xbf16> to vector<256x64xbf16>
    %c6 = arith.constant 6 : index
    %c0_26 = arith.constant 0 : index
    %c0_27 = arith.constant 0 : index
    %45 = vector.load %arg2[%c6, %c0_26, %c0_27] : memref<25x64x64xbf16, #tpu.memory_space<vmem>>, vector<1x64x64xbf16>
    %46 = vector.shape_cast %45 : vector<1x64x64xbf16> to vector<64x64xbf16>
    %cst_28 = arith.constant dense<0.000000e+00> : vector<256x64xf32>
    %47 = tpu.matmul %44, %46, %cst_28 {dimension_numbers = #tpu.dot_dimension_numbers<[1], [0], [0], [1], [0, 0, 1, 1], [], []>} : vector<256x64xbf16>, vector<64x64xbf16>, vector<256x64xf32> -> vector<256x64xf32>
    %48 = arith.addf %42, %47 : vector<256x64xf32>
    %49 = vector.extract_strided_slice %36 {offsets = [2, 0, 0], sizes = [16, 16, 64], strides = [1, 1, 1]} : vector<20x16x64xbf16> to vector<16x16x64xbf16>
    %50 = vector.shape_cast %49 : vector<16x16x64xbf16> to vector<256x64xbf16>
    %c11 = arith.constant 11 : index
    %c0_29 = arith.constant 0 : index
    %c0_30 = arith.constant 0 : index
    %51 = vector.load %arg2[%c11, %c0_29, %c0_30] : memref<25x64x64xbf16, #tpu.memory_space<vmem>>, vector<1x64x64xbf16>
    %52 = vector.shape_cast %51 : vector<1x64x64xbf16> to vector<64x64xbf16>
    %cst_31 = arith.constant dense<0.000000e+00> : vector<256x64xf32>
    %53 = tpu.matmul %50, %52, %cst_31 {dimension_numbers = #tpu.dot_dimension_numbers<[1], [0], [0], [1], [0, 0, 1, 1], [], []>} : vector<256x64xbf16>, vector<64x64xbf16>, vector<256x64xf32> -> vector<256x64xf32>
    %54 = arith.addf %48, %53 : vector<256x64xf32>
    %55 = vector.extract_strided_slice %36 {offsets = [3, 0, 0], sizes = [16, 16, 64], strides = [1, 1, 1]} : vector<20x16x64xbf16> to vector<16x16x64xbf16>
    %56 = vector.shape_cast %55 : vector<16x16x64xbf16> to vector<256x64xbf16>
    %c16 = arith.constant 16 : index
    %c0_32 = arith.constant 0 : index
    %c0_33 = arith.constant 0 : index
    %57 = vector.load %arg2[%c16, %c0_32, %c0_33] : memref<25x64x64xbf16, #tpu.memory_space<vmem>>, vector<1x64x64xbf16>
    %58 = vector.shape_cast %57 : vector<1x64x64xbf16> to vector<64x64xbf16>
    %cst_34 = arith.constant dense<0.000000e+00> : vector<256x64xf32>
    %59 = tpu.matmul %56, %58, %cst_34 {dimension_numbers = #tpu.dot_dimension_numbers<[1], [0], [0], [1], [0, 0, 1, 1], [], []>} : vector<256x64xbf16>, vector<64x64xbf16>, vector<256x64xf32> -> vector<256x64xf32>
    %60 = arith.addf %54, %59 : vector<256x64xf32>
    %61 = vector.extract_strided_slice %36 {offsets = [4, 0, 0], sizes = [16, 16, 64], strides = [1, 1, 1]} : vector<20x16x64xbf16> to vector<16x16x64xbf16>
    %62 = vector.shape_cast %61 : vector<16x16x64xbf16> to vector<256x64xbf16>
    %c21 = arith.constant 21 : index
    %c0_35 = arith.constant 0 : index
    %c0_36 = arith.constant 0 : index
    %63 = vector.load %arg2[%c21, %c0_35, %c0_36] : memref<25x64x64xbf16, #tpu.memory_space<vmem>>, vector<1x64x64xbf16>
    %64 = vector.shape_cast %63 : vector<1x64x64xbf16> to vector<64x64xbf16>
    %cst_37 = arith.constant dense<0.000000e+00> : vector<256x64xf32>
    %65 = tpu.matmul %62, %64, %cst_37 {dimension_numbers = #tpu.dot_dimension_numbers<[1], [0], [0], [1], [0, 0, 1, 1], [], []>} : vector<256x64xbf16>, vector<64x64xbf16>, vector<256x64xf32> -> vector<256x64xf32>
    %66 = arith.addf %60, %65 : vector<256x64xf32>
    %c0_38 = arith.constant 0 : index
    %c0_39 = arith.constant 0 : index
    %c2 = arith.constant 2 : index
    %c0_40 = arith.constant 0 : index
    %67 = vector.load %arg1[%c0_38, %c0_39, %c2, %c0_40] : memref<1x20x20x64xf32, #tpu.memory_space<vmem>>, vector<1x20x16x64xf32>
    %68 = vector.shape_cast %67 : vector<1x20x16x64xf32> to vector<20x16x64xf32>
    %69 = arith.truncf %68 : vector<20x16x64xf32> to vector<20x16x64xbf16>
    %70 = vector.extract_strided_slice %69 {offsets = [0, 0, 0], sizes = [16, 16, 64], strides = [1, 1, 1]} : vector<20x16x64xbf16> to vector<16x16x64xbf16>
    %71 = vector.shape_cast %70 : vector<16x16x64xbf16> to vector<256x64xbf16>
    %c2_41 = arith.constant 2 : index
    %c0_42 = arith.constant 0 : index
    %c0_43 = arith.constant 0 : index
    %72 = vector.load %arg2[%c2_41, %c0_42, %c0_43] : memref<25x64x64xbf16, #tpu.memory_space<vmem>>, vector<1x64x64xbf16>
    %73 = vector.shape_cast %72 : vector<1x64x64xbf16> to vector<64x64xbf16>
    %cst_44 = arith.constant dense<0.000000e+00> : vector<256x64xf32>
    %74 = tpu.matmul %71, %73, %cst_44 {dimension_numbers = #tpu.dot_dimension_numbers<[1], [0], [0], [1], [0, 0, 1, 1], [], []>} : vector<256x64xbf16>, vector<64x64xbf16>, vector<256x64xf32> -> vector<256x64xf32>
    %75 = arith.addf %66, %74 : vector<256x64xf32>
    %76 = vector.extract_strided_slice %69 {offsets = [1, 0, 0], sizes = [16, 16, 64], strides = [1, 1, 1]} : vector<20x16x64xbf16> to vector<16x16x64xbf16>
    %77 = vector.shape_cast %76 : vector<16x16x64xbf16> to vector<256x64xbf16>
    %c7 = arith.constant 7 : index
    %c0_45 = arith.constant 0 : index
    %c0_46 = arith.constant 0 : index
    %78 = vector.load %arg2[%c7, %c0_45, %c0_46] : memref<25x64x64xbf16, #tpu.memory_space<vmem>>, vector<1x64x64xbf16>
    %79 = vector.shape_cast %78 : vector<1x64x64xbf16> to vector<64x64xbf16>
    %cst_47 = arith.constant dense<0.000000e+00> : vector<256x64xf32>
    %80 = tpu.matmul %77, %79, %cst_47 {dimension_numbers = #tpu.dot_dimension_numbers<[1], [0], [0], [1], [0, 0, 1, 1], [], []>} : vector<256x64xbf16>, vector<64x64xbf16>, vector<256x64xf32> -> vector<256x64xf32>
    %81 = arith.addf %75, %80 : vector<256x64xf32>
    %82 = vector.extract_strided_slice %69 {offsets = [2, 0, 0], sizes = [16, 16, 64], strides = [1, 1, 1]} : vector<20x16x64xbf16> to vector<16x16x64xbf16>
    %83 = vector.shape_cast %82 : vector<16x16x64xbf16> to vector<256x64xbf16>
    %c12 = arith.constant 12 : index
    %c0_48 = arith.constant 0 : index
    %c0_49 = arith.constant 0 : index
    %84 = vector.load %arg2[%c12, %c0_48, %c0_49] : memref<25x64x64xbf16, #tpu.memory_space<vmem>>, vector<1x64x64xbf16>
    %85 = vector.shape_cast %84 : vector<1x64x64xbf16> to vector<64x64xbf16>
    %cst_50 = arith.constant dense<0.000000e+00> : vector<256x64xf32>
    %86 = tpu.matmul %83, %85, %cst_50 {dimension_numbers = #tpu.dot_dimension_numbers<[1], [0], [0], [1], [0, 0, 1, 1], [], []>} : vector<256x64xbf16>, vector<64x64xbf16>, vector<256x64xf32> -> vector<256x64xf32>
    %87 = arith.addf %81, %86 : vector<256x64xf32>
    %88 = vector.extract_strided_slice %69 {offsets = [3, 0, 0], sizes = [16, 16, 64], strides = [1, 1, 1]} : vector<20x16x64xbf16> to vector<16x16x64xbf16>
    %89 = vector.shape_cast %88 : vector<16x16x64xbf16> to vector<256x64xbf16>
    %c17 = arith.constant 17 : index
    %c0_51 = arith.constant 0 : index
    %c0_52 = arith.constant 0 : index
    %90 = vector.load %arg2[%c17, %c0_51, %c0_52] : memref<25x64x64xbf16, #tpu.memory_space<vmem>>, vector<1x64x64xbf16>
    %91 = vector.shape_cast %90 : vector<1x64x64xbf16> to vector<64x64xbf16>
    %cst_53 = arith.constant dense<0.000000e+00> : vector<256x64xf32>
    %92 = tpu.matmul %89, %91, %cst_53 {dimension_numbers = #tpu.dot_dimension_numbers<[1], [0], [0], [1], [0, 0, 1, 1], [], []>} : vector<256x64xbf16>, vector<64x64xbf16>, vector<256x64xf32> -> vector<256x64xf32>
    %93 = arith.addf %87, %92 : vector<256x64xf32>
    %94 = vector.extract_strided_slice %69 {offsets = [4, 0, 0], sizes = [16, 16, 64], strides = [1, 1, 1]} : vector<20x16x64xbf16> to vector<16x16x64xbf16>
    %95 = vector.shape_cast %94 : vector<16x16x64xbf16> to vector<256x64xbf16>
    %c22 = arith.constant 22 : index
    %c0_54 = arith.constant 0 : index
    %c0_55 = arith.constant 0 : index
    %96 = vector.load %arg2[%c22, %c0_54, %c0_55] : memref<25x64x64xbf16, #tpu.memory_space<vmem>>, vector<1x64x64xbf16>
    %97 = vector.shape_cast %96 : vector<1x64x64xbf16> to vector<64x64xbf16>
    %cst_56 = arith.constant dense<0.000000e+00> : vector<256x64xf32>
    %98 = tpu.matmul %95, %97, %cst_56 {dimension_numbers = #tpu.dot_dimension_numbers<[1], [0], [0], [1], [0, 0, 1, 1], [], []>} : vector<256x64xbf16>, vector<64x64xbf16>, vector<256x64xf32> -> vector<256x64xf32>
    %99 = arith.addf %93, %98 : vector<256x64xf32>
    %c0_57 = arith.constant 0 : index
    %c0_58 = arith.constant 0 : index
    %c3 = arith.constant 3 : index
    %c0_59 = arith.constant 0 : index
    %100 = vector.load %arg1[%c0_57, %c0_58, %c3, %c0_59] : memref<1x20x20x64xf32, #tpu.memory_space<vmem>>, vector<1x20x16x64xf32>
    %101 = vector.shape_cast %100 : vector<1x20x16x64xf32> to vector<20x16x64xf32>
    %102 = arith.truncf %101 : vector<20x16x64xf32> to vector<20x16x64xbf16>
    %103 = vector.extract_strided_slice %102 {offsets = [0, 0, 0], sizes = [16, 16, 64], strides = [1, 1, 1]} : vector<20x16x64xbf16> to vector<16x16x64xbf16>
    %104 = vector.shape_cast %103 : vector<16x16x64xbf16> to vector<256x64xbf16>
    %c3_60 = arith.constant 3 : index
    %c0_61 = arith.constant 0 : index
    %c0_62 = arith.constant 0 : index
    %105 = vector.load %arg2[%c3_60, %c0_61, %c0_62] : memref<25x64x64xbf16, #tpu.memory_space<vmem>>, vector<1x64x64xbf16>
    %106 = vector.shape_cast %105 : vector<1x64x64xbf16> to vector<64x64xbf16>
    %cst_63 = arith.constant dense<0.000000e+00> : vector<256x64xf32>
    %107 = tpu.matmul %104, %106, %cst_63 {dimension_numbers = #tpu.dot_dimension_numbers<[1], [0], [0], [1], [0, 0, 1, 1], [], []>} : vector<256x64xbf16>, vector<64x64xbf16>, vector<256x64xf32> -> vector<256x64xf32>
    %108 = arith.addf %99, %107 : vector<256x64xf32>
    %109 = vector.extract_strided_slice %102 {offsets = [1, 0, 0], sizes = [16, 16, 64], strides = [1, 1, 1]} : vector<20x16x64xbf16> to vector<16x16x64xbf16>
    %110 = vector.shape_cast %109 : vector<16x16x64xbf16> to vector<256x64xbf16>
    %c8 = arith.constant 8 : index
    %c0_64 = arith.constant 0 : index
    %c0_65 = arith.constant 0 : index
    %111 = vector.load %arg2[%c8, %c0_64, %c0_65] : memref<25x64x64xbf16, #tpu.memory_space<vmem>>, vector<1x64x64xbf16>
    %112 = vector.shape_cast %111 : vector<1x64x64xbf16> to vector<64x64xbf16>
    %cst_66 = arith.constant dense<0.000000e+00> : vector<256x64xf32>
    %113 = tpu.matmul %110, %112, %cst_66 {dimension_numbers = #tpu.dot_dimension_numbers<[1], [0], [0], [1], [0, 0, 1, 1], [], []>} : vector<256x64xbf16>, vector<64x64xbf16>, vector<256x64xf32> -> vector<256x64xf32>
    %114 = arith.addf %108, %113 : vector<256x64xf32>
    %115 = vector.extract_strided_slice %102 {offsets = [2, 0, 0], sizes = [16, 16, 64], strides = [1, 1, 1]} : vector<20x16x64xbf16> to vector<16x16x64xbf16>
    %116 = vector.shape_cast %115 : vector<16x16x64xbf16> to vector<256x64xbf16>
    %c13 = arith.constant 13 : index
    %c0_67 = arith.constant 0 : index
    %c0_68 = arith.constant 0 : index
    %117 = vector.load %arg2[%c13, %c0_67, %c0_68] : memref<25x64x64xbf16, #tpu.memory_space<vmem>>, vector<1x64x64xbf16>
    %118 = vector.shape_cast %117 : vector<1x64x64xbf16> to vector<64x64xbf16>
    %cst_69 = arith.constant dense<0.000000e+00> : vector<256x64xf32>
    %119 = tpu.matmul %116, %118, %cst_69 {dimension_numbers = #tpu.dot_dimension_numbers<[1], [0], [0], [1], [0, 0, 1, 1], [], []>} : vector<256x64xbf16>, vector<64x64xbf16>, vector<256x64xf32> -> vector<256x64xf32>
    %120 = arith.addf %114, %119 : vector<256x64xf32>
    %121 = vector.extract_strided_slice %102 {offsets = [3, 0, 0], sizes = [16, 16, 64], strides = [1, 1, 1]} : vector<20x16x64xbf16> to vector<16x16x64xbf16>
    %122 = vector.shape_cast %121 : vector<16x16x64xbf16> to vector<256x64xbf16>
    %c18 = arith.constant 18 : index
    %c0_70 = arith.constant 0 : index
    %c0_71 = arith.constant 0 : index
    %123 = vector.load %arg2[%c18, %c0_70, %c0_71] : memref<25x64x64xbf16, #tpu.memory_space<vmem>>, vector<1x64x64xbf16>
    %124 = vector.shape_cast %123 : vector<1x64x64xbf16> to vector<64x64xbf16>
    %cst_72 = arith.constant dense<0.000000e+00> : vector<256x64xf32>
    %125 = tpu.matmul %122, %124, %cst_72 {dimension_numbers = #tpu.dot_dimension_numbers<[1], [0], [0], [1], [0, 0, 1, 1], [], []>} : vector<256x64xbf16>, vector<64x64xbf16>, vector<256x64xf32> -> vector<256x64xf32>
    %126 = arith.addf %120, %125 : vector<256x64xf32>
    %127 = vector.extract_strided_slice %102 {offsets = [4, 0, 0], sizes = [16, 16, 64], strides = [1, 1, 1]} : vector<20x16x64xbf16> to vector<16x16x64xbf16>
    %128 = vector.shape_cast %127 : vector<16x16x64xbf16> to vector<256x64xbf16>
    %c23 = arith.constant 23 : index
    %c0_73 = arith.constant 0 : index
    %c0_74 = arith.constant 0 : index
    %129 = vector.load %arg2[%c23, %c0_73, %c0_74] : memref<25x64x64xbf16, #tpu.memory_space<vmem>>, vector<1x64x64xbf16>
    %130 = vector.shape_cast %129 : vector<1x64x64xbf16> to vector<64x64xbf16>
    %cst_75 = arith.constant dense<0.000000e+00> : vector<256x64xf32>
    %131 = tpu.matmul %128, %130, %cst_75 {dimension_numbers = #tpu.dot_dimension_numbers<[1], [0], [0], [1], [0, 0, 1, 1], [], []>} : vector<256x64xbf16>, vector<64x64xbf16>, vector<256x64xf32> -> vector<256x64xf32>
    %132 = arith.addf %126, %131 : vector<256x64xf32>
    %c0_76 = arith.constant 0 : index
    %c0_77 = arith.constant 0 : index
    %c4 = arith.constant 4 : index
    %c0_78 = arith.constant 0 : index
    %133 = vector.load %arg1[%c0_76, %c0_77, %c4, %c0_78] : memref<1x20x20x64xf32, #tpu.memory_space<vmem>>, vector<1x20x16x64xf32>
    %134 = vector.shape_cast %133 : vector<1x20x16x64xf32> to vector<20x16x64xf32>
    %135 = arith.truncf %134 : vector<20x16x64xf32> to vector<20x16x64xbf16>
    %136 = vector.extract_strided_slice %135 {offsets = [0, 0, 0], sizes = [16, 16, 64], strides = [1, 1, 1]} : vector<20x16x64xbf16> to vector<16x16x64xbf16>
    %137 = vector.shape_cast %136 : vector<16x16x64xbf16> to vector<256x64xbf16>
    %c4_79 = arith.constant 4 : index
    %c0_80 = arith.constant 0 : index
    %c0_81 = arith.constant 0 : index
    %138 = vector.load %arg2[%c4_79, %c0_80, %c0_81] : memref<25x64x64xbf16, #tpu.memory_space<vmem>>, vector<1x64x64xbf16>
    %139 = vector.shape_cast %138 : vector<1x64x64xbf16> to vector<64x64xbf16>
    %cst_82 = arith.constant dense<0.000000e+00> : vector<256x64xf32>
    %140 = tpu.matmul %137, %139, %cst_82 {dimension_numbers = #tpu.dot_dimension_numbers<[1], [0], [0], [1], [0, 0, 1, 1], [], []>} : vector<256x64xbf16>, vector<64x64xbf16>, vector<256x64xf32> -> vector<256x64xf32>
    %141 = arith.addf %132, %140 : vector<256x64xf32>
    %142 = vector.extract_strided_slice %135 {offsets = [1, 0, 0], sizes = [16, 16, 64], strides = [1, 1, 1]} : vector<20x16x64xbf16> to vector<16x16x64xbf16>
    %143 = vector.shape_cast %142 : vector<16x16x64xbf16> to vector<256x64xbf16>
    %c9 = arith.constant 9 : index
    %c0_83 = arith.constant 0 : index
    %c0_84 = arith.constant 0 : index
    %144 = vector.load %arg2[%c9, %c0_83, %c0_84] : memref<25x64x64xbf16, #tpu.memory_space<vmem>>, vector<1x64x64xbf16>
    %145 = vector.shape_cast %144 : vector<1x64x64xbf16> to vector<64x64xbf16>
    %cst_85 = arith.constant dense<0.000000e+00> : vector<256x64xf32>
    %146 = tpu.matmul %143, %145, %cst_85 {dimension_numbers = #tpu.dot_dimension_numbers<[1], [0], [0], [1], [0, 0, 1, 1], [], []>} : vector<256x64xbf16>, vector<64x64xbf16>, vector<256x64xf32> -> vector<256x64xf32>
    %147 = arith.addf %141, %146 : vector<256x64xf32>
    %148 = vector.extract_strided_slice %135 {offsets = [2, 0, 0], sizes = [16, 16, 64], strides = [1, 1, 1]} : vector<20x16x64xbf16> to vector<16x16x64xbf16>
    %149 = vector.shape_cast %148 : vector<16x16x64xbf16> to vector<256x64xbf16>
    %c14 = arith.constant 14 : index
    %c0_86 = arith.constant 0 : index
    %c0_87 = arith.constant 0 : index
    %150 = vector.load %arg2[%c14, %c0_86, %c0_87] : memref<25x64x64xbf16, #tpu.memory_space<vmem>>, vector<1x64x64xbf16>
    %151 = vector.shape_cast %150 : vector<1x64x64xbf16> to vector<64x64xbf16>
    %cst_88 = arith.constant dense<0.000000e+00> : vector<256x64xf32>
    %152 = tpu.matmul %149, %151, %cst_88 {dimension_numbers = #tpu.dot_dimension_numbers<[1], [0], [0], [1], [0, 0, 1, 1], [], []>} : vector<256x64xbf16>, vector<64x64xbf16>, vector<256x64xf32> -> vector<256x64xf32>
    %153 = arith.addf %147, %152 : vector<256x64xf32>
    %154 = vector.extract_strided_slice %135 {offsets = [3, 0, 0], sizes = [16, 16, 64], strides = [1, 1, 1]} : vector<20x16x64xbf16> to vector<16x16x64xbf16>
    %155 = vector.shape_cast %154 : vector<16x16x64xbf16> to vector<256x64xbf16>
    %c19 = arith.constant 19 : index
    %c0_89 = arith.constant 0 : index
    %c0_90 = arith.constant 0 : index
    %156 = vector.load %arg2[%c19, %c0_89, %c0_90] : memref<25x64x64xbf16, #tpu.memory_space<vmem>>, vector<1x64x64xbf16>
    %157 = vector.shape_cast %156 : vector<1x64x64xbf16> to vector<64x64xbf16>
    %cst_91 = arith.constant dense<0.000000e+00> : vector<256x64xf32>
    %158 = tpu.matmul %155, %157, %cst_91 {dimension_numbers = #tpu.dot_dimension_numbers<[1], [0], [0], [1], [0, 0, 1, 1], [], []>} : vector<256x64xbf16>, vector<64x64xbf16>, vector<256x64xf32> -> vector<256x64xf32>
    %159 = arith.addf %153, %158 : vector<256x64xf32>
    %160 = vector.extract_strided_slice %135 {offsets = [4, 0, 0], sizes = [16, 16, 64], strides = [1, 1, 1]} : vector<20x16x64xbf16> to vector<16x16x64xbf16>
    %161 = vector.shape_cast %160 : vector<16x16x64xbf16> to vector<256x64xbf16>
    %c24 = arith.constant 24 : index
    %c0_92 = arith.constant 0 : index
    %c0_93 = arith.constant 0 : index
    %162 = vector.load %arg2[%c24, %c0_92, %c0_93] : memref<25x64x64xbf16, #tpu.memory_space<vmem>>, vector<1x64x64xbf16>
    %163 = vector.shape_cast %162 : vector<1x64x64xbf16> to vector<64x64xbf16>
    %cst_94 = arith.constant dense<0.000000e+00> : vector<256x64xf32>
    %164 = tpu.matmul %161, %163, %cst_94 {dimension_numbers = #tpu.dot_dimension_numbers<[1], [0], [0], [1], [0, 0, 1, 1], [], []>} : vector<256x64xbf16>, vector<64x64xbf16>, vector<256x64xf32> -> vector<256x64xf32>
    %165 = arith.addf %159, %164 : vector<256x64xf32>
    %c0_95 = arith.constant 0 : index
    %c0_96 = arith.constant 0 : index
    %166 = vector.load %arg3[%c0_95, %c0_96] : memref<1x64xf32, #tpu.memory_space<vmem>>, vector<1x64xf32>
    %167 = vector.broadcast %166 : vector<1x64xf32> to vector<256x64xf32>
    %168 = arith.addf %165, %167 : vector<256x64xf32>
    %cst_97 = arith.constant 0.000000e+00 : f32
    %169 = vector.broadcast %cst_97 : f32 to vector<256x64xf32>
    %170 = arith.maximumf %168, %169 : vector<256x64xf32>
    %171 = arith.mulf %170, %170 : vector<256x64xf32>
    %c0_98 = arith.constant 0 : index
    %c0_99 = arith.constant 0 : index
    %172 = vector.load %arg4[%c0_98, %c0_99] : memref<64x64xf32, #tpu.memory_space<vmem>>, vector<64x64xf32>
    %cst_100 = arith.constant dense<0.000000e+00> : vector<256x64xf32>
    %173 = tpu.matmul %171, %172, %cst_100 {dimension_numbers = #tpu.dot_dimension_numbers<[1], [0], [0], [1], [0, 0, 1, 1], [], []>} : vector<256x64xf32>, vector<64x64xf32>, vector<256x64xf32> -> vector<256x64xf32>
    %cst_101 = arith.constant 2.77777781E-5 : f32
    %174 = vector.broadcast %cst_101 : f32 to vector<256x64xf32>
    %175 = arith.mulf %174, %173 : vector<256x64xf32>
    %cst_102 = arith.constant 1.000000e+00 : f32
    %176 = vector.broadcast %cst_102 : f32 to vector<256x64xf32>
    %177 = arith.addf %176, %175 : vector<256x64xf32>
    %178 = math.log %177 : vector<256x64xf32>
    %cst_103 = arith.constant -7.500000e-01 : f32
    %179 = vector.broadcast %cst_103 : f32 to vector<256x64xf32>
    %180 = arith.mulf %179, %178 : vector<256x64xf32>
    %181 = math.exp %180 : vector<256x64xf32>
    %182 = arith.mulf %170, %181 : vector<256x64xf32>
    %183 = vector.shape_cast %182 : vector<256x64xf32> to vector<16x16x64xf32>
    %cst_104 = arith.constant 0.000000e+00 : f32
    %184 = vector.broadcast %cst_104 : f32 to vector<1x16x64xf32>
    %185 = tpu.concatenate %184, %183, %184 in 0 : vector<1x16x64xf32>, vector<16x16x64xf32>, vector<1x16x64xf32> -> vector<18x16x64xf32>
    %186 = vector.extract_strided_slice %185 {offsets = [0, 0, 0], sizes = [16, 16, 64], strides = [1, 1, 1]} : vector<18x16x64xf32> to vector<16x16x64xf32>
    %187 = vector.extract_strided_slice %185 {offsets = [1, 0, 0], sizes = [16, 16, 64], strides = [1, 1, 1]} : vector<18x16x64xf32> to vector<16x16x64xf32>
    %188 = arith.maximumf %186, %187 : vector<16x16x64xf32>
    %189 = vector.extract_strided_slice %185 {offsets = [2, 0, 0], sizes = [16, 16, 64], strides = [1, 1, 1]} : vector<18x16x64xf32> to vector<16x16x64xf32>
    %190 = arith.maximumf %188, %189 : vector<16x16x64xf32>
    %191 = vector.shape_cast %190 : vector<16x16x64xf32> to vector<8x2x16x64xf32>
    %192 = vector.extract_strided_slice %191 {offsets = [0, 0, 0, 0], sizes = [8, 1, 16, 64], strides = [1, 1, 1, 1]} : vector<8x2x16x64xf32> to vector<8x1x16x64xf32>
    %193 = vector.shape_cast %192 : vector<8x1x16x64xf32> to vector<8x16x64xf32>
    %194 = vector.shape_cast %193 : vector<8x16x64xf32> to vector<128x64xf32>
    %c0_105 = arith.constant 0 : index
    %c0_106 = arith.constant 0 : index
    %c0_107 = arith.constant 0 : index
    %195 = vector.load %arg5[%c0_105, %c0_106, %c0_107] : memref<3x64x128xf32, #tpu.memory_space<vmem>>, vector<1x64x128xf32>
    %196 = vector.shape_cast %195 : vector<1x64x128xf32> to vector<64x128xf32>
    %cst_108 = arith.constant dense<0.000000e+00> : vector<64x64xf32>
    %197 = tpu.matmul %196, %194, %cst_108 {dimension_numbers = #tpu.dot_dimension_numbers<[1], [0], [0], [1], [0, 0, 1, 1], [], []>} : vector<64x128xf32>, vector<128x64xf32>, vector<64x64xf32> -> vector<64x64xf32>
    %c1_109 = arith.constant 1 : index
    %c0_110 = arith.constant 0 : index
    %c0_111 = arith.constant 0 : index
    %198 = vector.load %arg5[%c1_109, %c0_110, %c0_111] : memref<3x64x128xf32, #tpu.memory_space<vmem>>, vector<1x64x128xf32>
    %199 = vector.shape_cast %198 : vector<1x64x128xf32> to vector<64x128xf32>
    %cst_112 = arith.constant dense<0.000000e+00> : vector<64x64xf32>
    %200 = tpu.matmul %199, %194, %cst_112 {dimension_numbers = #tpu.dot_dimension_numbers<[1], [0], [0], [1], [0, 0, 1, 1], [], []>} : vector<64x128xf32>, vector<128x64xf32>, vector<64x64xf32> -> vector<64x64xf32>
    %201 = arith.maximumf %197, %200 : vector<64x64xf32>
    %c2_113 = arith.constant 2 : index
    %c0_114 = arith.constant 0 : index
    %c0_115 = arith.constant 0 : index
    %202 = vector.load %arg5[%c2_113, %c0_114, %c0_115] : memref<3x64x128xf32, #tpu.memory_space<vmem>>, vector<1x64x128xf32>
    %203 = vector.shape_cast %202 : vector<1x64x128xf32> to vector<64x128xf32>
    %cst_116 = arith.constant dense<0.000000e+00> : vector<64x64xf32>
    %204 = tpu.matmul %203, %194, %cst_116 {dimension_numbers = #tpu.dot_dimension_numbers<[1], [0], [0], [1], [0, 0, 1, 1], [], []>} : vector<64x128xf32>, vector<128x64xf32>, vector<64x64xf32> -> vector<64x64xf32>
    %205 = arith.maximumf %201, %204 : vector<64x64xf32>
    %206 = arith.truncf %205 : vector<64x64xf32> to vector<64x64xbf16>
    %c0_117 = arith.constant 0 : index
    %c0_118 = arith.constant 0 : index
    %c0_119 = arith.constant 0 : index
    %207 = vector.load %arg6[%c0_117, %c0_118, %c0_119] : memref<1x64x64xbf16, #tpu.memory_space<vmem>>, vector<1x64x64xbf16>
    %208 = vector.shape_cast %207 : vector<1x64x64xbf16> to vector<64x64xbf16>
    %209 = vector.shape_cast %206 : vector<64x64xbf16> to vector<1x64x64xbf16>
    tpu.vector_store %arg6[%c0_117, %c0_118, %c0_119], %209 {strides = array<i32>} : memref<1x64x64xbf16, #tpu.memory_space<vmem>>, vector<1x64x64xbf16>,
    return
  }
  func.func @transform_0(%arg0: i32) -> (i32, i32, i32, i32) {
    %c0_i32 = arith.constant 0 : i32
    %c0_i32_0 = arith.constant 0 : i32
    %c0_i32_1 = arith.constant 0 : i32
    %c0_i32_2 = arith.constant 0 : i32
    return %arg0, %c0_i32, %c0_i32_0, %c0_i32_1 : i32, i32, i32, i32
  }
  func.func @transform_1(%arg0: i32) -> (i32, i32, i32) {
    %c0_i32 = arith.constant 0 : i32
    %c0_i32_0 = arith.constant 0 : i32
    %c0_i32_1 = arith.constant 0 : i32
    %c0_i32_2 = arith.constant 0 : i32
    return %c0_i32, %c0_i32_0, %c0_i32_1 : i32, i32, i32
  }
  func.func @transform_2(%arg0: i32) -> (i32, i32) {
    %c0_i32 = arith.constant 0 : i32
    %c0_i32_0 = arith.constant 0 : i32
    %c0_i32_1 = arith.constant 0 : i32
    return %c0_i32, %c0_i32_0 : i32, i32
  }
  func.func @transform_3(%arg0: i32) -> (i32, i32) {
    %c0_i32 = arith.constant 0 : i32
    %c0_i32_0 = arith.constant 0 : i32
    %c0_i32_1 = arith.constant 0 : i32
    return %c0_i32, %c0_i32_0 : i32, i32
  }
  func.func @transform_4(%arg0: i32) -> (i32, i32, i32) {
    %c0_i32 = arith.constant 0 : i32
    %c0_i32_0 = arith.constant 0 : i32
    %c0_i32_1 = arith.constant 0 : i32
    %c0_i32_2 = arith.constant 0 : i32
    return %c0_i32, %c0_i32_0, %c0_i32_1 : i32, i32, i32
  }
  func.func @transform_5(%arg0: i32) -> (i32, i32, i32) {
    %c0_i32 = arith.constant 0 : i32
    %c0_i32_0 = arith.constant 0 : i32
    %c0_i32_1 = arith.constant 0 : i32
    return %arg0, %c0_i32, %c0_i32_0 : i32, i32, i32
  }
}

module attributes {stable_mosaic.version = 11 : i64} {
  func.func @_fc_kernel(%arg0: i32, %arg1: memref<2x4096xbf16, #tpu.memory_space<vmem>>, %arg2: memref<4096x384xbf16, #tpu.memory_space<vmem>>, %arg3: memref<1x384xf32, #tpu.memory_space<vmem>>, %arg4: memref<384x192xbf16, #tpu.memory_space<vmem>>, %arg5: memref<1x192xf32, #tpu.memory_space<vmem>>, %arg6: memref<192x128xbf16, #tpu.memory_space<vmem>>, %arg7: memref<1x128xf32, #tpu.memory_space<vmem>>, %arg8: memref<2x128xf32, #tpu.memory_space<vmem>>) attributes {dimension_semantics = [#tpu.dimension_semantics<parallel>], iteration_bounds = array<i64: 1>, scalar_prefetch = 0 : i64, scratch_operands = 0 : i64, tpu.core_type = #tpu.core_type<tc>, window_params = [{transform_indices = @transform_0, window_bounds = array<i64: 2, 4096>}, {pipeline_mode = #tpu.pipeline_mode<synchronous>, transform_indices = @transform_1, window_bounds = array<i64: 4096, 384>}, {pipeline_mode = #tpu.pipeline_mode<synchronous>, transform_indices = @transform_2, window_bounds = array<i64: 1, 384>}, {pipeline_mode = #tpu.pipeline_mode<synchronous>, transform_indices = @transform_3, window_bounds = array<i64: 384, 192>}, {pipeline_mode = #tpu.pipeline_mode<synchronous>, transform_indices = @transform_4, window_bounds = array<i64: 1, 192>}, {pipeline_mode = #tpu.pipeline_mode<synchronous>, transform_indices = @transform_5, window_bounds = array<i64: 192, 128>}, {pipeline_mode = #tpu.pipeline_mode<synchronous>, transform_indices = @transform_6, window_bounds = array<i64: 1, 128>}, {transform_indices = @transform_7, window_bounds = array<i64: 2, 128>}]} {
    %c0 = arith.constant 0 : index
    %c0_0 = arith.constant 0 : index
    %0 = vector.load %arg1[%c0, %c0_0] : memref<2x4096xbf16, #tpu.memory_space<vmem>>, vector<2x4096xbf16>
    %c0_1 = arith.constant 0 : index
    %c0_2 = arith.constant 0 : index
    %1 = vector.load %arg2[%c0_1, %c0_2] : memref<4096x384xbf16, #tpu.memory_space<vmem>>, vector<4096x384xbf16>
    %cst = arith.constant dense<0.000000e+00> : vector<2x384xf32>
    %2 = tpu.matmul %0, %1, %cst {dimension_numbers = #tpu.dot_dimension_numbers<[1], [0], [0], [1], [0, 0, 1, 1], [], []>} : vector<2x4096xbf16>, vector<4096x384xbf16>, vector<2x384xf32> -> vector<2x384xf32>
    %c0_3 = arith.constant 0 : index
    %c0_4 = arith.constant 0 : index
    %3 = vector.load %arg3[%c0_3, %c0_4] : memref<1x384xf32, #tpu.memory_space<vmem>>, vector<1x384xf32>
    %4 = vector.broadcast %3 : vector<1x384xf32> to vector<2x384xf32>
    %5 = arith.addf %2, %4 : vector<2x384xf32>
    %cst_5 = arith.constant 0.000000e+00 : f32
    %6 = vector.broadcast %cst_5 : f32 to vector<2x384xf32>
    %7 = arith.maximumf %5, %6 : vector<2x384xf32>
    %8 = arith.truncf %7 : vector<2x384xf32> to vector<2x384xbf16>
    %c0_6 = arith.constant 0 : index
    %c0_7 = arith.constant 0 : index
    %9 = vector.load %arg4[%c0_6, %c0_7] : memref<384x192xbf16, #tpu.memory_space<vmem>>, vector<384x192xbf16>
    %cst_8 = arith.constant dense<0.000000e+00> : vector<2x192xf32>
    %10 = tpu.matmul %8, %9, %cst_8 {dimension_numbers = #tpu.dot_dimension_numbers<[1], [0], [0], [1], [0, 0, 1, 1], [], []>} : vector<2x384xbf16>, vector<384x192xbf16>, vector<2x192xf32> -> vector<2x192xf32>
    %c0_9 = arith.constant 0 : index
    %c0_10 = arith.constant 0 : index
    %11 = vector.load %arg5[%c0_9, %c0_10] : memref<1x192xf32, #tpu.memory_space<vmem>>, vector<1x192xf32>
    %12 = vector.broadcast %11 : vector<1x192xf32> to vector<2x192xf32>
    %13 = arith.addf %10, %12 : vector<2x192xf32>
    %cst_11 = arith.constant 0.000000e+00 : f32
    %14 = vector.broadcast %cst_11 : f32 to vector<2x192xf32>
    %15 = arith.maximumf %13, %14 : vector<2x192xf32>
    %16 = arith.truncf %15 : vector<2x192xf32> to vector<2x192xbf16>
    %c0_12 = arith.constant 0 : index
    %c0_13 = arith.constant 0 : index
    %17 = vector.load %arg6[%c0_12, %c0_13] : memref<192x128xbf16, #tpu.memory_space<vmem>>, vector<192x128xbf16>
    %cst_14 = arith.constant dense<0.000000e+00> : vector<2x128xf32>
    %18 = tpu.matmul %16, %17, %cst_14 {dimension_numbers = #tpu.dot_dimension_numbers<[1], [0], [0], [1], [0, 0, 1, 1], [], []>} : vector<2x192xbf16>, vector<192x128xbf16>, vector<2x128xf32> -> vector<2x128xf32>
    %c0_15 = arith.constant 0 : index
    %c0_16 = arith.constant 0 : index
    %19 = vector.load %arg7[%c0_15, %c0_16] : memref<1x128xf32, #tpu.memory_space<vmem>>, vector<1x128xf32>
    %20 = vector.broadcast %19 : vector<1x128xf32> to vector<2x128xf32>
    %21 = arith.addf %18, %20 : vector<2x128xf32>
    %c0_17 = arith.constant 0 : index
    %c0_18 = arith.constant 0 : index
    %22 = vector.load %arg8[%c0_17, %c0_18] : memref<2x128xf32, #tpu.memory_space<vmem>>, vector<2x128xf32>
    tpu.vector_store %arg8[%c0_17, %c0_18], %21 {strides = array<i32>} : memref<2x128xf32, #tpu.memory_space<vmem>>, vector<2x128xf32>,
    return
  }
  func.func @transform_0(%arg0: i32) -> (i32, i32) {
    %c0_i32 = arith.constant 0 : i32
    %c0_i32_0 = arith.constant 0 : i32
    return %arg0, %c0_i32 : i32, i32
  }
  func.func @transform_1(%arg0: i32) -> (i32, i32) {
    %c0_i32 = arith.constant 0 : i32
    %c0_i32_0 = arith.constant 0 : i32
    %c0_i32_1 = arith.constant 0 : i32
    return %c0_i32, %c0_i32_0 : i32, i32
  }
  func.func @transform_2(%arg0: i32) -> (i32, i32) {
    %c0_i32 = arith.constant 0 : i32
    %c0_i32_0 = arith.constant 0 : i32
    %c0_i32_1 = arith.constant 0 : i32
    return %c0_i32, %c0_i32_0 : i32, i32
  }
  func.func @transform_3(%arg0: i32) -> (i32, i32) {
    %c0_i32 = arith.constant 0 : i32
    %c0_i32_0 = arith.constant 0 : i32
    %c0_i32_1 = arith.constant 0 : i32
    return %c0_i32, %c0_i32_0 : i32, i32
  }
  func.func @transform_4(%arg0: i32) -> (i32, i32) {
    %c0_i32 = arith.constant 0 : i32
    %c0_i32_0 = arith.constant 0 : i32
    %c0_i32_1 = arith.constant 0 : i32
    return %c0_i32, %c0_i32_0 : i32, i32
  }
  func.func @transform_5(%arg0: i32) -> (i32, i32) {
    %c0_i32 = arith.constant 0 : i32
    %c0_i32_0 = arith.constant 0 : i32
    %c0_i32_1 = arith.constant 0 : i32
    return %c0_i32, %c0_i32_0 : i32, i32
  }
  func.func @transform_6(%arg0: i32) -> (i32, i32) {
    %c0_i32 = arith.constant 0 : i32
    %c0_i32_0 = arith.constant 0 : i32
    %c0_i32_1 = arith.constant 0 : i32
    return %c0_i32, %c0_i32_0 : i32, i32
  }
  func.func @transform_7(%arg0: i32) -> (i32, i32) {
    %c0_i32 = arith.constant 0 : i32
    %c0_i32_0 = arith.constant 0 : i32
    return %arg0, %c0_i32 : i32, i32
  }
}

</mosaic_0001>

<bundles_post_ra>
// kernel: alexnet_forward.3
= control target key start
LH: loop header
LB: loop body
LE: loop exit
PB: predicated region body
PF: predicated region fallthrough
CT: control target
= control target key end

     0   :  { %s5716_s18 = smov 0   ;;  %s7998_s0 = inlined_call_operand.vmem [shape: bf16[2,1024,80], index: 0, kind: input, shape index: {}]   ;;  %s7999_s1 = inlined_call_operand.vmem [shape: bf16[80,64], index: 1, kind: input, shape index: {}]   ;;  %s8000_s2 = inlined_call_operand.vmem [shape: f32[1,64], index: 2, kind: input, shape index: {}]   ;;  %s8001_s3 = inlined_call_operand.vmem [shape: f32[64,64], index: 3, kind: input, shape index: {}]   ;;  %s8002_s4 = inlined_call_operand.vmem [shape: f32[3,256,512], index: 4, kind: input, shape index: {}]   ;;  %s8003_s5 = inlined_call_operand.vmem [shape: f32[2,16,16,64], index: 5, kind: output, shape index: {}]  }
   0x1 LB: > { %s4220_s19 = sadd.s32 4294967295, %s5683_s18   ;;  %p4224_p0 = scmp.ge.s32.totalorder %s5683_s18, 1  ;;  %s5683_s18 = sphi %s5716_s18, %s15_s18  }
   0x2   : > { %p187_p1 = scmp.lt.s32.totalorder %s5683_s18, 3 }
   0x4   : > { %p188_p2 = pnand %p4224_p0, %p187_p1 }
   0x6   : > { %191 = sbr.rel (%p188_p2) target bundleno = 1357 (0x54d), region = 40 }
   0xd   : > { %v5479_v0 = vld [vmem:[%s7999_s1] sm:$0xff]   ;;  %p215_p3 = scmp.lt.s32.totalorder %s4220_s19, 1  ;;  %v5480_v1 = vld [vmem:[%s7999_s1 + $0x8] sm:$0xff]   ;;  %v5481_v2 = vld [vmem:[%s7999_s1 + $0x10] sm:$0xff]   ;;  %vm721_vm0 = vcmask 654336   ;;  %v5685_v34 = vmov 0.0|0.0  }
   0xe   : > { %4764 = vmatprep.subr.bf16.mxu0 %v5479_v0  ;;  %v5482_v4 = vld [vmem:[%s7999_s1 + $0x18] sm:$0xff]   ;;  %v5483_v5 = vld [vmem:[%s7999_s1 + $0x20] sm:$0xff]   ;;  %4966 = vmatprep.subr.bf16.mxu1 %v5685_v34  ;;  %vm3555_vm1 = vcmask 523264  }
   0xf   : > { %s8067_s19 = smov (!%p215_p3, %s4220_s19), 1  ;;  %4765 = vmatpush3.bf16.msra.mxu0 %v5479_v0  ;;  %v5862_v62 = vld [vmem:[%s8000_s2] ss:$0 sm:$0xff] }
  0x10   : > { %4766 = vmatprep.subr.bf16.mxu0 %v5480_v1  ;;  %s4653_s26 = sshll.u32 %s8067_s19, 9  ;;  %s4654_s15 = sshll.u32 %s8067_s19, 8 }
  0x11   : > { %s5739_s29 = scalar_lea.vmem %s7998_s0, %s4653_s26  ;;  %s7897_s20 = scalar_lea.vmem %s8003_s5, %s4654_s15 }
  0x12   : > { %v5484_v3 = vld [vmem:[%s5739_s29] sm:$0xff]   ;;  %v5485_v6 = vld [vmem:[%s5739_s29 + $0x8] sm:$0xff]   ;;  %v5486_v7 = vld [vmem:[%s5739_s29 + $0x10] sm:$0xff]  }
  0x13   : > { %4767 = vmatpush3.bf16.msra.mxu0 %v5480_v1  ;;  %4774 = vmatprep.mubr.msk.bf16.mxu0 %vm721_vm0, %v5484_v3  ;;  %v5487_v8 = vld [vmem:[%s5739_s29 + $0x18] sm:$0xff]   ;;  %v5488_v9 = vld [vmem:[%s5739_s29 + $0x20] sm:$0xff]   ;;  %v5489_v10 = vld [vmem:[%s5739_s29 + $0x28] sm:$0xff]  }
  0x14   : > { %4768 = vmatprep.subr.bf16.mxu0 %v5481_v2  ;;  %v5490_v11 = vld [vmem:[%s5739_s29 + $0x30] sm:$0xff]   ;;  %v5491_v12 = vld [vmem:[%s5739_s29 + $0x38] sm:$0xff]   ;;  %v5492_v13 = vld [vmem:[%s5739_s29 + $0x40] sm:$0xff]  }
  0x15   : > { %v5493_v14 = vld [vmem:[%s5739_s29 + $0x48] sm:$0xff]   ;;  %v5494_v15 = vld [vmem:[%s5739_s29 + $0x50] sm:$0xff]   ;;  %v5495_v16 = vld [vmem:[%s5739_s29 + $0x58] sm:$0xff]  }
  0x16   : > { %v5496_v17 = vld [vmem:[%s5739_s29 + $0x60] sm:$0xff]   ;;  %v5497_v18 = vld [vmem:[%s5739_s29 + $0x68] sm:$0xff]   ;;  %v5498_v19 = vld [vmem:[%s5739_s29 + $0x70] sm:$0xff]  }
  0x17   : > { %4769 = vmatpush3.bf16.msra.mxu0 %v5481_v2  ;;  %v5499_v20 = vld [vmem:[%s5739_s29 + $0x78] sm:$0xff]   ;;  %v5500_v21 = vld [vmem:[%s5739_s29 + $0x80] sm:$0xff]   ;;  %v5501_v22 = vld [vmem:[%s5739_s29 + $0x88] sm:$0xff]  }
  0x18   : > { %4770 = vmatprep.subr.bf16.mxu0 %v5482_v4  ;;  %v5502_v23 = vld [vmem:[%s5739_s29 + $0x90] sm:$0xff]   ;;  %v5503_v24 = vld [vmem:[%s5739_s29 + $0x98] sm:$0xff]   ;;  %v5504_v25 = vld [vmem:[%s5739_s29 + $0xa0] sm:$0xff]  }
  0x19   : > { %v5505_v26 = vld [vmem:[%s5739_s29 + $0xa8] sm:$0xff]   ;;  %v5506_v27 = vld [vmem:[%s5739_s29 + $0xb0] sm:$0xff]   ;;  %v5507_v28 = vld [vmem:[%s5739_s29 + $0xb8] sm:$0xff]  }
  0x1a   : > { %v5508_v29 = vld [vmem:[%s5739_s29 + $0xc0] sm:$0xff]   ;;  %v5509_v30 = vld [vmem:[%s5739_s29 + $0xc8] sm:$0xff]   ;;  %v5510_v31 = vld [vmem:[%s5739_s29 + $0xd0] sm:$0xff]  }
  0x1b   : > { %4771 = vmatpush3.bf16.msra.mxu0 %v5482_v4  ;;  %v5511_v32 = vld [vmem:[%s5739_s29 + $0xd8] sm:$0xff]   ;;  %v5512_v33 = vld [vmem:[%s5739_s29 + $0xe0] sm:$0xff]   ;;  %v5513_v35 = vld [vmem:[%s5739_s29 + $0xe8] sm:$0xff]  }
  0x1c   : > { %4772 = vmatprep.subr.bf16.mxu0 %v5483_v5  ;;  %v5514_v36 = vld [vmem:[%s5739_s29 + $0xf0] sm:$0xff]   ;;  %v5515_v37 = vld [vmem:[%s5739_s29 + $0xf8] sm:$0xff]   ;;  %v5516_v38 = vld [vmem:[%s5739_s29 + $0x100] sm:$0xff]  }
  0x1d   : > { %v5517_v39 = vld [vmem:[%s5739_s29 + $0x108] sm:$0xff]   ;;  %v5518_v40 = vld [vmem:[%s5739_s29 + $0x110] sm:$0xff]   ;;  %v5519_v41 = vld [vmem:[%s5739_s29 + $0x118] sm:$0xff]  }
  0x1e   : > { %v5520_v42 = vld [vmem:[%s5739_s29 + $0x120] sm:$0xff]   ;;  %v5521_v43 = vld [vmem:[%s5739_s29 + $0x128] sm:$0xff]   ;;  %v5522_v44 = vld [vmem:[%s5739_s29 + $0x130] sm:$0xff]  }
  0x1f   : > { %4773 = vmatpush3.bf16.msra.mxu0 %v5483_v5  ;;  %v5523_v45 = vld [vmem:[%s5739_s29 + $0x138] sm:$0xff]   ;;  %v5524_v46 = vld [vmem:[%s5739_s29 + $0x140] sm:$0xff]   ;;  %v5525_v47 = vld [vmem:[%s5739_s29 + $0x148] sm:$0xff]  }
  0x20   : > { %5062 = vmatprep.subr.bf16.mxu0 %v5685_v34  ;;  %v5526_v48 = vld [vmem:[%s5739_s29 + $0x150] sm:$0xff]   ;;  %v5527_v49 = vld [vmem:[%s5739_s29 + $0x158] sm:$0xff]   ;;  %v5528_v50 = vld [vmem:[%s5739_s29 + $0x160] sm:$0xff]  }
  0x21   : > { %v5529_v51 = vld [vmem:[%s5739_s29 + $0x168] sm:$0xff]   ;;  %v5530_v52 = vld [vmem:[%s5739_s29 + $0x170] sm:$0xff]   ;;  %v5531_v53 = vld [vmem:[%s5739_s29 + $0x178] sm:$0xff]  }
  0x22   : > { %4775 = vmatmul.mubr.msk.bf16.vlgmr.msra.gmra.mrb[0].mxu0 %vm721_vm0, %v5485_v6  ;;  %v5532_v54 = vld [vmem:[%s5739_s29 + $0x180] sm:$0xff]   ;;  %v5533_v55 = vld [vmem:[%s5739_s29 + $0x188] sm:$0xff]   ;;  %v5534_v56 = vld [vmem:[%s5739_s29 + $0x190] sm:$0xff]  }
  0x23   : > { %4778 = vmatprep.mubr.msk.bf16.mxu0 %vm721_vm0, %v5486_v7  ;;  %v5535_v57 = vld [vmem:[%s5739_s29 + $0x198] sm:$0xff]   ;;  %v5536_v58 = vld [vmem:[%s5739_s29 + $0x1a0] sm:$0xff]   ;;  %v5537_v59 = vld [vmem:[%s5739_s29 + $0x1a8] sm:$0xff]  }
  0x24   : > { %v5538_v60 = vld [vmem:[%s5739_s29 + $0x1b0] sm:$0xff]   ;;  %v5539_v0 = vld [vmem:[%s5739_s29 + $0x1b8] sm:$0xff]   ;;  %v5540_v2 = vld [vmem:[%s5739_s29 + $0x1c0] sm:$0xff]  }
  0x2a   : > { %4779 = vmatmul.mubr.msk.bf16.gmra.mrb[4].mxu0 %vm721_vm0, %v5487_v8 }
  0x2b   : > { %4782 = vmatprep.mubr.msk.bf16.mxu0 %vm721_vm0, %v5488_v9 }
  0x32   : > { %4783 = vmatmul.mubr.msk.bf16.gmra.mrb[8].mxu0 %vm721_vm0, %v5489_v10 }
  0x33   : > { %4786 = vmatprep.mubr.msk.bf16.mxu0 %vm721_vm0, %v5490_v11 }
  0x3a   : > { %4787 = vmatmul.mubr.msk.bf16.gmra.mrb[12].mxu0 %vm721_vm0, %v5491_v12 }
  0x3b   : > { %4790 = vmatprep.mubr.msk.bf16.mxu0 %vm721_vm0, %v5492_v13 }
  0x42   : > { %4791 = vmatmul.mubr.msk.bf16.gmra.mrb[16].mxu0 %vm721_vm0, %v5493_v14  ;;  %v5541_v14 = vld [vmem:[%s5739_s29 + $0x1c8] sm:$0xff]  }
  0x43   : > { %4794 = vmatprep.mubr.msk.bf16.mxu0 %vm721_vm0, %v5494_v15  ;;  %v1716_v15 = vld [vmem:[%s8002_s4 + $0x8] sm:$0xff] }
  0x44   : > { %1907 = vmatprep.mubr.f32.mxu1 %v1716_v15 }
  0x4a   : > { %4795 = vmatmul.mubr.msk.bf16.gmra.mrb[20].mxu0 %vm721_vm0, %v5495_v16 }
  0x4b   : > { %4798 = vmatprep.mubr.msk.bf16.mxu0 %vm721_vm0, %v5496_v17 }
  0x52   : > { %4799 = vmatmul.mubr.msk.bf16.gmra.mrb[24].mxu0 %vm721_vm0, %v5497_v18 }
  0x53   : > { %4802 = vmatprep.mubr.msk.bf16.mxu0 %vm721_vm0, %v5498_v19  ;;  %v5542_v19 = vld [vmem:[%s5739_s29 + $0x1d0] sm:$0xff]  }
  0x5a   : > { %4803 = vmatmul.mubr.msk.bf16.gmra.mrb[28].mxu0 %vm721_vm0, %v5499_v20 }
  0x5b   : > { %4806 = vmatprep.mubr.msk.bf16.mxu0 %vm721_vm0, %v5500_v21 }
  0x62   : > { %4807 = vmatmul.mubr.msk.bf16.gmra.mrb[32].mxu0 %vm721_vm0, %v5501_v22 }
  0x63   : > { %4810 = vmatprep.mubr.msk.bf16.mxu0 %vm721_vm0, %v5502_v23 }
  0x6a   : > { %4811 = vmatmul.mubr.msk.bf16.gmra.mrb[36].mxu0 %vm721_vm0, %v5503_v24 }
  0x6b   : > { %4814 = vmatprep.mubr.msk.bf16.mxu0 %vm721_vm0, %v5504_v25 }
  0x72   : > { %4815 = vmatmul.mubr.msk.bf16.gmra.mrb[40].mxu0 %vm721_vm0, %v5505_v26 }
  0x73   : > { %4818 = vmatprep.mubr.msk.bf16.mxu0 %vm721_vm0, %v5506_v27 }
  0x7a   : > { %4819 = vmatmul.mubr.msk.bf16.gmra.mrb[44].mxu0 %vm721_vm0, %v5507_v28 }
  0x7b   : > { %4822 = vmatprep.mubr.msk.bf16.mxu0 %vm721_vm0, %v5508_v29 }
  0x82   : > { %4823 = vmatmul.mubr.msk.bf16.gmra.mrb[48].mxu0 %vm721_vm0, %v5509_v30 }
  0x83   : > { %4826 = vmatprep.mubr.msk.bf16.mxu0 %vm721_vm0, %v5510_v31 }
  0x8a   : > { %4827 = vmatmul.mubr.msk.bf16.gmra.mrb[52].mxu0 %vm721_vm0, %v5511_v32 }
  0x8b   : > { %4830 = vmatprep.mubr.msk.bf16.mxu0 %vm721_vm0, %v5512_v33 }
  0x92   : > { %4831 = vmatmul.mubr.msk.bf16.gmra.mrb[56].mxu0 %vm721_vm0, %v5513_v35 }
  0x93   : > { %4834 = vmatprep.mubr.msk.bf16.mxu0 %vm721_vm0, %v5514_v36 }
  0x9a   : > { %4835 = vmatmul.mubr.msk.bf16.gmra.mrb[60].mxu0 %vm721_vm0, %v5515_v37 }
  0x9b   : > { %4838 = vmatprep.mubr.msk.bf16.mxu0 %vm721_vm0, %v5516_v38 }
  0xa2   : > { %4839 = vmatmul.mubr.msk.bf16.gmra.mrb[64].mxu0 %vm721_vm0, %v5517_v39  ;;  %v5543_v39 = vld [vmem:[%s5739_s29 + $0x1d8] sm:$0xff]  }
  0xa3   : > { %4842 = vmatprep.mubr.msk.bf16.mxu0 %vm721_vm0, %v5518_v40 }
  0xaa   : > { %4843 = vmatmul.mubr.msk.bf16.gmra.mrb[68].mxu0 %vm721_vm0, %v5519_v41 }
  0xab   : > { %4846 = vmatprep.mubr.msk.bf16.mxu0 %vm721_vm0, %v5520_v42 }
  0xb2   : > { %4847 = vmatmul.mubr.msk.bf16.gmra.mrb[72].mxu0 %vm721_vm0, %v5521_v43 }
  0xb3   : > { %4850 = vmatprep.mubr.msk.bf16.mxu0 %vm721_vm0, %v5522_v44  ;;  %v5544_v44 = vld [vmem:[%s5739_s29 + $0x1e0] sm:$0xff]  }
  0xba   : > { %4851 = vmatmul.mubr.msk.bf16.gmra.mrb[76].mxu0 %vm721_vm0, %v5523_v45 }
  0xbb   : > { %4854 = vmatprep.mubr.msk.bf16.mxu0 %vm721_vm0, %v5524_v46 }
  0xc2   : > { %4855 = vmatmul.mubr.msk.bf16.gmra.mrb[80].mxu0 %vm721_vm0, %v5525_v47 }
  0xc3   : > { %4858 = vmatprep.mubr.msk.bf16.mxu0 %vm721_vm0, %v5526_v48 }
  0xca   : > { %4859 = vmatmul.mubr.msk.bf16.gmra.mrb[84].mxu0 %vm721_vm0, %v5527_v49 }
  0xcb   : > { %4862 = vmatprep.mubr.msk.bf16.mxu0 %vm721_vm0, %v5528_v50 }
  0xd2   : > { %4863 = vmatmul.mubr.msk.bf16.gmra.mrb[88].mxu0 %vm721_vm0, %v5529_v51 }
  0xd3   : > { %4866 = vmatprep.mubr.msk.bf16.mxu0 %vm721_vm0, %v5530_v52 }
  0xda   : > { %4867 = vmatmul.mubr.msk.bf16.gmra.mrb[92].mxu0 %vm721_vm0, %v5531_v53 }
  0xdb   : > { %4870 = vmatprep.mubr.msk.bf16.mxu0 %vm721_vm0, %v5532_v54 }
  0xe2   : > { %4871 = vmatmul.mubr.msk.bf16.gmra.mrb[96].mxu0 %vm721_vm0, %v5533_v55 }
  0xe3   : > { %4874 = vmatprep.mubr.msk.bf16.mxu0 %vm721_vm0, %v5534_v56 }
  0xea   : > { %4875 = vmatmul.mubr.msk.bf16.gmra.mrb[100].mxu0 %vm721_vm0, %v5535_v57 }
  0xeb   : > { %4878 = vmatprep.mubr.msk.bf16.mxu0 %vm721_vm0, %v5536_v58 }
  0xf2   : > { %4879 = vmatmul.mubr.msk.bf16.gmra.mrb[104].mxu0 %vm721_vm0, %v5537_v59  ;;  %v5545_v59 = vld [vmem:[%s5739_s29 + $0x1e8] sm:$0xff]  }
  0xf3   : > { %4882 = vmatprep.mubr.msk.bf16.mxu0 %vm721_vm0, %v5538_v60 }
  0xf5   : > { %v4776_v61 = vpop.f32.mrb[0].mxu0 }
  0xf6   : > { %v948_v63 = vpop.f32.mrb[1].mxu0  ;;  %v957_v3 = vadd.f32 %v4776_v61, %v5862_v62 }
  0xf7   : > { %v4777_v1 = vpop.f32.mrb[2].mxu0  ;;  %v949_v5 = vadd.f32 %v5862_v62, %v948_v63  ;;  %v5546_v63 = vld [vmem:[%s5739_s29 + $0x1f0] sm:$0xff]  }
  0xf8   : > { %v951_v4 = vpop.f32.mrb[3].mxu0  ;;  %v960_v6 = vadd.f32 %v4777_v1, %v5862_v62  ;;  %v1461_v8 = vmax.f32 %v957_v3, 0.0 }
  0xf9   : > { %v952_v7 = vadd.f32 %v5862_v62, %v951_v4  ;;  %v1459_v9 = vmax.f32 %v949_v5, 0.0 }
  0xfa   : > { %4883 = vmatmul.mubr.msk.bf16.gmra.mrb[108].mxu0 %vm721_vm0, %v5539_v0  ;;  %v1462_v11 = vmax.f32 %v960_v6, 0.0  ;;  %v1589_v20 = vmax.f32 %v1461_v8, 0.0 }
  0xfb   : > { %4886 = vmatprep.mubr.msk.bf16.mxu0 %vm721_vm0, %v5540_v2  ;;  %v1460_v16 = vmax.f32 %v952_v7, 0.0  ;;  %v1587_v24 = vmax.f32 %v1459_v9, 0.0 }
  0xfc   : > { %v1590_v27 = vmax.f32 %v1462_v11, 0.0 }
  0xfd   : > { %v4780_v10 = vpop.f32.mrb[4].mxu0  ;;  %v1588_v30 = vmax.f32 %v1460_v16, 0.0 }
  0xfe   : > { %v973_v12 = vadd.f32 %v4780_v10, %v5862_v62  ;;  %v964_v13 = vpop.f32.mrb[5].mxu0 }
  0xff   : > { %v965_v17 = vadd.f32 %v5862_v62, %v964_v13  ;;  %v4781_v18 = vpop.f32.mrb[6].mxu0 }
 0x100   : > { %v1465_v21 = vmax.f32 %v973_v12, 0.0  ;;  %v976_v22 = vadd.f32 %v4781_v18, %v5862_v62  ;;  %v967_v23 = vpop.f32.mrb[7].mxu0 }
 0x101   : > { %v1463_v25 = vmax.f32 %v965_v17, 0.0  ;;  %v968_v26 = vadd.f32 %v5862_v62, %v967_v23 }
 0x102   : > { %v1653_v28 = vmax.f32 %v1589_v20, %v1465_v21  ;;  %v1466_v29 = vmax.f32 %v976_v22, 0.0  ;;  %4887 = vmatmul.mubr.msk.bf16.gmra.mrb[112].mxu0 %vm721_vm0, %v5541_v14  ;;  %v5547_v14 = vld [vmem:[%s5739_s29 + $0x1f8] sm:$0xff]   ;;  %v4364_v22 = vld [vmem:[%s8002_s4 + $0x408] sm:$0xff] }
 0x103   : > { %v1651_v31 = vmax.f32 %v1587_v24, %v1463_v25  ;;  %v1464_v32 = vmax.f32 %v968_v26, 0.0  ;;  %4890 = vmatprep.mubr.msk.bf16.mxu0 %vm721_vm0, %v5542_v19 }
 0x104   : > { %v1654_v33 = vmax.f32 %v1590_v27, %v1466_v29 }
 0x105   : > { %v1652_v35 = vmax.f32 %v1588_v30, %v1464_v32  ;;  %v4784_v36 = vpop.f32.mrb[8].mxu0 }
 0x106   : > { %v989_v37 = vadd.f32 %v4784_v36, %v5862_v62  ;;  %v980_v38 = vpop.f32.mrb[9].mxu0  ;;  %v5885_v40 = vpack.c.bf16 %v1654_v33, %v1653_v28 }
 0x107   : > { %v981_v41 = vadd.f32 %v5862_v62, %v980_v38  ;;  %v4785_v42 = vpop.f32.mrb[10].mxu0  ;;  %v5888_v43 = vpack.c.bf16 %v1652_v35, %v1651_v31 }
 0x108   : > { %v1469_v45 = vmax.f32 %v989_v37, 0.0  ;;  %v992_v46 = vadd.f32 %v4785_v42, %v5862_v62  ;;  %v983_v47 = vpop.f32.mrb[11].mxu0 }
 0x109   : > { %v1467_v48 = vmax.f32 %v981_v41, 0.0  ;;  %v984_v49 = vadd.f32 %v5862_v62, %v983_v47  ;;  %4968 = vmatpush1.bf16.msra.mxu1 %v5888_v43  ;;  %5064 = vmatpush1.bf16.msra.mxu0 %v5888_v43 }
 0x10a   : > { %v1593_v50 = vmax.f32 %v1465_v21, %v1469_v45  ;;  %v1470_v51 = vmax.f32 %v992_v46, 0.0  ;;  %4891 = vmatmul.mubr.msk.bf16.gmra.mrb[116].mxu0 %vm721_vm0, %v5543_v39  ;;  %4969 = vmatprep.subr.bf16.mxu1 %v5685_v34 }
 0x10b   : > { %v1591_v52 = vmax.f32 %v1463_v25, %v1467_v48  ;;  %v1468_v53 = vmax.f32 %v984_v49, 0.0  ;;  %5065 = vmatprep.subr.bf16.mxu0 %v5685_v34  ;;  %4894 = vmatprep.mubr.msk.bf16.mxu0 %vm721_vm0, %v5544_v44 }
 0x10c   : > { %v1594_v54 = vmax.f32 %v1466_v29, %v1470_v51 }
 0x10d   : > { %v1592_v55 = vmax.f32 %v1464_v32, %v1468_v53  ;;  %v4788_v56 = vpop.f32.mrb[12].mxu0  ;;  %4971 = vmatpush1.bf16.msra.mxu1 %v5885_v40  ;;  %5067 = vmatpush1.bf16.msra.mxu0 %v5885_v40 }
 0x10e   : > { %v1005_v57 = vadd.f32 %v4788_v56, %v5862_v62  ;;  %v996_v58 = vpop.f32.mrb[13].mxu0  ;;  %4972 = vmatprep.subr.bf16.mxu1 %v5685_v34  ;;  %5068 = vmatprep.subr.bf16.mxu0 %v5685_v34 }
 0x10f   : > { %v997_v60 = vadd.f32 %v5862_v62, %v996_v58  ;;  %v4789_v61 = vpop.f32.mrb[14].mxu0 }
 0x110   : > { %v1473_v0 = vmax.f32 %v1005_v57, 0.0  ;;  %v1008_v1 = vadd.f32 %v4789_v61, %v5862_v62  ;;  %v999_v2 = vpop.f32.mrb[15].mxu0 }
 0x111   : > { %v1471_v3 = vmax.f32 %v997_v60, 0.0  ;;  %v1000_v4 = vadd.f32 %v5862_v62, %v999_v2 }
 0x112   : > { %v1657_v5 = vmax.f32 %v1593_v50, %v1473_v0  ;;  %v1474_v6 = vmax.f32 %v1008_v1, 0.0  ;;  %4895 = vmatmul.mubr.msk.bf16.gmra.mrb[120].mxu0 %vm721_vm0, %v5545_v59 }
 0x113   : > { %v1655_v7 = vmax.f32 %v1591_v52, %v1471_v3  ;;  %v1472_v8 = vmax.f32 %v1000_v4, 0.0  ;;  %4898 = vmatprep.mubr.msk.bf16.mxu0 %vm721_vm0, %v5546_v63 }
 0x114   : > { %v1658_v9 = vmax.f32 %v1594_v54, %v1474_v6 }
 0x115   : > { %v1656_v10 = vmax.f32 %v1592_v55, %v1472_v8  ;;  %v4792_v11 = vpop.f32.mrb[16].mxu0 }
 0x116   : > { %v1021_v12 = vadd.f32 %v4792_v11, %v5862_v62  ;;  %v1012_v13 = vpop.f32.mrb[17].mxu0  ;;  %v5913_v15 = vpack.c.bf16 %v1658_v9, %v1657_v5 }
 0x117   : > { %v1013_v16 = vadd.f32 %v5862_v62, %v1012_v13  ;;  %v4793_v17 = vpop.f32.mrb[18].mxu0  ;;  %v5916_v18 = vpack.c.bf16 %v1656_v10, %v1655_v7 }
 0x118   : > { %v1477_v19 = vmax.f32 %v1021_v12, 0.0  ;;  %v1024_v20 = vadd.f32 %v4793_v17, %v5862_v62  ;;  %v1015_v21 = vpop.f32.mrb[19].mxu0 }
 0x119   : > { %v1475_v23 = vmax.f32 %v1013_v16, 0.0  ;;  %v1016_v24 = vadd.f32 %v5862_v62, %v1015_v21  ;;  %4974 = vmatpush1.bf16.msra.mxu1 %v5916_v18  ;;  %5070 = vmatpush1.bf16.msra.mxu0 %v5916_v18 }
 0x11a   : > { %v1597_v25 = vmax.f32 %v1473_v0, %v1477_v19  ;;  %v1478_v26 = vmax.f32 %v1024_v20, 0.0  ;;  %4899 = vmatmul.mubr.msk.bf16.gmra.mrb[124].mxu0 %vm721_vm0, %v5547_v14  ;;  %4975 = vmatprep.subr.bf16.mxu1 %v5685_v34 }
 0x11b   : > { %v1595_v27 = vmax.f32 %v1471_v3, %v1475_v23  ;;  %v1476_v28 = vmax.f32 %v1016_v24, 0.0  ;;  %5071 = vmatprep.subr.bf16.mxu0 %v5685_v34  ;;  %2486 = vmatprep.mubr.f32.mxu0 %v4364_v22 }
 0x11c   : > { %v1598_v29 = vmax.f32 %v1474_v6, %v1478_v26 }
 0x11d   : > { %v1596_v30 = vmax.f32 %v1472_v8, %v1476_v28  ;;  %v4796_v31 = vpop.f32.mrb[20].mxu0  ;;  %4977 = vmatpush1.bf16.msra.mxu1 %v5913_v15  ;;  %5073 = vmatpush1.bf16.msra.mxu0 %v5913_v15 }
 0x11e   : > { %v1037_v32 = vadd.f32 %v4796_v31, %v5862_v62  ;;  %v1028_v33 = vpop.f32.mrb[21].mxu0  ;;  %4978 = vmatprep.subr.bf16.mxu1 %v5685_v34  ;;  %5074 = vmatprep.subr.bf16.mxu0 %v5685_v34 }
 0x11f   : > { %v1029_v35 = vadd.f32 %v5862_v62, %v1028_v33  ;;  %v4797_v36 = vpop.f32.mrb[22].mxu0 }
 0x120   : > { %v1481_v37 = vmax.f32 %v1037_v32, 0.0  ;;  %v1040_v38 = vadd.f32 %v4797_v36, %v5862_v62  ;;  %v1031_v39 = vpop.f32.mrb[23].mxu0 }
 0x121   : > { %v1479_v41 = vmax.f32 %v1029_v35, 0.0  ;;  %v1032_v42 = vadd.f32 %v5862_v62, %v1031_v39 }
 0x122   : > { %v1661_v44 = vmax.f32 %v1597_v25, %v1481_v37  ;;  %v1482_v45 = vmax.f32 %v1040_v38, 0.0 }
 0x123   : > { %v1659_v46 = vmax.f32 %v1595_v27, %v1479_v41  ;;  %v1480_v47 = vmax.f32 %v1032_v42, 0.0 }
 0x124   : > { %v1662_v48 = vmax.f32 %v1598_v29, %v1482_v45 }
 0x125   : > { %v1660_v49 = vmax.f32 %v1596_v30, %v1480_v47  ;;  %v4800_v50 = vpop.f32.mrb[24].mxu0 }
 0x126   : > { %v1053_v51 = vadd.f32 %v4800_v50, %v5862_v62  ;;  %v1044_v52 = vpop.f32.mrb[25].mxu0  ;;  %v5937_v53 = vpack.c.bf16 %v1662_v48, %v1661_v44 }
 0x127   : > { %v1045_v54 = vadd.f32 %v5862_v62, %v1044_v52  ;;  %v4801_v55 = vpop.f32.mrb[26].mxu0  ;;  %v5940_v56 = vpack.c.bf16 %v1660_v49, %v1659_v46 }
 0x128   : > { %v1485_v57 = vmax.f32 %v1053_v51, 0.0  ;;  %v1056_v58 = vadd.f32 %v4801_v55, %v5862_v62  ;;  %v1047_v59 = vpop.f32.mrb[27].mxu0 }
 0x129   : > { %v1483_v60 = vmax.f32 %v1045_v54, 0.0  ;;  %v1048_v61 = vadd.f32 %v5862_v62, %v1047_v59  ;;  %4980 = vmatpush1.bf16.msra.mxu1 %v5940_v56  ;;  %5076 = vmatpush1.bf16.msra.mxu0 %v5940_v56 }
 0x12a   : > { %v1601_v63 = vmax.f32 %v1481_v37, %v1485_v57  ;;  %v1486_v0 = vmax.f32 %v1056_v58, 0.0  ;;  %4981 = vmatprep.subr.bf16.mxu1 %v5685_v34  ;;  %5077 = vmatprep.subr.bf16.mxu0 %v5685_v34 }
 0x12b   : > { %v1599_v1 = vmax.f32 %v1479_v41, %v1483_v60  ;;  %v1484_v2 = vmax.f32 %v1048_v61, 0.0 }
 0x12c   : > { %v1602_v3 = vmax.f32 %v1482_v45, %v1486_v0 }
 0x12d   : > { %v1600_v4 = vmax.f32 %v1480_v47, %v1484_v2  ;;  %v4804_v5 = vpop.f32.mrb[28].mxu0  ;;  %4983 = vmatpush1.bf16.msra.mxu1 %v5937_v53  ;;  %5079 = vmatpush1.bf16.msra.mxu0 %v5937_v53 }
 0x12e   : > { %v1069_v6 = vadd.f32 %v4804_v5, %v5862_v62  ;;  %v1060_v7 = vpop.f32.mrb[29].mxu0  ;;  %4984 = vmatprep.subr.bf16.mxu1 %v5685_v34  ;;  %5080 = vmatprep.subr.bf16.mxu0 %v5685_v34 }
 0x12f   : > { %v1061_v8 = vadd.f32 %v5862_v62, %v1060_v7  ;;  %v4805_v9 = vpop.f32.mrb[30].mxu0 }
 0x130   : > { %v1489_v10 = vmax.f32 %v1069_v6, 0.0  ;;  %v1072_v11 = vadd.f32 %v4805_v9, %v5862_v62  ;;  %v1063_v12 = vpop.f32.mrb[31].mxu0 }
 0x131   : > { %v1487_v13 = vmax.f32 %v1061_v8, 0.0  ;;  %v1064_v14 = vadd.f32 %v5862_v62, %v1063_v12 }
 0x132   : > { %v1665_v16 = vmax.f32 %v1601_v63, %v1489_v10  ;;  %v1490_v17 = vmax.f32 %v1072_v11, 0.0 }
 0x133   : > { %v1663_v19 = vmax.f32 %v1599_v1, %v1487_v13  ;;  %v1488_v20 = vmax.f32 %v1064_v14, 0.0 }
 0x134   : > { %v1666_v21 = vmax.f32 %v1602_v3, %v1490_v17 }
 0x135   : > { %v1664_v22 = vmax.f32 %v1600_v4, %v1488_v20  ;;  %v4808_v23 = vpop.f32.mrb[32].mxu0 }
 0x136   : > { %v1085_v24 = vadd.f32 %v4808_v23, %v5862_v62  ;;  %v1076_v25 = vpop.f32.mrb[33].mxu0  ;;  %v5957_v26 = vpack.c.bf16 %v1666_v21, %v1665_v16 }
 0x137   : > { %v1077_v27 = vadd.f32 %v5862_v62, %v1076_v25  ;;  %v4809_v28 = vpop.f32.mrb[34].mxu0  ;;  %v5960_v29 = vpack.c.bf16 %v1664_v22, %v1663_v19 }
 0x138   : > { %v1493_v30 = vmax.f32 %v1085_v24, 0.0  ;;  %v1088_v31 = vadd.f32 %v4809_v28, %v5862_v62  ;;  %v1079_v32 = vpop.f32.mrb[35].mxu0 }
 0x139   : > { %v1491_v33 = vmax.f32 %v1077_v27, 0.0  ;;  %v1080_v35 = vadd.f32 %v5862_v62, %v1079_v32  ;;  %4986 = vmatpush1.bf16.msra.mxu1 %v5960_v29  ;;  %5082 = vmatpush1.bf16.msra.mxu0 %v5960_v29 }
 0x13a   : > { %v1605_v36 = vmax.f32 %v1489_v10, %v1493_v30  ;;  %v1494_v37 = vmax.f32 %v1088_v31, 0.0  ;;  %4987 = vmatprep.subr.bf16.mxu1 %v5685_v34  ;;  %5083 = vmatprep.subr.bf16.mxu0 %v5685_v34 }
 0x13b   : > { %v1603_v38 = vmax.f32 %v1487_v13, %v1491_v33  ;;  %v1492_v39 = vmax.f32 %v1080_v35, 0.0 }
 0x13c   : > { %v1606_v41 = vmax.f32 %v1490_v17, %v1494_v37 }
 0x13d   : > { %v1604_v42 = vmax.f32 %v1488_v20, %v1492_v39  ;;  %v4812_v44 = vpop.f32.mrb[36].mxu0  ;;  %4989 = vmatpush1.bf16.msra.mxu1 %v5957_v26  ;;  %5085 = vmatpush1.bf16.msra.mxu0 %v5957_v26 }
 0x13e   : > { %v1101_v45 = vadd.f32 %v4812_v44, %v5862_v62  ;;  %v1092_v46 = vpop.f32.mrb[37].mxu0  ;;  %4990 = vmatprep.subr.bf16.mxu1 %v5685_v34  ;;  %5086 = vmatprep.subr.bf16.mxu0 %v5685_v34 }
 0x13f   : > { %v1093_v47 = vadd.f32 %v5862_v62, %v1092_v46  ;;  %v4813_v48 = vpop.f32.mrb[38].mxu0 }
 0x140   : > { %v1497_v49 = vmax.f32 %v1101_v45, 0.0  ;;  %v1104_v50 = vadd.f32 %v4813_v48, %v5862_v62  ;;  %v1095_v51 = vpop.f32.mrb[39].mxu0 }
 0x141   : > { %v1495_v52 = vmax.f32 %v1093_v47, 0.0  ;;  %v1096_v54 = vadd.f32 %v5862_v62, %v1095_v51 }
 0x142   : > { %v1669_v55 = vmax.f32 %v1605_v36, %v1497_v49  ;;  %v1498_v57 = vmax.f32 %v1104_v50, 0.0 }
 0x143   : > { %v1667_v58 = vmax.f32 %v1603_v38, %v1495_v52  ;;  %v1496_v59 = vmax.f32 %v1096_v54, 0.0 }
 0x144   : > { %v1670_v60 = vmax.f32 %v1606_v41, %v1498_v57 }
 0x145   : > { %v1668_v61 = vmax.f32 %v1604_v42, %v1496_v59  ;;  %v4816_v63 = vpop.f32.mrb[40].mxu0 }
 0x146   : > { %v1117_v0 = vadd.f32 %v4816_v63, %v5862_v62  ;;  %v1108_v1 = vpop.f32.mrb[41].mxu0  ;;  %v5977_v2 = vpack.c.bf16 %v1670_v60, %v1669_v55 }
 0x147   : > { %v1109_v3 = vadd.f32 %v5862_v62, %v1108_v1  ;;  %v4817_v4 = vpop.f32.mrb[42].mxu0  ;;  %v5980_v5 = vpack.c.bf16 %v1668_v61, %v1667_v58 }
 0x148   : > { %v1501_v6 = vmax.f32 %v1117_v0, 0.0  ;;  %v1120_v7 = vadd.f32 %v4817_v4, %v5862_v62  ;;  %v1111_v8 = vpop.f32.mrb[43].mxu0 }
 0x149   : > { %v1499_v9 = vmax.f32 %v1109_v3, 0.0  ;;  %v1112_v10 = vadd.f32 %v5862_v62, %v1111_v8  ;;  %4992 = vmatpush1.bf16.msra.mxu1 %v5980_v5  ;;  %5088 = vmatpush1.bf16.msra.mxu0 %v5980_v5 }
 0x14a   : > { %v1609_v11 = vmax.f32 %v1497_v49, %v1501_v6  ;;  %v1502_v12 = vmax.f32 %v1120_v7, 0.0  ;;  %4993 = vmatprep.subr.bf16.mxu1 %v5685_v34  ;;  %5089 = vmatprep.subr.bf16.mxu0 %v5685_v34 }
 0x14b   : > { %v1607_v13 = vmax.f32 %v1495_v52, %v1499_v9  ;;  %v1500_v14 = vmax.f32 %v1112_v10, 0.0 }
 0x14c   : > { %v1610_v16 = vmax.f32 %v1498_v57, %v1502_v12 }
 0x14d   : > { %v1608_v17 = vmax.f32 %v1496_v59, %v1500_v14  ;;  %v4820_v19 = vpop.f32.mrb[44].mxu0  ;;  %4995 = vmatpush1.bf16.msra.mxu1 %v5977_v2  ;;  %5091 = vmatpush1.bf16.msra.mxu0 %v5977_v2 }
 0x14e   : > { %v1133_v20 = vadd.f32 %v4820_v19, %v5862_v62  ;;  %v1124_v21 = vpop.f32.mrb[45].mxu0  ;;  %4996 = vmatprep.subr.bf16.mxu1 %v5685_v34  ;;  %5092 = vmatprep.subr.bf16.mxu0 %v5685_v34 }
 0x14f   : > { %v1125_v22 = vadd.f32 %v5862_v62, %v1124_v21  ;;  %v4821_v23 = vpop.f32.mrb[46].mxu0 }
 0x150   : > { %v1505_v24 = vmax.f32 %v1133_v20, 0.0  ;;  %v1136_v25 = vadd.f32 %v4821_v23, %v5862_v62  ;;  %v1127_v27 = vpop.f32.mrb[47].mxu0 }
 0x151   : > { %v1503_v28 = vmax.f32 %v1125_v22, 0.0  ;;  %v1128_v30 = vadd.f32 %v5862_v62, %v1127_v27 }
 0x152   : > { %v1673_v31 = vmax.f32 %v1609_v11, %v1505_v24  ;;  %v1506_v32 = vmax.f32 %v1136_v25, 0.0 }
 0x153   : > { %v1671_v33 = vmax.f32 %v1607_v13, %v1503_v28  ;;  %v1504_v35 = vmax.f32 %v1128_v30, 0.0 }
 0x154   : > { %v1674_v36 = vmax.f32 %v1610_v16, %v1506_v32 }
 0x155   : > { %v1672_v37 = vmax.f32 %v1608_v17, %v1504_v35  ;;  %v4824_v38 = vpop.f32.mrb[48].mxu0 }
 0x156   : > { %v1149_v39 = vadd.f32 %v4824_v38, %v5862_v62  ;;  %v1140_v41 = vpop.f32.mrb[49].mxu0  ;;  %v5997_v42 = vpack.c.bf16 %v1674_v36, %v1673_v31 }
 0x157   : > { %v1141_v44 = vadd.f32 %v5862_v62, %v1140_v41  ;;  %v4825_v45 = vpop.f32.mrb[50].mxu0  ;;  %v6000_v46 = vpack.c.bf16 %v1672_v37, %v1671_v33 }
 0x158   : > { %v1509_v47 = vmax.f32 %v1149_v39, 0.0  ;;  %v1152_v48 = vadd.f32 %v4825_v45, %v5862_v62  ;;  %v1143_v49 = vpop.f32.mrb[51].mxu0 }
 0x159   : > { %v1507_v50 = vmax.f32 %v1141_v44, 0.0  ;;  %v1144_v51 = vadd.f32 %v5862_v62, %v1143_v49  ;;  %4998 = vmatpush1.bf16.msra.mxu1 %v6000_v46  ;;  %5094 = vmatpush1.bf16.msra.mxu0 %v6000_v46 }
 0x15a   : > { %v1613_v52 = vmax.f32 %v1505_v24, %v1509_v47  ;;  %v1510_v54 = vmax.f32 %v1152_v48, 0.0  ;;  %4999 = vmatprep.subr.bf16.mxu1 %v5685_v34  ;;  %5095 = vmatprep.subr.bf16.mxu0 %v5685_v34 }
 0x15b   : > { %v1611_v55 = vmax.f32 %v1503_v28, %v1507_v50  ;;  %v1508_v57 = vmax.f32 %v1144_v51, 0.0 }
 0x15c   : > { %v1614_v58 = vmax.f32 %v1506_v32, %v1510_v54 }
 0x15d   : > { %v1612_v59 = vmax.f32 %v1504_v35, %v1508_v57  ;;  %v4828_v60 = vpop.f32.mrb[52].mxu0  ;;  %5001 = vmatpush1.bf16.msra.mxu1 %v5997_v42  ;;  %5097 = vmatpush1.bf16.msra.mxu0 %v5997_v42 }
 0x15e   : > { %v1165_v61 = vadd.f32 %v4828_v60, %v5862_v62  ;;  %v1156_v63 = vpop.f32.mrb[53].mxu0  ;;  %5002 = vmatprep.subr.bf16.mxu1 %v5685_v34  ;;  %5098 = vmatprep.subr.bf16.mxu0 %v5685_v34 }
 0x15f   : > { %v1157_v0 = vadd.f32 %v5862_v62, %v1156_v63  ;;  %v4829_v1 = vpop.f32.mrb[54].mxu0 }
 0x160   : > { %v1513_v3 = vmax.f32 %v1165_v61, 0.0  ;;  %v1168_v4 = vadd.f32 %v4829_v1, %v5862_v62  ;;  %v1159_v6 = vpop.f32.mrb[55].mxu0 }
 0x161   : > { %v1511_v7 = vmax.f32 %v1157_v0, 0.0  ;;  %v1160_v8 = vadd.f32 %v5862_v62, %v1159_v6 }
 0x162   : > { %v1677_v9 = vmax.f32 %v1613_v52, %v1513_v3  ;;  %v1514_v10 = vmax.f32 %v1168_v4, 0.0 }
 0x163   : > { %v1675_v11 = vmax.f32 %v1611_v55, %v1511_v7  ;;  %v1512_v12 = vmax.f32 %v1160_v8, 0.0 }
 0x164   : > { %v1678_v13 = vmax.f32 %v1614_v58, %v1514_v10 }
 0x165   : > { %v1676_v14 = vmax.f32 %v1612_v59, %v1512_v12  ;;  %v4832_v16 = vpop.f32.mrb[56].mxu0 }
 0x166   : > { %v1181_v17 = vadd.f32 %v4832_v16, %v5862_v62  ;;  %v1172_v19 = vpop.f32.mrb[57].mxu0  ;;  %v6017_v20 = vpack.c.bf16 %v1678_v13, %v1677_v9 }
 0x167   : > { %v1173_v21 = vadd.f32 %v5862_v62, %v1172_v19  ;;  %v4833_v22 = vpop.f32.mrb[58].mxu0  ;;  %v6020_v23 = vpack.c.bf16 %v1676_v14, %v1675_v11 }
 0x168   : > { %v1517_v24 = vmax.f32 %v1181_v17, 0.0  ;;  %v1184_v25 = vadd.f32 %v4833_v22, %v5862_v62  ;;  %v1175_v27 = vpop.f32.mrb[59].mxu0  ;;  %v4363_v22 = vld [vmem:[%s8002_s4 + $0x400] sm:$0xff] }
 0x169   : > { %v1515_v28 = vmax.f32 %v1173_v21, 0.0  ;;  %v1176_v30 = vadd.f32 %v5862_v62, %v1175_v27  ;;  %5004 = vmatpush1.bf16.msra.mxu1 %v6020_v23  ;;  %5100 = vmatpush1.bf16.msra.mxu0 %v6020_v23  ;;  %v1715_v21 = vld [vmem:[%s8002_s4] sm:$0xff]  ;;  %v1720_v27 = vld [vmem:[%s8002_s4 + $0x28] sm:$0xff] }
 0x16a   : > { %v1617_v31 = vmax.f32 %v1513_v3, %v1517_v24  ;;  %v1518_v32 = vmax.f32 %v1184_v25, 0.0  ;;  %5005 = vmatprep.subr.bf16.mxu1 %v5685_v34  ;;  %5101 = vmatprep.subr.bf16.mxu0 %v5685_v34 }
 0x16b   : > { %v1615_v33 = vmax.f32 %v1511_v7, %v1515_v28  ;;  %v1516_v35 = vmax.f32 %v1176_v30, 0.0  ;;  %v4368_v28 = vld [vmem:[%s8002_s4 + $0x428] sm:$0xff] }
 0x16c   : > { %v1618_v36 = vmax.f32 %v1514_v10, %v1518_v32 }
 0x16d   : > { %v1616_v37 = vmax.f32 %v1512_v12, %v1516_v35  ;;  %v4836_v38 = vpop.f32.mrb[60].mxu0  ;;  %5007 = vmatpush1.bf16.msra.mxu1 %v6017_v20  ;;  %5103 = vmatpush1.bf16.msra.mxu0 %v6017_v20 }
 0x16e   : > { %v1197_v39 = vadd.f32 %v4836_v38, %v5862_v62  ;;  %v1188_v41 = vpop.f32.mrb[61].mxu0  ;;  %5008 = vmatprep.subr.bf16.mxu1 %v5685_v34  ;;  %5104 = vmatprep.subr.bf16.mxu0 %v5685_v34  ;;  %v1719_v38 = vld [vmem:[%s8002_s4 + $0x20] sm:$0xff] }
 0x16f   : > { %v1189_v44 = vadd.f32 %v5862_v62, %v1188_v41  ;;  %v4837_v45 = vpop.f32.mrb[62].mxu0 }
 0x170   : > { %v1521_v47 = vmax.f32 %v1197_v39, 0.0  ;;  %v1200_v48 = vadd.f32 %v4837_v45, %v5862_v62  ;;  %v1191_v49 = vpop.f32.mrb[63].mxu0  ;;  %v4367_v39 = vld [vmem:[%s8002_s4 + $0x420] sm:$0xff]  ;;  %v1724_v45 = vld [vmem:[%s8002_s4 + $0x48] sm:$0xff] }
 0x171   : > { %v1519_v50 = vmax.f32 %v1189_v44, 0.0  ;;  %v1192_v51 = vadd.f32 %v5862_v62, %v1191_v49 }
 0x172   : > { %v1681_v52 = vmax.f32 %v1617_v31, %v1521_v47  ;;  %v1522_v54 = vmax.f32 %v1200_v48, 0.0 }
 0x173   : > { %v1679_v55 = vmax.f32 %v1615_v33, %v1519_v50  ;;  %v1520_v57 = vmax.f32 %v1192_v51, 0.0 }
 0x174   : > { %v1682_v58 = vmax.f32 %v1618_v36, %v1522_v54 }
 0x175   : > { %v1680_v59 = vmax.f32 %v1616_v37, %v1520_v57  ;;  %v4840_v60 = vpop.f32.mrb[64].mxu0 }
 0x176   : > { %v1213_v61 = vadd.f32 %v4840_v60, %v5862_v62  ;;  %v1204_v63 = vpop.f32.mrb[65].mxu0  ;;  %v6037_v0 = vpack.c.bf16 %v1682_v58, %v1681_v52 }
 0x177   : > { %v1205_v1 = vadd.f32 %v5862_v62, %v1204_v63  ;;  %v4841_v3 = vpop.f32.mrb[66].mxu0  ;;  %v6040_v4 = vpack.c.bf16 %v1680_v59, %v1679_v55  ;;  %v4371_v55 = vld [vmem:[%s8002_s4 + $0x440] sm:$0xff] }
 0x178   : > { %v1525_v6 = vmax.f32 %v1213_v61, 0.0  ;;  %v1216_v7 = vadd.f32 %v4841_v3, %v5862_v62  ;;  %v1207_v8 = vpop.f32.mrb[67].mxu0  ;;  %v4376_v3 = vld [vmem:[%s8002_s4 + $0x468] sm:$0xff] }
 0x179   : > { %v1523_v9 = vmax.f32 %v1205_v1, 0.0  ;;  %v1208_v10 = vadd.f32 %v5862_v62, %v1207_v8  ;;  %5010 = vmatpush1.bf16.msra.mxu1 %v6040_v4  ;;  %5106 = vmatpush1.bf16.msra.mxu0 %v6040_v4  ;;  %v1728_v1 = vld [vmem:[%s8002_s4 + $0x68] sm:$0xff] }
 0x17a   : > { %v1621_v11 = vmax.f32 %v1521_v47, %v1525_v6  ;;  %v1526_v12 = vmax.f32 %v1216_v7, 0.0  ;;  %5011 = vmatprep.subr.bf16.mxu1 %v5685_v34  ;;  %5107 = vmatprep.subr.bf16.mxu0 %v5685_v34  ;;  %v4372_v47 = vld [vmem:[%s8002_s4 + $0x448] sm:$0xff] }
 0x17b   : > { %v1619_v13 = vmax.f32 %v1519_v50, %v1523_v9  ;;  %v1524_v14 = vmax.f32 %v1208_v10, 0.0 }
 0x17c   : > { %v1622_v16 = vmax.f32 %v1522_v54, %v1526_v12  ;;  %v1723_v54 = vld [vmem:[%s8002_s4 + $0x40] sm:$0xff] }
 0x17d   : > { %v1620_v17 = vmax.f32 %v1520_v57, %v1524_v14  ;;  %v4844_v19 = vpop.f32.mrb[68].mxu0  ;;  %5013 = vmatpush1.bf16.msra.mxu1 %v6037_v0  ;;  %5109 = vmatpush1.bf16.msra.mxu0 %v6037_v0  ;;  %v4375_v12 = vld [vmem:[%s8002_s4 + $0x460] sm:$0xff] }
 0x17e   : > { %v1229_v24 = vadd.f32 %v4844_v19, %v5862_v62  ;;  %v1220_v25 = vpop.f32.mrb[69].mxu0  ;;  %5014 = vmatprep.subr.bf16.mxu1 %v5685_v34  ;;  %5110 = vmatprep.subr.bf16.mxu0 %v5685_v34  ;;  %v1732_v19 = vld [vmem:[%s8002_s4 + $0x88] sm:$0xff] }
 0x17f   : > { %v1221_v30 = vadd.f32 %v5862_v62, %v1220_v25  ;;  %v4845_v31 = vpop.f32.mrb[70].mxu0 }
 0x180   : > { %v1529_v32 = vmax.f32 %v1229_v24, 0.0  ;;  %v1232_v33 = vadd.f32 %v4845_v31, %v5862_v62  ;;  %v1223_v35 = vpop.f32.mrb[71].mxu0  ;;  %1908 = vmatmul.mubr.f32.vlgmr.msra.gmra.mrb[0].mxu1 %v1715_v21  ;;  %2487 = vmatmul.mubr.f32.vlgmr.msra.gmra.mrb[128].mxu0 %v4363_v22  ;;  %v4380_v21 = vld [vmem:[%s8002_s4 + $0x488] sm:$0xff] }
 0x181   : > { %v1527_v36 = vmax.f32 %v1221_v30, 0.0  ;;  %v1224_v37 = vadd.f32 %v5862_v62, %v1223_v35  ;;  %1912 = vmatprep.mubr.f32.mxu1 %v1720_v27  ;;  %2491 = vmatprep.mubr.f32.mxu0 %v4368_v28  ;;  %v1731_v27 = vld [vmem:[%s8002_s4 + $0x80] sm:$0xff] }
 0x182   : > { %v1685_v41 = vmax.f32 %v1621_v11, %v1529_v32  ;;  %v1530_v44 = vmax.f32 %v1232_v33, 0.0  ;;  %v1727_v11 = vld [vmem:[%s8002_s4 + $0x60] sm:$0xff]  ;;  %v4384_v33 = vld [vmem:[%s8002_s4 + $0x4a8] sm:$0xff] }
 0x183   : > { %v1683_v48 = vmax.f32 %v1619_v13, %v1527_v36  ;;  %v1528_v49 = vmax.f32 %v1224_v37, 0.0  ;;  %v4379_v28 = vld [vmem:[%s8002_s4 + $0x480] sm:$0xff] }
 0x184   : > { %v1686_v50 = vmax.f32 %v1622_v16, %v1530_v44  ;;  %1913 = vmatmul.mubr.f32.gmra.mrb[2].mxu1 %v1719_v38  ;;  %2492 = vmatmul.mubr.f32.gmra.mrb[130].mxu0 %v4367_v39 }
 0x185   : > { %v1684_v51 = vmax.f32 %v1620_v17, %v1528_v49  ;;  %v4848_v52 = vpop.f32.mrb[72].mxu0  ;;  %1917 = vmatprep.mubr.f32.mxu1 %v1724_v45  ;;  %2496 = vmatprep.mubr.f32.mxu0 %v4372_v47  ;;  %v1735_v45 = vld [vmem:[%s8002_s4 + $0xa0] sm:$0xff] }
 0x186   : > { %v6086_v57 = vpack.c.bf16 %v1686_v50, %v1685_v41  ;;  %v1245_v58 = vadd.f32 %v4848_v52, %v5862_v62  ;;  %v1236_v59 = vpop.f32.mrb[73].mxu0  ;;  %v4383_v47 = vld [vmem:[%s8002_s4 + $0x4a0] sm:$0xff]  ;;  %v1740_v50 = vld [vmem:[%s8002_s4 + $0xc8] sm:$0xff] }
 0x187   : > { %v6089_v60 = vpack.c.bf16 %v1684_v51, %v1683_v48  ;;  %v1237_v61 = vadd.f32 %v5862_v62, %v1236_v59  ;;  %v4849_v63 = vpop.f32.mrb[74].mxu0  ;;  %v4388_v51 = vld [vmem:[%s8002_s4 + $0x4c8] sm:$0xff] }
 0x188   : > { %v1533_v6 = vmax.f32 %v1245_v58, 0.0  ;;  %v1248_v7 = vadd.f32 %v4849_v63, %v5862_v62  ;;  %v1239_v8 = vpop.f32.mrb[75].mxu0  ;;  %1918 = vmatmul.mubr.f32.gmra.mrb[4].mxu1 %v1723_v54  ;;  %2497 = vmatmul.mubr.f32.gmra.mrb[132].mxu0 %v4371_v55  ;;  %v4387_v63 = vld [vmem:[%s8002_s4 + $0x4c0] sm:$0xff] }
 0x189   : > { %v1531_v9 = vmax.f32 %v1237_v61, 0.0  ;;  %v1240_v10 = vadd.f32 %v5862_v62, %v1239_v8  ;;  %5016 = vmatpush1.bf16.msra.mxu1 %v6089_v60  ;;  %5112 = vmatpush1.bf16.msra.mxu0 %v6089_v60  ;;  %v1739_v61 = vld [vmem:[%s8002_s4 + $0xc0] sm:$0xff] }
 0x18a   : > { %v1625_v13 = vmax.f32 %v1529_v32, %v1533_v6  ;;  %v1534_v14 = vmax.f32 %v1248_v7, 0.0  ;;  %1922 = vmatprep.mubr.f32.mxu1 %v1728_v1  ;;  %2501 = vmatprep.mubr.f32.mxu0 %v4376_v3  ;;  %v1736_v32 = vld [vmem:[%s8002_s4 + $0xa8] sm:$0xff] }
 0x18b   : > { %v1623_v16 = vmax.f32 %v1527_v36, %v1531_v9  ;;  %v1532_v17 = vmax.f32 %v1240_v10, 0.0  ;;  %5017 = vmatprep.subr.bf16.mxu1 %v5685_v34  ;;  %5113 = vmatprep.subr.bf16.mxu0 %v5685_v34  ;;  %v1744_v10 = vld [vmem:[%s8002_s4 + $0xe8] sm:$0xff] }
 0x18c   : > { %v1626_v22 = vmax.f32 %v1530_v44, %v1534_v14  ;;  %1923 = vmatmul.mubr.f32.gmra.mrb[6].mxu1 %v1727_v11  ;;  %2502 = vmatmul.mubr.f32.gmra.mrb[134].mxu0 %v4375_v12  ;;  %v4392_v11 = vld [vmem:[%s8002_s4 + $0x4e8] sm:$0xff] }
 0x18d   : > { %v1624_v24 = vmax.f32 %v1528_v49, %v1532_v17  ;;  %v4852_v25 = vpop.f32.mrb[76].mxu0  ;;  %5019 = vmatpush1.bf16.msra.mxu1 %v6086_v57  ;;  %5115 = vmatpush1.bf16.msra.mxu0 %v6086_v57 }
 0x18e   : > { %v1261_v30 = vadd.f32 %v4852_v25, %v5862_v62  ;;  %v1252_v31 = vpop.f32.mrb[77].mxu0  ;;  %1927 = vmatprep.mubr.f32.mxu1 %v1732_v19  ;;  %2506 = vmatprep.mubr.f32.mxu0 %v4380_v21  ;;  %v1743_v19 = vld [vmem:[%s8002_s4 + $0xe0] sm:$0xff] }
 0x18f   : > { %v1253_v35 = vadd.f32 %v5862_v62, %v1252_v31  ;;  %v4853_v36 = vpop.f32.mrb[78].mxu0  ;;  %5020 = vmatprep.subr.bf16.mxu1 %v5685_v34  ;;  %5116 = vmatprep.subr.bf16.mxu0 %v5685_v34  ;;  %v4391_v21 = vld [vmem:[%s8002_s4 + $0x4e0] sm:$0xff] }
 0x190   : > { %v1537_v37 = vmax.f32 %v1261_v30, 0.0  ;;  %v1264_v38 = vadd.f32 %v4853_v36, %v5862_v62  ;;  %v1255_v39 = vpop.f32.mrb[79].mxu0  ;;  %1928 = vmatmul.mubr.f32.gmra.mrb[8].mxu1 %v1731_v27  ;;  %2507 = vmatmul.mubr.f32.gmra.mrb[136].mxu0 %v4379_v28  ;;  %v4396_v28 = vld [vmem:[%s8002_s4 + $0x508] sm:$0xff]  ;;  %v6195_v36 = vld [vmem:[%s8000_s2] ss:$0 sm:$0xff] }
 0x191   : > { %v1535_v41 = vmax.f32 %v1253_v35, 0.0  ;;  %v1256_v44 = vadd.f32 %v5862_v62, %v1255_v39  ;;  %1932 = vmatprep.mubr.f32.mxu1 %v1736_v32  ;;  %2511 = vmatprep.mubr.f32.mxu0 %v4384_v33  ;;  %v1747_v33 = vld [vmem:[%s8002_s4 + $0x100] sm:$0xff]  ;;  %v1752_v39 = vld [vmem:[%s8002_s4 + $0x128] sm:$0xff] }
 0x192   : > { %v1689_v48 = vmax.f32 %v1625_v13, %v1537_v37  ;;  %v1538_v49 = vmax.f32 %v1264_v38, 0.0  ;;  %v4395_v35 = vld [vmem:[%s8002_s4 + $0x500] sm:$0xff] }
 0x193   : > { %v1687_v52 = vmax.f32 %v1623_v16, %v1535_v41  ;;  %v1536_v54 = vmax.f32 %v1256_v44, 0.0 }
 0x194   : > { %v1690_v55 = vmax.f32 %v1626_v22, %v1538_v49  ;;  %1933 = vmatmul.mubr.f32.gmra.mrb[10].mxu1 %v1735_v45  ;;  %2512 = vmatmul.mubr.f32.gmra.mrb[138].mxu0 %v4383_v47 }
 0x195   : > { %v1688_v58 = vmax.f32 %v1624_v24, %v1536_v54  ;;  %v4856_v59 = vpop.f32.mrb[80].mxu0  ;;  %1937 = vmatprep.mubr.f32.mxu1 %v1740_v50  ;;  %2516 = vmatprep.mubr.f32.mxu0 %v4388_v51 }
 0x196   : > { %v6154_v1 = vpack.c.bf16 %v1690_v55, %v1689_v48  ;;  %v1277_v3 = vadd.f32 %v4856_v59, %v5862_v62  ;;  %v1268_v6 = vpop.f32.mrb[81].mxu0  ;;  %v1756_v59 = vld [vmem:[%s8002_s4 + $0x148] sm:$0xff] }
 0x197   : > { %v6157_v7 = vpack.c.bf16 %v1688_v58, %v1687_v52  ;;  %v1269_v8 = vadd.f32 %v5862_v62, %v1268_v6  ;;  %v4857_v9 = vpop.f32.mrb[82].mxu0  ;;  %v1751_v52 = vld [vmem:[%s8002_s4 + $0x120] sm:$0xff] }
 0x198   : > { %v1541_v12 = vmax.f32 %v1277_v3, 0.0  ;;  %v1280_v13 = vadd.f32 %v4857_v9, %v5862_v62  ;;  %v1271_v14 = vpop.f32.mrb[83].mxu0  ;;  %1938 = vmatmul.mubr.f32.gmra.mrb[12].mxu1 %v1739_v61  ;;  %2517 = vmatmul.mubr.f32.gmra.mrb[140].mxu0 %v4387_v63  ;;  %v4404_v61 = vld [vmem:[%s8002_s4 + $0x548] sm:$0xff] }
 0x199   : > { %v1539_v16 = vmax.f32 %v1269_v8, 0.0  ;;  %v1272_v17 = vadd.f32 %v5862_v62, %v1271_v14  ;;  %5022 = vmatpush1.bf16.msra.mxu1 %v6157_v7  ;;  %5118 = vmatpush1.bf16.msra.mxu0 %v6157_v7  ;;  %v1748_v62 = vld [vmem:[%s8002_s4 + $0x108] sm:$0xff] }
 0x19a   : > { %v1629_v22 = vmax.f32 %v1537_v37, %v1541_v12  ;;  %v1542_v24 = vmax.f32 %v1280_v13, 0.0  ;;  %1942 = vmatprep.mubr.f32.mxu1 %v1744_v10  ;;  %2521 = vmatprep.mubr.f32.mxu0 %v4392_v11  ;;  %v1755_v10 = vld [vmem:[%s8002_s4 + $0x140] sm:$0xff] }
 0x19b   : > { %v1627_v25 = vmax.f32 %v1535_v41, %v1539_v16  ;;  %v1540_v27 = vmax.f32 %v1272_v17, 0.0  ;;  %5023 = vmatprep.subr.bf16.mxu1 %v5685_v34  ;;  %5119 = vmatprep.subr.bf16.mxu0 %v5685_v34  ;;  %v4400_v41 = vld [vmem:[%s8002_s4 + $0x528] sm:$0xff]  ;;  %v4403_v11 = vld [vmem:[%s8002_s4 + $0x540] sm:$0xff] }
 0x19c   : > { %v1630_v30 = vmax.f32 %v1538_v49, %v1542_v24  ;;  %1943 = vmatmul.mubr.f32.gmra.mrb[14].mxu1 %v1743_v19  ;;  %2522 = vmatmul.mubr.f32.gmra.mrb[142].mxu0 %v4391_v21  ;;  %v1760_v21 = vld [vmem:[%s8002_s4 + $0x168] sm:$0xff] }
 0x19d   : > { %v1628_v31 = vmax.f32 %v1536_v54, %v1540_v27  ;;  %v4860_v32 = vpop.f32.mrb[84].mxu0  ;;  %5025 = vmatpush1.bf16.msra.mxu1 %v6154_v1  ;;  %5121 = vmatpush1.bf16.msra.mxu0 %v6154_v1  ;;  %v4399_v54 = vld [vmem:[%s8002_s4 + $0x520] sm:$0xff] }
 0x19e   : > { %v1293_v37 = vadd.f32 %v6195_v36, %v4860_v32  ;;  %v1284_v38 = vpop.f32.mrb[85].mxu0  ;;  %1947 = vmatprep.mubr.f32.mxu1 %v1748_v62  ;;  %2526 = vmatprep.mubr.f32.mxu0 %v4396_v28 }
 0x19f   : > { %v1285_v44 = vadd.f32 %v6195_v36, %v1284_v38  ;;  %v4861_v45 = vpop.f32.mrb[86].mxu0  ;;  %5026 = vmatprep.subr.bf16.mxu1 %v5685_v34  ;;  %5122 = vmatprep.subr.bf16.mxu0 %v5685_v34  ;;  %v1764_v38 = vld [vmem:[%s8002_s4 + $0x188] sm:$0xff] }
 0x1a0   : > { %v1545_v47 = vmax.f32 %v1293_v37, 0.0  ;;  %v1296_v48 = vadd.f32 %v6195_v36, %v4861_v45  ;;  %v1287_v49 = vpop.f32.mrb[87].mxu0  ;;  %1948 = vmatmul.mubr.f32.gmra.mrb[16].mxu1 %v1747_v33  ;;  %2527 = vmatmul.mubr.f32.gmra.mrb[144].mxu0 %v4395_v35 }
 0x1a1   : > { %v1543_v50 = vmax.f32 %v1285_v44, 0.0  ;;  %v1288_v51 = vadd.f32 %v6195_v36, %v1287_v49  ;;  %1952 = vmatprep.mubr.f32.mxu1 %v1752_v39  ;;  %2531 = vmatprep.mubr.f32.mxu0 %v4400_v41  ;;  %v4412_v39 = vld [vmem:[%s8002_s4 + $0x588] sm:$0xff] }
 0x1a2   : > { %v1693_v55 = vmax.f32 %v1629_v22, %v1545_v47  ;;  %v1546_v58 = vmax.f32 %v1296_v48, 0.0  ;;  %v4408_v22 = vld [vmem:[%s8002_s4 + $0x568] sm:$0xff]  ;;  %v4411_v48 = vld [vmem:[%s8002_s4 + $0x580] sm:$0xff] }
 0x1a3   : > { %v1691_v63 = vmax.f32 %v1627_v25, %v1543_v50  ;;  %v1544_v3 = vmax.f32 %v1288_v51, 0.0  ;;  %v1768_v51 = vld [vmem:[%s8002_s4 + $0x1a8] sm:$0xff] }
 0x1a4   : > { %v1694_v6 = vmax.f32 %v1630_v30, %v1546_v58  ;;  %1953 = vmatmul.mubr.f32.gmra.mrb[18].mxu1 %v1751_v52  ;;  %2532 = vmatmul.mubr.f32.gmra.mrb[146].mxu0 %v4399_v54  ;;  %v1759_v30 = vld [vmem:[%s8002_s4 + $0x160] sm:$0xff]  ;;  %v4416_v52 = vld [vmem:[%s8002_s4 + $0x5a8] sm:$0xff] }
 0x1a5   : > { %v1692_v8 = vmax.f32 %v1628_v31, %v1544_v3  ;;  %v4864_v9 = vpop.f32.mrb[88].mxu0  ;;  %1957 = vmatprep.mubr.f32.mxu1 %v1756_v59  ;;  %2536 = vmatprep.mubr.f32.mxu0 %v4404_v61  ;;  %v4407_v31 = vld [vmem:[%s8002_s4 + $0x560] sm:$0xff] }
 0x1a6   : > { %v6227_v12 = vpack.c.bf16 %v1694_v6, %v1693_v55  ;;  %v1309_v13 = vadd.f32 %v6195_v36, %v4864_v9  ;;  %v1300_v14 = vpop.f32.mrb[89].mxu0  ;;  %v1767_v6 = vld [vmem:[%s8002_s4 + $0x1a0] sm:$0xff] }
 0x1a7   : > { %v6230_v16 = vpack.c.bf16 %v1692_v8, %v1691_v63  ;;  %v1301_v17 = vadd.f32 %v6195_v36, %v1300_v14  ;;  %v4865_v19 = vpop.f32.mrb[90].mxu0  ;;  %v4415_v8 = vld [vmem:[%s8002_s4 + $0x5a0] sm:$0xff] }
 0x1a8   : > { %v1549_v24 = vmax.f32 %v1309_v13, 0.0  ;;  %v1312_v25 = vadd.f32 %v6195_v36, %v4865_v19  ;;  %v1303_v27 = vpop.f32.mrb[91].mxu0  ;;  %1958 = vmatmul.mubr.f32.gmra.mrb[20].mxu1 %v1755_v10  ;;  %2537 = vmatmul.mubr.f32.gmra.mrb[148].mxu0 %v4403_v11  ;;  %v1772_v11 = vld [vmem:[%s8002_s4 + $0x1c8] sm:$0xff] }
 0x1a9   : > { %v1547_v62 = vmax.f32 %v1301_v17, 0.0  ;;  %v1304_v28 = vadd.f32 %v6195_v36, %v1303_v27  ;;  %5028 = vmatpush1.bf16.msra.mxu1 %v6230_v16  ;;  %5124 = vmatpush1.bf16.msra.mxu0 %v6230_v16  ;;  %v4420_v13 = vld [vmem:[%s8002_s4 + $0x5c8] sm:$0xff] }
 0x1aa   : > { %v1633_v32 = vmax.f32 %v1545_v47, %v1549_v24  ;;  %v1550_v33 = vmax.f32 %v1312_v25, 0.0  ;;  %1962 = vmatprep.mubr.f32.mxu1 %v1760_v21  ;;  %2541 = vmatprep.mubr.f32.mxu0 %v4408_v22  ;;  %v1763_v47 = vld [vmem:[%s8002_s4 + $0x180] sm:$0xff] }
 0x1ab   : > { %v1631_v35 = vmax.f32 %v1543_v50, %v1547_v62  ;;  %v1548_v37 = vmax.f32 %v1304_v28, 0.0  ;;  %5029 = vmatprep.subr.bf16.mxu1 %v5685_v34  ;;  %5125 = vmatprep.subr.bf16.mxu0 %v5685_v34  ;;  %v1771_v24 = vld [vmem:[%s8002_s4 + $0x1c0] sm:$0xff] }
 0x1ac   : > { %v1634_v41 = vmax.f32 %v1546_v58, %v1550_v33  ;;  %1963 = vmatmul.mubr.f32.gmra.mrb[22].mxu1 %v1759_v30  ;;  %2542 = vmatmul.mubr.f32.gmra.mrb[150].mxu0 %v4407_v31  ;;  %v4419_v25 = vld [vmem:[%s8002_s4 + $0x5c0] sm:$0xff]  ;;  %v1776_v33 = vld [vmem:[%s8002_s4 + $0x1e8] sm:$0xff] }
 0x1ad   : > { %v1632_v44 = vmax.f32 %v1544_v3, %v1548_v37  ;;  %v4868_v45 = vpop.f32.mrb[92].mxu0  ;;  %5031 = vmatpush1.bf16.msra.mxu1 %v6227_v12  ;;  %5127 = vmatpush1.bf16.msra.mxu0 %v6227_v12 }
 0x1ae   : > { %v1325_v49 = vadd.f32 %v6195_v36, %v4868_v45  ;;  %v1316_v50 = vpop.f32.mrb[93].mxu0  ;;  %1967 = vmatprep.mubr.f32.mxu1 %v1764_v38  ;;  %2546 = vmatprep.mubr.f32.mxu0 %v4412_v39  ;;  %v1775_v45 = vld [vmem:[%s8002_s4 + $0x1e0] sm:$0xff] }
 0x1af   : > { %v1317_v54 = vadd.f32 %v6195_v36, %v1316_v50  ;;  %v4869_v55 = vpop.f32.mrb[94].mxu0  ;;  %5032 = vmatprep.subr.bf16.mxu1 %v5685_v34  ;;  %5128 = vmatprep.subr.bf16.mxu0 %v5685_v34 }
 0x1b0   : > { %v1553_v58 = vmax.f32 %v1325_v49, 0.0  ;;  %v1328_v59 = vadd.f32 %v6195_v36, %v4869_v55  ;;  %v1319_v61 = vpop.f32.mrb[95].mxu0  ;;  %1968 = vmatmul.mubr.f32.gmra.mrb[24].mxu1 %v1763_v47  ;;  %2547 = vmatmul.mubr.f32.gmra.mrb[152].mxu0 %v4411_v48  ;;  %v4423_v47 = vld [vmem:[%s8002_s4 + $0x5e0] sm:$0xff] }
 0x1b1   : > { %v1551_v63 = vmax.f32 %v1317_v54, 0.0  ;;  %v1320_v3 = vadd.f32 %v6195_v36, %v1319_v61  ;;  %1972 = vmatprep.mubr.f32.mxu1 %v1768_v51  ;;  %2551 = vmatprep.mubr.f32.mxu0 %v4416_v52  ;;  %v1780_v52 = vld [vmem:[%s8002_s4 + $0x208] sm:$0xff]  ;;  %v1779_v61 = vld [vmem:[%s8002_s4 + $0x200] sm:$0xff] }
 0x1b2   : > { %v1697_v9 = vmax.f32 %v1633_v32, %v1553_v58  ;;  %v1554_v10 = vmax.f32 %v1328_v59, 0.0  ;;  %v4428_v54 = vld [vmem:[%s8002_s4 + $0x608] sm:$0xff] }
 0x1b3   : > { %v1695_v14 = vmax.f32 %v1631_v35, %v1551_v63  ;;  %v1552_v17 = vmax.f32 %v1320_v3, 0.0  ;;  %v4424_v35 = vld [vmem:[%s8002_s4 + $0x5e8] sm:$0xff] }
 0x1b4   : > { %v1698_v19 = vmax.f32 %v1634_v41, %v1554_v10  ;;  %1973 = vmatmul.mubr.f32.gmra.mrb[26].mxu1 %v1767_v6  ;;  %2552 = vmatmul.mubr.f32.gmra.mrb[154].mxu0 %v4415_v8  ;;  %v1784_v8 = vld [vmem:[%s8002_s4 + $0x228] sm:$0xff] }
 0x1b5   : > { %v1696_v21 = vmax.f32 %v1632_v44, %v1552_v17  ;;  %v4872_v22 = vpop.f32.mrb[96].mxu0  ;;  %1977 = vmatprep.mubr.f32.mxu1 %v1772_v11  ;;  %2556 = vmatprep.mubr.f32.mxu0 %v4420_v13 }
 0x1b6   : > { %v6295_v27 = vpack.c.bf16 %v1698_v19, %v1697_v9  ;;  %v1341_v62 = vadd.f32 %v6195_v36, %v4872_v22  ;;  %v1332_v28 = vpop.f32.mrb[97].mxu0  ;;  %v4432_v9 = vld [vmem:[%s8002_s4 + $0x628] sm:$0xff]  ;;  %v1783_v22 = vld [vmem:[%s8002_s4 + $0x220] sm:$0xff] }
 0x1b7   : > { %v6298_v30 = vpack.c.bf16 %v1696_v21, %v1695_v14  ;;  %v1333_v31 = vadd.f32 %v6195_v36, %v1332_v28  ;;  %v4873_v32 = vpop.f32.mrb[98].mxu0  ;;  %v1788_v28 = vld [vmem:[%s8002_s4 + $0x248] sm:$0xff] }
 0x1b8   : > { %v1557_v37 = vmax.f32 %v1341_v62, 0.0  ;;  %v1344_v38 = vadd.f32 %v6195_v36, %v4873_v32  ;;  %v1335_v39 = vpop.f32.mrb[99].mxu0  ;;  %1978 = vmatmul.mubr.f32.gmra.mrb[28].mxu1 %v1771_v24  ;;  %2557 = vmatmul.mubr.f32.gmra.mrb[156].mxu0 %v4419_v25  ;;  %v4431_v24 = vld [vmem:[%s8002_s4 + $0x620] sm:$0xff] }
 0x1b9   : > { %v1555_v41 = vmax.f32 %v1333_v31, 0.0  ;;  %v1336_v44 = vadd.f32 %v6195_v36, %v1335_v39  ;;  %5034 = vmatpush1.bf16.msra.mxu1 %v6298_v30  ;;  %5130 = vmatpush1.bf16.msra.mxu0 %v6298_v30  ;;  %v4436_v31 = vld [vmem:[%s8002_s4 + $0x648] sm:$0xff]  ;;  %v1787_v39 = vld [vmem:[%s8002_s4 + $0x240] sm:$0xff] }
 0x1ba   : > { %v1637_v48 = vmax.f32 %v1553_v58, %v1557_v37  ;;  %v1558_v49 = vmax.f32 %v1344_v38, 0.0  ;;  %1982 = vmatprep.mubr.f32.mxu1 %v1776_v33  ;;  %2561 = vmatprep.mubr.f32.mxu0 %v4424_v35 }
 0x1bb   : > { %v1635_v50 = vmax.f32 %v1551_v63, %v1555_v41  ;;  %v1556_v51 = vmax.f32 %v1336_v44, 0.0  ;;  %5035 = vmatprep.subr.bf16.mxu1 %v5685_v34  ;;  %5131 = vmatprep.subr.bf16.mxu0 %v5685_v34  ;;  %v4427_v63 = vld [vmem:[%s8002_s4 + $0x600] sm:$0xff] }
 0x1bc   : > { %v1638_v55 = vmax.f32 %v1554_v10, %v1558_v49  ;;  %1983 = vmatmul.mubr.f32.gmra.mrb[30].mxu1 %v1775_v45  ;;  %2562 = vmatmul.mubr.f32.gmra.mrb[158].mxu0 %v4423_v47  ;;  %v4435_v41 = vld [vmem:[%s8002_s4 + $0x640] sm:$0xff] }
 0x1bd   : > { %v1636_v58 = vmax.f32 %v1552_v17, %v1556_v51  ;;  %v4876_v59 = vpop.f32.mrb[100].mxu0  ;;  %5037 = vmatpush1.bf16.msra.mxu1 %v6295_v27  ;;  %5133 = vmatpush1.bf16.msra.mxu0 %v6295_v27  ;;  %v1792_v51 = vld [vmem:[%s8002_s4 + $0x268] sm:$0xff] }
 0x1be   : > { %v1357_v3 = vadd.f32 %v6195_v36, %v4876_v59  ;;  %v1348_v6 = vpop.f32.mrb[101].mxu0  ;;  %1987 = vmatprep.mubr.f32.mxu1 %v1780_v52  ;;  %2566 = vmatprep.mubr.f32.mxu0 %v4428_v54  ;;  %v4440_v52 = vld [vmem:[%s8002_s4 + $0x668] sm:$0xff] }
 0x1bf   : > { %v1349_v10 = vadd.f32 %v6195_v36, %v1348_v6  ;;  %v4877_v11 = vpop.f32.mrb[102].mxu0  ;;  %5038 = vmatprep.subr.bf16.mxu1 %v5685_v34  ;;  %5134 = vmatprep.subr.bf16.mxu0 %v5685_v34 }
 0x1c0   : > { %v1561_v13 = vmax.f32 %v1357_v3, 0.0  ;;  %v1360_v14 = vadd.f32 %v6195_v36, %v4877_v11  ;;  %v1351_v17 = vpop.f32.mrb[103].mxu0  ;;  %1988 = vmatmul.mubr.f32.gmra.mrb[32].mxu1 %v1779_v61  ;;  %2567 = vmatmul.mubr.f32.gmra.mrb[160].mxu0 %v4427_v63  ;;  %v1791_v63 = vld [vmem:[%s8002_s4 + $0x260] sm:$0xff]  ;;  %v1796_v11 = vld [vmem:[%s8002_s4 + $0x288] sm:$0xff] }
 0x1c1   : > { %v1559_v19 = vmax.f32 %v1349_v10, 0.0  ;;  %v1352_v21 = vadd.f32 %v6195_v36, %v1351_v17  ;;  %1992 = vmatprep.mubr.f32.mxu1 %v1784_v8  ;;  %2571 = vmatprep.mubr.f32.mxu0 %v4432_v9  ;;  %v4439_v3 = vld [vmem:[%s8002_s4 + $0x660] sm:$0xff] }
 0x1c2   : > { %v1701_v25 = vmax.f32 %v1637_v48, %v1561_v13  ;;  %v1562_v62 = vmax.f32 %v1360_v14, 0.0  ;;  %v4444_v14 = vld [vmem:[%s8002_s4 + $0x688] sm:$0xff] }
 0x1c3   : > { %v1699_v32 = vmax.f32 %v1635_v50, %v1559_v19  ;;  %v1560_v33 = vmax.f32 %v1352_v21, 0.0 }
 0x1c4   : > { %v1702_v35 = vmax.f32 %v1638_v55, %v1562_v62  ;;  %1993 = vmatmul.mubr.f32.gmra.mrb[34].mxu1 %v1783_v22  ;;  %2572 = vmatmul.mubr.f32.gmra.mrb[162].mxu0 %v4431_v24  ;;  %v4443_v22 = vld [vmem:[%s8002_s4 + $0x680] sm:$0xff] }
 0x1c5   : > { %v1700_v37 = vmax.f32 %v1636_v58, %v1560_v33  ;;  %v4880_v38 = vpop.f32.mrb[104].mxu0  ;;  %1997 = vmatprep.mubr.f32.mxu1 %v1788_v28  ;;  %2576 = vmatprep.mubr.f32.mxu0 %v4436_v31  ;;  %v4448_v28 = vld [vmem:[%s8002_s4 + $0x6a8] sm:$0xff] }
 0x1c6   : > { %v6363_v44 = vpack.c.bf16 %v1702_v35, %v1701_v25  ;;  %v1373_v45 = vadd.f32 %v6195_v36, %v4880_v38  ;;  %v1364_v47 = vpop.f32.mrb[105].mxu0 }
 0x1c7   : > { %v6366_v48 = vpack.c.bf16 %v1700_v37, %v1699_v32  ;;  %v1365_v49 = vadd.f32 %v6195_v36, %v1364_v47  ;;  %v4881_v50 = vpop.f32.mrb[106].mxu0 }
 0x1c8   : > { %v1565_v54 = vmax.f32 %v1373_v45, 0.0  ;;  %v1376_v55 = vadd.f32 %v6195_v36, %v4881_v50  ;;  %v1367_v58 = vpop.f32.mrb[107].mxu0  ;;  %1998 = vmatmul.mubr.f32.gmra.mrb[36].mxu1 %v1787_v39  ;;  %2577 = vmatmul.mubr.f32.gmra.mrb[164].mxu0 %v4435_v41  ;;  %v1799_v41 = vld [vmem:[%s8002_s4 + $0x2a0] sm:$0xff]  ;;  %v1804_v50 = vld [vmem:[%s8002_s4 + $0x2c8] sm:$0xff] }
 0x1c9   : > { %v1563_v59 = vmax.f32 %v1365_v49, 0.0  ;;  %v1368_v61 = vadd.f32 %v6195_v36, %v1367_v58  ;;  %5040 = vmatpush1.bf16.msra.mxu1 %v6366_v48  ;;  %5136 = vmatpush1.bf16.msra.mxu0 %v6366_v48  ;;  %v4447_v45 = vld [vmem:[%s8002_s4 + $0x6a0] sm:$0xff] }
 0x1ca   : > { %v1641_v6 = vmax.f32 %v1561_v13, %v1565_v54  ;;  %v1566_v8 = vmax.f32 %v1376_v55, 0.0  ;;  %2002 = vmatprep.mubr.f32.mxu1 %v1792_v51  ;;  %2581 = vmatprep.mubr.f32.mxu0 %v4440_v52  ;;  %v4452_v51 = vld [vmem:[%s8002_s4 + $0x6c8] sm:$0xff] }
 0x1cb   : > { %v1639_v9 = vmax.f32 %v1559_v19, %v1563_v59  ;;  %v1564_v10 = vmax.f32 %v1368_v61, 0.0  ;;  %5041 = vmatprep.subr.bf16.mxu1 %v5685_v34  ;;  %5137 = vmatprep.subr.bf16.mxu0 %v5685_v34  ;;  %v1795_v19 = vld [vmem:[%s8002_s4 + $0x280] sm:$0xff] }
 0x1cc   : > { %v1642_v17 = vmax.f32 %v1562_v62, %v1566_v8  ;;  %2003 = vmatmul.mubr.f32.gmra.mrb[38].mxu1 %v1791_v63  ;;  %2582 = vmatmul.mubr.f32.gmra.mrb[166].mxu0 %v4439_v3  ;;  %v1800_v62 = vld [vmem:[%s8002_s4 + $0x2a8] sm:$0xff]  ;;  %v1803_v61 = vld [vmem:[%s8002_s4 + $0x2c0] sm:$0xff] }
 0x1cd   : > { %v1640_v13 = vmax.f32 %v1560_v33, %v1564_v10  ;;  %v4884_v21 = vpop.f32.mrb[108].mxu0  ;;  %5043 = vmatpush1.bf16.msra.mxu1 %v6363_v44  ;;  %5139 = vmatpush1.bf16.msra.mxu0 %v6363_v44  ;;  %v4451_v63 = vld [vmem:[%s8002_s4 + $0x6c0] sm:$0xff] }
 0x1ce   : > { %v1389_v24 = vadd.f32 %v6195_v36, %v4884_v21  ;;  %v1380_v25 = vpop.f32.mrb[109].mxu0  ;;  %2007 = vmatprep.mubr.f32.mxu1 %v1796_v11  ;;  %2586 = vmatprep.mubr.f32.mxu0 %v4444_v14  ;;  %v1808_v14 = vld [vmem:[%s8002_s4 + $0x2e8] sm:$0xff] }
 0x1cf   : > { %v1381_v31 = vadd.f32 %v6195_v36, %v1380_v25  ;;  %v4885_v32 = vpop.f32.mrb[110].mxu0  ;;  %5044 = vmatprep.subr.bf16.mxu1 %v5685_v34  ;;  %5140 = vmatprep.subr.bf16.mxu0 %v5685_v34  ;;  %v1807_v25 = vld [vmem:[%s8002_s4 + $0x2e0] sm:$0xff] }
 0x1d0   : > { %v1569_v33 = vmax.f32 %v1389_v24, 0.0  ;;  %v1392_v35 = vadd.f32 %v6195_v36, %v4885_v32  ;;  %v1383_v37 = vpop.f32.mrb[111].mxu0  ;;  %2008 = vmatmul.mubr.f32.gmra.mrb[40].mxu1 %v1795_v19  ;;  %2587 = vmatmul.mubr.f32.gmra.mrb[168].mxu0 %v4443_v22 }
 0x1d1   : > { %v1567_v38 = vmax.f32 %v1381_v31, 0.0  ;;  %v1384_v39 = vadd.f32 %v6195_v36, %v1383_v37  ;;  %2012 = vmatprep.mubr.f32.mxu1 %v1800_v62  ;;  %2591 = vmatprep.mubr.f32.mxu0 %v4448_v28  ;;  %v4455_v62 = vld [vmem:[%s8002_s4 + $0x6e0] sm:$0xff]  ;;  %v1812_v37 = vld [vmem:[%s8002_s4 + $0x308] sm:$0xff] }
 0x1d2   : > { %v1705_v47 = vmax.f32 %v1641_v6, %v1569_v33  ;;  %v1570_v49 = vmax.f32 %v1392_v35, 0.0 }
 0x1d3   : > { %v1703_v52 = vmax.f32 %v1639_v9, %v1567_v38  ;;  %v1568_v54 = vmax.f32 %v1384_v39, 0.0  ;;  %v4460_v39 = vld [vmem:[%s8002_s4 + $0x708] sm:$0xff] }
 0x1d4   : > { %v1706_v55 = vmax.f32 %v1642_v17, %v1570_v49  ;;  %2013 = vmatmul.mubr.f32.gmra.mrb[42].mxu1 %v1799_v41  ;;  %2592 = vmatmul.mubr.f32.gmra.mrb[170].mxu0 %v4447_v45  ;;  %v4456_v17 = vld [vmem:[%s8002_s4 + $0x6e8] sm:$0xff] }
 0x1d5   : > { %v1704_v58 = vmax.f32 %v1640_v13, %v1568_v54  ;;  %v4888_v59 = vpop.f32.mrb[112].mxu0  ;;  %2017 = vmatprep.mubr.f32.mxu1 %v1804_v50  ;;  %2596 = vmatprep.mubr.f32.mxu0 %v4452_v51 }
 0x1d6   : > { %v6431_v3 = vpack.c.bf16 %v1706_v55, %v1705_v47  ;;  %v1405_v6 = vadd.f32 %v6195_v36, %v4888_v59  ;;  %v1396_v8 = vpop.f32.mrb[113].mxu0  ;;  %v4459_v47 = vld [vmem:[%s8002_s4 + $0x700] sm:$0xff] }
 0x1d7   : > { %v6434_v9 = vpack.c.bf16 %v1704_v58, %v1703_v52  ;;  %v1397_v10 = vadd.f32 %v6195_v36, %v1396_v8  ;;  %v4889_v11 = vpop.f32.mrb[114].mxu0  ;;  %v4464_v52 = vld [vmem:[%s8002_s4 + $0x728] sm:$0xff]  ;;  %v1815_v8 = vld [vmem:[%s8002_s4 + $0x320] sm:$0xff] }
 0x1d8   : > { %v1573_v13 = vmax.f32 %v1405_v6, 0.0  ;;  %v1408_v21 = vadd.f32 %v6195_v36, %v4889_v11  ;;  %v1399_v19 = vpop.f32.mrb[115].mxu0  ;;  %2018 = vmatmul.mubr.f32.gmra.mrb[44].mxu1 %v1803_v61  ;;  %2597 = vmatmul.mubr.f32.gmra.mrb[172].mxu0 %v4451_v63 }
 0x1d9   : > { %v1571_v22 = vmax.f32 %v1397_v10, 0.0  ;;  %v1400_v24 = vadd.f32 %v6195_v36, %v1399_v19  ;;  %5046 = vmatpush1.bf16.msra.mxu1 %v6434_v9  ;;  %5142 = vmatpush1.bf16.msra.mxu0 %v6434_v9  ;;  %v4463_v10 = vld [vmem:[%s8002_s4 + $0x720] sm:$0xff] }
 0x1da   : > { %v1645_v28 = vmax.f32 %v1569_v33, %v1573_v13  ;;  %v1574_v31 = vmax.f32 %v1408_v21, 0.0  ;;  %2022 = vmatprep.mubr.f32.mxu1 %v1808_v14  ;;  %2601 = vmatprep.mubr.f32.mxu0 %v4456_v17  ;;  %v1820_v17 = vld [vmem:[%s8002_s4 + $0x348] sm:$0xff] }
 0x1db   : > { %v1643_v32 = vmax.f32 %v1567_v38, %v1571_v22  ;;  %v1572_v35 = vmax.f32 %v1400_v24, 0.0  ;;  %5047 = vmatprep.subr.bf16.mxu1 %v5685_v34  ;;  %5143 = vmatprep.subr.bf16.mxu0 %v5685_v34  ;;  %v1811_v38 = vld [vmem:[%s8002_s4 + $0x300] sm:$0xff]  ;;  %v4468_v13 = vld [vmem:[%s8002_s4 + $0x748] sm:$0xff] }
 0x1dc   : > { %v1646_v41 = vmax.f32 %v1570_v49, %v1574_v31  ;;  %2023 = vmatmul.mubr.f32.gmra.mrb[46].mxu1 %v1807_v25  ;;  %2602 = vmatmul.mubr.f32.gmra.mrb[174].mxu0 %v4455_v62  ;;  %v1816_v49 = vld [vmem:[%s8002_s4 + $0x328] sm:$0xff]  ;;  %v1819_v62 = vld [vmem:[%s8002_s4 + $0x340] sm:$0xff] }
 0x1dd   : > { %v1644_v33 = vmax.f32 %v1568_v54, %v1572_v35  ;;  %v4892_v45 = vpop.f32.mrb[116].mxu0  ;;  %5049 = vmatpush1.bf16.msra.mxu1 %v6431_v3  ;;  %5145 = vmatpush1.bf16.msra.mxu0 %v6431_v3 }
 0x1de   : > { %v1421_v50 = vadd.f32 %v6195_v36, %v4892_v45  ;;  %v1412_v51 = vpop.f32.mrb[117].mxu0  ;;  %2027 = vmatprep.mubr.f32.mxu1 %v1812_v37  ;;  %2606 = vmatprep.mubr.f32.mxu0 %v4460_v39  ;;  %v4472_v45 = vld [vmem:[%s8002_s4 + $0x768] sm:$0xff] }
 0x1df   : > { %v1413_v54 = vadd.f32 %v6195_v36, %v1412_v51  ;;  %v4893_v55 = vpop.f32.mrb[118].mxu0  ;;  %5050 = vmatprep.subr.bf16.mxu1 %v5685_v34  ;;  %5146 = vmatprep.subr.bf16.mxu0 %v5685_v34 }
 0x1e0   : > { %v1577_v58 = vmax.f32 %v1421_v50, 0.0  ;;  %v1424_v59 = vadd.f32 %v6195_v36, %v4893_v55  ;;  %v1415_v61 = vpop.f32.mrb[119].mxu0  ;;  %2028 = vmatmul.mubr.f32.gmra.mrb[48].mxu1 %v1811_v38  ;;  %2607 = vmatmul.mubr.f32.gmra.mrb[176].mxu0 %v4459_v47 }
 0x1e1   : > { %v1575_v63 = vmax.f32 %v1413_v54, 0.0  ;;  %v1416_v6 = vadd.f32 %v6195_v36, %v1415_v61  ;;  %2032 = vmatprep.mubr.f32.mxu1 %v1816_v49  ;;  %2611 = vmatprep.mubr.f32.mxu0 %v4464_v52  ;;  %v1823_v52 = vld [vmem:[%s8002_s4 + $0x360] sm:$0xff] }
 0x1e2   : > { %v1709_v11 = vmax.f32 %v1645_v28, %v1577_v58  ;;  %v1578_v14 = vmax.f32 %v1424_v59, 0.0  ;;  %v4467_v28 = vld [vmem:[%s8002_s4 + $0x740] sm:$0xff] }
 0x1e3   : > { %v1707_v21 = vmax.f32 %v1643_v32, %v1575_v63  ;;  %v1576_v19 = vmax.f32 %v1416_v6, 0.0  ;;  %v4471_v54 = vld [vmem:[%s8002_s4 + $0x760] sm:$0xff] }
 0x1e4   : > { %v1710_v22 = vmax.f32 %v1646_v41, %v1578_v14  ;;  %2033 = vmatmul.mubr.f32.gmra.mrb[50].mxu1 %v1815_v8  ;;  %2612 = vmatmul.mubr.f32.gmra.mrb[178].mxu0 %v4463_v10  ;;  %v1828_v8 = vld [vmem:[%s8002_s4 + $0x388] sm:$0xff] }
 0x1e5   : > { %v1708_v24 = vmax.f32 %v1644_v33, %v1576_v19  ;;  %v4896_v25 = vpop.f32.mrb[120].mxu0  ;;  %2037 = vmatprep.mubr.f32.mxu1 %v1820_v17  ;;  %2616 = vmatprep.mubr.f32.mxu0 %v4468_v13  ;;  %v1824_v33 = vld [vmem:[%s8002_s4 + $0x368] sm:$0xff]  ;;  %v4475_v13 = vld [vmem:[%s8002_s4 + $0x780] sm:$0xff] }
 0x1e6   : > { %v6499_v31 = vpack.c.bf16 %v1710_v22, %v1709_v11  ;;  %v1437_v32 = vadd.f32 %v6195_v36, %v4896_v25  ;;  %v1428_v35 = vpop.f32.mrb[121].mxu0  ;;  %v4476_v10 = vld [vmem:[%s8002_s4 + $0x788] sm:$0xff] }
 0x1e7   : > { %v6502_v37 = vpack.c.bf16 %v1708_v24, %v1707_v21  ;;  %v1429_v39 = vadd.f32 %v6195_v36, %v1428_v35  ;;  %v4897_v41 = vpop.f32.mrb[122].mxu0 }
 0x1e8   : > { %v1581_v38 = vmax.f32 %v1437_v32, 0.0  ;;  %v1440_v47 = vadd.f32 %v6195_v36, %v4897_v41  ;;  %v1431_v50 = vpop.f32.mrb[123].mxu0  ;;  %2038 = vmatmul.mubr.f32.gmra.mrb[52].mxu1 %v1819_v62  ;;  %2617 = vmatmul.mubr.f32.gmra.mrb[180].mxu0 %v4467_v28  ;;  %v1831_v41 = vld [vmem:[%s8002_s4 + $0x3a0] sm:$0xff] }
 0x1e9   : > { %v1579_v51 = vmax.f32 %v1429_v39, 0.0  ;;  %v1432_v49 = vadd.f32 %v6195_v36, %v1431_v50  ;;  %5052 = vmatpush1.bf16.msra.mxu1 %v6502_v37  ;;  %5148 = vmatpush1.bf16.msra.mxu0 %v6502_v37 }
 0x1ea   : > { %v1649_v55 = vmax.f32 %v1577_v58, %v1581_v38  ;;  %v1582_v59 = vmax.f32 %v1440_v47, 0.0  ;;  %2042 = vmatprep.mubr.f32.mxu1 %v1824_v33  ;;  %2621 = vmatprep.mubr.f32.mxu0 %v4472_v45  ;;  %v4479_v33 = vld [vmem:[%s8002_s4 + $0x7a0] sm:$0xff]  ;;  %v1836_v47 = vld [vmem:[%s8002_s4 + $0x3c8] sm:$0xff] }
 0x1eb   : > { %v1647_v61 = vmax.f32 %v1575_v63, %v1579_v51  ;;  %v1580_v6 = vmax.f32 %v1432_v49, 0.0  ;;  %5053 = vmatprep.subr.bf16.mxu1 %v5685_v34  ;;  %5149 = vmatprep.subr.bf16.mxu0 %v5685_v34  ;;  %v1827_v63 = vld [vmem:[%s8002_s4 + $0x380] sm:$0xff] }
 0x1ec   : > { %v1650_v11 = vmax.f32 %v1578_v14, %v1582_v59  ;;  %2043 = vmatmul.mubr.f32.gmra.mrb[54].mxu1 %v1823_v52  ;;  %2622 = vmatmul.mubr.f32.gmra.mrb[182].mxu0 %v4471_v54  ;;  %v1832_v14 = vld [vmem:[%s8002_s4 + $0x3a8] sm:$0xff]  ;;  %v1835_v54 = vld [vmem:[%s8002_s4 + $0x3c0] sm:$0xff] }
 0x1ed   : > { %v1648_v58 = vmax.f32 %v1576_v19, %v1580_v6  ;;  %v4900_v17 = vpop.f32.mrb[124].mxu0  ;;  %5055 = vmatpush1.bf16.msra.mxu1 %v6499_v31  ;;  %5151 = vmatpush1.bf16.msra.mxu0 %v6499_v31  ;;  %v4480_v19 = vld [vmem:[%s8002_s4 + $0x7a8] sm:$0xff] }
 0x1ee   : > { %v1453_v21 = vadd.f32 %v6195_v36, %v4900_v17  ;;  %v1444_v22 = vpop.f32.mrb[125].mxu0  ;;  %2047 = vmatprep.mubr.f32.mxu1 %v1828_v8  ;;  %2626 = vmatprep.mubr.f32.mxu0 %v4476_v10  ;;  %v4488_v8 = vld [vmem:[%s8002_s4 + $0x7e8] sm:$0xff]  ;;  %v1839_v10 = vld [vmem:[%s8002_s4 + $0x3e0] sm:$0xff]  ;;  %v4366_v17 = vld [vmem:[%s8002_s4 + $0x418] sm:$0xff] }
 0x1ef   : > { %v1445_v24 = vadd.f32 %v6195_v36, %v1444_v22  ;;  %v4901_v25 = vpop.f32.mrb[126].mxu0  ;;  %5056 = vmatprep.subr.bf16.mxu1 %v5685_v34  ;;  %5152 = vmatprep.subr.bf16.mxu0 %v5685_v34  ;;  %v4370_v22 = vld [vmem:[%s8002_s4 + $0x438] sm:$0xff] }
 0x1f0   : > { %v1585_v62 = vmax.f32 %v1453_v21, 0.0  ;;  %v1456_v28 = vadd.f32 %v6195_v36, %v4901_v25  ;;  %v1447_v32 = vpop.f32.mrb[127].mxu0  ;;  %2048 = vmatmul.mubr.f32.gmra.mrb[56].mxu1 %v1827_v63  ;;  %2627 = vmatmul.mubr.f32.gmra.mrb[184].mxu0 %v4475_v13  ;;  %v1717_v63 = vld [vmem:[%s8002_s4 + $0x10] sm:$0xff]  ;;  %v1722_v21 = vld [vmem:[%s8002_s4 + $0x38] sm:$0xff] }
 0x1f1   : > { %v1583_v35 = vmax.f32 %v1445_v24, 0.0  ;;  %v1448_v39 = vadd.f32 %v6195_v36, %v1447_v32  ;;  %2052 = vmatprep.mubr.f32.mxu1 %v1832_v14  ;;  %2631 = vmatprep.mubr.f32.mxu0 %v4480_v19  ;;  %v4484_v36 = vld [vmem:[%s8002_s4 + $0x7c8] sm:$0xff]  ;;  %v4365_v13 = vld [vmem:[%s8002_s4 + $0x410] sm:$0xff]  ;;  %v1726_v24 = vld [vmem:[%s8002_s4 + $0x58] sm:$0xff] }
 0x1f2   : > { %v1713_v45 = vmax.f32 %v1649_v55, %v1585_v62  ;;  %v1586_v38 = vmax.f32 %v1456_v28, 0.0  ;;  %v4483_v55 = vld [vmem:[%s8002_s4 + $0x7c0] sm:$0xff]  ;;  %v1721_v14 = vld [vmem:[%s8002_s4 + $0x30] sm:$0xff]  ;;  %v1730_v28 = vld [vmem:[%s8002_s4 + $0x78] sm:$0xff] }
 0x1f3   : > { %v1711_v50 = vmax.f32 %v1647_v61, %v1583_v35  ;;  %v1584_v51 = vmax.f32 %v1448_v39, 0.0  ;;  %v1840_v61 = vld [vmem:[%s8002_s4 + $0x3e8] sm:$0xff]  ;;  %v4369_v19 = vld [vmem:[%s8002_s4 + $0x430] sm:$0xff]  ;;  %v1734_v39 = vld [vmem:[%s8002_s4 + $0x98] sm:$0xff] }
 0x1f4   : > { %v1714_v49 = vmax.f32 %v1650_v11, %v1586_v38  ;;  %2053 = vmatmul.mubr.f32.gmra.mrb[58].mxu1 %v1831_v41  ;;  %2632 = vmatmul.mubr.f32.gmra.mrb[186].mxu0 %v4479_v33  ;;  %v4487_v11 = vld [vmem:[%s8002_s4 + $0x7e0] sm:$0xff]  ;;  %v1725_v25 = vld [vmem:[%s8002_s4 + $0x50] sm:$0xff] }
 0x1f5   : > { %v1712_v52 = vmax.f32 %v1648_v58, %v1584_v51  ;;  %2057 = vmatprep.mubr.f32.mxu1 %v1836_v47  ;;  %2636 = vmatprep.mubr.f32.mxu0 %v4484_v36  ;;  %v1718_v58 = vld [vmem:[%s8002_s4 + $0x18] sm:$0xff]  ;;  %v4373_v62 = vld [vmem:[%s8002_s4 + $0x450] sm:$0xff] }
 0x1f6   : > { %v6567_v59 = vpack.c.bf16 %v1714_v49, %v1713_v45  ;;  %v1729_v32 = vld [vmem:[%s8002_s4 + $0x70] sm:$0xff]  ;;  %v1738_v45 = vld [vmem:[%s8002_s4 + $0xb8] sm:$0xff] }
 0x1f7   : > { %v6569_v6 = vpack.c.bf16 %v1712_v52, %v1711_v50  ;;  %v4377_v35 = vld [vmem:[%s8002_s4 + $0x470] sm:$0xff]  ;;  %v1742_v36 = vld [vmem:[%s8002_s4 + $0xd8] sm:$0xff] }
 0x1f8   : > { %2058 = vmatmul.mubr.f32.gmra.mrb[60].mxu1 %v1835_v54  ;;  %2637 = vmatmul.mubr.f32.gmra.mrb[188].mxu0 %v4483_v55  ;;  %v1733_v41 = vld [vmem:[%s8002_s4 + $0x90] sm:$0xff]  ;;  %v1746_v49 = vld [vmem:[%s8002_s4 + $0xf8] sm:$0xff] }
 0x1f9   : > { %5058 = vmatpush1.bf16.msra.mxu1 %v6569_v6  ;;  %5154 = vmatpush1.bf16.msra.mxu0 %v6569_v6  ;;  %v4381_v33 = vld [vmem:[%s8002_s4 + $0x490] sm:$0xff]  ;;  %v1750_v55 = vld [vmem:[%s8002_s4 + $0x118] sm:$0xff] }
 0x1fa   : > { %2062 = vmatprep.mubr.f32.mxu1 %v1840_v61  ;;  %2641 = vmatprep.mubr.f32.mxu0 %v4488_v8  ;;  %v1737_v38 = vld [vmem:[%s8002_s4 + $0xb0] sm:$0xff] }
 0x1fb   : > { %5059 = vmatprep.subr.bf16.mxu1 %v5685_v34  ;;  %5155 = vmatprep.subr.bf16.mxu0 %v5685_v34  ;;  %v4385_v47 = vld [vmem:[%s8002_s4 + $0x4b0] sm:$0xff] }
 0x1fc   : > { %2063 = vmatmul.mubr.f32.gmra.mrb[62].mxu1 %v1839_v10  ;;  %2642 = vmatmul.mubr.f32.gmra.mrb[190].mxu0 %v4487_v11  ;;  %v1741_v50 = vld [vmem:[%s8002_s4 + $0xd0] sm:$0xff]  ;;  %v1754_v10 = vld [vmem:[%s8002_s4 + $0x138] sm:$0xff] }
 0x1fd   : > { %5061 = vmatpush1.bf16.msra.mxu1 %v6567_v59  ;;  %5157 = vmatpush1.bf16.msra.mxu0 %v6567_v59  ;;  %v4389_v51 = vld [vmem:[%s8002_s4 + $0x4d0] sm:$0xff] }
 0x1fe   : > { %2132 = vmatprep.mubr.f32.mxu1 %v1718_v58  ;;  %2711 = vmatprep.mubr.f32.mxu0 %v4366_v17  ;;  %v1745_v52 = vld [vmem:[%s8002_s4 + $0xf0] sm:$0xff]  ;;  %v1758_v17 = vld [vmem:[%s8002_s4 + $0x158] sm:$0xff] }
 0x1ff   : > { %5158 = vmatprep.subr.bf16.mxu1 %v5685_v34  ;;  %v4393_v54 = vld [vmem:[%s8002_s4 + $0x4f0] sm:$0xff] }
 0x200   : > { %2133 = vmatmul.mubr.f32.vlgmr.msra.gmra.mrb[0].mxu1 %v1717_v63  ;;  %2712 = vmatmul.mubr.f32.vlgmr.msra.gmra.mrb[128].mxu0 %v4365_v13  ;;  %v1749_v61 = vld [vmem:[%s8002_s4 + $0x110] sm:$0xff] }
 0x201   : > { %5160 = vmatpush1.bf16.msra.mxu1 %v5888_v43  ;;  %2137 = vmatprep.mubr.f32.mxu1 %v1722_v21  ;;  %v4374_v43 = vld [vmem:[%s8002_s4 + $0x458] sm:$0xff]  ;;  %v4397_v8 = vld [vmem:[%s8002_s4 + $0x510] sm:$0xff] }
 0x202   : > { %2716 = vmatprep.mubr.f32.mxu0 %v4370_v22  ;;  %5161 = vmatprep.subr.bf16.mxu1 %v5685_v34  ;;  %v1753_v11 = vld [vmem:[%s8002_s4 + $0x130] sm:$0xff]  ;;  %v1762_v21 = vld [vmem:[%s8002_s4 + $0x178] sm:$0xff] }
 0x203   : > { %v4401_v58 = vld [vmem:[%s8002_s4 + $0x530] sm:$0xff] }
 0x204   : > { %2138 = vmatmul.mubr.f32.gmra.mrb[2].mxu1 %v1721_v14  ;;  %2717 = vmatmul.mubr.f32.gmra.mrb[130].mxu0 %v4369_v19  ;;  %v1757_v63 = vld [vmem:[%s8002_s4 + $0x150] sm:$0xff]  ;;  %v1766_v19 = vld [vmem:[%s8002_s4 + $0x198] sm:$0xff] }
 0x205   : > { %5163 = vmatpush1.bf16.msra.mxu1 %v5885_v40  ;;  %2142 = vmatprep.mubr.f32.mxu1 %v1726_v24  ;;  %v4378_v40 = vld [vmem:[%s8002_s4 + $0x478] sm:$0xff]  ;;  %v4405_v13 = vld [vmem:[%s8002_s4 + $0x550] sm:$0xff] }
 0x206   : > { %2721 = vmatprep.mubr.f32.mxu0 %v4374_v43  ;;  %5164 = vmatprep.subr.bf16.mxu1 %v5685_v34  ;;  %v1761_v22 = vld [vmem:[%s8002_s4 + $0x170] sm:$0xff] }
 0x207   : > { %v4409_v14 = vld [vmem:[%s8002_s4 + $0x570] sm:$0xff] }
 0x208   : > { %2143 = vmatmul.mubr.f32.gmra.mrb[4].mxu1 %v1725_v25  ;;  %2722 = vmatmul.mubr.f32.gmra.mrb[132].mxu0 %v4373_v62  ;;  %v1765_v24 = vld [vmem:[%s8002_s4 + $0x190] sm:$0xff]  ;;  %v1770_v25 = vld [vmem:[%s8002_s4 + $0x1b8] sm:$0xff] }
 0x209   : > { %5166 = vmatpush1.bf16.msra.mxu1 %v5916_v18  ;;  %2147 = vmatprep.mubr.f32.mxu1 %v1730_v28  ;;  %v4382_v18 = vld [vmem:[%s8002_s4 + $0x498] sm:$0xff]  ;;  %v4413_v43 = vld [vmem:[%s8002_s4 + $0x590] sm:$0xff] }
 0x20a   : > { %2726 = vmatprep.mubr.f32.mxu0 %v4378_v40  ;;  %5167 = vmatprep.subr.bf16.mxu1 %v5685_v34  ;;  %v1769_v62 = vld [vmem:[%s8002_s4 + $0x1b0] sm:$0xff]  ;;  %v1774_v40 = vld [vmem:[%s8002_s4 + $0x1d8] sm:$0xff] }
 0x20b   : > { %v4417_v28 = vld [vmem:[%s8002_s4 + $0x5b0] sm:$0xff] }
 0x20c   : > { %2148 = vmatmul.mubr.f32.gmra.mrb[6].mxu1 %v1729_v32  ;;  %2727 = vmatmul.mubr.f32.gmra.mrb[134].mxu0 %v4377_v35  ;;  %v1773_v32 = vld [vmem:[%s8002_s4 + $0x1d0] sm:$0xff] }
 0x20d   : > { %5169 = vmatpush1.bf16.msra.mxu1 %v5913_v15  ;;  %2152 = vmatprep.mubr.f32.mxu1 %v1734_v39  ;;  %v4386_v15 = vld [vmem:[%s8002_s4 + $0x4b8] sm:$0xff]  ;;  %v4421_v35 = vld [vmem:[%s8002_s4 + $0x5d0] sm:$0xff] }
 0x20e   : > { %2731 = vmatprep.mubr.f32.mxu0 %v4382_v18  ;;  %5170 = vmatprep.subr.bf16.mxu1 %v5685_v34  ;;  %v1778_v39 = vld [vmem:[%s8002_s4 + $0x1f8] sm:$0xff]  ;;  %v1777_v18 = vld [vmem:[%s8002_s4 + $0x1f0] sm:$0xff] }
 0x210   : > { %2153 = vmatmul.mubr.f32.gmra.mrb[8].mxu1 %v1733_v41  ;;  %2732 = vmatmul.mubr.f32.gmra.mrb[136].mxu0 %v4381_v33  ;;  %v4425_v41 = vld [vmem:[%s8002_s4 + $0x5f0] sm:$0xff]  ;;  %v1782_v33 = vld [vmem:[%s8002_s4 + $0x218] sm:$0xff] }
 0x211   : > { %5172 = vmatpush1.bf16.msra.mxu1 %v5940_v56  ;;  %2157 = vmatprep.mubr.f32.mxu1 %v1738_v45  ;;  %v4390_v56 = vld [vmem:[%s8002_s4 + $0x4d8] sm:$0xff]  ;;  %v1781_v45 = vld [vmem:[%s8002_s4 + $0x210] sm:$0xff] }
 0x212   : > { %2736 = vmatprep.mubr.f32.mxu0 %v4386_v15  ;;  %5173 = vmatprep.subr.bf16.mxu1 %v5685_v34  ;;  %v4429_v15 = vld [vmem:[%s8002_s4 + $0x610] sm:$0xff] }
 0x214   : > { %2158 = vmatmul.mubr.f32.gmra.mrb[10].mxu1 %v1737_v38  ;;  %2737 = vmatmul.mubr.f32.gmra.mrb[138].mxu0 %v4385_v47  ;;  %v1786_v38 = vld [vmem:[%s8002_s4 + $0x238] sm:$0xff] }
 0x215   : > { %5175 = vmatpush1.bf16.msra.mxu1 %v5937_v53  ;;  %2162 = vmatprep.mubr.f32.mxu1 %v1742_v36  ;;  %v4394_v53 = vld [vmem:[%s8002_s4 + $0x4f8] sm:$0xff]  ;;  %v4433_v36 = vld [vmem:[%s8002_s4 + $0x630] sm:$0xff] }
 0x216   : > { %2741 = vmatprep.mubr.f32.mxu0 %v4390_v56  ;;  %5176 = vmatprep.subr.bf16.mxu1 %v5685_v34  ;;  %v4434_v47 = vld [vmem:[%s8002_s4 + $0x638] sm:$0xff] }
 0x217   : > { %v1790_v56 = vld [vmem:[%s8002_s4 + $0x258] sm:$0xff] }
 0x218   : > { %2163 = vmatmul.mubr.f32.gmra.mrb[12].mxu1 %v1741_v50  ;;  %2742 = vmatmul.mubr.f32.gmra.mrb[140].mxu0 %v4389_v51  ;;  %v4438_v50 = vld [vmem:[%s8002_s4 + $0x658] sm:$0xff]  ;;  %v1789_v51 = vld [vmem:[%s8002_s4 + $0x250] sm:$0xff] }
 0x219   : > { %5178 = vmatpush1.bf16.msra.mxu1 %v5960_v29  ;;  %2167 = vmatprep.mubr.f32.mxu1 %v1746_v49  ;;  %v4398_v29 = vld [vmem:[%s8002_s4 + $0x518] sm:$0xff]  ;;  %v4437_v49 = vld [vmem:[%s8002_s4 + $0x650] sm:$0xff] }
 0x21a   : > { %2746 = vmatprep.mubr.f32.mxu0 %v4394_v53  ;;  %5179 = vmatprep.subr.bf16.mxu1 %v5685_v34  ;;  %v1794_v53 = vld [vmem:[%s8002_s4 + $0x278] sm:$0xff] }
 0x21c   : > { %2168 = vmatmul.mubr.f32.gmra.mrb[14].mxu1 %v1745_v52  ;;  %2747 = vmatmul.mubr.f32.gmra.mrb[142].mxu0 %v4393_v54  ;;  %v4442_v52 = vld [vmem:[%s8002_s4 + $0x678] sm:$0xff]  ;;  %v1793_v54 = vld [vmem:[%s8002_s4 + $0x270] sm:$0xff] }
 0x21d   : > { %5181 = vmatpush1.bf16.msra.mxu1 %v5957_v26  ;;  %2172 = vmatprep.mubr.f32.mxu1 %v1750_v55  ;;  %v4402_v26 = vld [vmem:[%s8002_s4 + $0x538] sm:$0xff]  ;;  %v4441_v55 = vld [vmem:[%s8002_s4 + $0x670] sm:$0xff] }
 0x21e   : > { %2751 = vmatprep.mubr.f32.mxu0 %v4398_v29  ;;  %5182 = vmatprep.subr.bf16.mxu1 %v5685_v34  ;;  %v1798_v29 = vld [vmem:[%s8002_s4 + $0x298] sm:$0xff] }
 0x220   : > { %2173 = vmatmul.mubr.f32.gmra.mrb[16].mxu1 %v1749_v61  ;;  %2752 = vmatmul.mubr.f32.gmra.mrb[144].mxu0 %v4397_v8  ;;  %v4446_v61 = vld [vmem:[%s8002_s4 + $0x698] sm:$0xff]  ;;  %v1797_v8 = vld [vmem:[%s8002_s4 + $0x290] sm:$0xff] }
 0x221   : > { %5184 = vmatpush1.bf16.msra.mxu1 %v5980_v5  ;;  %2177 = vmatprep.mubr.f32.mxu1 %v1754_v10  ;;  %v4406_v5 = vld [vmem:[%s8002_s4 + $0x558] sm:$0xff]  ;;  %v4445_v10 = vld [vmem:[%s8002_s4 + $0x690] sm:$0xff] }
 0x222   : > { %2756 = vmatprep.mubr.f32.mxu0 %v4402_v26  ;;  %5185 = vmatprep.subr.bf16.mxu1 %v5685_v34  ;;  %v1802_v26 = vld [vmem:[%s8002_s4 + $0x2b8] sm:$0xff] }
 0x224   : > { %2178 = vmatmul.mubr.f32.gmra.mrb[18].mxu1 %v1753_v11  ;;  %2757 = vmatmul.mubr.f32.gmra.mrb[146].mxu0 %v4401_v58  ;;  %v4450_v11 = vld [vmem:[%s8002_s4 + $0x6b8] sm:$0xff]  ;;  %v1801_v58 = vld [vmem:[%s8002_s4 + $0x2b0] sm:$0xff] }
 0x225   : > { %5187 = vmatpush1.bf16.msra.mxu1 %v5977_v2  ;;  %2182 = vmatprep.mubr.f32.mxu1 %v1758_v17  ;;  %v4410_v2 = vld [vmem:[%s8002_s4 + $0x578] sm:$0xff]  ;;  %v4449_v17 = vld [vmem:[%s8002_s4 + $0x6b0] sm:$0xff] }
 0x226   : > { %2761 = vmatprep.mubr.f32.mxu0 %v4406_v5  ;;  %5188 = vmatprep.subr.bf16.mxu1 %v5685_v34  ;;  %v1806_v5 = vld [vmem:[%s8002_s4 + $0x2d8] sm:$0xff] }
 0x228   : > { %2183 = vmatmul.mubr.f32.gmra.mrb[20].mxu1 %v1757_v63  ;;  %2762 = vmatmul.mubr.f32.gmra.mrb[148].mxu0 %v4405_v13  ;;  %v4454_v63 = vld [vmem:[%s8002_s4 + $0x6d8] sm:$0xff]  ;;  %v1805_v13 = vld [vmem:[%s8002_s4 + $0x2d0] sm:$0xff] }
 0x229   : > { %5190 = vmatpush1.bf16.msra.mxu1 %v6000_v46  ;;  %2187 = vmatprep.mubr.f32.mxu1 %v1762_v21  ;;  %v4414_v46 = vld [vmem:[%s8002_s4 + $0x598] sm:$0xff]  ;;  %v4453_v21 = vld [vmem:[%s8002_s4 + $0x6d0] sm:$0xff] }
 0x22a   : > { %2766 = vmatprep.mubr.f32.mxu0 %v4410_v2  ;;  %5191 = vmatprep.subr.bf16.mxu1 %v5685_v34  ;;  %v1810_v2 = vld [vmem:[%s8002_s4 + $0x2f8] sm:$0xff] }
 0x22c   : > { %2188 = vmatmul.mubr.f32.gmra.mrb[22].mxu1 %v1761_v22  ;;  %2767 = vmatmul.mubr.f32.gmra.mrb[150].mxu0 %v4409_v14  ;;  %v4458_v22 = vld [vmem:[%s8002_s4 + $0x6f8] sm:$0xff]  ;;  %v1809_v14 = vld [vmem:[%s8002_s4 + $0x2f0] sm:$0xff] }
 0x22d   : > { %5193 = vmatpush1.bf16.msra.mxu1 %v5997_v42  ;;  %2192 = vmatprep.mubr.f32.mxu1 %v1766_v19  ;;  %v4418_v42 = vld [vmem:[%s8002_s4 + $0x5b8] sm:$0xff]  ;;  %v4457_v19 = vld [vmem:[%s8002_s4 + $0x6f0] sm:$0xff] }
 0x22e   : > { %2771 = vmatprep.mubr.f32.mxu0 %v4414_v46  ;;  %5194 = vmatprep.subr.bf16.mxu1 %v5685_v34  ;;  %v1814_v46 = vld [vmem:[%s8002_s4 + $0x318] sm:$0xff] }
 0x230   : > { %2193 = vmatmul.mubr.f32.gmra.mrb[24].mxu1 %v1765_v24  ;;  %2772 = vmatmul.mubr.f32.gmra.mrb[152].mxu0 %v4413_v43  ;;  %v4462_v24 = vld [vmem:[%s8002_s4 + $0x718] sm:$0xff]  ;;  %v1813_v43 = vld [vmem:[%s8002_s4 + $0x310] sm:$0xff] }
 0x231   : > { %5196 = vmatpush1.bf16.msra.mxu1 %v6020_v23  ;;  %2197 = vmatprep.mubr.f32.mxu1 %v1770_v25  ;;  %v4422_v23 = vld [vmem:[%s8002_s4 + $0x5d8] sm:$0xff]  ;;  %v4461_v25 = vld [vmem:[%s8002_s4 + $0x710] sm:$0xff] }
 0x232   : > { %2776 = vmatprep.mubr.f32.mxu0 %v4418_v42  ;;  %5197 = vmatprep.subr.bf16.mxu1 %v5685_v34  ;;  %v1818_v42 = vld [vmem:[%s8002_s4 + $0x338] sm:$0xff] }
 0x234   : > { %2198 = vmatmul.mubr.f32.gmra.mrb[26].mxu1 %v1769_v62  ;;  %2777 = vmatmul.mubr.f32.gmra.mrb[154].mxu0 %v4417_v28  ;;  %v4466_v62 = vld [vmem:[%s8002_s4 + $0x738] sm:$0xff]  ;;  %v1817_v28 = vld [vmem:[%s8002_s4 + $0x330] sm:$0xff] }
 0x235   : > { %5199 = vmatpush1.bf16.msra.mxu1 %v6017_v20  ;;  %2202 = vmatprep.mubr.f32.mxu1 %v1774_v40  ;;  %v4426_v20 = vld [vmem:[%s8002_s4 + $0x5f8] sm:$0xff]  ;;  %v4465_v40 = vld [vmem:[%s8002_s4 + $0x730] sm:$0xff] }
 0x236   : > { %2781 = vmatprep.mubr.f32.mxu0 %v4422_v23  ;;  %5200 = vmatprep.subr.bf16.mxu1 %v5685_v34  ;;  %v1822_v23 = vld [vmem:[%s8002_s4 + $0x358] sm:$0xff] }
 0x238   : > { %2203 = vmatmul.mubr.f32.gmra.mrb[28].mxu1 %v1773_v32  ;;  %2782 = vmatmul.mubr.f32.gmra.mrb[156].mxu0 %v4421_v35  ;;  %v4470_v32 = vld [vmem:[%s8002_s4 + $0x758] sm:$0xff]  ;;  %v1821_v35 = vld [vmem:[%s8002_s4 + $0x350] sm:$0xff] }
 0x239   : > { %5202 = vmatpush1.bf16.msra.mxu1 %v6040_v4  ;;  %2207 = vmatprep.mubr.f32.mxu1 %v1778_v39  ;;  %v4430_v4 = vld [vmem:[%s8002_s4 + $0x618] sm:$0xff]  ;;  %v4469_v39 = vld [vmem:[%s8002_s4 + $0x750] sm:$0xff] }
 0x23a   : > { %2786 = vmatprep.mubr.f32.mxu0 %v4426_v20  ;;  %5203 = vmatprep.subr.bf16.mxu1 %v5685_v34  ;;  %v1826_v20 = vld [vmem:[%s8002_s4 + $0x378] sm:$0xff] }
 0x23c   : > { %2208 = vmatmul.mubr.f32.gmra.mrb[30].mxu1 %v1777_v18  ;;  %2787 = vmatmul.mubr.f32.gmra.mrb[158].mxu0 %v4425_v41  ;;  %v4474_v18 = vld [vmem:[%s8002_s4 + $0x778] sm:$0xff]  ;;  %v1825_v41 = vld [vmem:[%s8002_s4 + $0x370] sm:$0xff] }
 0x23d   : > { %5205 = vmatpush1.bf16.msra.mxu1 %v6037_v0  ;;  %2212 = vmatprep.mubr.f32.mxu1 %v1782_v33  ;;  %v1785_v0 = vld [vmem:[%s8002_s4 + $0x230] sm:$0xff] }
 0x23e   : > { %2791 = vmatprep.mubr.f32.mxu0 %v4430_v4  ;;  %5206 = vmatprep.subr.bf16.mxu1 %v5685_v34  ;;  %v4473_v33 = vld [vmem:[%s8002_s4 + $0x770] sm:$0xff]  ;;  %v1830_v4 = vld [vmem:[%s8002_s4 + $0x398] sm:$0xff] }
 0x240   : > { %2213 = vmatmul.mubr.f32.gmra.mrb[32].mxu1 %v1781_v45  ;;  %2792 = vmatmul.mubr.f32.gmra.mrb[160].mxu0 %v4429_v15  ;;  %v4478_v45 = vld [vmem:[%s8002_s4 + $0x798] sm:$0xff]  ;;  %v1829_v15 = vld [vmem:[%s8002_s4 + $0x390] sm:$0xff] }
 0x241   : > { %2217 = vmatprep.mubr.f32.mxu1 %v1786_v38  ;;  %2796 = vmatprep.mubr.f32.mxu0 %v4434_v47  ;;  %v4477_v38 = vld [vmem:[%s8002_s4 + $0x790] sm:$0xff]  ;;  %v1834_v47 = vld [vmem:[%s8002_s4 + $0x3b8] sm:$0xff] }
 0x244   : > { %2218 = vmatmul.mubr.f32.gmra.mrb[34].mxu1 %v1785_v0  ;;  %2797 = vmatmul.mubr.f32.gmra.mrb[162].mxu0 %v4433_v36  ;;  %v4482_v0 = vld [vmem:[%s8002_s4 + $0x7b8] sm:$0xff]  ;;  %v1833_v36 = vld [vmem:[%s8002_s4 + $0x3b0] sm:$0xff] }
 0x245   : > { %2222 = vmatprep.mubr.f32.mxu1 %v1790_v56  ;;  %2801 = vmatprep.mubr.f32.mxu0 %v4438_v50  ;;  %v4481_v56 = vld [vmem:[%s8002_s4 + $0x7b0] sm:$0xff]  ;;  %v1838_v50 = vld [vmem:[%s8002_s4 + $0x3d8] sm:$0xff] }
 0x248   : > { %2223 = vmatmul.mubr.f32.gmra.mrb[36].mxu1 %v1789_v51  ;;  %2802 = vmatmul.mubr.f32.gmra.mrb[164].mxu0 %v4437_v49  ;;  %v4486_v51 = vld [vmem:[%s8002_s4 + $0x7d8] sm:$0xff]  ;;  %v1837_v49 = vld [vmem:[%s8002_s4 + $0x3d0] sm:$0xff] }
 0x249   : > { %2227 = vmatprep.mubr.f32.mxu1 %v1794_v53  ;;  %2806 = vmatprep.mubr.f32.mxu0 %v4442_v52  ;;  %v4485_v53 = vld [vmem:[%s8002_s4 + $0x7d0] sm:$0xff]  ;;  %v1842_v52 = vld [vmem:[%s8002_s4 + $0x3f8] sm:$0xff] }
 0x24c   : > { %2228 = vmatmul.mubr.f32.gmra.mrb[38].mxu1 %v1793_v54  ;;  %2807 = vmatmul.mubr.f32.gmra.mrb[166].mxu0 %v4441_v55  ;;  %v4490_v54 = vld [vmem:[%s8002_s4 + $0x7f8] sm:$0xff]  ;;  %v1841_v55 = vld [vmem:[%s8002_s4 + $0x3f0] sm:$0xff] }
 0x24d   : > { %2232 = vmatprep.mubr.f32.mxu1 %v1798_v29  ;;  %2811 = vmatprep.mubr.f32.mxu0 %v4446_v61  ;;  %v4489_v29 = vld [vmem:[%s8002_s4 + $0x7f0] sm:$0xff]  ;;  %v4492_v61 = vld [vmem:[%s8002_s4 + $0x808] sm:$0xff] }
 0x250   : > { %2233 = vmatmul.mubr.f32.gmra.mrb[40].mxu1 %v1797_v8  ;;  %2812 = vmatmul.mubr.f32.gmra.mrb[168].mxu0 %v4445_v10  ;;  %v4491_v8 = vld [vmem:[%s8002_s4 + $0x800] sm:$0xff]  ;;  %v4496_v10 = vld [vmem:[%s8002_s4 + $0x828] sm:$0xff] }
 0x251   : > { %2237 = vmatprep.mubr.f32.mxu1 %v1802_v26  ;;  %2816 = vmatprep.mubr.f32.mxu0 %v4450_v11  ;;  %v4495_v26 = vld [vmem:[%s8002_s4 + $0x820] sm:$0xff]  ;;  %v4500_v11 = vld [vmem:[%s8002_s4 + $0x848] sm:$0xff] }
 0x254   : > { %2238 = vmatmul.mubr.f32.gmra.mrb[42].mxu1 %v1801_v58  ;;  %2817 = vmatmul.mubr.f32.gmra.mrb[170].mxu0 %v4449_v17  ;;  %v4499_v58 = vld [vmem:[%s8002_s4 + $0x840] sm:$0xff] }
 0x255   : > { %2242 = vmatprep.mubr.f32.mxu1 %v1806_v5  ;;  %2821 = vmatprep.mubr.f32.mxu0 %v4454_v63  ;;  %v4503_v17 = vld [vmem:[%s8002_s4 + $0x860] sm:$0xff] }
 0x256   : > { %v4507_v5 = vld [vmem:[%s8002_s4 + $0x880] sm:$0xff] }
 0x257   : > { %v4511_v63 = vld [vmem:[%s8002_s4 + $0x8a0] sm:$0xff] }
 0x258   : > { %2243 = vmatmul.mubr.f32.gmra.mrb[44].mxu1 %v1805_v13  ;;  %2822 = vmatmul.mubr.f32.gmra.mrb[172].mxu0 %v4453_v21  ;;  %v4515_v13 = vld [vmem:[%s8002_s4 + $0x8c0] sm:$0xff] }
 0x259   : > { %2247 = vmatprep.mubr.f32.mxu1 %v1810_v2  ;;  %2826 = vmatprep.mubr.f32.mxu0 %v4458_v22  ;;  %v4519_v21 = vld [vmem:[%s8002_s4 + $0x8e0] sm:$0xff] }
 0x25a   : > { %v4523_v2 = vld [vmem:[%s8002_s4 + $0x900] sm:$0xff] }
 0x25b   : > { %v4527_v22 = vld [vmem:[%s8002_s4 + $0x920] sm:$0xff] }
 0x25c   : > { %2248 = vmatmul.mubr.f32.gmra.mrb[46].mxu1 %v1809_v14  ;;  %2827 = vmatmul.mubr.f32.gmra.mrb[174].mxu0 %v4457_v19  ;;  %v4531_v14 = vld [vmem:[%s8002_s4 + $0x940] sm:$0xff] }
 0x25d   : > { %2252 = vmatprep.mubr.f32.mxu1 %v1814_v46  ;;  %2831 = vmatprep.mubr.f32.mxu0 %v4462_v24  ;;  %v4535_v19 = vld [vmem:[%s8002_s4 + $0x960] sm:$0xff] }
 0x25e   : > { %v4539_v46 = vld [vmem:[%s8002_s4 + $0x980] sm:$0xff] }
 0x25f   : > { %v4543_v24 = vld [vmem:[%s8002_s4 + $0x9a0] sm:$0xff] }
 0x260   : > { %2253 = vmatmul.mubr.f32.gmra.mrb[48].mxu1 %v1813_v43  ;;  %2832 = vmatmul.mubr.f32.gmra.mrb[176].mxu0 %v4461_v25  ;;  %v4547_v43 = vld [vmem:[%s8002_s4 + $0x9c0] sm:$0xff] }
 0x261   : > { %2257 = vmatprep.mubr.f32.mxu1 %v1818_v42  ;;  %2836 = vmatprep.mubr.f32.mxu0 %v4466_v62  ;;  %v4551_v25 = vld [vmem:[%s8002_s4 + $0x9e0] sm:$0xff]  ;;  %v4564_v62 = vld [vmem:[%s8002_s4 + $0xa48] sm:$0xff] }
 0x262   : > { %v4555_v42 = vld [vmem:[%s8002_s4 + $0xa00] sm:$0xff] }
 0x264   : > { %2258 = vmatmul.mubr.f32.gmra.mrb[50].mxu1 %v1817_v28  ;;  %2837 = vmatmul.mubr.f32.gmra.mrb[178].mxu0 %v4465_v40  ;;  %v4568_v28 = vld [vmem:[%s8002_s4 + $0xa68] sm:$0xff]  ;;  %v4567_v40 = vld [vmem:[%s8002_s4 + $0xa60] sm:$0xff] }
 0x265   : > { %2262 = vmatprep.mubr.f32.mxu1 %v1822_v23  ;;  %2841 = vmatprep.mubr.f32.mxu0 %v4470_v32  ;;  %v4572_v23 = vld [vmem:[%s8002_s4 + $0xa88] sm:$0xff]  ;;  %v4571_v32 = vld [vmem:[%s8002_s4 + $0xa80] sm:$0xff] }
 0x268   : > { %2263 = vmatmul.mubr.f32.gmra.mrb[52].mxu1 %v1821_v35  ;;  %2842 = vmatmul.mubr.f32.gmra.mrb[180].mxu0 %v4469_v39  ;;  %v4576_v35 = vld [vmem:[%s8002_s4 + $0xaa8] sm:$0xff]  ;;  %v4575_v39 = vld [vmem:[%s8002_s4 + $0xaa0] sm:$0xff] }
 0x269   : > { %2267 = vmatprep.mubr.f32.mxu1 %v1826_v20  ;;  %2846 = vmatprep.mubr.f32.mxu0 %v4474_v18  ;;  %v4580_v20 = vld [vmem:[%s8002_s4 + $0xac8] sm:$0xff] }
 0x26c   : > { %2268 = vmatmul.mubr.f32.gmra.mrb[54].mxu1 %v1825_v41  ;;  %2847 = vmatmul.mubr.f32.gmra.mrb[182].mxu0 %v4473_v33 }
 0x26d   : > { %2272 = vmatprep.mubr.f32.mxu1 %v1830_v4  ;;  %2851 = vmatprep.mubr.f32.mxu0 %v4478_v45 }
 0x270   : > { %2273 = vmatmul.mubr.f32.gmra.mrb[56].mxu1 %v1829_v15  ;;  %2852 = vmatmul.mubr.f32.gmra.mrb[184].mxu0 %v4477_v38  ;;  %v4579_v15 = vld [vmem:[%s8002_s4 + $0xac0] sm:$0xff]  ;;  %v4584_v38 = vld [vmem:[%s8002_s4 + $0xae8] sm:$0xff] }
 0x271   : > { %2277 = vmatprep.mubr.f32.mxu1 %v1834_v47  ;;  %2856 = vmatprep.mubr.f32.mxu0 %v4482_v0 }
 0x274   : > { %2278 = vmatmul.mubr.f32.gmra.mrb[58].mxu1 %v1833_v36  ;;  %2857 = vmatmul.mubr.f32.gmra.mrb[186].mxu0 %v4481_v56 }
 0x275   : > { %2282 = vmatprep.mubr.f32.mxu1 %v1838_v50  ;;  %2861 = vmatprep.mubr.f32.mxu0 %v4486_v51  ;;  %v4583_v51 = vld [vmem:[%s8002_s4 + $0xae0] sm:$0xff] }
 0x278   : > { %2283 = vmatmul.mubr.f32.gmra.mrb[60].mxu1 %v1837_v49  ;;  %2862 = vmatmul.mubr.f32.gmra.mrb[188].mxu0 %v4485_v53  ;;  %v4588_v49 = vld [vmem:[%s8002_s4 + $0xb08] sm:$0xff] }
 0x279   : > { %2287 = vmatprep.mubr.f32.mxu1 %v1842_v52  ;;  %2866 = vmatprep.mubr.f32.mxu0 %v4490_v54 }
 0x27c   : > { %2288 = vmatmul.mubr.f32.gmra.mrb[62].mxu1 %v1841_v55  ;;  %2867 = vmatmul.mubr.f32.gmra.mrb[190].mxu0 %v4489_v29 }
 0x27d   : > { %3097 = vmatprep.mubr.f32.mxu1 %v4492_v61  ;;  %v4587_v61 = vld [vmem:[%s8002_s4 + $0xb00] sm:$0xff] }
 0x280   : > { %3098 = vmatmul.mubr.f32.vlgmr.msra.gmra.mrb[64].mxu1 %v4491_v8  ;;  %v4592_v8 = vld [vmem:[%s8002_s4 + $0xb28] sm:$0xff] }
 0x281   : > { %5208 = vmatpush1.bf16.msra.mxu1 %v6089_v60  ;;  %3102 = vmatprep.mubr.f32.mxu1 %v4496_v10  ;;  %v4504_v60 = vld [vmem:[%s8002_s4 + $0x868] sm:$0xff] }
 0x282   : > { %5209 = vmatprep.subr.bf16.mxu1 %v5685_v34 }
 0x284   : > { %3103 = vmatmul.mubr.f32.gmra.mrb[66].mxu1 %v4495_v26 }
 0x285   : > { %5211 = vmatpush1.bf16.msra.mxu1 %v6086_v57  ;;  %3107 = vmatprep.mubr.f32.mxu1 %v4500_v11  ;;  %v4508_v57 = vld [vmem:[%s8002_s4 + $0x888] sm:$0xff] }
 0x286   : > { %5212 = vmatprep.subr.bf16.mxu1 %v5685_v34 }
 0x288   : > { %3108 = vmatmul.mubr.f32.gmra.mrb[68].mxu1 %v4499_v58 }
 0x289   : > { %5214 = vmatpush1.bf16.msra.mxu1 %v6157_v7  ;;  %3112 = vmatprep.mubr.f32.mxu1 %v4504_v60  ;;  %v4512_v7 = vld [vmem:[%s8002_s4 + $0x8a8] sm:$0xff] }
 0x28a   : > { %5215 = vmatprep.subr.bf16.mxu1 %v5685_v34 }
 0x28c   : > { %3113 = vmatmul.mubr.f32.gmra.mrb[70].mxu1 %v4503_v17  ;;  %v4591_v17 = vld [vmem:[%s8002_s4 + $0xb20] sm:$0xff] }
 0x28d   : > { %5217 = vmatpush1.bf16.msra.mxu1 %v6154_v1  ;;  %3117 = vmatprep.mubr.f32.mxu1 %v4508_v57  ;;  %v4516_v1 = vld [vmem:[%s8002_s4 + $0x8c8] sm:$0xff] }
 0x28e   : > { %5218 = vmatprep.subr.bf16.mxu1 %v5685_v34  ;;  %v4596_v57 = vld [vmem:[%s8002_s4 + $0xb48] sm:$0xff] }
 0x290   : > { %3118 = vmatmul.mubr.f32.gmra.mrb[72].mxu1 %v4507_v5 }
 0x291   : > { %5220 = vmatpush1.bf16.msra.mxu1 %v6230_v16  ;;  %3122 = vmatprep.mubr.f32.mxu1 %v4512_v7  ;;  %v4520_v16 = vld [vmem:[%s8002_s4 + $0x8e8] sm:$0xff] }
 0x292   : > { %5221 = vmatprep.subr.bf16.mxu1 %v5685_v34 }
 0x294   : > { %3123 = vmatmul.mubr.f32.gmra.mrb[74].mxu1 %v4511_v63 }
 0x295   : > { %5223 = vmatpush1.bf16.msra.mxu1 %v6227_v12  ;;  %3127 = vmatprep.mubr.f32.mxu1 %v4516_v1  ;;  %v4524_v12 = vld [vmem:[%s8002_s4 + $0x908] sm:$0xff] }
 0x296   : > { %5224 = vmatprep.subr.bf16.mxu1 %v5685_v34 }
 0x298   : > { %3128 = vmatmul.mubr.f32.gmra.mrb[76].mxu1 %v4515_v13 }
 0x299   : > { %5226 = vmatpush1.bf16.msra.mxu1 %v6298_v30  ;;  %3132 = vmatprep.mubr.f32.mxu1 %v4520_v16  ;;  %v4528_v30 = vld [vmem:[%s8002_s4 + $0x928] sm:$0xff]  ;;  %v4595_v16 = vld [vmem:[%s8002_s4 + $0xb40] sm:$0xff] }
 0x29a   : > { %5227 = vmatprep.subr.bf16.mxu1 %v5685_v34 }
 0x29c   : > { %3133 = vmatmul.mubr.f32.gmra.mrb[78].mxu1 %v4519_v21  ;;  %v4600_v21 = vld [vmem:[%s8002_s4 + $0xb68] sm:$0xff] }
 0x29d   : > { %5229 = vmatpush1.bf16.msra.mxu1 %v6295_v27  ;;  %3137 = vmatprep.mubr.f32.mxu1 %v4524_v12  ;;  %v4532_v27 = vld [vmem:[%s8002_s4 + $0x948] sm:$0xff] }
 0x29e   : > { %5230 = vmatprep.subr.bf16.mxu1 %v5685_v34 }
 0x2a0   : > { %3138 = vmatmul.mubr.f32.gmra.mrb[80].mxu1 %v4523_v2 }
 0x2a1   : > { %5232 = vmatpush1.bf16.msra.mxu1 %v6366_v48  ;;  %3142 = vmatprep.mubr.f32.mxu1 %v4528_v30  ;;  %v4536_v48 = vld [vmem:[%s8002_s4 + $0x968] sm:$0xff] }
 0x2a2   : > { %5233 = vmatprep.subr.bf16.mxu1 %v5685_v34 }
 0x2a4   : > { %3143 = vmatmul.mubr.f32.gmra.mrb[82].mxu1 %v4527_v22 }
 0x2a5   : > { %5235 = vmatpush1.bf16.msra.mxu1 %v6363_v44  ;;  %3147 = vmatprep.mubr.f32.mxu1 %v4532_v27  ;;  %v4540_v44 = vld [vmem:[%s8002_s4 + $0x988] sm:$0xff] }
 0x2a6   : > { %5236 = vmatprep.subr.bf16.mxu1 %v5685_v34 }
 0x2a8   : > { %3148 = vmatmul.mubr.f32.gmra.mrb[84].mxu1 %v4531_v14  ;;  %v4599_v14 = vld [vmem:[%s8002_s4 + $0xb60] sm:$0xff] }
 0x2a9   : > { %5238 = vmatpush1.bf16.msra.mxu1 %v6434_v9  ;;  %3152 = vmatprep.mubr.f32.mxu1 %v4536_v48  ;;  %v4544_v9 = vld [vmem:[%s8002_s4 + $0x9a8] sm:$0xff] }
 0x2aa   : > { %5239 = vmatprep.subr.bf16.mxu1 %v5685_v34  ;;  %v4604_v48 = vld [vmem:[%s8002_s4 + $0xb88] sm:$0xff] }
 0x2ac   : > { %3153 = vmatmul.mubr.f32.gmra.mrb[86].mxu1 %v4535_v19 }
 0x2ad   : > { %5241 = vmatpush1.bf16.msra.mxu1 %v6431_v3  ;;  %3157 = vmatprep.mubr.f32.mxu1 %v4540_v44  ;;  %v4548_v3 = vld [vmem:[%s8002_s4 + $0x9c8] sm:$0xff] }
 0x2ae   : > { %5242 = vmatprep.subr.bf16.mxu1 %v5685_v34 }
 0x2b0   : > { %3158 = vmatmul.mubr.f32.gmra.mrb[88].mxu1 %v4539_v46 }
 0x2b1   : > { %5244 = vmatpush1.bf16.msra.mxu1 %v6502_v37  ;;  %3162 = vmatprep.mubr.f32.mxu1 %v4544_v9  ;;  %v4552_v37 = vld [vmem:[%s8002_s4 + $0x9e8] sm:$0xff] }
 0x2b2   : > { %5245 = vmatprep.subr.bf16.mxu1 %v5685_v34 }
 0x2b4   : > { %3163 = vmatmul.mubr.f32.gmra.mrb[90].mxu1 %v4543_v24 }
 0x2b5   : > { %5247 = vmatpush1.bf16.msra.mxu1 %v6499_v31  ;;  %3167 = vmatprep.mubr.f32.mxu1 %v4548_v3  ;;  %v4556_v31 = vld [vmem:[%s8002_s4 + $0xa08] sm:$0xff]  ;;  %v4603_v3 = vld [vmem:[%s8002_s4 + $0xb80] sm:$0xff] }
 0x2b6   : > { %5248 = vmatprep.subr.bf16.mxu1 %v5685_v34 }
 0x2b8   : > { %3168 = vmatmul.mubr.f32.gmra.mrb[92].mxu1 %v4547_v43  ;;  %v4608_v43 = vld [vmem:[%s8002_s4 + $0xba8] sm:$0xff] }
 0x2b9   : > { %5250 = vmatpush1.bf16.msra.mxu1 %v6569_v6  ;;  %3172 = vmatprep.mubr.f32.mxu1 %v4552_v37  ;;  %v4560_v6 = vld [vmem:[%s8002_s4 + $0xa28] sm:$0xff] }
 0x2ba   : > { %5251 = vmatprep.subr.bf16.mxu1 %v5685_v34  ;;  %v4559_v34 = vld [vmem:[%s8002_s4 + $0xa20] sm:$0xff] }
 0x2bc   : > { %3173 = vmatmul.mubr.f32.gmra.mrb[94].mxu1 %v4551_v25 }
 0x2bd   : > { %5253 = vmatpush1.bf16.msra.mxu1 %v6567_v59  ;;  %3177 = vmatprep.mubr.f32.mxu1 %v4556_v31  ;;  %v4563_v59 = vld [vmem:[%s8002_s4 + $0xa40] sm:$0xff] }
 0x2c0   : > { %3178 = vmatmul.mubr.f32.gmra.mrb[96].mxu1 %v4555_v42 }
 0x2c1   : > { %3182 = vmatprep.mubr.f32.mxu1 %v4560_v6 }
 0x2c4   : > { %3183 = vmatmul.mubr.f32.gmra.mrb[98].mxu1 %v4559_v34  ;;  %v4607_v34 = vld [vmem:[%s8002_s4 + $0xba0] sm:$0xff] }
 0x2c5   : > { %3187 = vmatprep.mubr.f32.mxu1 %v4564_v62  ;;  %v4612_v62 = vld [vmem:[%s8002_s4 + $0xbc8] sm:$0xff] }
 0x2c8   : > { %3188 = vmatmul.mubr.f32.gmra.mrb[100].mxu1 %v4563_v59 }
 0x2c9   : > { %3192 = vmatprep.mubr.f32.mxu1 %v4568_v28 }
 0x2cc   : > { %3193 = vmatmul.mubr.f32.gmra.mrb[102].mxu1 %v4567_v40 }
 0x2cd   : > { %3197 = vmatprep.mubr.f32.mxu1 %v4572_v23 }
 0x2d0   : > { %3198 = vmatmul.mubr.f32.gmra.mrb[104].mxu1 %v4571_v32 }
 0x2d1   : > { %3202 = vmatprep.mubr.f32.mxu1 %v4576_v35  ;;  %v4611_v35 = vld [vmem:[%s8002_s4 + $0xbc0] sm:$0xff] }
 0x2d3   : > { %v7172_v18 = vpop.f32.mrb[0].mxu1  ;;  %v7174_v41 = vpop.f32.mrb[128].mxu0 }
 0x2d4   : > { %v2136_v4 = vpop.f32.mrb[1].mxu1  ;;  %3203 = vmatmul.mubr.f32.gmra.mrb[106].mxu1 %v4575_v39  ;;  %v2715_v45 = vpop.f32.mrb[129].mxu0  ;;  %v4616_v39 = vld [vmem:[%s8002_s4 + $0xbe8] sm:$0xff] }
 0x2d5   : > { %3207 = vmatprep.mubr.f32.mxu1 %v4580_v20 }
 0x2d7   : > { %v7184_v47 = vpop.f32.mrb[2].mxu1  ;;  %v7186_v0 = vpop.f32.mrb[130].mxu0 }
 0x2d8   : > { %v2141_v56 = vpop.f32.mrb[3].mxu1  ;;  %3208 = vmatmul.mubr.f32.gmra.mrb[108].mxu1 %v4579_v15  ;;  %v2720_v50 = vpop.f32.mrb[131].mxu0 }
 0x2d9   : > { %3212 = vmatprep.mubr.f32.mxu1 %v4584_v38  ;;  %v4615_v56 = vld [vmem:[%s8002_s4 + $0xbe0] sm:$0xff]  ;;  %v4494_v50 = vld [vmem:[%s8002_s4 + $0x818] sm:$0xff] }
 0x2db   : > { %v7196_v53 = vpop.f32.mrb[4].mxu1  ;;  %v7198_v52 = vpop.f32.mrb[132].mxu0 }
 0x2dc   : > { %v2146_v55 = vpop.f32.mrb[5].mxu1  ;;  %3213 = vmatmul.mubr.f32.gmra.mrb[110].mxu1 %v4583_v51  ;;  %v2725_v29 = vpop.f32.mrb[133].mxu0 }
 0x2dd   : > { %3217 = vmatprep.mubr.f32.mxu1 %v4588_v49 }
 0x2df   : > { %v7208_v10 = vpop.f32.mrb[6].mxu1  ;;  %v7210_v26 = vpop.f32.mrb[134].mxu0 }
 0x2e0   : > { %v2151_v58 = vpop.f32.mrb[7].mxu1  ;;  %3218 = vmatmul.mubr.f32.gmra.mrb[112].mxu1 %v4587_v61  ;;  %v2730_v60 = vpop.f32.mrb[135].mxu0 }
 0x2e1   : > { %3222 = vmatprep.mubr.f32.mxu1 %v4592_v8  ;;  %v3547_v8 = vld [vmem:[%s8001_s3] sm:$0xff]  ;;  %v3548_v58 = vld [vmem:[%s8001_s3 + $0x8] sm:$0xff]  ;;  %v3549_v60 = vld [vmem:[%s8001_s3 + $0x10] sm:$0xff] }
 0x2e3   : > { %v7220_v5 = vpop.f32.mrb[8].mxu1  ;;  %v7222_v7 = vpop.f32.mrb[136].mxu0 }
 0x2e4   : > { %v2156_v1 = vpop.f32.mrb[9].mxu1  ;;  %3223 = vmatmul.mubr.f32.gmra.mrb[114].mxu1 %v4591_v17  ;;  %v2735_v13 = vpop.f32.mrb[137].mxu0  ;;  %v4493_v17 = vld [vmem:[%s8002_s4 + $0x810] sm:$0xff] }
 0x2e5   : > { %3227 = vmatprep.mubr.f32.mxu1 %v4596_v57  ;;  %v5254_v57 = vpack.c.bf16 %v3548_v58, %v3547_v8  ;;  %v3550_v1 = vld [vmem:[%s8001_s3 + $0x18] sm:$0xff] }
 0x2e6   : > { %v4498_v13 = vld [vmem:[%s8002_s4 + $0x838] sm:$0xff] }
 0x2e7   : > { %v7232_v12 = vpop.f32.mrb[10].mxu1  ;;  %v7234_v2 = vpop.f32.mrb[138].mxu0  ;;  %5255 = vmatprep.subr.bf16.mxu0 %v5254_v57  ;;  %5270 = vmatprep.subr.bf16.mxu1 %v5254_v57 }
 0x2e8   : > { %v2161_v22 = vpop.f32.mrb[11].mxu1  ;;  %3228 = vmatmul.mubr.f32.gmra.mrb[116].mxu1 %v4595_v16  ;;  %v2740_v27 = vpop.f32.mrb[139].mxu0  ;;  %v5258_v16 = vpack.c.bf16 %v3550_v1, %v3549_v60  ;;  %5257 = vmatpush3.bf16.msra.mxu0 %v5254_v57 }
 0x2e9   : > { %3232 = vmatprep.mubr.f32.mxu1 %v4600_v21 }
 0x2ea   : > { %5259 = vmatprep.subr.bf16.mxu0 %v5258_v16 }
 0x2eb   : > { %v7244_v19 = vpop.f32.mrb[12].mxu1  ;;  %v7246_v44 = vpop.f32.mrb[140].mxu0 }
 0x2ec   : > { %v2166_v9 = vpop.f32.mrb[13].mxu1  ;;  %3233 = vmatmul.mubr.f32.gmra.mrb[118].mxu1 %v4599_v14  ;;  %v2745_v24 = vpop.f32.mrb[141].mxu0  ;;  %5261 = vmatpush3.bf16.msra.mxu0 %v5258_v16 }
 0x2ed   : > { %3237 = vmatprep.mubr.f32.mxu1 %v4604_v48  ;;  %v4497_v9 = vld [vmem:[%s8002_s4 + $0x830] sm:$0xff]  ;;  %v4502_v24 = vld [vmem:[%s8002_s4 + $0x858] sm:$0xff] }
 0x2ef   : > { %v7256_v37 = vpop.f32.mrb[14].mxu1  ;;  %v7258_v25 = vpop.f32.mrb[142].mxu0 }
 0x2f0   : > { %v2171_v42 = vpop.f32.mrb[15].mxu1  ;;  %3238 = vmatmul.mubr.f32.gmra.mrb[120].mxu1 %v4603_v3  ;;  %v2750_v6 = vpop.f32.mrb[143].mxu0 }
 0x2f1   : > { %3242 = vmatprep.mubr.f32.mxu1 %v4608_v43 }
 0x2f3   : > { %v7268_v59 = vpop.f32.mrb[16].mxu1  ;;  %v7270_v28 = vpop.f32.mrb[144].mxu0 }
 0x2f4   : > { %v2176_v23 = vpop.f32.mrb[17].mxu1  ;;  %3243 = vmatmul.mubr.f32.gmra.mrb[122].mxu1 %v4607_v34  ;;  %v2755_v32 = vpop.f32.mrb[145].mxu0 }
 0x2f5   : > { %3247 = vmatprep.mubr.f32.mxu1 %v4612_v62  ;;  %v4501_v62 = vld [vmem:[%s8002_s4 + $0x850] sm:$0xff]  ;;  %v4506_v23 = vld [vmem:[%s8002_s4 + $0x878] sm:$0xff] }
 0x2f7   : > { %v7280_v20 = vpop.f32.mrb[18].mxu1  ;;  %v7282_v4 = vpop.f32.mrb[146].mxu0 }
 0x2f8   : > { %v2181_v15 = vpop.f32.mrb[19].mxu1  ;;  %3248 = vmatmul.mubr.f32.gmra.mrb[124].mxu1 %v4611_v35  ;;  %v2760_v38 = vpop.f32.mrb[147].mxu0 }
 0x2f9   : > { %3252 = vmatprep.mubr.f32.mxu1 %v4616_v39 }
 0x2fb   : > { %v7292_v51 = vpop.f32.mrb[20].mxu1  ;;  %v7294_v49 = vpop.f32.mrb[148].mxu0 }
 0x2fc   : > { %v2186_v29 = vpop.f32.mrb[21].mxu1  ;;  %3253 = vmatmul.mubr.f32.gmra.mrb[126].mxu1 %v4615_v56  ;;  %v2765_v61 = vpop.f32.mrb[149].mxu0  ;;  %v4505_v56 = vld [vmem:[%s8002_s4 + $0x870] sm:$0xff] }
 0x2fd   : > { %3322 = vmatprep.mubr.f32.mxu1 %v4494_v50  ;;  %v4510_v50 = vld [vmem:[%s8002_s4 + $0x898] sm:$0xff] }
 0x2ff   : > { %v7316_v21 = vpop.f32.mrb[22].mxu1  ;;  %v7318_v22 = vpop.f32.mrb[150].mxu0 }
 0x300   : > { %v2191_v14 = vpop.f32.mrb[23].mxu1  ;;  %3323 = vmatmul.mubr.f32.vlgmr.msra.gmra.mrb[64].mxu1 %v4493_v17  ;;  %v2770_v48 = vpop.f32.mrb[151].mxu0  ;;  %v4509_v17 = vld [vmem:[%s8002_s4 + $0x890] sm:$0xff] }
 0x301   : > { %3327 = vmatprep.mubr.f32.mxu1 %v4498_v13  ;;  %5274 = vmatpush3.bf16.msra.mxu1 %v5254_v57  ;;  %v4514_v57 = vld [vmem:[%s8002_s4 + $0x8b8] sm:$0xff] }
 0x302   : > { %5271 = vmatprep.subr.bf16.mxu1 %v5258_v16 }
 0x303   : > { %v7328_v3 = vpop.f32.mrb[24].mxu1  ;;  %v7330_v43 = vpop.f32.mrb[152].mxu0 }
 0x304   : > { %v2196_v6 = vpop.f32.mrb[25].mxu1  ;;  %3328 = vmatmul.mubr.f32.gmra.mrb[66].mxu1 %v4497_v9  ;;  %v2775_v34 = vpop.f32.mrb[153].mxu0  ;;  %v4513_v9 = vld [vmem:[%s8002_s4 + $0x8b0] sm:$0xff] }
 0x305   : > { %3332 = vmatprep.mubr.f32.mxu1 %v4502_v24  ;;  %5275 = vmatpush3.bf16.msra.mxu1 %v5258_v16  ;;  %v4518_v24 = vld [vmem:[%s8002_s4 + $0x8d8] sm:$0xff] }
 0x307   : > { %v7340_v32 = vpop.f32.mrb[26].mxu1  ;;  %v7342_v35 = vpop.f32.mrb[154].mxu0 }
 0x308   : > { %v2201_v15 = vpop.f32.mrb[27].mxu1  ;;  %3333 = vmatmul.mubr.f32.gmra.mrb[68].mxu1 %v4501_v62  ;;  %v2780_v38 = vpop.f32.mrb[155].mxu0 }
 0x309   : > { %3337 = vmatprep.mubr.f32.mxu1 %v4506_v23  ;;  %v4517_v38 = vld [vmem:[%s8002_s4 + $0x8d0] sm:$0xff] }
 0x30b   : > { %v7352_v29 = vpop.f32.mrb[28].mxu1  ;;  %v7354_v61 = vpop.f32.mrb[156].mxu0 }
 0x30c   : > { %v2206_v58 = vpop.f32.mrb[29].mxu1  ;;  %3338 = vmatmul.mubr.f32.gmra.mrb[70].mxu1 %v4505_v56  ;;  %v2785_v60 = vpop.f32.mrb[157].mxu0  ;;  %v4522_v56 = vld [vmem:[%s8002_s4 + $0x8f8] sm:$0xff] }
 0x30d   : > { %3342 = vmatprep.mubr.f32.mxu1 %v4510_v50 }
 0x30f   : > { %v7364_v1 = vpop.f32.mrb[30].mxu1  ;;  %v7366_v13 = vpop.f32.mrb[158].mxu0 }
 0x310   : > { %v2211_v14 = vpop.f32.mrb[31].mxu1  ;;  %3343 = vmatmul.mubr.f32.gmra.mrb[72].mxu1 %v4509_v17  ;;  %v2790_v48 = vpop.f32.mrb[159].mxu0 }
 0x311   : > { %3347 = vmatprep.mubr.f32.mxu1 %v4514_v57  ;;  %v4521_v14 = vld [vmem:[%s8002_s4 + $0x8f0] sm:$0xff]  ;;  %v4526_v48 = vld [vmem:[%s8002_s4 + $0x918] sm:$0xff] }
 0x313   : > { %v7376_v6 = vpop.f32.mrb[32].mxu1  ;;  %v7378_v34 = vpop.f32.mrb[160].mxu0 }
 0x314   : > { %v2216_v23 = vpop.f32.mrb[33].mxu1  ;;  %3348 = vmatmul.mubr.f32.gmra.mrb[74].mxu1 %v4513_v9  ;;  %v2795_v15 = vpop.f32.mrb[161].mxu0 }
 0x315   : > { %3352 = vmatprep.mubr.f32.mxu1 %v4518_v24 }
 0x317   : > { %v7388_v50 = vpop.f32.mrb[34].mxu1  ;;  %v7390_v58 = vpop.f32.mrb[162].mxu0 }
 0x318   : > { %v2221_v17 = vpop.f32.mrb[35].mxu1  ;;  %3353 = vmatmul.mubr.f32.gmra.mrb[76].mxu1 %v4517_v38  ;;  %v2800_v57 = vpop.f32.mrb[163].mxu0 }
 0x319   : > { %3357 = vmatprep.mubr.f32.mxu1 %v4522_v56  ;;  %v4525_v56 = vld [vmem:[%s8002_s4 + $0x910] sm:$0xff]  ;;  %v4530_v17 = vld [vmem:[%s8002_s4 + $0x938] sm:$0xff] }
 0x31b   : > { %v7400_v9 = vpop.f32.mrb[36].mxu1  ;;  %v7402_v24 = vpop.f32.mrb[164].mxu0 }
 0x31c   : > { %v2226_v15 = vpop.f32.mrb[37].mxu1  ;;  %3358 = vmatmul.mubr.f32.gmra.mrb[78].mxu1 %v4521_v14  ;;  %v2805_v38 = vpop.f32.mrb[165].mxu0 }
 0x31d   : > { %3362 = vmatprep.mubr.f32.mxu1 %v4526_v48  ;;  %v4529_v48 = vld [vmem:[%s8002_s4 + $0x930] sm:$0xff]  ;;  %v4534_v15 = vld [vmem:[%s8002_s4 + $0x958] sm:$0xff] }
 0x31f   : > { %v7412_v57 = vpop.f32.mrb[38].mxu1  ;;  %v7414_v60 = vpop.f32.mrb[166].mxu0 }
 0x320   : > { %v2231_v23 = vpop.f32.mrb[39].mxu1  ;;  %3363 = vmatmul.mubr.f32.gmra.mrb[80].mxu1 %v4525_v56  ;;  %v2810_v14 = vpop.f32.mrb[167].mxu0  ;;  %v4533_v56 = vld [vmem:[%s8002_s4 + $0x950] sm:$0xff] }
 0x321   : > { %3367 = vmatprep.mubr.f32.mxu1 %v4530_v17  ;;  %v4538_v17 = vld [vmem:[%s8002_s4 + $0x978] sm:$0xff] }
 0x323   : > { %v7424_v38 = vpop.f32.mrb[40].mxu1  ;;  %v7426_v16 = vpop.f32.mrb[168].mxu0 }
 0x324   : > { %v2236_v62 = vpop.f32.mrb[41].mxu1  ;;  %3368 = vmatmul.mubr.f32.gmra.mrb[82].mxu1 %v4529_v48  ;;  %v2815_v23 = vpop.f32.mrb[169].mxu0  ;;  %v4537_v48 = vld [vmem:[%s8002_s4 + $0x970] sm:$0xff] }
 0x325   : > { %3372 = vmatprep.mubr.f32.mxu1 %v4534_v15  ;;  %v4542_v15 = vld [vmem:[%s8002_s4 + $0x998] sm:$0xff] }
 0x327   : > { %v7436_v14 = vpop.f32.mrb[42].mxu1  ;;  %v7438_v39 = vpop.f32.mrb[170].mxu0 }
 0x328   : > { %v2241_v8 = vpop.f32.mrb[43].mxu1  ;;  %3373 = vmatmul.mubr.f32.gmra.mrb[84].mxu1 %v4533_v56  ;;  %v2820_v62 = vpop.f32.mrb[171].mxu0  ;;  %v4541_v56 = vld [vmem:[%s8002_s4 + $0x990] sm:$0xff] }
 0x329   : > { %3377 = vmatprep.mubr.f32.mxu1 %v4538_v17  ;;  %v4546_v17 = vld [vmem:[%s8002_s4 + $0x9b8] sm:$0xff] }
 0x32b   : > { %v7448_v23 = vpop.f32.mrb[44].mxu1  ;;  %v7450_v27 = vpop.f32.mrb[172].mxu0 }
 0x32c   : > { %v2246_v42 = vpop.f32.mrb[45].mxu1  ;;  %3378 = vmatmul.mubr.f32.gmra.mrb[86].mxu1 %v4537_v48  ;;  %v2825_v8 = vpop.f32.mrb[173].mxu0  ;;  %v4545_v48 = vld [vmem:[%s8002_s4 + $0x9b0] sm:$0xff] }
 0x32d   : > { %3382 = vmatprep.mubr.f32.mxu1 %v4542_v15  ;;  %v4550_v15 = vld [vmem:[%s8002_s4 + $0x9d8] sm:$0xff] }
 0x32f   : > { %v7460_v62 = vpop.f32.mrb[46].mxu1  ;;  %v7462_v45 = vpop.f32.mrb[174].mxu0 }
 0x330   : > { %v2251_v55 = vpop.f32.mrb[47].mxu1  ;;  %3383 = vmatmul.mubr.f32.gmra.mrb[88].mxu1 %v4541_v56  ;;  %v2830_v42 = vpop.f32.mrb[175].mxu0  ;;  %v4549_v56 = vld [vmem:[%s8002_s4 + $0x9d0] sm:$0xff] }
 0x331   : > { %3387 = vmatprep.mubr.f32.mxu1 %v4546_v17  ;;  %v4554_v17 = vld [vmem:[%s8002_s4 + $0x9f8] sm:$0xff] }
 0x333   : > { %v7472_v8 = vpop.f32.mrb[48].mxu1  ;;  %v7474_v31 = vpop.f32.mrb[176].mxu0 }
 0x334   : > { %v2256_v40 = vpop.f32.mrb[49].mxu1  ;;  %3388 = vmatmul.mubr.f32.gmra.mrb[90].mxu1 %v4545_v48  ;;  %v2835_v55 = vpop.f32.mrb[177].mxu0  ;;  %v4553_v48 = vld [vmem:[%s8002_s4 + $0x9f0] sm:$0xff] }
 0x335   : > { %3392 = vmatprep.mubr.f32.mxu1 %v4550_v15  ;;  %v4558_v15 = vld [vmem:[%s8002_s4 + $0xa18] sm:$0xff] }
 0x337   : > { %v7484_v42 = vpop.f32.mrb[50].mxu1  ;;  %v7486_v30 = vpop.f32.mrb[178].mxu0 }
 0x338   : > { %v2261_v46 = vpop.f32.mrb[51].mxu1  ;;  %3393 = vmatmul.mubr.f32.gmra.mrb[92].mxu1 %v4549_v56  ;;  %v2840_v40 = vpop.f32.mrb[179].mxu0  ;;  %v4557_v56 = vld [vmem:[%s8002_s4 + $0xa10] sm:$0xff] }
 0x339   : > { %3397 = vmatprep.mubr.f32.mxu1 %v4554_v17  ;;  %v4562_v17 = vld [vmem:[%s8002_s4 + $0xa38] sm:$0xff] }
 0x33b   : > { %v7496_v55 = vpop.f32.mrb[52].mxu1  ;;  %v7498_v11 = vpop.f32.mrb[180].mxu0 }
 0x33c   : > { %8014 = vst [vmem:[#allocation2_spill] sm:$0xff] %v7496_v55  ;;  %8015 = vst [vmem:[#allocation3_spill] sm:$0xff] %v7498_v11  ;;  %v2266_v63 = vpop.f32.mrb[53].mxu1  ;;  %3398 = vmatmul.mubr.f32.gmra.mrb[94].mxu1 %v4553_v48  ;;  %v2845_v46 = vpop.f32.mrb[181].mxu0  ;;  %v4561_v48 = vld [vmem:[%s8002_s4 + $0xa30] sm:$0xff] }
 0x33d   : > { %3402 = vmatprep.mubr.f32.mxu1 %v4558_v15  ;;  %v4566_v15 = vld [vmem:[%s8002_s4 + $0xa58] sm:$0xff] }
 0x33f   : > { %v7508_v40 = vpop.f32.mrb[54].mxu1  ;;  %v7510_v36 = vpop.f32.mrb[182].mxu0 }
 0x340   : > { %8016 = vst [vmem:[#allocation4_spill] sm:$0xff] %v7508_v40  ;;  %8017 = vst [vmem:[#allocation5_spill] sm:$0xff] %v7510_v36  ;;  %v2271_v54 = vpop.f32.mrb[55].mxu1  ;;  %3403 = vmatmul.mubr.f32.gmra.mrb[96].mxu1 %v4557_v56  ;;  %v2850_v63 = vpop.f32.mrb[183].mxu0  ;;  %v4565_v56 = vld [vmem:[%s8002_s4 + $0xa50] sm:$0xff] }
 0x341   : > { %3407 = vmatprep.mubr.f32.mxu1 %v4562_v17  ;;  %v4570_v17 = vld [vmem:[%s8002_s4 + $0xa78] sm:$0xff] }
 0x343   : > { %v7520_v46 = vpop.f32.mrb[56].mxu1  ;;  %v7522_v11 = vpop.f32.mrb[184].mxu0 }
 0x344   : > { %8018 = vst [vmem:[#allocation6_spill] sm:$0xff] %v7520_v46  ;;  %8019 = vst [vmem:[#allocation7_spill] sm:$0xff] %v7522_v11  ;;  %v2276_v33 = vpop.f32.mrb[57].mxu1  ;;  %3408 = vmatmul.mubr.f32.gmra.mrb[98].mxu1 %v4561_v48  ;;  %v2855_v54 = vpop.f32.mrb[185].mxu0  ;;  %v4569_v48 = vld [vmem:[%s8002_s4 + $0xa70] sm:$0xff] }
 0x345   : > { %3412 = vmatprep.mubr.f32.mxu1 %v4566_v15  ;;  %v4574_v15 = vld [vmem:[%s8002_s4 + $0xa98] sm:$0xff] }
 0x347   : > { %v7532_v63 = vpop.f32.mrb[58].mxu1  ;;  %v7534_v36 = vpop.f32.mrb[186].mxu0 }
 0x348   : > { %8020 = vst [vmem:[#allocation8_spill] sm:$0xff] %v7532_v63  ;;  %8021 = vst [vmem:[#allocation9_spill] sm:$0xff] %v7534_v36  ;;  %v2281_v55 = vpop.f32.mrb[59].mxu1  ;;  %3413 = vmatmul.mubr.f32.gmra.mrb[100].mxu1 %v4565_v56  ;;  %v2860_v33 = vpop.f32.mrb[187].mxu0  ;;  %v4573_v56 = vld [vmem:[%s8002_s4 + $0xa90] sm:$0xff]  ;;  %v3552_v63 = vld [vmem:[%s8001_s3 + $0x28] sm:$0xff] }
 0x349   : > { %3417 = vmatprep.mubr.f32.mxu1 %v4570_v17  ;;  %v4578_v17 = vld [vmem:[%s8002_s4 + $0xab8] sm:$0xff] }
 0x34b   : > { %v7544_v54 = vpop.f32.mrb[60].mxu1  ;;  %v7546_v11 = vpop.f32.mrb[188].mxu0 }
 0x34c   : > { %v2286_v40 = vpop.f32.mrb[61].mxu1  ;;  %3418 = vmatmul.mubr.f32.gmra.mrb[102].mxu1 %v4569_v48  ;;  %v2865_v55 = vpop.f32.mrb[189].mxu0  ;;  %v4577_v48 = vld [vmem:[%s8002_s4 + $0xab0] sm:$0xff] }
 0x34d   : > { %3422 = vmatprep.mubr.f32.mxu1 %v4574_v15  ;;  %v4582_v15 = vld [vmem:[%s8002_s4 + $0xad8] sm:$0xff]  ;;  %v3551_v55 = vld [vmem:[%s8001_s3 + $0x20] sm:$0xff] }
 0x34f   : > { %v7556_v33 = vpop.f32.mrb[62].mxu1  ;;  %v7558_v36 = vpop.f32.mrb[190].mxu0 }
 0x350   : > { %8022 = vst [vmem:[#allocation10_spill] sm:$0xff] %v7556_v33  ;;  %8023 = vst [vmem:[#allocation11_spill] sm:$0xff] %v7558_v36  ;;  %v2291_v46 = vpop.f32.mrb[63].mxu1  ;;  %3423 = vmatmul.mubr.f32.gmra.mrb[104].mxu1 %v4573_v56  ;;  %v2870_v40 = vpop.f32.mrb[191].mxu0  ;;  %v4581_v56 = vld [vmem:[%s8002_s4 + $0xad0] sm:$0xff] }
 0x351   : > { %3427 = vmatprep.mubr.f32.mxu1 %v4578_v17  ;;  %v5262_v46 = vpack.c.bf16 %v3552_v63, %v3551_v55  ;;  %v4586_v17 = vld [vmem:[%s8002_s4 + $0xaf8] sm:$0xff]  ;;  %v3553_v40 = vld [vmem:[%s8001_s3 + $0x30] sm:$0xff] }
 0x352   : > { %v3554_v63 = vld [vmem:[%s8001_s3 + $0x38] sm:$0xff] }
 0x353   : > { %5263 = vmatprep.subr.bf16.mxu0 %v5262_v46  ;;  %5272 = vmatprep.subr.bf16.mxu1 %v5262_v46  ;;  %v4590_v55 = vld [vmem:[%s8002_s4 + $0xb18] sm:$0xff] }
 0x354   : > { %3428 = vmatmul.mubr.f32.gmra.mrb[106].mxu1 %v4577_v48  ;;  %5265 = vmatpush3.bf16.msra.mxu0 %v5262_v46  ;;  %v5266_v48 = vpack.c.bf16 %v3554_v63, %v3553_v40  ;;  %v4598_v40 = vld [vmem:[%s8002_s4 + $0xb58] sm:$0xff]  ;;  %v4597_v63 = vld [vmem:[%s8002_s4 + $0xb50] sm:$0xff] }
 0x355   : > { %3432 = vmatprep.mubr.f32.mxu1 %v4582_v15  ;;  %5276 = vmatpush3.bf16.msra.mxu1 %v5262_v46  ;;  %v4585_v15 = vld [vmem:[%s8002_s4 + $0xaf0] sm:$0xff] }
 0x356   : > { %5267 = vmatprep.subr.bf16.mxu0 %v5266_v48  ;;  %5273 = vmatprep.subr.bf16.mxu1 %v5266_v48  ;;  %v4589_v46 = vld [vmem:[%s8002_s4 + $0xb10] sm:$0xff] }
 0x358   : > { %3433 = vmatmul.mubr.f32.gmra.mrb[108].mxu1 %v4581_v56  ;;  %5269 = vmatpush3.bf16.msra.mxu0 %v5266_v48  ;;  %v4594_v56 = vld [vmem:[%s8002_s4 + $0xb38] sm:$0xff] }
 0x359   : > { %3437 = vmatprep.mubr.f32.mxu1 %v4586_v17  ;;  %5277 = vmatpush3.bf16.msra.mxu1 %v5266_v48  ;;  %v4593_v17 = vld [vmem:[%s8002_s4 + $0xb30] sm:$0xff]  ;;  %v4602_v48 = vld [vmem:[%s8002_s4 + $0xb78] sm:$0xff] }
 0x35c   : > { %3438 = vmatmul.mubr.f32.gmra.mrb[110].mxu1 %v4585_v15  ;;  %v4601_v15 = vld [vmem:[%s8002_s4 + $0xb70] sm:$0xff] }
 0x35d   : > { %3442 = vmatprep.mubr.f32.mxu1 %v4590_v55  ;;  %v4606_v55 = vld [vmem:[%s8002_s4 + $0xb98] sm:$0xff] }
 0x360   : > { %3443 = vmatmul.mubr.f32.gmra.mrb[112].mxu1 %v4589_v46  ;;  %v4605_v46 = vld [vmem:[%s8002_s4 + $0xb90] sm:$0xff] }
 0x361   : > { %3447 = vmatprep.mubr.f32.mxu1 %v4594_v56  ;;  %v4610_v56 = vld [vmem:[%s8002_s4 + $0xbb8] sm:$0xff] }
 0x364   : > { %3448 = vmatmul.mubr.f32.gmra.mrb[114].mxu1 %v4593_v17  ;;  %v4609_v17 = vld [vmem:[%s8002_s4 + $0xbb0] sm:$0xff] }
 0x365   : > { %3452 = vmatprep.mubr.f32.mxu1 %v4598_v40  ;;  %v4614_v40 = vld [vmem:[%s8002_s4 + $0xbd8] sm:$0xff] }
 0x368   : > { %3453 = vmatmul.mubr.f32.gmra.mrb[116].mxu1 %v4597_v63  ;;  %v4613_v63 = vld [vmem:[%s8002_s4 + $0xbd0] sm:$0xff] }
 0x369   : > { %3457 = vmatprep.mubr.f32.mxu1 %v4602_v48  ;;  %v4618_v48 = vld [vmem:[%s8002_s4 + $0xbf8] sm:$0xff] }
 0x36c   : > { %3458 = vmatmul.mubr.f32.gmra.mrb[118].mxu1 %v4601_v15  ;;  %v4617_v15 = vld [vmem:[%s8002_s4 + $0xbf0] sm:$0xff] }
 0x36d   : > { %3462 = vmatprep.mubr.f32.mxu1 %v4606_v55 }
 0x370   : > { %3463 = vmatmul.mubr.f32.gmra.mrb[120].mxu1 %v4605_v46  ;;  %v8024_v46 = vmax.f32 %v7172_v18, %v7174_v41  ;;  %v8026_v41 = vmax.f32 %v7196_v53, %v7198_v52 }
 0x371   : > { %3467 = vmatprep.mubr.f32.mxu1 %v4610_v56 }
 0x374   : > { %3468 = vmatmul.mubr.f32.gmra.mrb[122].mxu1 %v4609_v17 }
 0x375   : > { %3472 = vmatprep.mubr.f32.mxu1 %v4614_v40 }
 0x378   : > { %3473 = vmatmul.mubr.f32.gmra.mrb[124].mxu1 %v4613_v63  ;;  %v8025_v63 = vmax.f32 %v7184_v47, %v7186_v0 }
 0x379   : > { %3477 = vmatprep.mubr.f32.mxu1 %v4618_v48 }
 0x37c   : > { %3478 = vmatmul.mubr.f32.gmra.mrb[126].mxu1 %v4617_v15 }
 0x3d3   : > { %v3324_v55 = vpop.f32.mrb[64].mxu1 }
 0x3d4   : > { %v7640_v56 = vmax.f32 %v8024_v46, %v3324_v55  ;;  %v3326_v17 = vpop.f32.mrb[65].mxu1 }
 0x3d6   : > { %v3515_v40 = vmul.f32 %v7640_v56, %v7640_v56 }
 0x3d7   : > { %v3329_v36 = vpop.f32.mrb[66].mxu1 }
 0x3d8   : > { %v7647_v48 = vmax.f32 %v8025_v63, %v3329_v36  ;;  %v3331_v33 = vpop.f32.mrb[67].mxu1  ;;  %4918 = vmatprep.mubr.msk.f32.mxu0 %vm3555_vm1, %v3515_v40  ;;  %v8027_v36 = vmax.f32 %v7208_v10, %v7210_v26  ;;  %v8028_v40 = vmax.f32 %v7220_v5, %v7222_v7 }
 0x3da   : > { %v3516_v15 = vmul.f32 %v7647_v48, %v7647_v48 }
 0x3db   : > { %v3334_v18 = vpop.f32.mrb[68].mxu1 }
 0x3dc   : > { %v7655_v55 = vmax.f32 %v8026_v41, %v3334_v18  ;;  %v3336_v46 = vpop.f32.mrb[69].mxu1  ;;  %4919 = vmatmul.mubr.msk.f32.vlgmr.msra.gmra.mrb[192].mxu0 %vm3555_vm1, %v3516_v15  ;;  %v8029_v18 = vmax.f32 %v7232_v12, %v7234_v2 }
 0x3de   : > { %v3517_v47 = vmul.f32 %v7655_v55, %v7655_v55 }
 0x3df   : > { %v3339_v0 = vpop.f32.mrb[70].mxu1 }
 0x3e0   : > { %v7663_v33 = vmax.f32 %v8027_v36, %v3339_v0  ;;  %v3341_v17 = vpop.f32.mrb[71].mxu1  ;;  %4921 = vmatprep.mubr.msk.f32.mxu0 %vm3555_vm1, %v3517_v47  ;;  %v8030_v47 = vmax.f32 %v7244_v19, %v7246_v44 }
 0x3e1   : > { %v8031_v17 = vmax.f32 %v7256_v37, %v7258_v25 }
 0x3e2   : > { %v3518_v53 = vmul.f32 %v7663_v33, %v7663_v33 }
 0x3e3   : > { %v3344_v52 = vpop.f32.mrb[72].mxu1 }
 0x3e4   : > { %v7671_v63 = vmax.f32 %v8028_v40, %v3344_v52  ;;  %v3346_v15 = vpop.f32.mrb[73].mxu1  ;;  %4922 = vmatmul.mubr.msk.f32.gmra.mrb[194].mxu0 %vm3555_vm1, %v3518_v53  ;;  %v8032_v40 = vmax.f32 %v7268_v59, %v7270_v28 }
 0x3e6   : > { %v3519_v10 = vmul.f32 %v7671_v63, %v7671_v63 }
 0x3e7   : > { %v3349_v26 = vpop.f32.mrb[74].mxu1 }
 0x3e8   : > { %v7679_v41 = vmax.f32 %v8029_v18, %v3349_v26  ;;  %v3351_v46 = vpop.f32.mrb[75].mxu1  ;;  %4924 = vmatprep.mubr.msk.f32.mxu0 %vm3555_vm1, %v3519_v10  ;;  %v8033_v26 = vmax.f32 %v7280_v20, %v7282_v4 }
 0x3ea   : > { %v3520_v5 = vmul.f32 %v7679_v41, %v7679_v41 }
 0x3eb   : > { %v3354_v7 = vpop.f32.mrb[76].mxu1 }
 0x3ec   : > { %v7687_v0 = vmax.f32 %v8030_v47, %v3354_v7  ;;  %v3356_v36 = vpop.f32.mrb[77].mxu1  ;;  %4925 = vmatmul.mubr.msk.f32.gmra.mrb[196].mxu0 %vm3555_vm1, %v3520_v5  ;;  %v8034_v5 = vmax.f32 %v7292_v51, %v7294_v49 }
 0x3ed   : > { %v8035_v36 = vmax.f32 %v7316_v21, %v7318_v22 }
 0x3ee   : > { %v3521_v12 = vmul.f32 %v7687_v0, %v7687_v0 }
 0x3ef   : > { %v3359_v2 = vpop.f32.mrb[78].mxu1 }
 0x3f0   : > { %v7695_v53 = vmax.f32 %v8031_v17, %v3359_v2  ;;  %v3361_v52 = vpop.f32.mrb[79].mxu1  ;;  %4927 = vmatprep.mubr.msk.f32.mxu0 %vm3555_vm1, %v3521_v12  ;;  %v8036_v17 = vmax.f32 %v7328_v3, %v7330_v43 }
 0x3f2   : > { %v3522_v19 = vmul.f32 %v7695_v53, %v7695_v53 }
 0x3f3   : > { %v3364_v44 = vpop.f32.mrb[80].mxu1 }
 0x3f4   : > { %v7703_v15 = vmax.f32 %v8032_v40, %v3364_v44  ;;  %v3366_v10 = vpop.f32.mrb[81].mxu1  ;;  %4928 = vmatmul.mubr.msk.f32.gmra.mrb[198].mxu0 %vm3555_vm1, %v3522_v19  ;;  %v8037_v44 = vmax.f32 %v7340_v32, %v7342_v35 }
 0x3f6   : > { %v3523_v37 = vmul.f32 %v7703_v15, %v7703_v15 }
 0x3f7   : > { %v3369_v25 = vpop.f32.mrb[82].mxu1 }
 0x3f8   : > { %v7711_v18 = vmax.f32 %v8033_v26, %v3369_v25  ;;  %v3371_v46 = vpop.f32.mrb[83].mxu1  ;;  %4930 = vmatprep.mubr.msk.f32.mxu0 %vm3555_vm1, %v3523_v37  ;;  %v8038_v37 = vmax.f32 %v7352_v29, %v7354_v61 }
 0x3f9   : > { %v8039_v46 = vmax.f32 %v7364_v1, %v7366_v13 }
 0x3fa   : > { %v3524_v59 = vmul.f32 %v7711_v18, %v7711_v18 }
 0x3fb   : > { %v3374_v28 = vpop.f32.mrb[84].mxu1 }
 0x3fc   : > { %v7719_v7 = vmax.f32 %v8034_v5, %v3374_v28  ;;  %v3376_v47 = vpop.f32.mrb[85].mxu1  ;;  %4931 = vmatmul.mubr.msk.f32.gmra.mrb[200].mxu0 %vm3555_vm1, %v3524_v59  ;;  %v8040_v5 = vmax.f32 %v7376_v6, %v7378_v34 }
 0x3fe   : > { %v3525_v20 = vmul.f32 %v7719_v7, %v7719_v7 }
 0x3ff   : > { %v3379_v4 = vpop.f32.mrb[86].mxu1 }
 0x400   : > { %v7727_v12 = vmax.f32 %v8035_v36, %v3379_v4  ;;  %v3381_v2 = vpop.f32.mrb[87].mxu1  ;;  %4933 = vmatprep.mubr.msk.f32.mxu0 %vm3555_vm1, %v3525_v20  ;;  %v8041_v4 = vmax.f32 %v7388_v50, %v7390_v58 }
 0x402   : > { %v3526_v51 = vmul.f32 %v7727_v12, %v7727_v12 }
 0x403   : > { %v3384_v49 = vpop.f32.mrb[88].mxu1 }
 0x404   : > { %v7735_v52 = vmax.f32 %v8036_v17, %v3384_v49  ;;  %v3386_v19 = vpop.f32.mrb[89].mxu1  ;;  %4934 = vmatmul.mubr.msk.f32.gmra.mrb[202].mxu0 %vm3555_vm1, %v3526_v51  ;;  %v8042_v51 = vmax.f32 %v7400_v9, %v7402_v24 }
 0x405   : > { %v8043_v19 = vmax.f32 %v7412_v57, %v7414_v60 }
 0x406   : > { %v3527_v21 = vmul.f32 %v7735_v52, %v7735_v52 }
 0x407   : > { %v3389_v22 = vpop.f32.mrb[90].mxu1 }
 0x408   : > { %v7743_v40 = vmax.f32 %v8037_v44, %v3389_v22  ;;  %v3391_v10 = vpop.f32.mrb[91].mxu1  ;;  %4936 = vmatprep.mubr.msk.f32.mxu0 %vm3555_vm1, %v3527_v21  ;;  %v8044_v44 = vmax.f32 %v7424_v38, %v7426_v16 }
 0x40a   : > { %v3528_v3 = vmul.f32 %v7743_v40, %v7743_v40 }
 0x40b   : > { %v3394_v43 = vpop.f32.mrb[92].mxu1 }
 0x40c   : > { %v7751_v25 = vmax.f32 %v8038_v37, %v3394_v43  ;;  %v3396_v26 = vpop.f32.mrb[93].mxu1  ;;  %4937 = vmatmul.mubr.msk.f32.gmra.mrb[204].mxu0 %vm3555_vm1, %v3528_v3  ;;  %v8045_v43 = vmax.f32 %v7436_v14, %v7438_v39 }
 0x40e   : > { %v3529_v32 = vmul.f32 %v7751_v25, %v7751_v25 }
 0x40f   : > { %v3399_v35 = vpop.f32.mrb[94].mxu1 }
 0x410   : > { %v7759_v59 = vmax.f32 %v8039_v46, %v3399_v35  ;;  %v3401_v28 = vpop.f32.mrb[95].mxu1  ;;  %4939 = vmatprep.mubr.msk.f32.mxu0 %vm3555_vm1, %v3529_v32  ;;  %v8046_v32 = vmax.f32 %v7448_v23, %v7450_v27 }
 0x411   : > { %v8047_v28 = vmax.f32 %v7460_v62, %v7462_v45 }
 0x412   : > { %v3530_v29 = vmul.f32 %v7759_v59, %v7759_v59 }
 0x413   : > { %v3404_v61 = vpop.f32.mrb[96].mxu1 }
 0x414   : > { %v7767_v47 = vmax.f32 %v8040_v5, %v3404_v61  ;;  %v3406_v20 = vpop.f32.mrb[97].mxu1  ;;  %4940 = vmatmul.mubr.msk.f32.gmra.mrb[206].mxu0 %vm3555_vm1, %v3530_v29  ;;  %v8048_v5 = vmax.f32 %v7472_v8, %v7474_v31 }
 0x416   : > { %v3531_v1 = vmul.f32 %v7767_v47, %v7767_v47 }
 0x417   : > { %v3409_v13 = vpop.f32.mrb[98].mxu1 }
 0x418   : > { %v7775_v36 = vmax.f32 %v8041_v4, %v3409_v13  ;;  %v3411_v2 = vpop.f32.mrb[99].mxu1  ;;  %4942 = vmatprep.mubr.msk.f32.mxu0 %vm3555_vm1, %v3531_v1  ;;  %v8049_v13 = vmax.f32 %v7484_v42, %v7486_v30 }
 0x41a   : > { %v3532_v6 = vmul.f32 %v7775_v36, %v7775_v36 }
 0x41b   : > { %v3414_v34 = vpop.f32.mrb[100].mxu1 }
 0x41c   : > { %v7783_v49 = vmax.f32 %v8042_v51, %v3414_v34  ;;  %v3416_v17 = vpop.f32.mrb[101].mxu1  ;;  %4943 = vmatmul.mubr.msk.f32.gmra.mrb[208].mxu0 %vm3555_vm1, %v3532_v6  ;;  %v8050_v6 = vld [vmem:[#allocation2_spill] sm:$0xff]  ;;  %v8051_v34 = vld [vmem:[#allocation3_spill] sm:$0xff] }
 0x41d   : > { %v8052_v51 = vmax.f32 %v8050_v6, %v8051_v34 }
 0x41e   : > { %v3533_v50 = vmul.f32 %v7783_v49, %v7783_v49 }
 0x41f   : > { %v3419_v58 = vpop.f32.mrb[102].mxu1 }
 0x420   : > { %v7791_v21 = vmax.f32 %v8043_v19, %v3419_v58  ;;  %v3421_v22 = vpop.f32.mrb[103].mxu1  ;;  %4945 = vmatprep.mubr.msk.f32.mxu0 %vm3555_vm1, %v3533_v50  ;;  %v8053_v58 = vld [vmem:[#allocation4_spill] sm:$0xff]  ;;  %v8054_v19 = vld [vmem:[#allocation5_spill] sm:$0xff] }
 0x421   : > { %v8055_v22 = vmax.f32 %v8053_v58, %v8054_v19 }
 0x422   : > { %v3534_v9 = vmul.f32 %v7791_v21, %v7791_v21 }
 0x423   : > { %v3424_v24 = vpop.f32.mrb[104].mxu1 }
 0x424   : > { %v7799_v10 = vmax.f32 %v8044_v44, %v3424_v24  ;;  %v3426_v3 = vpop.f32.mrb[105].mxu1  ;;  %4946 = vmatmul.mubr.msk.f32.gmra.mrb[210].mxu0 %vm3555_vm1, %v3534_v9 }
 0x426   : > { %v3535_v60 = vmul.f32 %v7799_v10, %v7799_v10 }
 0x427   : > { %v3429_v57 = vpop.f32.mrb[106].mxu1 }
 0x428   : > { %v7807_v37 = vmax.f32 %v8045_v43, %v3429_v57  ;;  %v3431_v26 = vpop.f32.mrb[107].mxu1  ;;  %4948 = vmatprep.mubr.msk.f32.mxu0 %vm3555_vm1, %v3535_v60  ;;  %v8056_v60 = vld [vmem:[#allocation6_spill] sm:$0xff]  ;;  %v8057_v57 = vld [vmem:[#allocation7_spill] sm:$0xff] }
 0x429   : > { %v8058_v43 = vmax.f32 %v8056_v60, %v8057_v57 }
 0x42a   : > { %v3536_v16 = vmul.f32 %v7807_v37, %v7807_v37 }
 0x42b   : > { %v3434_v38 = vpop.f32.mrb[108].mxu1 }
 0x42c   : > { %v7815_v35 = vmax.f32 %v8046_v32, %v3434_v38  ;;  %v3436_v46 = vpop.f32.mrb[109].mxu1  ;;  %4949 = vmatmul.mubr.msk.f32.gmra.mrb[212].mxu0 %vm3555_vm1, %v3536_v16 }
 0x42d   : > { %v8059_v46 = vld [vmem:[#allocation8_spill] sm:$0xff] }
 0x42e   : > { %v3537_v39 = vmul.f32 %v7815_v35, %v7815_v35 }
 0x42f   : > { %v3439_v14 = vpop.f32.mrb[110].mxu1 }
 0x430   : > { %v7823_v29 = vmax.f32 %v8047_v28, %v3439_v14  ;;  %v3441_v61 = vpop.f32.mrb[111].mxu1  ;;  %4951 = vmatprep.mubr.msk.f32.mxu0 %vm3555_vm1, %v3537_v39  ;;  %v8060_v39 = vld [vmem:[#allocation9_spill] sm:$0xff] }
 0x431   : > { %v8061_v14 = vmax.f32 %v8059_v46, %v8060_v39 }
 0x432   : > { %v3538_v27 = vmul.f32 %v7823_v29, %v7823_v29 }
 0x433   : > { %v3444_v23 = vpop.f32.mrb[112].mxu1 }
 0x434   : > { %v7831_v20 = vmax.f32 %v8048_v5, %v3444_v23  ;;  %v3446_v1 = vpop.f32.mrb[113].mxu1  ;;  %4952 = vmatmul.mubr.msk.f32.gmra.mrb[214].mxu0 %vm3555_vm1, %v3538_v27  ;;  %v8062_v5 = vmax.f32 %v7544_v54, %v7546_v11 }
 0x436   : > { %v3539_v45 = vmul.f32 %v7831_v20, %v7831_v20 }
 0x437   : > { %v3449_v62 = vpop.f32.mrb[114].mxu1 }
 0x438   : > { %v7839_v4 = vmax.f32 %v8049_v13, %v3449_v62  ;;  %v3451_v2 = vpop.f32.mrb[115].mxu1  ;;  %4954 = vmatprep.mubr.msk.f32.mxu0 %vm3555_vm1, %v3539_v45 }
 0x439   : > { %v8063_v2 = vld [vmem:[#allocation10_spill] sm:$0xff] }
 0x43a   : > { %v3540_v31 = vmul.f32 %v7839_v4, %v7839_v4 }
 0x43b   : > { %v3454_v8 = vpop.f32.mrb[116].mxu1 }
 0x43c   : > { %v7847_v17 = vmax.f32 %v8052_v51, %v3454_v8  ;;  %v3456_v50 = vpop.f32.mrb[117].mxu1  ;;  %4955 = vmatmul.mubr.msk.f32.gmra.mrb[216].mxu0 %vm3555_vm1, %v3540_v31  ;;  %v8064_v31 = vld [vmem:[#allocation11_spill] sm:$0xff] }
 0x43d   : > { %v8065_v8 = vmax.f32 %v8063_v2, %v8064_v31 }
 0x43e   : > { %v3541_v30 = vmul.f32 %v7847_v17, %v7847_v17 }
 0x43f   : > { %v3459_v42 = vpop.f32.mrb[118].mxu1 }
 0x440   : > { %v7855_v9 = vmax.f32 %v8055_v22, %v3459_v42  ;;  %v3461_v24 = vpop.f32.mrb[119].mxu1  ;;  %4957 = vmatprep.mubr.msk.f32.mxu0 %vm3555_vm1, %v3541_v30 }
 0x442   : > { %v3542_v44 = vmul.f32 %v7855_v9, %v7855_v9 }
 0x443   : > { %v3464_v3 = vpop.f32.mrb[120].mxu1 }
 0x444   : > { %v7863_v26 = vmax.f32 %v8058_v43, %v3464_v3  ;;  %v3466_v16 = vpop.f32.mrb[121].mxu1  ;;  %4958 = vmatmul.mubr.msk.f32.gmra.mrb[218].mxu0 %vm3555_vm1, %v3542_v44 }
 0x446   : > { %v3543_v38 = vmul.f32 %v7863_v26, %v7863_v26 }
 0x447   : > { %v3469_v32 = vpop.f32.mrb[122].mxu1 }
 0x448   : > { %v7871_v28 = vmax.f32 %v8061_v14, %v3469_v32  ;;  %v3471_v61 = vpop.f32.mrb[123].mxu1  ;;  %4960 = vmatprep.mubr.msk.f32.mxu1 %vm3555_vm1, %v3543_v38 }
 0x44a   : > { %v3544_v27 = vmul.f32 %v7871_v28, %v7871_v28 }
 0x44b   : > { %v3474_v23 = vpop.f32.mrb[124].mxu1 }
 0x44c   : > { %v7879_v1 = vmax.f32 %v8062_v5, %v3474_v23  ;;  %v3476_v45 = vpop.f32.mrb[125].mxu1  ;;  %4961 = vmatmul.mubr.msk.f32.vlgmr.msra.gmra.mrb[128].mxu1 %vm3555_vm1, %v3544_v27 }
 0x44e   : > { %v3545_v62 = vmul.f32 %v7879_v1, %v7879_v1 }
 0x44f   : > { %v3479_v13 = vpop.f32.mrb[126].mxu1 }
 0x450   : > { %v7887_v6 = vmax.f32 %v8065_v8, %v3479_v13  ;;  %v3481_v34 = vpop.f32.mrb[127].mxu1  ;;  %4963 = vmatprep.mubr.msk.f32.mxu1 %vm3555_vm1, %v3545_v62 }
 0x452   : > { %v3546_v11 = vmul.f32 %v7887_v6, %v7887_v6 }
 0x454   : > { %4964 = vmatmul.mubr.msk.f32.gmra.mrb[130].mxu1 %vm3555_vm1, %v3546_v11 }
 0x4af   : > { %v4920_v54 = vpop.f32.mrb[192].mxu0 }
 0x4b0   : > { %v3878_v51 = vmul.f32 2.7777778e-05, %v4920_v54  ;;  %v3718_v50 = vpop.f32.mrb[193].mxu0 }
 0x4b1   : > { %v3877_v30 = vmul.f32 2.7777778e-05, %v3718_v50 }
 0x4b2   : > { %v3910_v42 = vadd.f32 1.0, %v3878_v51 }
 0x4b3   : > { %v3909_v58 = vadd.f32 1.0, %v3877_v30 }
 0x4b4   : > { %5548 = vlog2.f32 %v3910_v42 }
 0x4b5   : > { %5550 = vlog2.f32 %v3909_v58 }
 0x4b7   : > { %v4923_v19 = vpop.f32.mrb[194].mxu0 }
 0x4b8   : > { %v3880_v22 = vmul.f32 2.7777778e-05, %v4923_v19  ;;  %v3728_v24 = vpop.f32.mrb[195].mxu0 }
 0x4b9   : > { %v3879_v44 = vmul.f32 2.7777778e-05, %v3728_v24 }
 0x4ba   : > { %v3912_v3 = vadd.f32 1.0, %v3880_v22 }
 0x4bb   : > { %v3911_v60 = vadd.f32 1.0, %v3879_v44 }
 0x4bc   : > { %5552 = vlog2.f32 %v3912_v3 }
 0x4bd   : > { %5554 = vlog2.f32 %v3911_v60 }
 0x4be   : > { %v5549_v57 = vpop.eup %5548 }
 0x4bf   : > { %v5551_v43 = vpop.eup %5550  ;;  %v3944_v16 = vmul.f32 0.6931472, %v5549_v57  ;;  %v4926_v38 = vpop.f32.mrb[196].mxu0 }
 0x4c0   : > { %v3942_v32 = vmul.f32 0.6931472, %v5551_v43  ;;  %v3882_v46 = vmul.f32 2.7777778e-05, %v4926_v38  ;;  %v3738_v39 = vpop.f32.mrb[197].mxu0 }
 0x4c1   : > { %v4006_v14 = vmul.f32 -0.75, %v3944_v16  ;;  %v3881_v61 = vmul.f32 2.7777778e-05, %v3738_v39 }
 0x4c2   : > { %v4005_v27 = vmul.f32 -0.75, %v3942_v32  ;;  %v3914_v23 = vadd.f32 1.0, %v3882_v46 }
 0x4c3   : > { %v4039_v5 = vmul.f32 1.442695, %v4006_v14  ;;  %v3913_v45 = vadd.f32 1.0, %v3881_v61 }
 0x4c4   : > { %v4037_v62 = vmul.f32 1.442695, %v4005_v27  ;;  %5556 = vlog2.f32 %v3914_v23 }
 0x4c5   : > { %5558 = vpow2.f32 %v4039_v5 }
 0x4c6   : > { %v5553_v13 = vpop.eup %5552  ;;  %5560 = vpow2.f32 %v4037_v62 }
 0x4c7   : > { %v5555_v2 = vpop.eup %5554  ;;  %v3948_v31 = vmul.f32 0.6931472, %v5553_v13  ;;  %5562 = vlog2.f32 %v3913_v45  ;;  %v4929_v8 = vpop.f32.mrb[198].mxu0 }
 0x4c8   : > { %v3946_v34 = vmul.f32 0.6931472, %v5555_v2  ;;  %v3884_v11 = vmul.f32 2.7777778e-05, %v4929_v8  ;;  %v3748_v54 = vpop.f32.mrb[199].mxu0 }
 0x4c9   : > { %v4008_v51 = vmul.f32 -0.75, %v3948_v31  ;;  %v3883_v50 = vmul.f32 2.7777778e-05, %v3748_v54 }
 0x4ca   : > { %v4007_v30 = vmul.f32 -0.75, %v3946_v34  ;;  %v3916_v42 = vadd.f32 1.0, %v3884_v11 }
 0x4cb   : > { %v4043_v58 = vmul.f32 1.442695, %v4008_v51  ;;  %v3915_v19 = vadd.f32 1.0, %v3883_v50 }
 0x4cc   : > { %v4041_v22 = vmul.f32 1.442695, %v4007_v30  ;;  %5564 = vlog2.f32 %v3916_v42 }
 0x4cd   : > { %5566 = vpow2.f32 %v4043_v58 }
 0x4ce   : > { %v5557_v24 = vpop.eup %5556  ;;  %5568 = vpow2.f32 %v4041_v22 }
 0x4cf   : > { %v5559_v44 = vpop.eup %5558  ;;  %v3952_v3 = vmul.f32 0.6931472, %v5557_v24  ;;  %5570 = vlog2.f32 %v3915_v19  ;;  %v4932_v60 = vpop.f32.mrb[200].mxu0 }
 0x4d0   : > { %v5561_v57 = vpop.eup %5560  ;;  %v4102_v43 = vmul.f32 %v5559_v44, %v7647_v48  ;;  %v3886_v16 = vmul.f32 2.7777778e-05, %v4932_v60  ;;  %v3758_v38 = vpop.f32.mrb[201].mxu0 }
 0x4d1   : > { %v5563_v32 = vpop.eup %5562  ;;  %v4101_v46 = vmul.f32 %v5561_v57, %v7640_v56  ;;  %v4010_v39 = vmul.f32 -0.75, %v3952_v3  ;;  %v3885_v14 = vmul.f32 2.7777778e-05, %v3758_v38 }
 0x4d2   : > { %4134 = vst.msk [vmem:[%s7897_s20 + $0x8] sm:$0xff] %vm3555_vm1, %v4102_v43  ;;  %v3950_v61 = vmul.f32 0.6931472, %v5563_v32  ;;  %v3918_v27 = vadd.f32 1.0, %v3886_v16 }
 0x4d3   : > { %4133 = vst.msk [vmem:[%s7897_s20] sm:$0xff] %vm3555_vm1, %v4101_v46  ;;  %v4047_v23 = vmul.f32 1.442695, %v4010_v39  ;;  %v3917_v5 = vadd.f32 1.0, %v3885_v14 }
 0x4d4   : > { %v4009_v45 = vmul.f32 -0.75, %v3950_v61  ;;  %5572 = vlog2.f32 %v3918_v27 }
 0x4d5   : > { %5574 = vpow2.f32 %v4047_v23 }
 0x4d6   : > { %v5565_v48 = vpop.eup %5564  ;;  %v4045_v62 = vmul.f32 1.442695, %v4009_v45  ;;  %5576 = vlog2.f32 %v3917_v5 }
 0x4d7   : > { %v5567_v13 = vpop.eup %5566  ;;  %v3956_v56 = vmul.f32 0.6931472, %v5565_v48  ;;  %v4935_v2 = vpop.f32.mrb[202].mxu0 }
 0x4d8   : > { %v5569_v31 = vpop.eup %5568  ;;  %v4104_v8 = vmul.f32 %v5567_v13, %v7663_v33  ;;  %5578 = vpow2.f32 %v4045_v62  ;;  %v3888_v34 = vmul.f32 2.7777778e-05, %v4935_v2  ;;  %v3768_v11 = vpop.f32.mrb[203].mxu0 }
 0x4d9   : > { %v5571_v54 = vpop.eup %5570  ;;  %v4103_v51 = vmul.f32 %v5569_v31, %v7655_v55  ;;  %v4012_v50 = vmul.f32 -0.75, %v3956_v56  ;;  %v3887_v30 = vmul.f32 2.7777778e-05, %v3768_v11 }
 0x4da   : > { %4136 = vst.msk [vmem:[%s7897_s20 + $0x18] sm:$0xff] %vm3555_vm1, %v4104_v8  ;;  %v3954_v42 = vmul.f32 0.6931472, %v5571_v54  ;;  %v3920_v58 = vadd.f32 1.0, %v3888_v34 }
 0x4db   : > { %4135 = vst.msk [vmem:[%s7897_s20 + $0x10] sm:$0xff] %vm3555_vm1, %v4103_v51  ;;  %v4051_v19 = vmul.f32 1.442695, %v4012_v50  ;;  %v3919_v22 = vadd.f32 1.0, %v3887_v30 }
 0x4dc   : > { %v4011_v24 = vmul.f32 -0.75, %v3954_v42  ;;  %5580 = vlog2.f32 %v3920_v58 }
 0x4dd   : > { %5582 = vpow2.f32 %v4051_v19 }
 0x4de   : > { %v5573_v33 = vpop.eup %5572  ;;  %v4049_v44 = vmul.f32 1.442695, %v4011_v24  ;;  %5584 = vlog2.f32 %v3919_v22 }
 0x4df   : > { %v5575_v3 = vpop.eup %5574  ;;  %v3960_v60 = vmul.f32 0.6931472, %v5573_v33  ;;  %v4938_v55 = vpop.f32.mrb[204].mxu0 }
 0x4e0   : > { %v5577_v57 = vpop.eup %5576  ;;  %v4106_v43 = vmul.f32 %v5575_v3, %v7679_v41  ;;  %5586 = vpow2.f32 %v4049_v44  ;;  %v3890_v16 = vmul.f32 2.7777778e-05, %v4938_v55  ;;  %v3778_v38 = vpop.f32.mrb[205].mxu0 }
 0x4e1   : > { %v4014_v32 = vmul.f32 -0.75, %v3960_v60  ;;  %v3958_v46 = vmul.f32 0.6931472, %v5577_v57  ;;  %v3889_v39 = vmul.f32 2.7777778e-05, %v3778_v38 }
 0x4e2   : > { %v5579_v14 = vpop.eup %5578  ;;  %4138 = vst.msk [vmem:[%s7897_s20 + $0x28] sm:$0xff] %vm3555_vm1, %v4106_v43  ;;  %v3922_v61 = vadd.f32 1.0, %v3890_v16 }
 0x4e3   : > { %v4105_v27 = vmul.f32 %v5579_v14, %v7671_v63  ;;  %v4055_v23 = vmul.f32 1.442695, %v4014_v32  ;;  %v4013_v5 = vmul.f32 -0.75, %v3958_v46  ;;  %v3921_v45 = vadd.f32 1.0, %v3889_v39 }
 0x4e4   : > { %5588 = vlog2.f32 %v3922_v61 }
 0x4e5   : > { %4137 = vst.msk [vmem:[%s7897_s20 + $0x20] sm:$0xff] %vm3555_vm1, %v4105_v27  ;;  %5590 = vpow2.f32 %v4055_v23  ;;  %v4053_v41 = vmul.f32 1.442695, %v4013_v5 }
 0x4e6   : > { %v5581_v48 = vpop.eup %5580  ;;  %5592 = vlog2.f32 %v3921_v45 }
 0x4e7   : > { %v5583_v62 = vpop.eup %5582  ;;  %5594 = vpow2.f32 %v4053_v41  ;;  %v3964_v13 = vmul.f32 0.6931472, %v5581_v48  ;;  %v4941_v56 = vpop.f32.mrb[206].mxu0 }
 0x4e8   : > { %v5585_v2 = vpop.eup %5584  ;;  %v4108_v31 = vmul.f32 %v5583_v62, %v7695_v53  ;;  %v3892_v63 = vmul.f32 2.7777778e-05, %v4941_v56  ;;  %v3788_v8 = vpop.f32.mrb[207].mxu0 }
 0x4e9   : > { %v4016_v34 = vmul.f32 -0.75, %v3964_v13  ;;  %v3962_v11 = vmul.f32 0.6931472, %v5585_v2  ;;  %v3891_v54 = vmul.f32 2.7777778e-05, %v3788_v8 }
 0x4ea   : > { %v5587_v51 = vpop.eup %5586  ;;  %4140 = vst.msk [vmem:[%s7897_s20 + $0x38] sm:$0xff] %vm3555_vm1, %v4108_v31  ;;  %v3924_v50 = vadd.f32 1.0, %v3892_v63 }
 0x4eb   : > { %v4107_v30 = vmul.f32 %v5587_v51, %v7687_v0  ;;  %v4059_v42 = vmul.f32 1.442695, %v4016_v34  ;;  %v4015_v58 = vmul.f32 -0.75, %v3962_v11  ;;  %v3923_v19 = vadd.f32 1.0, %v3891_v54 }
 0x4ec   : > { %5596 = vlog2.f32 %v3924_v50 }
 0x4ed   : > { %4139 = vst.msk [vmem:[%s7897_s20 + $0x30] sm:$0xff] %vm3555_vm1, %v4107_v30  ;;  %5598 = vpow2.f32 %v4059_v42  ;;  %v4057_v53 = vmul.f32 1.442695, %v4015_v58 }
 0x4ee   : > { %v5589_v22 = vpop.eup %5588  ;;  %5600 = vlog2.f32 %v3923_v19 }
 0x4ef   : > { %v5591_v24 = vpop.eup %5590  ;;  %5602 = vpow2.f32 %v4057_v53  ;;  %v3968_v33 = vmul.f32 0.6931472, %v5589_v22  ;;  %v4944_v44 = vpop.f32.mrb[208].mxu0 }
 0x4f0   : > { %v5593_v3 = vpop.eup %5592  ;;  %v4110_v60 = vmul.f32 %v5591_v24, %v7711_v18  ;;  %v3894_v0 = vmul.f32 2.7777778e-05, %v4944_v44  ;;  %v3798_v55 = vpop.f32.mrb[209].mxu0 }
 0x4f1   : > { %v5595_v57 = vpop.eup %5594  ;;  %v4018_v43 = vmul.f32 -0.75, %v3968_v33  ;;  %v3966_v16 = vmul.f32 0.6931472, %v5593_v3  ;;  %v3893_v38 = vmul.f32 2.7777778e-05, %v3798_v55 }
 0x4f2   : > { %4142 = vst.msk [vmem:[%s7897_s20 + $0x48] sm:$0xff] %vm3555_vm1, %v4110_v60  ;;  %v4109_v32 = vmul.f32 %v5595_v57, %v7703_v15  ;;  %v3926_v46 = vadd.f32 1.0, %v3894_v0 }
 0x4f3   : > { %v4063_v39 = vmul.f32 1.442695, %v4018_v43  ;;  %v4017_v14 = vmul.f32 -0.75, %v3966_v16  ;;  %v3925_v61 = vadd.f32 1.0, %v3893_v38 }
 0x4f4   : > { %4141 = vst.msk [vmem:[%s7897_s20 + $0x40] sm:$0xff] %vm3555_vm1, %v4109_v32  ;;  %5604 = vlog2.f32 %v3926_v46 }
 0x4f5   : > { %5606 = vpow2.f32 %v4063_v39  ;;  %v4061_v18 = vmul.f32 1.442695, %v4017_v14 }
 0x4f6   : > { %v5597_v27 = vpop.eup %5596  ;;  %5608 = vlog2.f32 %v3925_v61 }
 0x4f7   : > { %v5599_v23 = vpop.eup %5598  ;;  %5610 = vpow2.f32 %v4061_v18  ;;  %v3972_v5 = vmul.f32 0.6931472, %v5597_v27  ;;  %v4947_v45 = vpop.f32.mrb[210].mxu0 }
 0x4f8   : > { %v5601_v41 = vpop.eup %5600  ;;  %v4112_v15 = vmul.f32 %v5599_v23, %v7727_v12  ;;  %v3896_v48 = vmul.f32 2.7777778e-05, %v4947_v45  ;;  %v3808_v62 = vpop.f32.mrb[211].mxu0 }
 0x4f9   : > { %v5603_v13 = vpop.eup %5602  ;;  %v4020_v56 = vmul.f32 -0.75, %v3972_v5  ;;  %v3970_v2 = vmul.f32 0.6931472, %v5601_v41  ;;  %v3895_v31 = vmul.f32 2.7777778e-05, %v3808_v62 }
 0x4fa   : > { %4144 = vst.msk [vmem:[%s7897_s20 + $0x58] sm:$0xff] %vm3555_vm1, %v4112_v15  ;;  %v4111_v63 = vmul.f32 %v5603_v13, %v7719_v7  ;;  %v3928_v8 = vadd.f32 1.0, %v3896_v48 }
 0x4fb   : > { %v4067_v34 = vmul.f32 1.442695, %v4020_v56  ;;  %v4019_v11 = vmul.f32 -0.75, %v3970_v2  ;;  %v3927_v54 = vadd.f32 1.0, %v3895_v31 }
 0x4fc   : > { %4143 = vst.msk [vmem:[%s7897_s20 + $0x50] sm:$0xff] %vm3555_vm1, %v4111_v63  ;;  %5612 = vlog2.f32 %v3928_v8 }
 0x4fd   : > { %5614 = vpow2.f32 %v4067_v34  ;;  %v4065_v12 = vmul.f32 1.442695, %v4019_v11 }
 0x4fe   : > { %v5605_v51 = vpop.eup %5604  ;;  %5616 = vlog2.f32 %v3927_v54 }
 0x4ff   : > { %v5607_v50 = vpop.eup %5606  ;;  %5618 = vpow2.f32 %v4065_v12  ;;  %v3976_v30 = vmul.f32 0.6931472, %v5605_v51  ;;  %v4950_v42 = vpop.f32.mrb[212].mxu0 }
 0x500   : > { %v5609_v58 = vpop.eup %5608  ;;  %v4114_v7 = vmul.f32 %v5607_v50, %v7743_v40  ;;  %v3898_v19 = vmul.f32 2.7777778e-05, %v4950_v42  ;;  %v3818_v53 = vpop.f32.mrb[213].mxu0 }
 0x501   : > { %v5611_v22 = vpop.eup %5610  ;;  %v4022_v24 = vmul.f32 -0.75, %v3976_v30  ;;  %v3974_v33 = vmul.f32 0.6931472, %v5609_v58  ;;  %v3897_v44 = vmul.f32 2.7777778e-05, %v3818_v53 }
 0x502   : > { %4146 = vst.msk [vmem:[%s7897_s20 + $0x68] sm:$0xff] %vm3555_vm1, %v4114_v7  ;;  %v4113_v3 = vmul.f32 %v5611_v22, %v7735_v52  ;;  %v3930_v60 = vadd.f32 1.0, %v3898_v19 }
 0x503   : > { %v4071_v0 = vmul.f32 1.442695, %v4022_v24  ;;  %v4021_v55 = vmul.f32 -0.75, %v3974_v33  ;;  %v3929_v57 = vadd.f32 1.0, %v3897_v44 }
 0x504   : > { %4145 = vst.msk [vmem:[%s7897_s20 + $0x60] sm:$0xff] %vm3555_vm1, %v4113_v3  ;;  %5620 = vlog2.f32 %v3930_v60 }
 0x505   : > { %5622 = vpow2.f32 %v4071_v0  ;;  %v4069_v40 = vmul.f32 1.442695, %v4021_v55 }
 0x506   : > { %v5613_v43 = vpop.eup %5612  ;;  %5624 = vlog2.f32 %v3929_v57 }
 0x507   : > { %v5615_v16 = vpop.eup %5614  ;;  %5626 = vpow2.f32 %v4069_v40  ;;  %v3980_v38 = vmul.f32 0.6931472, %v5613_v43  ;;  %v4953_v32 = vpop.f32.mrb[214].mxu0 }
 0x508   : > { %v5617_v46 = vpop.eup %5616  ;;  %v4116_v52 = vmul.f32 %v5615_v16, %v7759_v59  ;;  %v3900_v39 = vmul.f32 2.7777778e-05, %v4953_v32  ;;  %v3828_v14 = vpop.f32.mrb[215].mxu0 }
 0x509   : > { %v5619_v61 = vpop.eup %5618  ;;  %v4024_v18 = vmul.f32 -0.75, %v3980_v38  ;;  %v3978_v27 = vmul.f32 0.6931472, %v5617_v46  ;;  %v3899_v23 = vmul.f32 2.7777778e-05, %v3828_v14 }
 0x50a   : > { %4148 = vst.msk [vmem:[%s7897_s20 + $0x78] sm:$0xff] %vm3555_vm1, %v4116_v52  ;;  %v4115_v5 = vmul.f32 %v5619_v61, %v7751_v25  ;;  %v3932_v45 = vadd.f32 1.0, %v3900_v39 }
 0x50b   : > { %v4075_v41 = vmul.f32 1.442695, %v4024_v18  ;;  %v4023_v15 = vmul.f32 -0.75, %v3978_v27  ;;  %v3931_v48 = vadd.f32 1.0, %v3899_v23 }
 0x50c   : > { %4147 = vst.msk [vmem:[%s7897_s20 + $0x70] sm:$0xff] %vm3555_vm1, %v4115_v5  ;;  %5628 = vlog2.f32 %v3932_v45 }
 0x50d   : > { %5630 = vpow2.f32 %v4075_v41  ;;  %v4073_v59 = vmul.f32 1.442695, %v4023_v15 }
 0x50e   : > { %v5621_v62 = vpop.eup %5620  ;;  %5632 = vlog2.f32 %v3931_v48 }
 0x50f   : > { %v5623_v13 = vpop.eup %5622  ;;  %5634 = vpow2.f32 %v4073_v59  ;;  %v3984_v56 = vmul.f32 0.6931472, %v5621_v62  ;;  %v4956_v2 = vpop.f32.mrb[216].mxu0 }
 0x510   : > { %v5625_v31 = vpop.eup %5624  ;;  %v4118_v25 = vmul.f32 %v5623_v13, %v7775_v36  ;;  %v3902_v63 = vmul.f32 2.7777778e-05, %v4956_v2  ;;  %v3838_v8 = vpop.f32.mrb[217].mxu0 }
 0x511   : > { %v5627_v34 = vpop.eup %5626  ;;  %v4026_v11 = vmul.f32 -0.75, %v3984_v56  ;;  %v3982_v54 = vmul.f32 0.6931472, %v5625_v31  ;;  %v3901_v12 = vmul.f32 2.7777778e-05, %v3838_v8 }
 0x512   : > { %4150 = vst.msk [vmem:[%s7897_s20 + $0x88] sm:$0xff] %vm3555_vm1, %v4118_v25  ;;  %v4117_v51 = vmul.f32 %v5627_v34, %v7767_v47  ;;  %v3934_v50 = vadd.f32 1.0, %v3902_v63 }
 0x513   : > { %v4079_v30 = vmul.f32 1.442695, %v4026_v11  ;;  %v4025_v42 = vmul.f32 -0.75, %v3982_v54  ;;  %v3933_v58 = vadd.f32 1.0, %v3901_v12 }
 0x514   : > { %4149 = vst.msk [vmem:[%s7897_s20 + $0x80] sm:$0xff] %vm3555_vm1, %v4117_v51  ;;  %5636 = vlog2.f32 %v3934_v50 }
 0x515   : > { %5638 = vpow2.f32 %v4079_v30  ;;  %v4077_v36 = vmul.f32 1.442695, %v4025_v42 }
 0x516   : > { %v5629_v7 = vpop.eup %5628  ;;  %5640 = vlog2.f32 %v3933_v58 }
 0x517   : > { %v5631_v19 = vpop.eup %5630  ;;  %5642 = vpow2.f32 %v4077_v36  ;;  %v3988_v53 = vmul.f32 0.6931472, %v5629_v7  ;;  %v4959_v22 = vpop.f32.mrb[218].mxu0 }
 0x518   : > { %v5633_v24 = vpop.eup %5632  ;;  %v4120_v47 = vmul.f32 %v5631_v19, %v7791_v21  ;;  %v3904_v33 = vmul.f32 2.7777778e-05, %v4959_v22  ;;  %v3848_v44 = vpop.f32.mrb[219].mxu0 }
 0x519   : > { %v5635_v3 = vpop.eup %5634  ;;  %v4028_v60 = vmul.f32 -0.75, %v3988_v53  ;;  %v3986_v0 = vmul.f32 0.6931472, %v5633_v24  ;;  %v3903_v55 = vmul.f32 2.7777778e-05, %v3848_v44 }
 0x51a   : > { %4152 = vst.msk [vmem:[%s7897_s20 + $0x98] sm:$0xff] %vm3555_vm1, %v4120_v47  ;;  %v4119_v57 = vmul.f32 %v5635_v3, %v7783_v49  ;;  %v3936_v40 = vadd.f32 1.0, %v3904_v33 }
 0x51b   : > { %v4083_v43 = vmul.f32 1.442695, %v4028_v60  ;;  %v4027_v16 = vmul.f32 -0.75, %v3986_v0  ;;  %v3935_v38 = vadd.f32 1.0, %v3903_v55 }
 0x51c   : > { %4151 = vst.msk [vmem:[%s7897_s20 + $0x90] sm:$0xff] %vm3555_vm1, %v4119_v57  ;;  %5644 = vlog2.f32 %v3936_v40 }
 0x51d   : > { %5646 = vpow2.f32 %v4083_v43  ;;  %v4081_v21 = vmul.f32 1.442695, %v4027_v16 }
 0x51e   : > { %v5637_v32 = vpop.eup %5636  ;;  %5648 = vlog2.f32 %v3935_v38 }
 0x51f   : > { %v5639_v46 = vpop.eup %5638  ;;  %5650 = vpow2.f32 %v4081_v21  ;;  %v3992_v52 = vmul.f32 0.6931472, %v5637_v32  ;;  %v4962_v39 = vpop.f32.mrb[128].mxu1 }
 0x520   : > { %v5641_v14 = vpop.eup %5640  ;;  %v4122_v49 = vmul.f32 %v5639_v46, %v7807_v37  ;;  %v3906_v61 = vmul.f32 2.7777778e-05, %v4962_v39  ;;  %v3858_v18 = vpop.f32.mrb[129].mxu1 }
 0x521   : > { %v5643_v27 = vpop.eup %5642  ;;  %v4030_v23 = vmul.f32 -0.75, %v3992_v52  ;;  %v3990_v5 = vmul.f32 0.6931472, %v5641_v14  ;;  %v3905_v45 = vmul.f32 2.7777778e-05, %v3858_v18 }
 0x522   : > { %4154 = vst.msk [vmem:[%s7897_s20 + $0xa8] sm:$0xff] %vm3555_vm1, %v4122_v49  ;;  %v4121_v41 = vmul.f32 %v5643_v27, %v7799_v10  ;;  %v3938_v15 = vadd.f32 1.0, %v3906_v61 }
 0x523   : > { %v4087_v48 = vmul.f32 1.442695, %v4030_v23  ;;  %v4029_v59 = vmul.f32 -0.75, %v3990_v5  ;;  %v3937_v62 = vadd.f32 1.0, %v3905_v45 }
 0x524   : > { %4153 = vst.msk [vmem:[%s7897_s20 + $0xa0] sm:$0xff] %vm3555_vm1, %v4121_v41  ;;  %5652 = vlog2.f32 %v3938_v15 }
 0x525   : > { %5654 = vpow2.f32 %v4087_v48  ;;  %v4085_v37 = vmul.f32 1.442695, %v4029_v59 }
 0x526   : > { %v5645_v13 = vpop.eup %5644  ;;  %5656 = vlog2.f32 %v3937_v62 }
 0x527   : > { %v5647_v56 = vpop.eup %5646  ;;  %5658 = vpow2.f32 %v4085_v37  ;;  %v3996_v2 = vmul.f32 0.6931472, %v5645_v13  ;;  %v4965_v31 = vpop.f32.mrb[130].mxu1 }
 0x528   : > { %v5649_v25 = vpop.eup %5648  ;;  %v4124_v10 = vmul.f32 %v5647_v56, %v7823_v29  ;;  %v3908_v63 = vmul.f32 2.7777778e-05, %v4965_v31  ;;  %v3868_v8 = vpop.f32.mrb[131].mxu1 }
 0x529   : > { %v5651_v34 = vpop.eup %5650  ;;  %v4032_v11 = vmul.f32 -0.75, %v3996_v2  ;;  %v3994_v54 = vmul.f32 0.6931472, %v5649_v25  ;;  %v3907_v12 = vmul.f32 2.7777778e-05, %v3868_v8 }
 0x52a   : > { %4156 = vst.msk [vmem:[%s7897_s20 + $0xb8] sm:$0xff] %vm3555_vm1, %v4124_v10  ;;  %v4123_v51 = vmul.f32 %v5651_v34, %v7815_v35  ;;  %v3940_v50 = vadd.f32 1.0, %v3908_v63 }
 0x52b   : > { %v4091_v30 = vmul.f32 1.442695, %v4032_v11  ;;  %v4031_v42 = vmul.f32 -0.75, %v3994_v54  ;;  %v3939_v58 = vadd.f32 1.0, %v3907_v12 }
 0x52c   : > { %4155 = vst.msk [vmem:[%s7897_s20 + $0xb0] sm:$0xff] %vm3555_vm1, %v4123_v51  ;;  %5660 = vlog2.f32 %v3940_v50 }
 0x52d   : > { %5662 = vpow2.f32 %v4091_v30  ;;  %v4089_v29 = vmul.f32 1.442695, %v4031_v42 }
 0x52e   : > { %v5653_v36 = vpop.eup %5652  ;;  %5664 = vlog2.f32 %v3939_v58 }
 0x52f   : > { %v5655_v7 = vpop.eup %5654  ;;  %5666 = vpow2.f32 %v4089_v29  ;;  %v4000_v19 = vmul.f32 0.6931472, %v5653_v36 }
 0x530   : > { %v5657_v53 = vpop.eup %5656  ;;  %v4126_v22 = vmul.f32 %v5655_v7, %v7839_v4 }
 0x531   : > { %v5659_v35 = vpop.eup %5658  ;;  %v4034_v24 = vmul.f32 -0.75, %v4000_v19  ;;  %v3998_v47 = vmul.f32 0.6931472, %v5657_v53 }
 0x532   : > { %4158 = vst.msk [vmem:[%s7897_s20 + $0xc8] sm:$0xff] %vm3555_vm1, %v4126_v22  ;;  %v4125_v33 = vmul.f32 %v5659_v35, %v7831_v20 }
 0x533   : > { %v4095_v44 = vmul.f32 1.442695, %v4034_v24  ;;  %v4033_v3 = vmul.f32 -0.75, %v3998_v47 }
 0x534   : > { %4157 = vst.msk [vmem:[%s7897_s20 + $0xc0] sm:$0xff] %vm3555_vm1, %v4125_v33 }
 0x535   : > { %5668 = vpow2.f32 %v4095_v44  ;;  %v4093_v60 = vmul.f32 1.442695, %v4033_v3 }
 0x536   : > { %v5661_v0 = vpop.eup %5660 }
 0x537   : > { %v5663_v55 = vpop.eup %5662  ;;  %5670 = vpow2.f32 %v4093_v60  ;;  %v4004_v57 = vmul.f32 0.6931472, %v5661_v0 }
 0x538   : > { %v5665_v4 = vpop.eup %5664  ;;  %v4128_v40 = vmul.f32 %v5663_v55, %v7855_v9 }
 0x539   : > { %v5667_v43 = vpop.eup %5666  ;;  %v4036_v16 = vmul.f32 -0.75, %v4004_v57  ;;  %v4002_v38 = vmul.f32 0.6931472, %v5665_v4 }
 0x53a   : > { %4160 = vst.msk [vmem:[%s7897_s20 + $0xd8] sm:$0xff] %vm3555_vm1, %v4128_v40  ;;  %v4127_v20 = vmul.f32 %v5667_v43, %v7847_v17 }
 0x53b   : > { %v4099_v21 = vmul.f32 1.442695, %v4036_v16  ;;  %v4035_v32 = vmul.f32 -0.75, %v4002_v38 }
 0x53c   : > { %4159 = vst.msk [vmem:[%s7897_s20 + $0xd0] sm:$0xff] %vm3555_vm1, %v4127_v20 }
 0x53d   : > { %5672 = vpow2.f32 %v4099_v21  ;;  %v4097_v46 = vmul.f32 1.442695, %v4035_v32 }
 0x53f   : > { %v5669_v52 = vpop.eup %5668  ;;  %5674 = vpow2.f32 %v4097_v46 }
 0x540   : > { %v4130_v9 = vmul.f32 %v5669_v52, %v7871_v28 }
 0x541   : > { %v5671_v39 = vpop.eup %5670 }
 0x542   : > { %4162 = vst.msk [vmem:[%s7897_s20 + $0xe8] sm:$0xff] %vm3555_vm1, %v4130_v9  ;;  %v4129_v14 = vmul.f32 %v5671_v39, %v7863_v26 }
 0x544   : > { %4161 = vst.msk [vmem:[%s7897_s20 + $0xe0] sm:$0xff] %vm3555_vm1, %v4129_v14 }
 0x547   : > { %v5673_v17 = vpop.eup %5672 }
 0x548   : > { %v4132_v49 = vmul.f32 %v5673_v17, %v7887_v6 }
 0x549   : > { %v5675_v61 = vpop.eup %5674 }
 0x54a   : > { %4164 = vst.msk [vmem:[%s7897_s20 + $0xf8] sm:$0xff] %vm3555_vm1, %v4132_v49  ;;  %v4131_v18 = vmul.f32 %v5675_v61, %v7879_v1 }
 0x54c   : > { %4163 = vst.msk [vmem:[%s7897_s20 + $0xf0] sm:$0xff] %vm3555_vm1, %v4131_v18 }
 0x54d PF: > { %s15_s18 = sadd.s32 1, %s5683_s18  }
 0x54e   : > { %p12_p4 = scmp.ge.s32.totalorder %s15_s18, 4  }
 0x550   :  { %14 = sbr.rel (!%p12_p4) target bundleno = 1 (0x1), region = 72 }

// kernel: alexnet_forward.4
= control target key start
LH: loop header
LB: loop body
LE: loop exit
PB: predicated region body
PF: predicated region fallthrough
CT: control target
= control target key end

     0   :  { %s11328_s18 = smov 0   ;;  %s13347_s0 = inlined_call_operand.vmem [shape: f32[2,20,20,64], index: 0, kind: input, shape index: {}]   ;;  %s13348_s1 = inlined_call_operand.vmem [shape: bf16[25,64,64], index: 1, kind: input, shape index: {}]   ;;  %s13349_s2 = inlined_call_operand.vmem [shape: f32[1,64], index: 2, kind: input, shape index: {}]   ;;  %s13350_s3 = inlined_call_operand.vmem [shape: f32[64,64], index: 3, kind: input, shape index: {}]   ;;  %s13351_s4 = inlined_call_operand.vmem [shape: f32[3,64,128], index: 4, kind: input, shape index: {}]   ;;  %s13352_s5 = inlined_call_operand.vmem [shape: bf16[2,64,64], index: 5, kind: output, shape index: {}]  }
   0x1 LB: > { %s7585_s19 = sadd.s32 4294967295, %s11296_s18   ;;  %p7589_p0 = scmp.ge.s32.totalorder %s11296_s18, 1  ;;  %s11296_s18 = sphi %s11328_s18, %s15_s18  }
   0x2   : > { %p187_p1 = scmp.lt.s32.totalorder %s11296_s18, 3 }
   0x4   : > { %p188_p2 = pnand %p7589_p0, %p187_p1 }
   0x5   : > { %v11058_v0 = vld [vmem:[%s13348_s1 + $0xa0] sm:$0xff] (!%p188_p2)   ;;  %p215_p3 = scmp.lt.s32.totalorder (!%p188_p2), %s7585_s19, 1  ;;  %v11060_v2 = vld [vmem:[%s13348_s1 + $0xa8] sm:$0xff] (!%p188_p2)   ;;  %v11062_v4 = vld [vmem:[%s13348_s1 + $0xb0] sm:$0xff] (!%p188_p2)   ;;  %vm327_vm0 = vcmask (!%p188_p2), 523264   ;;  %vm7521_vm1 = vcmask (!%p188_p2), 519168  }
   0x6   : > { %191 = sbr.rel (%p188_p2) target bundleno = 1670 (0x686), region = 40  ;;  %v11059_v1 = vld [vmem:[%s13348_s1 + $0xe0] sm:$0xff] (!%p188_p2)   ;;  %8965 = vmatprep.subr.bf16.mxu1 (!%p188_p2), %v11058_v0  ;;  %v11061_v3 = vld [vmem:[%s13348_s1 + $0xe8] sm:$0xff] (!%p188_p2)   ;;  %v11063_v5 = vld [vmem:[%s13348_s1 + $0xf0] sm:$0xff] (!%p188_p2)  }
   0x7   : > { %9405 = vmatprep.subr.bf16.mxu0 (!%p188_p2), %v11059_v1  ;;  %8966 = vmatpush3.bf16.msra.mxu1 (!%p188_p2), %v11058_v0  ;;  %v11064_v6 = vld [vmem:[%s13348_s1 + $0xb8] sm:$0xff] (!%p188_p2)   ;;  %v11066_v20 = vld [vmem:[%s13348_s1 + $0x180] sm:$0xff] (!%p188_p2)   ;;  %v11067_v27 = vld [vmem:[%s13348_s1 + $0x188] sm:$0xff] (!%p188_p2)  }
   0x8   : > { %9406 = vmatpush3.bf16.msra.mxu0 (!%p188_p2), %v11059_v1  ;;  %8967 = vmatprep.subr.bf16.mxu1 (!%p188_p2), %v11060_v2  ;;  %v11065_v10 = vld [vmem:[%s13348_s1 + $0xf8] sm:$0xff] (!%p188_p2)   ;;  %v11068_v36 = vld [vmem:[%s13348_s1 + $0x190] sm:$0xff] (!%p188_p2)   ;;  %v11451_v50 = vld [vmem:[%s13348_s1 + $0x220] sm:$0xff] (!%p188_p2)  }
   0x9   : > { %9407 = vmatprep.subr.bf16.mxu0 (!%p188_p2), %v11061_v3  ;;  %v11069_v43 = vld [vmem:[%s13348_s1 + $0x198] sm:$0xff] (!%p188_p2)   ;;  %v11071_v51 = vld [vmem:[%s13348_s1] sm:$0xff] (!%p188_p2)   ;;  %v11072_v53 = vld [vmem:[%s13348_s1 + $0x8] sm:$0xff] (!%p188_p2)  }
   0xa   : > { %v11073_v58 = vld [vmem:[%s13348_s1 + $0x10] sm:$0xff] (!%p188_p2)  }
   0xb   : > { %8968 = vmatpush3.bf16.msra.mxu1 (!%p188_p2), %v11060_v2  ;;  %v11075_v2 = vld [vmem:[%s13348_s1 + $0x18] sm:$0xff] (!%p188_p2)  }
   0xc   : > { %9408 = vmatpush3.bf16.msra.mxu0 (!%p188_p2), %v11061_v3  ;;  %8969 = vmatprep.subr.bf16.mxu1 (!%p188_p2), %v11062_v4 }
   0xd   : > { %s13354_s19 = smov (!%p215_p3, %s7585_s19), 1  ;;  %9409 = vmatprep.subr.bf16.mxu0 %v11063_v5 }
   0xe   : > { %s11049_s30 = smul.u32 480, %s13354_s19 }
   0xf   : > { %8970 = vmatpush3.bf16.msra.mxu1 %v11062_v4 }
  0x10   : > { %s11360_s10 = scalar_lea.vmem %s13347_s0, %s11049_s30  ;;  %9410 = vmatpush3.bf16.msra.mxu0 %v11063_v5  ;;  %8971 = vmatprep.subr.bf16.mxu1 %v11064_v6  ;;  %s8344_s30 = sshll.u32 %s13354_s19, 5 }
  0x11   : > { %v228_v7 = vld [vmem:[%s11360_s10 + $0x18] sm:$0xff]  ;;  %v229_v8 = vld [vmem:[%s11360_s10 + $0x20] sm:$0xff]  ;;  %v230_v14 = vld [vmem:[%s11360_s10 + $0x30] sm:$0xff]  ;;  %9411 = vmatprep.subr.bf16.mxu0 %v11065_v10  ;;  %s224_s8 = scalar_lea.vmem %s13352_s5, %s8344_s30 }
  0x12   : > { %v2664_v9 = vld [vmem:[%s11360_s10 + $0x1a] sm:$0xff]  ;;  %v11371_v11 = vpack.c.bf16 %v229_v8, %v228_v7  ;;  %v2665_v12 = vld [vmem:[%s11360_s10 + $0x22] sm:$0xff]  ;;  %v2666_v16 = vld [vmem:[%s11360_s10 + $0x32] sm:$0xff] }
  0x13   : > { %v11374_v13 = vpack.c.bf16 %v2665_v12, %v2664_v9  ;;  %v231_v15 = vld [vmem:[%s11360_s10 + $0x38] sm:$0xff]  ;;  %v232_v18 = vld [vmem:[%s11360_s10 + $0x48] sm:$0xff]  ;;  %v233_v19 = vld [vmem:[%s11360_s10 + $0x50] sm:$0xff]  ;;  %8972 = vmatpush3.bf16.msra.mxu1 %v11064_v6 }
  0x14   : > { %8973 = vmatprep.mubr.msk.bf16.mxu1 %vm327_vm0, %v11371_v11  ;;  %v2667_v17 = vld [vmem:[%s11360_s10 + $0x3a] sm:$0xff]  ;;  %v2668_v21 = vld [vmem:[%s11360_s10 + $0x4a] sm:$0xff]  ;;  %v2669_v22 = vld [vmem:[%s11360_s10 + $0x52] sm:$0xff]  ;;  %v11391_v23 = vpack.c.bf16 %v231_v15, %v230_v14  ;;  %v11395_v25 = vpack.c.bf16 %v233_v19, %v232_v18  ;;  %9412 = vmatpush3.bf16.msra.mxu0 %v11065_v10 }
  0x15   : > { %9413 = vmatprep.mubr.msk.bf16.mxu0 %vm327_vm0, %v11374_v13  ;;  %v11393_v24 = vpack.c.bf16 %v2667_v17, %v2666_v16  ;;  %v11397_v26 = vpack.c.bf16 %v2669_v22, %v2668_v21  ;;  %9445 = vmatprep.subr.bf16.mxu0 %v11066_v20  ;;  %v234_v28 = vld [vmem:[%s11360_s10 + $0x60] sm:$0xff]  ;;  %v235_v29 = vld [vmem:[%s11360_s10 + $0x68] sm:$0xff]  ;;  %v236_v32 = vld [vmem:[%s11360_s10 + $0x78] sm:$0xff] }
  0x16   : > { %8974 = vmatmul.mubr.msk.bf16.vlgmr.msra.gmra.mrb[0].mxu1 %vm327_vm0, %v11391_v23  ;;  %v2670_v30 = vld [vmem:[%s11360_s10 + $0x62] sm:$0xff]  ;;  %v2671_v31 = vld [vmem:[%s11360_s10 + $0x6a] sm:$0xff]  ;;  %v2672_v34 = vld [vmem:[%s11360_s10 + $0x7a] sm:$0xff]  ;;  %v11421_v37 = vpack.c.bf16 %v235_v29, %v234_v28  ;;  %9005 = vmatprep.subr.bf16.mxu1 %v11071_v51 }
  0x17   : > { %9414 = vmatmul.mubr.msk.bf16.vlgmr.msra.gmra.mrb[0].mxu0 %vm327_vm0, %v11393_v24  ;;  %8977 = vmatprep.mubr.msk.bf16.mxu1 %vm327_vm0, %v11395_v25  ;;  %v237_v33 = vld [vmem:[%s11360_s10 + $0x80] sm:$0xff]  ;;  %v11423_v38 = vpack.c.bf16 %v2671_v31, %v2670_v30  ;;  %v238_v41 = vld [vmem:[%s11360_s10 + $0x90] sm:$0xff]  ;;  %v239_v42 = vld [vmem:[%s11360_s10 + $0x98] sm:$0xff] }
  0x18   : > { %9446 = vmatpush3.bf16.msra.mxu0 %v11066_v20  ;;  %9417 = vmatprep.mubr.msk.bf16.mxu0 %vm327_vm0, %v11397_v26  ;;  %v2673_v35 = vld [vmem:[%s11360_s10 + $0x82] sm:$0xff]  ;;  %v11425_v39 = vpack.c.bf16 %v237_v33, %v236_v32  ;;  %v2674_v44 = vld [vmem:[%s11360_s10 + $0x92] sm:$0xff]  ;;  %v2675_v45 = vld [vmem:[%s11360_s10 + $0x9a] sm:$0xff]  ;;  %v11456_v52 = vpack.c.bf16 %v239_v42, %v238_v41 }
  0x19   : > { %9447 = vmatprep.subr.bf16.mxu0 %v11067_v27  ;;  %v11427_v40 = vpack.c.bf16 %v2673_v35, %v2672_v34  ;;  %v240_v46 = vld [vmem:[%s11360_s10 + $0xa8] sm:$0xff]  ;;  %v241_v47 = vld [vmem:[%s11360_s10 + $0xb0] sm:$0xff]  ;;  %v11461_v54 = vpack.c.bf16 %v2675_v45, %v2674_v44  ;;  %9006 = vmatpush3.bf16.msra.mxu1 %v11071_v51  ;;  %v242_v57 = vld [vmem:[%s11360_s10 + $0xc0] sm:$0xff] }
  0x1a   : > { %v2676_v48 = vld [vmem:[%s11360_s10 + $0xaa] sm:$0xff]  ;;  %v2677_v49 = vld [vmem:[%s11360_s10 + $0xb2] sm:$0xff]  ;;  %v11463_v55 = vpack.c.bf16 %v241_v47, %v240_v46  ;;  %9007 = vmatprep.subr.bf16.mxu1 %v11072_v53  ;;  %v2678_v60 = vld [vmem:[%s11360_s10 + $0xc2] sm:$0xff] }
  0x1b   : > { %v11465_v56 = vpack.c.bf16 %v2677_v49, %v2676_v48  ;;  %v243_v59 = vld [vmem:[%s11360_s10 + $0xc8] sm:$0xff]  ;;  %v244_v62 = vld [vmem:[%s11360_s10 + $0xd8] sm:$0xff]  ;;  %v245_v63 = vld [vmem:[%s11360_s10 + $0xe0] sm:$0xff] }
  0x1c   : > { %9448 = vmatpush3.bf16.msra.mxu0 %v11067_v27  ;;  %v2679_v61 = vld [vmem:[%s11360_s10 + $0xca] sm:$0xff]  ;;  %v2680_v0 = vld [vmem:[%s11360_s10 + $0xda] sm:$0xff]  ;;  %v2681_v1 = vld [vmem:[%s11360_s10 + $0xe2] sm:$0xff]  ;;  %v11490_v3 = vpack.c.bf16 %v243_v59, %v242_v57  ;;  %v11494_v5 = vpack.c.bf16 %v245_v63, %v244_v62 }
  0x1d   : > { %9449 = vmatprep.subr.bf16.mxu0 %v11068_v36  ;;  %9008 = vmatpush3.bf16.msra.mxu1 %v11072_v53  ;;  %v11492_v4 = vpack.c.bf16 %v2679_v61, %v2678_v60  ;;  %v11496_v6 = vpack.c.bf16 %v2681_v1, %v2680_v0  ;;  %v246_v7 = vld [vmem:[%s11360_s10 + $0xf0] sm:$0xff]  ;;  %v247_v8 = vld [vmem:[%s11360_s10 + $0xf8] sm:$0xff]  ;;  %v248_v12 = vld [vmem:[%s11360_s10 + $0x108] sm:$0xff] }
  0x1e   : > { %8978 = vmatmul.mubr.msk.bf16.gmra.mrb[4].mxu1 %vm327_vm0, %v11421_v37  ;;  %9009 = vmatprep.subr.bf16.mxu1 %v11073_v58  ;;  %v2682_v9 = vld [vmem:[%s11360_s10 + $0xf2] sm:$0xff]  ;;  %v2683_v10 = vld [vmem:[%s11360_s10 + $0xfa] sm:$0xff]  ;;  %v11515_v16 = vpack.c.bf16 %v247_v8, %v246_v7  ;;  %v251_v20 = vld [vmem:[%s11360_s10 + $0x128] sm:$0xff] }
  0x1f   : > { %9418 = vmatmul.mubr.msk.bf16.gmra.mrb[4].mxu0 %vm327_vm0, %v11423_v38  ;;  %8981 = vmatprep.mubr.msk.bf16.mxu1 %vm327_vm0, %v11425_v39  ;;  %v249_v14 = vld [vmem:[%s11360_s10 + $0x110] sm:$0xff]  ;;  %v11079_v15 = vld [vmem:[%s13348_s1 + $0x140] sm:$0xff]   ;;  %v11517_v17 = vpack.c.bf16 %v2683_v10, %v2682_v9  ;;  %v252_v21 = vld [vmem:[%s11360_s10 + $0x138] sm:$0xff] }
  0x20   : > { %9421 = vmatprep.mubr.msk.bf16.mxu0 %vm327_vm0, %v11427_v40  ;;  %9450 = vmatpush3.bf16.msra.mxu0 %v11068_v36  ;;  %v11519_v18 = vpack.c.bf16 %v249_v14, %v248_v12  ;;  %v250_v19 = vld [vmem:[%s11360_s10 + $0x120] sm:$0xff]  ;;  %v11074_v29 = vld [vmem:[%s13348_s1 + $0x228] sm:$0xff]   ;;  %v254_v30 = vld [vmem:[%s11360_s10 + $0x150] sm:$0xff] }
  0x21   : > { %9451 = vmatprep.subr.bf16.mxu0 %v11069_v43  ;;  %9010 = vmatpush3.bf16.msra.mxu1 %v11073_v58  ;;  %v253_v22 = vld [vmem:[%s11360_s10 + $0x140] sm:$0xff]  ;;  %v11533_v27 = vpack.c.bf16 %v251_v20, %v250_v19  ;;  %v255_v31 = vld [vmem:[%s11360_s10 + $0x158] sm:$0xff]  ;;  %v256_v32 = vld [vmem:[%s11360_s10 + $0x168] sm:$0xff] }
  0x22   : > { %9011 = vmatprep.subr.bf16.mxu1 %v11075_v2  ;;  %v11535_v28 = vpack.c.bf16 %v253_v22, %v252_v21  ;;  %v257_v33 = vld [vmem:[%s11360_s10 + $0x170] sm:$0xff]  ;;  %v11556_v35 = vpack.c.bf16 %v255_v31, %v254_v30  ;;  %v258_v41 = vld [vmem:[%s11360_s10 + $0x180] sm:$0xff]  ;;  %v259_v42 = vld [vmem:[%s11360_s10 + $0x188] sm:$0xff] }
  0x23   : > { %v11076_v34 = vld [vmem:[%s13348_s1 + $0x230] sm:$0xff]   ;;  %v11558_v36 = vpack.c.bf16 %v257_v33, %v256_v32  ;;  %v226_v44 = vld [vmem:[%s11360_s10] sm:$0xff]  ;;  %v227_v45 = vld [vmem:[%s11360_s10 + $0x8] sm:$0xff]  ;;  %v11580_v47 = vpack.c.bf16 %v259_v42, %v258_v41 }
  0x24   : > { %9452 = vmatpush3.bf16.msra.mxu0 %v11069_v43  ;;  %v11077_v43 = vld [vmem:[%s13348_s1 + $0x238] sm:$0xff]   ;;  %v11578_v46 = vld [vmem:[%s13348_s1 + $0x2c0] sm:$0xff]   ;;  %v266_v48 = vpack.c.bf16 %v227_v45, %v226_v44  ;;  %v11080_v49 = vld [vmem:[%s13348_s1 + $0x148] sm:$0xff]  }
  0x25   : > { %9485 = vmatprep.subr.bf16.mxu0 %v11451_v50  ;;  %9012 = vmatpush3.bf16.msra.mxu1 %v11075_v2  ;;  %v2685_v51 = vld [vmem:[%s11360_s10 + $0x112] sm:$0xff]  ;;  %v2686_v53 = vld [vmem:[%s11360_s10 + $0x122] sm:$0xff]  ;;  %v2687_v57 = vld [vmem:[%s11360_s10 + $0x12a] sm:$0xff] }
  0x26   : > { %8982 = vmatmul.mubr.msk.bf16.gmra.mrb[8].mxu1 %vm327_vm0, %v11456_v52  ;;  %9045 = vmatprep.subr.bf16.mxu1 %v11079_v15  ;;  %v11081_v58 = vld [vmem:[%s13348_s1 + $0x150] sm:$0xff]   ;;  %v11083_v59 = vld [vmem:[%s13348_s1 + $0x158] sm:$0xff]   ;;  %v11613_v60 = vpack.c.bf16 %v2687_v57, %v2686_v53  ;;  %v2689_v62 = vld [vmem:[%s11360_s10 + $0x142] sm:$0xff] }
  0x27   : > { %9422 = vmatmul.mubr.msk.bf16.gmra.mrb[8].mxu0 %vm327_vm0, %v11461_v54  ;;  %8985 = vmatprep.mubr.msk.bf16.mxu1 %vm327_vm0, %v11463_v55  ;;  %v2688_v61 = vld [vmem:[%s11360_s10 + $0x13a] sm:$0xff]  ;;  %v2690_v63 = vld [vmem:[%s11360_s10 + $0x152] sm:$0xff]  ;;  %v2692_v8 = vld [vmem:[%s11360_s10 + $0x16a] sm:$0xff] }
  0x28   : > { %9425 = vmatprep.mubr.msk.bf16.mxu0 %vm327_vm0, %v11465_v56  ;;  %v2691_v0 = vld [vmem:[%s11360_s10 + $0x15a] sm:$0xff]  ;;  %v11630_v2 = vpack.c.bf16 %v2689_v62, %v2688_v61  ;;  %v2693_v9 = vld [vmem:[%s11360_s10 + $0x172] sm:$0xff]  ;;  %v2694_v10 = vld [vmem:[%s11360_s10 + $0x182] sm:$0xff] }
  0x29   : > { %v11087_v1 = vld [vmem:[%s13348_s1 + $0x1e0] sm:$0xff]   ;;  %v11632_v7 = vpack.c.bf16 %v2691_v0, %v2690_v63  ;;  %v2695_v12 = vld [vmem:[%s11360_s10 + $0x18a] sm:$0xff]  ;;  %v11646_v14 = vpack.c.bf16 %v2693_v9, %v2692_v8  ;;  %v11085_v30 = vld [vmem:[%s13348_s1 + $0x2d8] sm:$0xff]  }
  0x2a   : > { %v2696_v19 = vld [vmem:[%s11360_s10 + $0x19a] sm:$0xff]  ;;  %v2697_v20 = vld [vmem:[%s11360_s10 + $0x1a2] sm:$0xff]  ;;  %v2698_v41 = vld [vmem:[%s11360_s10 + $0x1b2] sm:$0xff] }
  0x2b   : > { %v11660_v21 = vpack.c.bf16 %v2697_v20, %v2696_v19  ;;  %v11082_v22 = vld [vmem:[%s13348_s1 + $0x2c8] sm:$0xff]   ;;  %v11086_v31 = vld [vmem:[%s13348_s1 + $0x60] sm:$0xff]   ;;  %v11091_v33 = vld [vmem:[%s13348_s1 + $0x1f8] sm:$0xff]  }
  0x2c   : > { %v11088_v32 = vld [vmem:[%s13348_s1 + $0x1e8] sm:$0xff]   ;;  %v2699_v42 = vld [vmem:[%s11360_s10 + $0x1ba] sm:$0xff]  ;;  %v11092_v45 = vld [vmem:[%s13348_s1 + $0x70] sm:$0xff]  }
  0x2d   : > { %v11090_v44 = vld [vmem:[%s13348_s1 + $0x68] sm:$0xff]   ;;  %v11099_v57 = vld [vmem:[%s13348_s1 + $0x298] sm:$0xff]  }
  0x2e   : > { %8986 = vmatmul.mubr.msk.bf16.gmra.mrb[12].mxu1 %vm327_vm0, %v11490_v3  ;;  %v11096_v53 = vld [vmem:[%s13348_s1 + $0x288] sm:$0xff]   ;;  %v2701_v61 = vld [vmem:[%s11360_s10 + $0x1d2] sm:$0xff]  ;;  %v3914_v8 = vld [vmem:[%s11360_s10 + $0x1b] sm:$0xff] }
  0x2f   : > { %9426 = vmatmul.mubr.msk.bf16.gmra.mrb[12].mxu0 %vm327_vm0, %v11492_v4  ;;  %8989 = vmatprep.mubr.msk.bf16.mxu1 %vm327_vm0, %v11494_v5  ;;  %v3912_v62 = vld [vmem:[%s11360_s10 + $0x3] sm:$0xff]  ;;  %v3913_v63 = vld [vmem:[%s11360_s10 + $0xb] sm:$0xff] }
  0x30   : > { %9429 = vmatprep.mubr.msk.bf16.mxu0 %vm327_vm0, %v11496_v6  ;;  %v3915_v9 = vld [vmem:[%s11360_s10 + $0x23] sm:$0xff] }
  0x31   : > { %v11860_v19 = vpack.c.bf16 %v3915_v9, %v3914_v8  ;;  %v3932_v8 = vld [vmem:[%s11360_s10 + $0xf3] sm:$0xff]  ;;  %v3933_v9 = vld [vmem:[%s11360_s10 + $0xfb] sm:$0xff] }
  0x36   : > { %8990 = vmatmul.mubr.msk.bf16.gmra.mrb[16].mxu1 %vm327_vm0, %v11515_v16 }
  0x37   : > { %9430 = vmatmul.mubr.msk.bf16.gmra.mrb[16].mxu0 %vm327_vm0, %v11517_v17  ;;  %8993 = vmatprep.mubr.msk.bf16.mxu1 %vm327_vm0, %v11519_v18 }
  0x38   : > { %9453 = vmatprep.mubr.msk.bf16.mxu0 %vm327_vm0, %v11393_v24 }
  0x3e   : > { %8994 = vmatmul.mubr.msk.bf16.gmra.mrb[20].mxu1 %vm327_vm0, %v11533_v27 }
  0x3f   : > { %9454 = vmatmul.mubr.msk.bf16.vlgmr.msra.gmra.mrb[0].mxu0 %vm327_vm0, %v11397_v26  ;;  %8997 = vmatprep.mubr.msk.bf16.mxu1 %vm327_vm0, %v11535_v28 }
  0x40   : > { %9486 = vmatpush3.bf16.msra.mxu0 %v11451_v50  ;;  %9457 = vmatprep.mubr.msk.bf16.mxu0 %vm327_vm0, %v11423_v38  ;;  %v2684_v50 = vld [vmem:[%s11360_s10 + $0x10a] sm:$0xff] }
  0x41   : > { %9487 = vmatprep.subr.bf16.mxu0 %v11074_v29 }
  0x44   : > { %9488 = vmatpush3.bf16.msra.mxu0 %v11074_v29  ;;  %v11084_v29 = vld [vmem:[%s13348_s1 + $0x2d0] sm:$0xff]  }
  0x45   : > { %9489 = vmatprep.subr.bf16.mxu0 %v11076_v34 }
  0x46   : > { %8998 = vmatmul.mubr.msk.bf16.gmra.mrb[24].mxu1 %vm327_vm0, %v11556_v35 }
  0x47   : > { %9458 = vmatmul.mubr.msk.bf16.gmra.mrb[4].mxu0 %vm327_vm0, %v11427_v40  ;;  %9001 = vmatprep.mubr.msk.bf16.mxu1 %vm327_vm0, %v11558_v36 }
  0x48   : > { %9461 = vmatprep.mubr.msk.bf16.mxu0 %vm327_vm0, %v11461_v54  ;;  %9490 = vmatpush3.bf16.msra.mxu0 %v11076_v34  ;;  %v11095_v34 = vld [vmem:[%s13348_s1 + $0x280] sm:$0xff]  }
  0x49   : > { %9491 = vmatprep.subr.bf16.mxu0 %v11077_v43 }
  0x4c   : > { %9492 = vmatpush3.bf16.msra.mxu0 %v11077_v43  ;;  %v2720_v43 = vpack.c.bf16 %v2699_v42, %v2698_v41  ;;  %v262_v41 = vld [vmem:[%s11360_s10 + $0x1b0] sm:$0xff]  ;;  %v263_v42 = vld [vmem:[%s11360_s10 + $0x1b8] sm:$0xff] }
  0x4d   : > { %9525 = vmatprep.subr.bf16.mxu0 %v11578_v46 }
  0x4e   : > { %9002 = vmatmul.mubr.msk.bf16.gmra.mrb[28].mxu1 %vm327_vm0, %v11580_v47 }
  0x4f   : > { %9462 = vmatmul.mubr.msk.bf16.gmra.mrb[8].mxu0 %vm327_vm0, %v11465_v56  ;;  %9013 = vmatprep.mubr.msk.bf16.mxu1 %vm327_vm0, %v266_v48  ;;  %v260_v48 = vld [vmem:[%s11360_s10 + $0x198] sm:$0xff] }
  0x50   : > { %9465 = vmatprep.mubr.msk.bf16.mxu0 %vm327_vm0, %v11492_v4 }
  0x56   : > { %9014 = vmatmul.mubr.msk.bf16.vlgmr.msra.gmra.mrb[0].mxu1 %vm327_vm0, %v11371_v11  ;;  %v11608_v11 = vpack.c.bf16 %v2685_v51, %v2684_v50  ;;  %v11094_v50 = vld [vmem:[%s13348_s1 + $0x100] sm:$0xff]  }
  0x57   : > { %9466 = vmatmul.mubr.msk.bf16.gmra.mrb[12].mxu0 %vm327_vm0, %v11496_v6  ;;  %9017 = vmatprep.mubr.msk.bf16.mxu1 %vm327_vm0, %v11391_v23 }
  0x58   : > { %9469 = vmatprep.mubr.msk.bf16.mxu0 %vm327_vm0, %v11517_v17  ;;  %9046 = vmatpush3.bf16.msra.mxu1 %v11079_v15  ;;  %v11648_v15 = vpack.c.bf16 %v2695_v12, %v2694_v10  ;;  %v3916_v10 = vld [vmem:[%s11360_s10 + $0x33] sm:$0xff]  ;;  %v3917_v12 = vld [vmem:[%s11360_s10 + $0x3b] sm:$0xff] }
  0x59   : > { %9047 = vmatprep.subr.bf16.mxu1 %v11080_v49  ;;  %v11862_v20 = vpack.c.bf16 %v3917_v12, %v3916_v10  ;;  %v11107_v12 = vld [vmem:[%s13348_s1 + $0x38] sm:$0xff]  }
  0x5c   : > { %9048 = vmatpush3.bf16.msra.mxu1 %v11080_v49  ;;  %v261_v49 = vld [vmem:[%s11360_s10 + $0x1a0] sm:$0xff] }
  0x5d   : > { %9049 = vmatprep.subr.bf16.mxu1 %v11081_v58  ;;  %v11790_v51 = vpack.c.bf16 %v261_v49, %v260_v48  ;;  %v11906_v48 = vld [vmem:[%s13348_s1 + $0x1a0] sm:$0xff]   ;;  %v11908_v49 = vpack.c.bf16 %v263_v42, %v262_v41 }
  0x5e   : > { %9018 = vmatmul.mubr.msk.bf16.gmra.mrb[4].mxu1 %vm327_vm0, %v11395_v25  ;;  %v3941_v41 = vld [vmem:[%s11360_s10 + $0x15b] sm:$0xff] }
  0x5f   : > { %9470 = vmatmul.mubr.msk.bf16.gmra.mrb[16].mxu0 %vm327_vm0, %v11608_v11  ;;  %9021 = vmatprep.mubr.msk.bf16.mxu1 %vm327_vm0, %v11421_v37 }
  0x60   : > { %9473 = vmatprep.mubr.msk.bf16.mxu0 %vm327_vm0, %v11613_v60  ;;  %9050 = vmatpush3.bf16.msra.mxu1 %v11081_v58  ;;  %v11828_v58 = vld [vmem:[%s13348_s1 + $0x20] sm:$0xff]  }
  0x61   : > { %9051 = vmatprep.subr.bf16.mxu1 %v11083_v59 }
  0x64   : > { %9052 = vmatpush3.bf16.msra.mxu1 %v11083_v59  ;;  %v2700_v59 = vld [vmem:[%s11360_s10 + $0x1ca] sm:$0xff] }
  0x65   : > { %9085 = vmatprep.subr.bf16.mxu1 %v11087_v1  ;;  %v2721_v0 = vpack.c.bf16 %v2701_v61, %v2700_v59  ;;  %v3928_v59 = vld [vmem:[%s11360_s10 + $0xc3] sm:$0xff]  ;;  %v3929_v61 = vld [vmem:[%s11360_s10 + $0xcb] sm:$0xff] }
  0x66   : > { %9022 = vmatmul.mubr.msk.bf16.gmra.mrb[8].mxu1 %vm327_vm0, %v11425_v39 }
  0x67   : > { %9474 = vmatmul.mubr.msk.bf16.gmra.mrb[20].mxu0 %vm327_vm0, %v11630_v2  ;;  %9025 = vmatprep.mubr.msk.bf16.mxu1 %vm327_vm0, %v11456_v52 }
  0x68   : > { %9477 = vmatprep.mubr.msk.bf16.mxu0 %vm327_vm0, %v11632_v7 }
  0x6e   : > { %9026 = vmatmul.mubr.msk.bf16.gmra.mrb[12].mxu1 %vm327_vm0, %v11463_v55 }
  0x6f   : > { %9478 = vmatmul.mubr.msk.bf16.gmra.mrb[24].mxu0 %vm327_vm0, %v11646_v14  ;;  %9029 = vmatprep.mubr.msk.bf16.mxu1 %vm327_vm0, %v11490_v3 }
  0x70   : > { %9481 = vmatprep.mubr.msk.bf16.mxu0 %vm327_vm0, %v11648_v15 }
  0x76   : > { %9030 = vmatmul.mubr.msk.bf16.gmra.mrb[16].mxu1 %vm327_vm0, %v11494_v5 }
  0x77   : > { %9482 = vmatmul.mubr.msk.bf16.gmra.mrb[28].mxu0 %vm327_vm0, %v11660_v21  ;;  %9033 = vmatprep.mubr.msk.bf16.mxu1 %vm327_vm0, %v11515_v16 }
  0x78   : > { %9493 = vmatprep.mubr.msk.bf16.mxu0 %vm327_vm0, %v11397_v26 }
  0x7e   : > { %9034 = vmatmul.mubr.msk.bf16.gmra.mrb[20].mxu1 %vm327_vm0, %v11519_v18 }
  0x7f   : > { %9494 = vmatmul.mubr.msk.bf16.vlgmr.msra.gmra.mrb[0].mxu0 %vm327_vm0, %v11423_v38  ;;  %9037 = vmatprep.mubr.msk.bf16.mxu1 %vm327_vm0, %v11533_v27 }
  0x80   : > { %9526 = vmatpush3.bf16.msra.mxu0 %v11578_v46  ;;  %9497 = vmatprep.mubr.msk.bf16.mxu0 %vm327_vm0, %v11427_v40  ;;  %v11093_v46 = vld [vmem:[%s13348_s1 + $0x78] sm:$0xff]  }
  0x81   : > { %9527 = vmatprep.subr.bf16.mxu0 %v11082_v22 }
  0x84   : > { %9528 = vmatpush3.bf16.msra.mxu0 %v11082_v22  ;;  %v3918_v22 = vld [vmem:[%s11360_s10 + $0x4b] sm:$0xff] }
  0x85   : > { %9529 = vmatprep.subr.bf16.mxu0 %v11084_v29 }
  0x86   : > { %9038 = vmatmul.mubr.msk.bf16.gmra.mrb[24].mxu1 %vm327_vm0, %v11535_v28 }
  0x87   : > { %9498 = vmatmul.mubr.msk.bf16.gmra.mrb[4].mxu0 %vm327_vm0, %v11461_v54  ;;  %9041 = vmatprep.mubr.msk.bf16.mxu1 %vm327_vm0, %v11556_v35 }
  0x88   : > { %9501 = vmatprep.mubr.msk.bf16.mxu0 %vm327_vm0, %v11465_v56  ;;  %9530 = vmatpush3.bf16.msra.mxu0 %v11084_v29  ;;  %v3919_v29 = vld [vmem:[%s11360_s10 + $0x53] sm:$0xff] }
  0x89   : > { %9531 = vmatprep.subr.bf16.mxu0 %v11085_v30 }
  0x8c   : > { %9532 = vmatpush3.bf16.msra.mxu0 %v11085_v30  ;;  %v3920_v30 = vld [vmem:[%s11360_s10 + $0x63] sm:$0xff] }
  0x8d   : > { %9565 = vmatprep.subr.bf16.mxu0 %v11086_v31 }
  0x8e   : > { %9042 = vmatmul.mubr.msk.bf16.gmra.mrb[28].mxu1 %vm327_vm0, %v11558_v36 }
  0x8f   : > { %9502 = vmatmul.mubr.msk.bf16.gmra.mrb[8].mxu0 %vm327_vm0, %v11492_v4  ;;  %9053 = vmatprep.mubr.msk.bf16.mxu1 %vm327_vm0, %v11391_v23  ;;  %v11089_v23 = vld [vmem:[%s13348_s1 + $0x1f0] sm:$0xff]  }
  0x90   : > { %9505 = vmatprep.mubr.msk.bf16.mxu0 %vm327_vm0, %v11496_v6 }
  0x96   : > { %9054 = vmatmul.mubr.msk.bf16.vlgmr.msra.gmra.mrb[0].mxu1 %vm327_vm0, %v11395_v25 }
  0x97   : > { %9506 = vmatmul.mubr.msk.bf16.gmra.mrb[12].mxu0 %vm327_vm0, %v11517_v17  ;;  %9057 = vmatprep.mubr.msk.bf16.mxu1 %vm327_vm0, %v11421_v37 }
  0x98   : > { %9509 = vmatprep.mubr.msk.bf16.mxu0 %vm327_vm0, %v11608_v11  ;;  %9086 = vmatpush3.bf16.msra.mxu1 %v11087_v1  ;;  %v3952_v1 = vpack.c.bf16 %v3913_v63, %v3912_v62  ;;  %v11929_v63 = vpack.c.bf16 %v3929_v61, %v3928_v59 }
  0x99   : > { %9087 = vmatprep.subr.bf16.mxu1 %v11088_v32 }
  0x9c   : > { %9088 = vmatpush3.bf16.msra.mxu1 %v11088_v32  ;;  %v11100_v32 = vld [vmem:[%s13348_s1 + $0x110] sm:$0xff]  }
  0x9d   : > { %9089 = vmatprep.subr.bf16.mxu1 %v11089_v23 }
  0x9e   : > { %9058 = vmatmul.mubr.msk.bf16.gmra.mrb[4].mxu1 %vm327_vm0, %v11425_v39 }
  0x9f   : > { %9510 = vmatmul.mubr.msk.bf16.gmra.mrb[16].mxu0 %vm327_vm0, %v11613_v60  ;;  %9061 = vmatprep.mubr.msk.bf16.mxu1 %vm327_vm0, %v11456_v52 }
  0xa0   : > { %9513 = vmatprep.mubr.msk.bf16.mxu0 %vm327_vm0, %v11630_v2  ;;  %9090 = vmatpush3.bf16.msra.mxu1 %v11089_v23  ;;  %v11882_v23 = vpack.c.bf16 %v3919_v29, %v3918_v22  ;;  %v3936_v22 = vld [vmem:[%s11360_s10 + $0x123] sm:$0xff]  ;;  %v3937_v29 = vld [vmem:[%s11360_s10 + $0x12b] sm:$0xff] }
  0xa1   : > { %9091 = vmatprep.subr.bf16.mxu1 %v11091_v33 }
  0xa4   : > { %9092 = vmatpush3.bf16.msra.mxu1 %v11091_v33 }
  0xa5   : > { %9125 = vmatprep.subr.bf16.mxu1 %v11095_v34 }
  0xa6   : > { %9062 = vmatmul.mubr.msk.bf16.gmra.mrb[8].mxu1 %vm327_vm0, %v11463_v55 }
  0xa7   : > { %9514 = vmatmul.mubr.msk.bf16.gmra.mrb[20].mxu0 %vm327_vm0, %v11632_v7  ;;  %9065 = vmatprep.mubr.msk.bf16.mxu1 %vm327_vm0, %v11490_v3 }
  0xa8   : > { %9517 = vmatprep.mubr.msk.bf16.mxu0 %vm327_vm0, %v11646_v14 }
  0xae   : > { %9066 = vmatmul.mubr.msk.bf16.gmra.mrb[12].mxu1 %vm327_vm0, %v11494_v5 }
  0xaf   : > { %9518 = vmatmul.mubr.msk.bf16.gmra.mrb[24].mxu0 %vm327_vm0, %v11648_v15  ;;  %9069 = vmatprep.mubr.msk.bf16.mxu1 %vm327_vm0, %v11515_v16 }
  0xb0   : > { %9521 = vmatprep.mubr.msk.bf16.mxu0 %vm327_vm0, %v11660_v21 }
  0xb6   : > { %9070 = vmatmul.mubr.msk.bf16.gmra.mrb[16].mxu1 %vm327_vm0, %v11519_v18 }
  0xb7   : > { %9522 = vmatmul.mubr.msk.bf16.gmra.mrb[28].mxu0 %vm327_vm0, %v2720_v43  ;;  %9073 = vmatprep.mubr.msk.bf16.mxu1 %vm327_vm0, %v11533_v27 }
  0xb8   : > { %9533 = vmatprep.mubr.msk.bf16.mxu0 %vm327_vm0, %v11423_v38 }
  0xbe   : > { %9074 = vmatmul.mubr.msk.bf16.gmra.mrb[20].mxu1 %vm327_vm0, %v11535_v28 }
  0xbf   : > { %9534 = vmatmul.mubr.msk.bf16.vlgmr.msra.gmra.mrb[0].mxu0 %vm327_vm0, %v11427_v40  ;;  %9077 = vmatprep.mubr.msk.bf16.mxu1 %vm327_vm0, %v11556_v35 }
  0xc0   : > { %9566 = vmatpush3.bf16.msra.mxu0 %v11086_v31  ;;  %9537 = vmatprep.mubr.msk.bf16.mxu0 %vm327_vm0, %v11461_v54  ;;  %v3921_v31 = vld [vmem:[%s11360_s10 + $0x6b] sm:$0xff] }
  0xc1   : > { %9567 = vmatprep.subr.bf16.mxu0 %v11090_v44  ;;  %v11884_v33 = vpack.c.bf16 %v3921_v31, %v3920_v30  ;;  %v3938_v31 = vld [vmem:[%s11360_s10 + $0x13b] sm:$0xff] }
  0xc4   : > { %9568 = vmatpush3.bf16.msra.mxu0 %v11090_v44  ;;  %v3923_v44 = vld [vmem:[%s11360_s10 + $0x83] sm:$0xff] }
  0xc5   : > { %9569 = vmatprep.subr.bf16.mxu0 %v11092_v45 }
  0xc6   : > { %9078 = vmatmul.mubr.msk.bf16.gmra.mrb[24].mxu1 %vm327_vm0, %v11558_v36 }
  0xc7   : > { %9538 = vmatmul.mubr.msk.bf16.gmra.mrb[4].mxu0 %vm327_vm0, %v11465_v56  ;;  %9081 = vmatprep.mubr.msk.bf16.mxu1 %vm327_vm0, %v11580_v47 }
  0xc8   : > { %9541 = vmatprep.mubr.msk.bf16.mxu0 %vm327_vm0, %v11492_v4  ;;  %9570 = vmatpush3.bf16.msra.mxu0 %v11092_v45  ;;  %v3924_v45 = vld [vmem:[%s11360_s10 + $0x93] sm:$0xff] }
  0xc9   : > { %9571 = vmatprep.subr.bf16.mxu0 %v11093_v46 }
  0xcc   : > { %9572 = vmatpush3.bf16.msra.mxu0 %v11093_v46  ;;  %v3925_v46 = vld [vmem:[%s11360_s10 + $0x9b] sm:$0xff] }
  0xcd   : > { %9605 = vmatprep.subr.bf16.mxu0 %v11094_v50 }
  0xce   : > { %9082 = vmatmul.mubr.msk.bf16.gmra.mrb[28].mxu1 %vm327_vm0, %v11790_v51 }
  0xcf   : > { %9542 = vmatmul.mubr.msk.bf16.gmra.mrb[8].mxu0 %vm327_vm0, %v11496_v6  ;;  %9093 = vmatprep.mubr.msk.bf16.mxu1 %vm327_vm0, %v11395_v25  ;;  %v11097_v25 = vld [vmem:[%s13348_s1 + $0x290] sm:$0xff]  }
  0xd0   : > { %9545 = vmatprep.mubr.msk.bf16.mxu0 %vm327_vm0, %v11517_v17 }
  0xd6   : > { %9094 = vmatmul.mubr.msk.bf16.vlgmr.msra.gmra.mrb[0].mxu1 %vm327_vm0, %v11421_v37 }
  0xd7   : > { %9546 = vmatmul.mubr.msk.bf16.gmra.mrb[12].mxu0 %vm327_vm0, %v11608_v11  ;;  %9097 = vmatprep.mubr.msk.bf16.mxu1 %vm327_vm0, %v11425_v39 }
  0xd8   : > { %9549 = vmatprep.mubr.msk.bf16.mxu0 %vm327_vm0, %v11613_v60  ;;  %9126 = vmatpush3.bf16.msra.mxu1 %v11095_v34  ;;  %v11101_v34 = vld [vmem:[%s13348_s1 + $0x118] sm:$0xff]  }
  0xd9   : > { %9127 = vmatprep.subr.bf16.mxu1 %v11096_v53 }
  0xdc   : > { %9128 = vmatpush3.bf16.msra.mxu1 %v11096_v53  ;;  %v11912_v53 = vpack.c.bf16 %v3925_v46, %v3924_v45 }
  0xdd   : > { %9129 = vmatprep.subr.bf16.mxu1 %v11097_v25 }
  0xde   : > { %9098 = vmatmul.mubr.msk.bf16.gmra.mrb[4].mxu1 %vm327_vm0, %v11456_v52 }
  0xdf   : > { %9550 = vmatmul.mubr.msk.bf16.gmra.mrb[16].mxu0 %vm327_vm0, %v11630_v2  ;;  %9101 = vmatprep.mubr.msk.bf16.mxu1 %vm327_vm0, %v11463_v55 }
  0xe0   : > { %9553 = vmatprep.mubr.msk.bf16.mxu0 %vm327_vm0, %v11632_v7  ;;  %9130 = vmatpush3.bf16.msra.mxu1 %v11097_v25  ;;  %v3926_v25 = vld [vmem:[%s11360_s10 + $0xab] sm:$0xff] }
  0xe1   : > { %9131 = vmatprep.subr.bf16.mxu1 %v11099_v57 }
  0xe4   : > { %9132 = vmatpush3.bf16.msra.mxu1 %v11099_v57  ;;  %v3927_v57 = vld [vmem:[%s11360_s10 + $0xb3] sm:$0xff] }
  0xe5   : > { %9165 = vmatprep.subr.bf16.mxu1 %v11828_v58  ;;  %v11927_v62 = vpack.c.bf16 %v3927_v57, %v3926_v25  ;;  %v1416_v25 = vld [vmem:[%s11360_s10 + $0x31] sm:$0xff]  ;;  %v1417_v57 = vld [vmem:[%s11360_s10 + $0x39] sm:$0xff] }
  0xe6   : > { %9102 = vmatmul.mubr.msk.bf16.gmra.mrb[8].mxu1 %vm327_vm0, %v11490_v3  ;;  %v12063_v61 = vpack.c.bf16 %v1417_v57, %v1416_v25 }
  0xe7   : > { %9554 = vmatmul.mubr.msk.bf16.gmra.mrb[20].mxu0 %vm327_vm0, %v11646_v14  ;;  %9105 = vmatprep.mubr.msk.bf16.mxu1 %vm327_vm0, %v11494_v5 }
  0xe8   : > { %9557 = vmatprep.mubr.msk.bf16.mxu0 %vm327_vm0, %v11648_v15 }
  0xee   : > { %9106 = vmatmul.mubr.msk.bf16.gmra.mrb[12].mxu1 %vm327_vm0, %v11515_v16 }
  0xef   : > { %9558 = vmatmul.mubr.msk.bf16.gmra.mrb[24].mxu0 %vm327_vm0, %v11660_v21  ;;  %9109 = vmatprep.mubr.msk.bf16.mxu1 %vm327_vm0, %v11519_v18  ;;  %v11098_v21 = vld [vmem:[%s13348_s1 + $0x108] sm:$0xff]  }
  0xf0   : > { %9561 = vmatprep.mubr.msk.bf16.mxu0 %vm327_vm0, %v2720_v43  ;;  %v3922_v43 = vld [vmem:[%s11360_s10 + $0x7b] sm:$0xff] }
  0xf6   : > { %9110 = vmatmul.mubr.msk.bf16.gmra.mrb[16].mxu1 %vm327_vm0, %v11533_v27 }
  0xf7   : > { %9562 = vmatmul.mubr.msk.bf16.gmra.mrb[28].mxu0 %vm327_vm0, %v2721_v0  ;;  %9113 = vmatprep.mubr.msk.bf16.mxu1 %vm327_vm0, %v11535_v28  ;;  %v11104_v0 = vld [vmem:[%s13348_s1 + $0x28] sm:$0xff]  }
  0xf8   : > { %9573 = vmatprep.mubr.msk.bf16.mxu0 %vm327_vm0, %v3952_v1  ;;  %v3931_v1 = vld [vmem:[%s11360_s10 + $0xe3] sm:$0xff] }
  0xfe   : > { %9114 = vmatmul.mubr.msk.bf16.gmra.mrb[20].mxu1 %vm327_vm0, %v11556_v35 }
  0xff   : > { %9574 = vmatmul.mubr.msk.bf16.vlgmr.msra.gmra.mrb[0].mxu0 %vm327_vm0, %v11860_v19  ;;  %9117 = vmatprep.mubr.msk.bf16.mxu1 %vm327_vm0, %v11558_v36 }
 0x100   : > { %9606 = vmatpush3.bf16.msra.mxu0 %v11094_v50  ;;  %9577 = vmatprep.mubr.msk.bf16.mxu0 %vm327_vm0, %v11862_v20  ;;  %v11910_v50 = vpack.c.bf16 %v3923_v44, %v3922_v43 }
 0x101   : > { %9607 = vmatprep.subr.bf16.mxu0 %v11098_v21 }
 0x104   : > { %9608 = vmatpush3.bf16.msra.mxu0 %v11098_v21  ;;  %v3935_v21 = vld [vmem:[%s11360_s10 + $0x113] sm:$0xff] }
 0x105   : > { %9609 = vmatprep.subr.bf16.mxu0 %v11100_v32 }
 0x106   : > { %9118 = vmatmul.mubr.msk.bf16.gmra.mrb[24].mxu1 %vm327_vm0, %v11580_v47 }
 0x107   : > { %9578 = vmatmul.mubr.msk.bf16.gmra.mrb[4].mxu0 %vm327_vm0, %v11882_v23  ;;  %9121 = vmatprep.mubr.msk.bf16.mxu1 %vm327_vm0, %v11790_v51 }
 0x108   : > { %9581 = vmatprep.mubr.msk.bf16.mxu0 %vm327_vm0, %v11884_v33  ;;  %9610 = vmatpush3.bf16.msra.mxu0 %v11100_v32  ;;  %v3939_v32 = vld [vmem:[%s11360_s10 + $0x143] sm:$0xff] }
 0x109   : > { %9611 = vmatprep.subr.bf16.mxu0 %v11101_v34  ;;  %v11991_v42 = vpack.c.bf16 %v3939_v32, %v3938_v31  ;;  %v1425_v31 = vld [vmem:[%s11360_s10 + $0x99] sm:$0xff] }
 0x10a   : > { %v12106_v32 = vld [vmem:[%s13348_s1 + $0x160] sm:$0xff]  }
 0x10c   : > { %9612 = vmatpush3.bf16.msra.mxu0 %v11101_v34  ;;  %v3940_v34 = vld [vmem:[%s11360_s10 + $0x153] sm:$0xff] }
 0x10d   : > { %9645 = vmatprep.subr.bf16.mxu0 %v11906_v48  ;;  %v11993_v43 = vpack.c.bf16 %v3941_v41, %v3940_v34 }
 0x10e   : > { %9122 = vmatmul.mubr.msk.bf16.gmra.mrb[28].mxu1 %vm327_vm0, %v11908_v49 }
 0x10f   : > { %9582 = vmatmul.mubr.msk.bf16.gmra.mrb[8].mxu0 %vm327_vm0, %v11910_v50  ;;  %9133 = vmatprep.mubr.msk.bf16.mxu1 %vm327_vm0, %v11421_v37  ;;  %v3930_v37 = vld [vmem:[%s11360_s10 + $0xdb] sm:$0xff] }
 0x110   : > { %9585 = vmatprep.mubr.msk.bf16.mxu0 %vm327_vm0, %v11912_v53  ;;  %v11950_v10 = vpack.c.bf16 %v3931_v1, %v3930_v37  ;;  %v1418_v37 = vld [vmem:[%s11360_s10 + $0x49] sm:$0xff]  ;;  %v1419_v1 = vld [vmem:[%s11360_s10 + $0x51] sm:$0xff] }
 0x116   : > { %9134 = vmatmul.mubr.msk.bf16.vlgmr.msra.gmra.mrb[0].mxu1 %vm327_vm0, %v11425_v39  ;;  %v11105_v39 = vld [vmem:[%s13348_s1 + $0x30] sm:$0xff]  }
 0x117   : > { %9586 = vmatmul.mubr.msk.bf16.gmra.mrb[12].mxu0 %vm327_vm0, %v11927_v62  ;;  %9137 = vmatprep.mubr.msk.bf16.mxu1 %vm327_vm0, %v11456_v52  ;;  %v11952_v52 = vpack.c.bf16 %v3933_v9, %v3932_v8  ;;  %v1420_v8 = vld [vmem:[%s11360_s10 + $0x61] sm:$0xff]  ;;  %v1421_v9 = vld [vmem:[%s11360_s10 + $0x69] sm:$0xff] }
 0x118   : > { %9589 = vmatprep.mubr.msk.bf16.mxu0 %vm327_vm0, %v11929_v63  ;;  %9166 = vmatpush3.bf16.msra.mxu1 %v11828_v58  ;;  %v3934_v58 = vld [vmem:[%s11360_s10 + $0x10b] sm:$0xff] }
 0x119   : > { %9167 = vmatprep.subr.bf16.mxu1 %v11104_v0  ;;  %v11974_v30 = vpack.c.bf16 %v3935_v21, %v3934_v58  ;;  %v12086_v58 = vpack.c.bf16 %v1421_v9, %v1420_v8  ;;  %v11115_v21 = vld [vmem:[%s13348_s1 + $0xd8] sm:$0xff]   ;;  %v1437_v8 = vld [vmem:[%s11360_s10 + $0x129] sm:$0xff] }
 0x11c   : > { %9168 = vmatpush3.bf16.msra.mxu1 %v11104_v0  ;;  %v11112_v0 = vld [vmem:[%s13348_s1 + $0xc8] sm:$0xff]  }
 0x11d   : > { %9169 = vmatprep.subr.bf16.mxu1 %v11105_v39 }
 0x11e   : > { %9138 = vmatmul.mubr.msk.bf16.gmra.mrb[4].mxu1 %vm327_vm0, %v11463_v55  ;;  %v11972_v55 = vld [vmem:[%s13348_s1 + $0xc0] sm:$0xff]  }
 0x11f   : > { %9590 = vmatmul.mubr.msk.bf16.gmra.mrb[16].mxu0 %vm327_vm0, %v11950_v10  ;;  %9141 = vmatprep.mubr.msk.bf16.mxu1 %vm327_vm0, %v11490_v3  ;;  %v11976_v3 = vpack.c.bf16 %v3937_v29, %v3936_v22  ;;  %v1422_v22 = vld [vmem:[%s11360_s10 + $0x79] sm:$0xff]  ;;  %v1423_v29 = vld [vmem:[%s11360_s10 + $0x81] sm:$0xff] }
 0x120   : > { %9593 = vmatprep.mubr.msk.bf16.mxu0 %vm327_vm0, %v11952_v52  ;;  %9170 = vmatpush3.bf16.msra.mxu1 %v11105_v39  ;;  %v11113_v39 = vld [vmem:[%s13348_s1 + $0xd0] sm:$0xff]   ;;  %v12108_v34 = vpack.c.bf16 %v1423_v29, %v1422_v22  ;;  %v1439_v22 = vld [vmem:[%s11360_s10 + $0x141] sm:$0xff] }
 0x121   : > { %9171 = vmatprep.subr.bf16.mxu1 %v11107_v12  ;;  %v1440_v29 = vld [vmem:[%s11360_s10 + $0x151] sm:$0xff] }
 0x124   : > { %9172 = vmatpush3.bf16.msra.mxu1 %v11107_v12  ;;  %v12084_v12 = vpack.c.bf16 %v1419_v1, %v1418_v37  ;;  %v1435_v37 = vld [vmem:[%s11360_s10 + $0x111] sm:$0xff]  ;;  %v1436_v1 = vld [vmem:[%s11360_s10 + $0x121] sm:$0xff] }
 0x125   : > { %9205 = vmatprep.subr.bf16.mxu1 %v11972_v55 }
 0x126   : > { %9142 = vmatmul.mubr.msk.bf16.gmra.mrb[8].mxu1 %vm327_vm0, %v11494_v5  ;;  %v3942_v5 = vld [vmem:[%s11360_s10 + $0x16b] sm:$0xff] }
 0x127   : > { %9594 = vmatmul.mubr.msk.bf16.gmra.mrb[20].mxu0 %vm327_vm0, %v11974_v30  ;;  %9145 = vmatprep.mubr.msk.bf16.mxu1 %vm327_vm0, %v11515_v16  ;;  %v3943_v16 = vld [vmem:[%s11360_s10 + $0x173] sm:$0xff] }
 0x128   : > { %9597 = vmatprep.mubr.msk.bf16.mxu0 %vm327_vm0, %v11976_v3  ;;  %v12005_v44 = vpack.c.bf16 %v3943_v16, %v3942_v5  ;;  %v1426_v5 = vld [vmem:[%s11360_s10 + $0xa9] sm:$0xff]  ;;  %v1427_v16 = vld [vmem:[%s11360_s10 + $0xb1] sm:$0xff] }
 0x12e   : > { %9146 = vmatmul.mubr.msk.bf16.gmra.mrb[12].mxu1 %vm327_vm0, %v11519_v18  ;;  %v11106_v18 = vld [vmem:[%s13348_s1 + $0x1a8] sm:$0xff]  }
 0x12f   : > { %9598 = vmatmul.mubr.msk.bf16.gmra.mrb[24].mxu0 %vm327_vm0, %v11991_v42  ;;  %9149 = vmatprep.mubr.msk.bf16.mxu1 %vm327_vm0, %v11533_v27  ;;  %v11108_v27 = vld [vmem:[%s13348_s1 + $0x1b0] sm:$0xff]  }
 0x130   : > { %9601 = vmatprep.mubr.msk.bf16.mxu0 %vm327_vm0, %v11993_v43 }
 0x136   : > { %9150 = vmatmul.mubr.msk.bf16.gmra.mrb[16].mxu1 %vm327_vm0, %v11535_v28  ;;  %v11109_v28 = vld [vmem:[%s13348_s1 + $0x1b8] sm:$0xff]  }
 0x137   : > { %9602 = vmatmul.mubr.msk.bf16.gmra.mrb[28].mxu0 %vm327_vm0, %v12005_v44  ;;  %9153 = vmatprep.mubr.msk.bf16.mxu1 %vm327_vm0, %v11556_v35  ;;  %v264_v35 = vld [vmem:[%s11360_s10 + $0x1c8] sm:$0xff] }
 0x138   : > { %9613 = vmatprep.mubr.msk.bf16.mxu0 %vm327_vm0, %v11860_v19  ;;  %v1413_v19 = vld [vmem:[%s11360_s10 + $0x9] sm:$0xff] }
 0x13e   : > { %9154 = vmatmul.mubr.msk.bf16.gmra.mrb[20].mxu1 %vm327_vm0, %v11558_v36  ;;  %v265_v36 = vld [vmem:[%s11360_s10 + $0x1d0] sm:$0xff] }
 0x13f   : > { %9614 = vmatmul.mubr.msk.bf16.vlgmr.msra.gmra.mrb[0].mxu0 %vm327_vm0, %v11862_v20  ;;  %9157 = vmatprep.mubr.msk.bf16.mxu1 %vm327_vm0, %v11580_v47  ;;  %v1412_v47 = vld [vmem:[%s11360_s10 + $0x1] sm:$0xff]  ;;  %v285_v45 = vpack.c.bf16 %v265_v36, %v264_v35  ;;  %v1430_v36 = vld [vmem:[%s11360_s10 + $0xd9] sm:$0xff] }
 0x140   : > { %9646 = vmatpush3.bf16.msra.mxu0 %v11906_v48  ;;  %9617 = vmatprep.mubr.msk.bf16.mxu0 %vm327_vm0, %v11882_v23  ;;  %v1452_v46 = vpack.c.bf16 %v1413_v19, %v1412_v47  ;;  %v1414_v48 = vld [vmem:[%s11360_s10 + $0x19] sm:$0xff]  ;;  %v1431_v47 = vld [vmem:[%s11360_s10 + $0xe1] sm:$0xff] }
 0x141   : > { %9647 = vmatprep.subr.bf16.mxu0 %v11106_v18  ;;  %v3944_v19 = vld [vmem:[%s11360_s10 + $0x183] sm:$0xff] }
 0x144   : > { %9648 = vmatpush3.bf16.msra.mxu0 %v11106_v18  ;;  %v1428_v18 = vld [vmem:[%s11360_s10 + $0xc1] sm:$0xff] }
 0x145   : > { %9649 = vmatprep.subr.bf16.mxu0 %v11108_v27 }
 0x146   : > { %9158 = vmatmul.mubr.msk.bf16.gmra.mrb[24].mxu1 %vm327_vm0, %v11790_v51  ;;  %v12048_v51 = vld [vmem:[%s13348_s1 + $0x240] sm:$0xff]  }
 0x147   : > { %9618 = vmatmul.mubr.msk.bf16.gmra.mrb[4].mxu0 %vm327_vm0, %v11884_v33  ;;  %9161 = vmatprep.mubr.msk.bf16.mxu1 %vm327_vm0, %v11908_v49  ;;  %v1415_v49 = vld [vmem:[%s11360_s10 + $0x21] sm:$0xff] }
 0x148   : > { %9621 = vmatprep.mubr.msk.bf16.mxu0 %vm327_vm0, %v11910_v50  ;;  %9650 = vmatpush3.bf16.msra.mxu0 %v11108_v27  ;;  %v12061_v59 = vpack.c.bf16 %v1415_v49, %v1414_v48  ;;  %v1429_v27 = vld [vmem:[%s11360_s10 + $0xc9] sm:$0xff]  ;;  %v1433_v48 = vld [vmem:[%s11360_s10 + $0xf9] sm:$0xff]  ;;  %v12143_v49 = vpack.c.bf16 %v1431_v47, %v1430_v36 }
 0x149   : > { %9651 = vmatprep.subr.bf16.mxu0 %v11109_v28  ;;  %v12127_v35 = vpack.c.bf16 %v1429_v27, %v1428_v18  ;;  %v1442_v18 = vld [vmem:[%s11360_s10 + $0x169] sm:$0xff]  ;;  %v1443_v27 = vld [vmem:[%s11360_s10 + $0x171] sm:$0xff]  ;;  %v11118_v36 = vld [vmem:[%s13348_s1 + $0x2e0] sm:$0xff]  }
 0x14a   : > { %v12204_v47 = vpack.c.bf16 %v1443_v27, %v1442_v18  ;;  %v3949_v18 = vld [vmem:[%s11360_s10 + $0x1bb] sm:$0xff] }
 0x14c   : > { %9652 = vmatpush3.bf16.msra.mxu0 %v11109_v28  ;;  %v12125_v28 = vpack.c.bf16 %v1427_v16, %v1426_v5 }
 0x14d   : > { %9685 = vmatprep.subr.bf16.mxu0 %v12048_v51 }
 0x14e   : > { %9162 = vmatmul.mubr.msk.bf16.gmra.mrb[28].mxu1 %vm327_vm0, %v285_v45  ;;  %v3945_v45 = vld [vmem:[%s11360_s10 + $0x18b] sm:$0xff] }
 0x14f   : > { %9622 = vmatmul.mubr.msk.bf16.gmra.mrb[8].mxu0 %vm327_vm0, %v11912_v53  ;;  %9173 = vmatprep.mubr.msk.bf16.mxu1 %vm327_vm0, %v1452_v46  ;;  %v1432_v46 = vld [vmem:[%s11360_s10 + $0xf1] sm:$0xff]  ;;  %v12145_v25 = vpack.c.bf16 %v3945_v45, %v3944_v19  ;;  %v11120_v19 = vld [vmem:[%s13348_s1 + $0x168] sm:$0xff]  }
 0x150   : > { %9625 = vmatprep.mubr.msk.bf16.mxu0 %vm327_vm0, %v11927_v62  ;;  %v12147_v57 = vpack.c.bf16 %v1433_v48, %v1432_v46  ;;  %v11123_v45 = vld [vmem:[%s13348_s1 + $0x178] sm:$0xff]   ;;  %v3947_v48 = vld [vmem:[%s11360_s10 + $0x1a3] sm:$0xff] }
 0x151   : > { %v3946_v46 = vld [vmem:[%s11360_s10 + $0x19b] sm:$0xff] }
 0x156   : > { %9174 = vmatmul.mubr.msk.bf16.vlgmr.msra.gmra.mrb[0].mxu1 %vm327_vm0, %v12061_v59 }
 0x157   : > { %9626 = vmatmul.mubr.msk.bf16.gmra.mrb[12].mxu0 %vm327_vm0, %v11929_v63  ;;  %9177 = vmatprep.mubr.msk.bf16.mxu1 %vm327_vm0, %v12063_v61 }
 0x158   : > { %9629 = vmatprep.mubr.msk.bf16.mxu0 %vm327_vm0, %v11950_v10  ;;  %9206 = vmatpush3.bf16.msra.mxu1 %v11972_v55  ;;  %v1424_v55 = vld [vmem:[%s11360_s10 + $0x91] sm:$0xff] }
 0x159   : > { %9207 = vmatprep.subr.bf16.mxu1 %v11112_v0  ;;  %v12110_v41 = vpack.c.bf16 %v1425_v31, %v1424_v55  ;;  %v1441_v55 = vld [vmem:[%s11360_s10 + $0x159] sm:$0xff]  ;;  %v11116_v31 = vld [vmem:[%s13348_s1 + $0x250] sm:$0xff]  }
 0x15a   : > { %v12186_v16 = vpack.c.bf16 %v1441_v55, %v1440_v29  ;;  %v11128_v29 = vld [vmem:[%s13348_s1 + $0x208] sm:$0xff]   ;;  %v11131_v55 = vld [vmem:[%s13348_s1 + $0x218] sm:$0xff]  }
 0x15c   : > { %9208 = vmatpush3.bf16.msra.mxu1 %v11112_v0  ;;  %v1434_v0 = vld [vmem:[%s11360_s10 + $0x109] sm:$0xff] }
 0x15d   : > { %9209 = vmatprep.subr.bf16.mxu1 %v11113_v39  ;;  %v12161_v9 = vpack.c.bf16 %v1435_v37, %v1434_v0  ;;  %v12261_v0 = vpack.c.bf16 %v3947_v48, %v3946_v46  ;;  %v11122_v37 = vld [vmem:[%s13348_s1 + $0x2e8] sm:$0xff]   ;;  %v5166_v46 = vld [vmem:[%s11360_s10 + $0x34] sm:$0xff]  ;;  %v5167_v48 = vld [vmem:[%s11360_s10 + $0x3c] sm:$0xff] }
 0x15e   : > { %9178 = vmatmul.mubr.msk.bf16.gmra.mrb[4].mxu1 %vm327_vm0, %v12084_v12 }
 0x15f   : > { %9630 = vmatmul.mubr.msk.bf16.gmra.mrb[16].mxu0 %vm327_vm0, %v11952_v52  ;;  %9181 = vmatprep.mubr.msk.bf16.mxu1 %vm327_vm0, %v12086_v58 }
 0x160   : > { %9633 = vmatprep.mubr.msk.bf16.mxu0 %vm327_vm0, %v11974_v30  ;;  %9210 = vmatpush3.bf16.msra.mxu1 %v11113_v39  ;;  %v12163_v39 = vpack.c.bf16 %v1437_v8, %v1436_v1  ;;  %v11125_v1 = vld [vmem:[%s13348_s1 + $0x2f8] sm:$0xff]   ;;  %v1444_v8 = vld [vmem:[%s11360_s10 + $0x181] sm:$0xff] }
 0x161   : > { %9211 = vmatprep.subr.bf16.mxu1 %v11115_v21 }
 0x164   : > { %9212 = vmatpush3.bf16.msra.mxu1 %v11115_v21  ;;  %v11114_v21 = vld [vmem:[%s13348_s1 + $0x248] sm:$0xff]  }
 0x165   : > { %9245 = vmatprep.subr.bf16.mxu1 %v12106_v32 }
 0x166   : > { %9182 = vmatmul.mubr.msk.bf16.gmra.mrb[8].mxu1 %vm327_vm0, %v12108_v34 }
 0x167   : > { %9634 = vmatmul.mubr.msk.bf16.gmra.mrb[20].mxu0 %vm327_vm0, %v11976_v3  ;;  %9185 = vmatprep.mubr.msk.bf16.mxu1 %vm327_vm0, %v12110_v41 }
 0x168   : > { %9637 = vmatprep.mubr.msk.bf16.mxu0 %vm327_vm0, %v11991_v42 }
 0x16e   : > { %9186 = vmatmul.mubr.msk.bf16.gmra.mrb[12].mxu1 %vm327_vm0, %v12125_v28 }
 0x16f   : > { %9638 = vmatmul.mubr.msk.bf16.gmra.mrb[24].mxu0 %vm327_vm0, %v11993_v43  ;;  %9189 = vmatprep.mubr.msk.bf16.mxu1 %vm327_vm0, %v12127_v35 }
 0x170   : > { %9641 = vmatprep.mubr.msk.bf16.mxu0 %vm327_vm0, %v12005_v44 }
 0x176   : > { %9190 = vmatmul.mubr.msk.bf16.gmra.mrb[16].mxu1 %vm327_vm0, %v12143_v49 }
 0x177   : > { %9642 = vmatmul.mubr.msk.bf16.gmra.mrb[28].mxu0 %vm327_vm0, %v12145_v25  ;;  %9193 = vmatprep.mubr.msk.bf16.mxu1 %vm327_vm0, %v12147_v57 }
 0x178   : > { %9653 = vmatprep.mubr.msk.bf16.mxu0 %vm327_vm0, %v11862_v20  ;;  %v1438_v20 = vld [vmem:[%s11360_s10 + $0x139] sm:$0xff] }
 0x179   : > { %v12184_v5 = vpack.c.bf16 %v1439_v22, %v1438_v20  ;;  %v11126_v20 = vld [vmem:[%s13348_s1 + $0x80] sm:$0xff]  }
 0x17e   : > { %9194 = vmatmul.mubr.msk.bf16.gmra.mrb[20].mxu1 %vm327_vm0, %v12161_v9 }
 0x17f   : > { %9654 = vmatmul.mubr.msk.bf16.vlgmr.msra.gmra.mrb[0].mxu0 %vm327_vm0, %v11882_v23  ;;  %9197 = vmatprep.mubr.msk.bf16.mxu1 %vm327_vm0, %v12163_v39 }
 0x180   : > { %9686 = vmatpush3.bf16.msra.mxu0 %v12048_v51  ;;  %9657 = vmatprep.mubr.msk.bf16.mxu0 %vm327_vm0, %v11884_v33  ;;  %v11117_v51 = vld [vmem:[%s13348_s1 + $0x258] sm:$0xff]  }
 0x181   : > { %9687 = vmatprep.subr.bf16.mxu0 %v11114_v21 }
 0x184   : > { %9688 = vmatpush3.bf16.msra.mxu0 %v11114_v21  ;;  %v1445_v21 = vld [vmem:[%s11360_s10 + $0x189] sm:$0xff] }
 0x185   : > { %9689 = vmatprep.subr.bf16.mxu0 %v11116_v31  ;;  %v12301_v22 = vpack.c.bf16 %v1445_v21, %v1444_v8  ;;  %v5169_v8 = vld [vmem:[%s11360_s10 + $0x54] sm:$0xff]  ;;  %v5170_v21 = vld [vmem:[%s11360_s10 + $0x64] sm:$0xff] }
 0x186   : > { %9198 = vmatmul.mubr.msk.bf16.gmra.mrb[24].mxu1 %vm327_vm0, %v12184_v5 }
 0x187   : > { %9658 = vmatmul.mubr.msk.bf16.gmra.mrb[4].mxu0 %vm327_vm0, %v11910_v50  ;;  %9201 = vmatprep.mubr.msk.bf16.mxu1 %vm327_vm0, %v12186_v16 }
 0x188   : > { %9661 = vmatprep.mubr.msk.bf16.mxu0 %vm327_vm0, %v11912_v53  ;;  %9690 = vmatpush3.bf16.msra.mxu0 %v11116_v31  ;;  %v11135_v31 = vld [vmem:[%s13348_s1 + $0x2a0] sm:$0xff]  }
 0x189   : > { %9691 = vmatprep.subr.bf16.mxu0 %v11117_v51 }
 0x18c   : > { %9692 = vmatpush3.bf16.msra.mxu0 %v11117_v51  ;;  %v3948_v51 = vld [vmem:[%s11360_s10 + $0x1b3] sm:$0xff] }
 0x18d   : > { %9725 = vmatprep.subr.bf16.mxu0 %v11118_v36  ;;  %v3970_v27 = vpack.c.bf16 %v3949_v18, %v3948_v51  ;;  %v1448_v51 = vld [vmem:[%s11360_s10 + $0x1b1] sm:$0xff]  ;;  %v1449_v18 = vld [vmem:[%s11360_s10 + $0x1b9] sm:$0xff] }
 0x18e   : > { %9202 = vmatmul.mubr.msk.bf16.gmra.mrb[28].mxu1 %vm327_vm0, %v12204_v47 }
 0x18f   : > { %9662 = vmatmul.mubr.msk.bf16.gmra.mrb[8].mxu0 %vm327_vm0, %v11927_v62  ;;  %9213 = vmatprep.mubr.msk.bf16.mxu1 %vm327_vm0, %v12061_v59  ;;  %v11121_v59 = vld [vmem:[%s13348_s1 + $0x170] sm:$0xff]  }
 0x190   : > { %9665 = vmatprep.mubr.msk.bf16.mxu0 %vm327_vm0, %v11929_v63 }
 0x196   : > { %9214 = vmatmul.mubr.msk.bf16.vlgmr.msra.gmra.mrb[0].mxu1 %vm327_vm0, %v12063_v61 }
 0x197   : > { %9666 = vmatmul.mubr.msk.bf16.gmra.mrb[12].mxu0 %vm327_vm0, %v11950_v10  ;;  %9217 = vmatprep.mubr.msk.bf16.mxu1 %vm327_vm0, %v12084_v12 }
 0x198   : > { %9669 = vmatprep.mubr.msk.bf16.mxu0 %vm327_vm0, %v11952_v52  ;;  %9246 = vmatpush3.bf16.msra.mxu1 %v12106_v32  ;;  %v11127_v32 = vld [vmem:[%s13348_s1 + $0x200] sm:$0xff]  }
 0x199   : > { %9247 = vmatprep.subr.bf16.mxu1 %v11120_v19 }
 0x19c   : > { %9248 = vmatpush3.bf16.msra.mxu1 %v11120_v19  ;;  %v11133_v19 = vld [vmem:[%s13348_s1 + $0x98] sm:$0xff]  }
 0x19d   : > { %9249 = vmatprep.subr.bf16.mxu1 %v11121_v59 }
 0x19e   : > { %9218 = vmatmul.mubr.msk.bf16.gmra.mrb[4].mxu1 %vm327_vm0, %v12086_v58 }
 0x19f   : > { %9670 = vmatmul.mubr.msk.bf16.gmra.mrb[16].mxu0 %vm327_vm0, %v11974_v30  ;;  %9221 = vmatprep.mubr.msk.bf16.mxu1 %vm327_vm0, %v12108_v34 }
 0x1a0   : > { %9673 = vmatprep.mubr.msk.bf16.mxu0 %vm327_vm0, %v11976_v3  ;;  %9250 = vmatpush3.bf16.msra.mxu1 %v11121_v59  ;;  %v11134_v59 = vld [vmem:[%s13348_s1 + $0x120] sm:$0xff]  }
 0x1a1   : > { %9251 = vmatprep.subr.bf16.mxu1 %v11123_v45 }
 0x1a4   : > { %9252 = vmatpush3.bf16.msra.mxu1 %v11123_v45 }
 0x1a5   : > { %9285 = vmatprep.subr.bf16.mxu1 %v11127_v32 }
 0x1a6   : > { %9222 = vmatmul.mubr.msk.bf16.gmra.mrb[8].mxu1 %vm327_vm0, %v12110_v41 }
 0x1a7   : > { %9674 = vmatmul.mubr.msk.bf16.gmra.mrb[20].mxu0 %vm327_vm0, %v11991_v42  ;;  %9225 = vmatprep.mubr.msk.bf16.mxu1 %vm327_vm0, %v12125_v28 }
 0x1a8   : > { %9677 = vmatprep.mubr.msk.bf16.mxu0 %vm327_vm0, %v11993_v43 }
 0x1ae   : > { %9226 = vmatmul.mubr.msk.bf16.gmra.mrb[12].mxu1 %vm327_vm0, %v12127_v35 }
 0x1af   : > { %9678 = vmatmul.mubr.msk.bf16.gmra.mrb[24].mxu0 %vm327_vm0, %v12005_v44  ;;  %9229 = vmatprep.mubr.msk.bf16.mxu1 %vm327_vm0, %v12143_v49 }
 0x1b0   : > { %9681 = vmatprep.mubr.msk.bf16.mxu0 %vm327_vm0, %v12145_v25 }
 0x1b6   : > { %9230 = vmatmul.mubr.msk.bf16.gmra.mrb[16].mxu1 %vm327_vm0, %v12147_v57 }
 0x1b7   : > { %9682 = vmatmul.mubr.msk.bf16.gmra.mrb[28].mxu0 %vm327_vm0, %v12261_v0  ;;  %9233 = vmatprep.mubr.msk.bf16.mxu1 %vm327_vm0, %v12161_v9 }
 0x1b8   : > { %9693 = vmatprep.mubr.msk.bf16.mxu0 %vm327_vm0, %v11882_v23  ;;  %v11124_v23 = vld [vmem:[%s13348_s1 + $0x2f0] sm:$0xff]  }
 0x1be   : > { %9234 = vmatmul.mubr.msk.bf16.gmra.mrb[20].mxu1 %vm327_vm0, %v12163_v39 }
 0x1bf   : > { %9694 = vmatmul.mubr.msk.bf16.vlgmr.msra.gmra.mrb[0].mxu0 %vm327_vm0, %v11884_v33  ;;  %9237 = vmatprep.mubr.msk.bf16.mxu1 %vm327_vm0, %v12184_v5 }
 0x1c0   : > { %9726 = vmatpush3.bf16.msra.mxu0 %v11118_v36  ;;  %9697 = vmatprep.mubr.msk.bf16.mxu0 %vm327_vm0, %v11910_v50  ;;  %v11130_v36 = vld [vmem:[%s13348_s1 + $0x88] sm:$0xff]  }
 0x1c1   : > { %9727 = vmatprep.subr.bf16.mxu0 %v11122_v37 }
 0x1c4   : > { %9728 = vmatpush3.bf16.msra.mxu0 %v11122_v37  ;;  %v12466_v37 = vpack.c.bf16 %v5167_v48, %v5166_v46  ;;  %v11147_v48 = vld [vmem:[%s13348_s1 + $0x58] sm:$0xff]  }
 0x1c5   : > { %9729 = vmatprep.subr.bf16.mxu0 %v11124_v23 }
 0x1c6   : > { %9238 = vmatmul.mubr.msk.bf16.gmra.mrb[24].mxu1 %vm327_vm0, %v12186_v16 }
 0x1c7   : > { %9698 = vmatmul.mubr.msk.bf16.gmra.mrb[4].mxu0 %vm327_vm0, %v11912_v53  ;;  %9241 = vmatprep.mubr.msk.bf16.mxu1 %vm327_vm0, %v12204_v47 }
 0x1c8   : > { %9701 = vmatprep.mubr.msk.bf16.mxu0 %vm327_vm0, %v11927_v62  ;;  %9730 = vmatpush3.bf16.msra.mxu0 %v11124_v23  ;;  %v11138_v23 = vld [vmem:[%s13348_s1 + $0x128] sm:$0xff]  }
 0x1c9   : > { %9731 = vmatprep.subr.bf16.mxu0 %v11125_v1 }
 0x1cc   : > { %9732 = vmatpush3.bf16.msra.mxu0 %v11125_v1  ;;  %v5168_v1 = vld [vmem:[%s11360_s10 + $0x4c] sm:$0xff] }
 0x1cd   : > { %9765 = vmatprep.subr.bf16.mxu0 %v11126_v20 }
 0x1ce   : > { %9242 = vmatmul.mubr.msk.bf16.gmra.mrb[28].mxu1 %vm327_vm0, %v12301_v22 }
 0x1cf   : > { %9702 = vmatmul.mubr.msk.bf16.gmra.mrb[8].mxu0 %vm327_vm0, %v11929_v63  ;;  %9253 = vmatprep.mubr.msk.bf16.mxu1 %vm327_vm0, %v12063_v61  ;;  %v11129_v61 = vld [vmem:[%s13348_s1 + $0x210] sm:$0xff]  }
 0x1d0   : > { %9705 = vmatprep.mubr.msk.bf16.mxu0 %vm327_vm0, %v11950_v10 }
 0x1d6   : > { %9254 = vmatmul.mubr.msk.bf16.vlgmr.msra.gmra.mrb[0].mxu1 %vm327_vm0, %v12084_v12 }
 0x1d7   : > { %9706 = vmatmul.mubr.msk.bf16.gmra.mrb[12].mxu0 %vm327_vm0, %v11952_v52  ;;  %9257 = vmatprep.mubr.msk.bf16.mxu1 %vm327_vm0, %v12086_v58 }
 0x1d8   : > { %9709 = vmatprep.mubr.msk.bf16.mxu0 %vm327_vm0, %v11974_v30  ;;  %9286 = vmatpush3.bf16.msra.mxu1 %v11127_v32  ;;  %v5165_v32 = vld [vmem:[%s11360_s10 + $0x24] sm:$0xff] }
 0x1d9   : > { %9287 = vmatprep.subr.bf16.mxu1 %v11128_v29 }
 0x1dc   : > { %9288 = vmatpush3.bf16.msra.mxu1 %v11128_v29  ;;  %v11140_v29 = vld [vmem:[%s13348_s1 + $0x130] sm:$0xff]  }
 0x1dd   : > { %9289 = vmatprep.subr.bf16.mxu1 %v11129_v61 }
 0x1de   : > { %9258 = vmatmul.mubr.msk.bf16.gmra.mrb[4].mxu1 %vm327_vm0, %v12108_v34 }
 0x1df   : > { %9710 = vmatmul.mubr.msk.bf16.gmra.mrb[16].mxu0 %vm327_vm0, %v11976_v3  ;;  %9261 = vmatprep.mubr.msk.bf16.mxu1 %vm327_vm0, %v12110_v41 }
 0x1e0   : > { %9713 = vmatprep.mubr.msk.bf16.mxu0 %vm327_vm0, %v11991_v42  ;;  %9290 = vmatpush3.bf16.msra.mxu1 %v11129_v61  ;;  %v12486_v61 = vpack.c.bf16 %v5169_v8, %v5168_v1  ;;  %v5186_v1 = vld [vmem:[%s11360_s10 + $0x124] sm:$0xff]  ;;  %v5187_v8 = vld [vmem:[%s11360_s10 + $0x12c] sm:$0xff] }
 0x1e1   : > { %9291 = vmatprep.subr.bf16.mxu1 %v11131_v55 }
 0x1e4   : > { %9292 = vmatpush3.bf16.msra.mxu1 %v11131_v55 }
 0x1e5   : > { %9325 = vmatprep.subr.bf16.mxu1 %v11135_v31 }
 0x1e6   : > { %9262 = vmatmul.mubr.msk.bf16.gmra.mrb[8].mxu1 %vm327_vm0, %v12125_v28 }
 0x1e7   : > { %9714 = vmatmul.mubr.msk.bf16.gmra.mrb[20].mxu0 %vm327_vm0, %v11993_v43  ;;  %9265 = vmatprep.mubr.msk.bf16.mxu1 %vm327_vm0, %v12127_v35 }
 0x1e8   : > { %9717 = vmatprep.mubr.msk.bf16.mxu0 %vm327_vm0, %v12005_v44 }
 0x1ee   : > { %9266 = vmatmul.mubr.msk.bf16.gmra.mrb[12].mxu1 %vm327_vm0, %v12143_v49 }
 0x1ef   : > { %9718 = vmatmul.mubr.msk.bf16.gmra.mrb[24].mxu0 %vm327_vm0, %v12145_v25  ;;  %9269 = vmatprep.mubr.msk.bf16.mxu1 %vm327_vm0, %v12147_v57 }
 0x1f0   : > { %9721 = vmatprep.mubr.msk.bf16.mxu0 %vm327_vm0, %v12261_v0 }
 0x1f6   : > { %9270 = vmatmul.mubr.msk.bf16.gmra.mrb[16].mxu1 %vm327_vm0, %v12161_v9 }
 0x1f7   : > { %9722 = vmatmul.mubr.msk.bf16.gmra.mrb[28].mxu0 %vm327_vm0, %v3970_v27  ;;  %9273 = vmatprep.mubr.msk.bf16.mxu1 %vm327_vm0, %v12163_v39 }
 0x1f8   : > { %9733 = vmatprep.mubr.msk.bf16.mxu0 %vm327_vm0, %v11884_v33  ;;  %v11132_v33 = vld [vmem:[%s13348_s1 + $0x90] sm:$0xff]  }
 0x1fe   : > { %9274 = vmatmul.mubr.msk.bf16.gmra.mrb[20].mxu1 %vm327_vm0, %v12184_v5 }
 0x1ff   : > { %9734 = vmatmul.mubr.msk.bf16.vlgmr.msra.gmra.mrb[0].mxu0 %vm327_vm0, %v11910_v50  ;;  %9277 = vmatprep.mubr.msk.bf16.mxu1 %vm327_vm0, %v12186_v16  ;;  %v1446_v50 = vld [vmem:[%s11360_s10 + $0x199] sm:$0xff] }
 0x200   : > { %9766 = vmatpush3.bf16.msra.mxu0 %v11126_v20  ;;  %9737 = vmatprep.mubr.msk.bf16.mxu0 %vm327_vm0, %v11912_v53  ;;  %v1447_v53 = vld [vmem:[%s11360_s10 + $0x1a1] sm:$0xff]  ;;  %v5171_v20 = vld [vmem:[%s11360_s10 + $0x6c] sm:$0xff] }
 0x201   : > { %9767 = vmatprep.subr.bf16.mxu0 %v11130_v36  ;;  %v12394_v45 = vpack.c.bf16 %v1447_v53, %v1446_v50  ;;  %v12488_v55 = vpack.c.bf16 %v5171_v20, %v5170_v21  ;;  %v12510_v50 = vld [vmem:[%s13348_s1 + $0x1c0] sm:$0xff]   ;;  %v12512_v53 = vpack.c.bf16 %v1449_v18, %v1448_v51  ;;  %v12575_v21 = vpack.c.bf16 %v5187_v8, %v5186_v1 }
 0x202   : > { %v5188_v20 = vld [vmem:[%s11360_s10 + $0x13c] sm:$0xff] }
 0x203   : > { %v5191_v51 = vld [vmem:[%s11360_s10 + $0x15c] sm:$0xff] }
 0x204   : > { %9768 = vmatpush3.bf16.msra.mxu0 %v11130_v36  ;;  %v5173_v36 = vld [vmem:[%s11360_s10 + $0x84] sm:$0xff] }
 0x205   : > { %9769 = vmatprep.subr.bf16.mxu0 %v11132_v33 }
 0x206   : > { %9278 = vmatmul.mubr.msk.bf16.gmra.mrb[24].mxu1 %vm327_vm0, %v12204_v47 }
 0x207   : > { %9738 = vmatmul.mubr.msk.bf16.gmra.mrb[4].mxu0 %vm327_vm0, %v11927_v62  ;;  %9281 = vmatprep.mubr.msk.bf16.mxu1 %vm327_vm0, %v12301_v22  ;;  %v11136_v62 = vld [vmem:[%s13348_s1 + $0x2a8] sm:$0xff]  }
 0x208   : > { %9741 = vmatprep.mubr.msk.bf16.mxu0 %vm327_vm0, %v11929_v63  ;;  %9770 = vmatpush3.bf16.msra.mxu0 %v11132_v33  ;;  %v11137_v63 = vld [vmem:[%s13348_s1 + $0x2b0] sm:$0xff]  }
 0x209   : > { %9771 = vmatprep.subr.bf16.mxu0 %v11133_v19  ;;  %v5174_v33 = vld [vmem:[%s11360_s10 + $0x94] sm:$0xff] }
 0x20c   : > { %9772 = vmatpush3.bf16.msra.mxu0 %v11133_v19  ;;  %v5175_v19 = vld [vmem:[%s11360_s10 + $0x9c] sm:$0xff] }
 0x20d   : > { %9805 = vmatprep.subr.bf16.mxu0 %v11134_v59 }
 0x20e   : > { %9282 = vmatmul.mubr.msk.bf16.gmra.mrb[28].mxu1 %vm327_vm0, %v12394_v45 }
 0x20f   : > { %9742 = vmatmul.mubr.msk.bf16.gmra.mrb[8].mxu0 %vm327_vm0, %v11950_v10  ;;  %9293 = vmatprep.mubr.msk.bf16.mxu1 %vm327_vm0, %v12084_v12  ;;  %v11139_v10 = vld [vmem:[%s13348_s1 + $0x2b8] sm:$0xff]  }
 0x210   : > { %9745 = vmatprep.mubr.msk.bf16.mxu0 %vm327_vm0, %v11952_v52  ;;  %v12432_v52 = vld [vmem:[%s13348_s1 + $0x40] sm:$0xff]  }
 0x216   : > { %9294 = vmatmul.mubr.msk.bf16.vlgmr.msra.gmra.mrb[0].mxu1 %vm327_vm0, %v12086_v58 }
 0x217   : > { %9746 = vmatmul.mubr.msk.bf16.gmra.mrb[12].mxu0 %vm327_vm0, %v11974_v30  ;;  %9297 = vmatprep.mubr.msk.bf16.mxu1 %vm327_vm0, %v12108_v34  ;;  %v3950_v30 = vld [vmem:[%s11360_s10 + $0x1cb] sm:$0xff] }
 0x218   : > { %9749 = vmatprep.mubr.msk.bf16.mxu0 %vm327_vm0, %v11976_v3  ;;  %9326 = vmatpush3.bf16.msra.mxu1 %v11135_v31  ;;  %v3951_v3 = vld [vmem:[%s11360_s10 + $0x1d3] sm:$0xff] }
 0x219   : > { %9327 = vmatprep.subr.bf16.mxu1 %v11136_v62  ;;  %v11141_v31 = vld [vmem:[%s13348_s1 + $0x138] sm:$0xff]  }
 0x21c   : > { %9328 = vmatpush3.bf16.msra.mxu1 %v11136_v62  ;;  %v12516_v62 = vpack.c.bf16 %v5175_v19, %v5174_v33  ;;  %v11150_v33 = vld [vmem:[%s13348_s1 + $0x260] sm:$0xff]  }
 0x21d   : > { %9329 = vmatprep.subr.bf16.mxu1 %v11137_v63 }
 0x21e   : > { %9298 = vmatmul.mubr.msk.bf16.gmra.mrb[4].mxu1 %vm327_vm0, %v12110_v41 }
 0x21f   : > { %9750 = vmatmul.mubr.msk.bf16.gmra.mrb[16].mxu0 %vm327_vm0, %v11991_v42  ;;  %9301 = vmatprep.mubr.msk.bf16.mxu1 %vm327_vm0, %v12125_v28  ;;  %v5162_v42 = vld [vmem:[%s11360_s10 + $0x4] sm:$0xff] }
 0x220   : > { %9753 = vmatprep.mubr.msk.bf16.mxu0 %vm327_vm0, %v11993_v43  ;;  %9330 = vmatpush3.bf16.msra.mxu1 %v11137_v63  ;;  %v5163_v43 = vld [vmem:[%s11360_s10 + $0xc] sm:$0xff] }
 0x221   : > { %9331 = vmatprep.subr.bf16.mxu1 %v11139_v10  ;;  %v5202_v12 = vpack.c.bf16 %v5163_v43, %v5162_v42  ;;  %v5176_v63 = vld [vmem:[%s11360_s10 + $0xac] sm:$0xff] }
 0x224   : > { %9332 = vmatpush3.bf16.msra.mxu1 %v11139_v10  ;;  %v5177_v10 = vld [vmem:[%s11360_s10 + $0xb4] sm:$0xff] }
 0x225   : > { %9365 = vmatprep.subr.bf16.mxu1 %v12432_v52  ;;  %v12531_v42 = vpack.c.bf16 %v5177_v10, %v5176_v63  ;;  %v6516_v63 = vld [vmem:[%s13350_s3 + $0x8] sm:$0xff]  ;;  %v6517_v10 = vld [vmem:[%s13350_s3 + $0x10] sm:$0xff] }
 0x226   : > { %9302 = vmatmul.mubr.msk.bf16.gmra.mrb[8].mxu1 %vm327_vm0, %v12127_v35 }
 0x227   : > { %9754 = vmatmul.mubr.msk.bf16.gmra.mrb[20].mxu0 %vm327_vm0, %v12005_v44  ;;  %9305 = vmatprep.mubr.msk.bf16.mxu1 %vm327_vm0, %v12143_v49  ;;  %v3971_v44 = vpack.c.bf16 %v3951_v3, %v3950_v30  ;;  %v5178_v30 = vld [vmem:[%s11360_s10 + $0xc4] sm:$0xff]  ;;  %v5179_v3 = vld [vmem:[%s11360_s10 + $0xcc] sm:$0xff] }
 0x228   : > { %9757 = vmatprep.mubr.msk.bf16.mxu0 %vm327_vm0, %v12145_v25  ;;  %v5164_v25 = vld [vmem:[%s11360_s10 + $0x1c] sm:$0xff]  ;;  %v12533_v43 = vpack.c.bf16 %v5179_v3, %v5178_v30 }
 0x229   : > { %v6518_v3 = vld [vmem:[%s13350_s3 + $0x18] sm:$0xff] }
 0x22e   : > { %9306 = vmatmul.mubr.msk.bf16.gmra.mrb[12].mxu1 %vm327_vm0, %v12147_v57 }
 0x22f   : > { %9758 = vmatmul.mubr.msk.bf16.gmra.mrb[24].mxu0 %vm327_vm0, %v12261_v0  ;;  %9309 = vmatprep.mubr.msk.bf16.mxu1 %vm327_vm0, %v12161_v9  ;;  %v12464_v0 = vpack.c.bf16 %v5165_v32, %v5164_v25  ;;  %v5182_v25 = vld [vmem:[%s11360_s10 + $0xf4] sm:$0xff]  ;;  %v5183_v32 = vld [vmem:[%s11360_s10 + $0xfc] sm:$0xff] }
 0x230   : > { %9761 = vmatprep.mubr.msk.bf16.mxu0 %vm327_vm0, %v3970_v27  ;;  %v5172_v27 = vld [vmem:[%s11360_s10 + $0x7c] sm:$0xff] }
 0x236   : > { %9310 = vmatmul.mubr.msk.bf16.gmra.mrb[16].mxu1 %vm327_vm0, %v12163_v39 }
 0x237   : > { %9762 = vmatmul.mubr.msk.bf16.gmra.mrb[28].mxu0 %vm327_vm0, %v3971_v44  ;;  %9313 = vmatprep.mubr.msk.bf16.mxu1 %vm327_vm0, %v12184_v5  ;;  %v11144_v44 = vld [vmem:[%s13348_s1 + $0x48] sm:$0xff]  }
 0x238   : > { %9773 = vmatprep.mubr.msk.bf16.mxu0 %vm327_vm0, %v5202_v12  ;;  %v5181_v12 = vld [vmem:[%s11360_s10 + $0xe4] sm:$0xff] }
 0x23e   : > { %9314 = vmatmul.mubr.msk.bf16.gmra.mrb[20].mxu1 %vm327_vm0, %v12186_v16 }
 0x23f   : > { %9774 = vmatmul.mubr.msk.bf16.vlgmr.msra.gmra.mrb[0].mxu0 %vm327_vm0, %v12464_v0  ;;  %9317 = vmatprep.mubr.msk.bf16.mxu1 %vm327_vm0, %v12204_v47 }
 0x240   : > { %9806 = vmatpush3.bf16.msra.mxu0 %v11134_v59  ;;  %9777 = vmatprep.mubr.msk.bf16.mxu0 %vm327_vm0, %v12466_v37  ;;  %v12514_v59 = vpack.c.bf16 %v5173_v36, %v5172_v27 }
 0x241   : > { %9807 = vmatprep.subr.bf16.mxu0 %v11138_v23 }
 0x244   : > { %9808 = vmatpush3.bf16.msra.mxu0 %v11138_v23  ;;  %v5185_v23 = vld [vmem:[%s11360_s10 + $0x114] sm:$0xff] }
 0x245   : > { %9809 = vmatprep.subr.bf16.mxu0 %v11140_v29 }
 0x246   : > { %9318 = vmatmul.mubr.msk.bf16.gmra.mrb[24].mxu1 %vm327_vm0, %v12301_v22 }
 0x247   : > { %9778 = vmatmul.mubr.msk.bf16.gmra.mrb[4].mxu0 %vm327_vm0, %v12486_v61  ;;  %9321 = vmatprep.mubr.msk.bf16.mxu1 %vm327_vm0, %v12394_v45 }
 0x248   : > { %9781 = vmatprep.mubr.msk.bf16.mxu0 %vm327_vm0, %v12488_v55  ;;  %9810 = vmatpush3.bf16.msra.mxu0 %v11140_v29  ;;  %v5189_v29 = vld [vmem:[%s11360_s10 + $0x144] sm:$0xff] }
 0x249   : > { %9811 = vmatprep.subr.bf16.mxu0 %v11141_v31  ;;  %v12592_v18 = vpack.c.bf16 %v5189_v29, %v5188_v20 }
 0x24c   : > { %9812 = vmatpush3.bf16.msra.mxu0 %v11141_v31  ;;  %v5190_v31 = vld [vmem:[%s11360_s10 + $0x154] sm:$0xff] }
 0x24d   : > { %9845 = vmatprep.subr.bf16.mxu0 %v12510_v50  ;;  %v12594_v27 = vpack.c.bf16 %v5191_v51, %v5190_v31  ;;  %v6519_v51 = vld [vmem:[%s13350_s3 + $0x20] sm:$0xff] }
 0x24e   : > { %9322 = vmatmul.mubr.msk.bf16.gmra.mrb[28].mxu1 %vm327_vm0, %v12512_v53 }
 0x24f   : > { %9782 = vmatmul.mubr.msk.bf16.gmra.mrb[8].mxu0 %vm327_vm0, %v12514_v59  ;;  %9333 = vmatprep.mubr.msk.bf16.mxu1 %vm327_vm0, %v12086_v58  ;;  %v5180_v58 = vld [vmem:[%s11360_s10 + $0xdc] sm:$0xff] }
 0x250   : > { %9785 = vmatprep.mubr.msk.bf16.mxu0 %vm327_vm0, %v12516_v62  ;;  %v12554_v46 = vpack.c.bf16 %v5181_v12, %v5180_v58  ;;  %v5201_v58 = vld [vmem:[%s11360_s10 + $0x1d4] sm:$0xff] }
 0x256   : > { %9334 = vmatmul.mubr.msk.bf16.vlgmr.msra.gmra.mrb[0].mxu1 %vm327_vm0, %v12108_v34  ;;  %v11145_v34 = vld [vmem:[%s13348_s1 + $0x50] sm:$0xff]  }
 0x257   : > { %9786 = vmatmul.mubr.msk.bf16.gmra.mrb[12].mxu0 %vm327_vm0, %v12531_v42  ;;  %9337 = vmatprep.mubr.msk.bf16.mxu1 %vm327_vm0, %v12110_v41  ;;  %v12556_v41 = vpack.c.bf16 %v5183_v32, %v5182_v25 }
 0x258   : > { %9789 = vmatprep.mubr.msk.bf16.mxu0 %vm327_vm0, %v12533_v43  ;;  %9366 = vmatpush3.bf16.msra.mxu1 %v12432_v52  ;;  %v5184_v52 = vld [vmem:[%s11360_s10 + $0x10c] sm:$0xff] }
 0x259   : > { %9367 = vmatprep.subr.bf16.mxu1 %v11144_v44 }
 0x25c   : > { %9368 = vmatpush3.bf16.msra.mxu1 %v11144_v44  ;;  %v10165_v44 = vpack.c.bf16 %v6518_v3, %v6517_v10 }
 0x25d   : > { %9369 = vmatprep.subr.bf16.mxu1 %v11145_v34 }
 0x25e   : > { %9338 = vmatmul.mubr.msk.bf16.gmra.mrb[4].mxu1 %vm327_vm0, %v12125_v28  ;;  %v12573_v28 = vpack.c.bf16 %v5185_v23, %v5184_v52 }
 0x25f   : > { %9790 = vmatmul.mubr.msk.bf16.gmra.mrb[16].mxu0 %vm327_vm0, %v12554_v46  ;;  %9341 = vmatprep.mubr.msk.bf16.mxu1 %vm327_vm0, %v12127_v35  ;;  %v11286_v35 = vld [vmem:[%s13348_s1 + $0xe0] sm:$0xff]  }
 0x260   : > { %9793 = vmatprep.mubr.msk.bf16.mxu0 %vm327_vm0, %v12556_v41  ;;  %9370 = vmatpush3.bf16.msra.mxu1 %v11145_v34 }
 0x261   : > { %9371 = vmatprep.subr.bf16.mxu1 %v11147_v48 }
 0x264   : > { %9372 = vmatpush3.bf16.msra.mxu1 %v11147_v48 }
 0x265   : > { %10273 = vmatprep.subr.bf16.mxu1 %v11286_v35 }
 0x266   : > { %9342 = vmatmul.mubr.msk.bf16.gmra.mrb[8].mxu1 %vm327_vm0, %v12143_v49  ;;  %v5192_v49 = vld [vmem:[%s11360_s10 + $0x16c] sm:$0xff] }
 0x267   : > { %9794 = vmatmul.mubr.msk.bf16.gmra.mrb[20].mxu0 %vm327_vm0, %v12573_v28  ;;  %9345 = vmatprep.mubr.msk.bf16.mxu1 %vm327_vm0, %v12147_v57  ;;  %v5193_v57 = vld [vmem:[%s11360_s10 + $0x174] sm:$0xff] }
 0x268   : > { %9797 = vmatprep.mubr.msk.bf16.mxu0 %vm327_vm0, %v12575_v21  ;;  %v12606_v36 = vpack.c.bf16 %v5193_v57, %v5192_v49  ;;  %v6521_v49 = vld [vmem:[%s13350_s3 + $0x30] sm:$0xff]  ;;  %v6522_v57 = vld [vmem:[%s13350_s3 + $0x38] sm:$0xff] }
 0x26e   : > { %9346 = vmatmul.mubr.msk.bf16.gmra.mrb[12].mxu1 %vm327_vm0, %v12161_v9  ;;  %v11146_v9 = vld [vmem:[%s13348_s1 + $0x1c8] sm:$0xff]  }
 0x26f   : > { %9798 = vmatmul.mubr.msk.bf16.gmra.mrb[24].mxu0 %vm327_vm0, %v12592_v18  ;;  %9349 = vmatprep.mubr.msk.bf16.mxu1 %vm327_vm0, %v12163_v39  ;;  %v11148_v39 = vld [vmem:[%s13348_s1 + $0x1d0] sm:$0xff]  }
 0x270   : > { %9801 = vmatprep.mubr.msk.bf16.mxu0 %vm327_vm0, %v12594_v27 }
 0x276   : > { %9350 = vmatmul.mubr.msk.bf16.gmra.mrb[16].mxu1 %vm327_vm0, %v12184_v5  ;;  %v11149_v5 = vld [vmem:[%s13348_s1 + $0x1d8] sm:$0xff]  }
 0x277   : > { %9802 = vmatmul.mubr.msk.bf16.gmra.mrb[28].mxu0 %vm327_vm0, %v12606_v36  ;;  %9353 = vmatprep.mubr.msk.bf16.mxu1 %vm327_vm0, %v12186_v16  ;;  %v1450_v16 = vld [vmem:[%s11360_s10 + $0x1c9] sm:$0xff] }
 0x278   : > { %9813 = vmatprep.mubr.msk.bf16.mxu0 %vm327_vm0, %v12464_v0  ;;  %v2663_v0 = vld [vmem:[%s11360_s10 + $0xa] sm:$0xff] }
 0x27e   : > { %9354 = vmatmul.mubr.msk.bf16.gmra.mrb[20].mxu1 %vm327_vm0, %v12204_v47  ;;  %v1451_v47 = vld [vmem:[%s11360_s10 + $0x1d1] sm:$0xff] }
 0x27f   : > { %9814 = vmatmul.mubr.msk.bf16.vlgmr.msra.gmra.mrb[0].mxu0 %vm327_vm0, %v12466_v37  ;;  %9357 = vmatprep.mubr.msk.bf16.mxu1 %vm327_vm0, %v12301_v22  ;;  %v2662_v22 = vld [vmem:[%s11360_s10 + $0x2] sm:$0xff] }
 0x280   : > { %9846 = vmatpush3.bf16.msra.mxu0 %v12510_v50  ;;  %9817 = vmatprep.mubr.msk.bf16.mxu0 %vm327_vm0, %v12486_v61  ;;  %v2702_v19 = vpack.c.bf16 %v2663_v0, %v2662_v22  ;;  %v11287_v50 = vld [vmem:[%s13348_s1 + $0xe8] sm:$0xff]  }
 0x281   : > { %9847 = vmatprep.subr.bf16.mxu0 %v11146_v9 }
 0x284   : > { %9848 = vmatpush3.bf16.msra.mxu0 %v11146_v9 }
 0x285   : > { %9849 = vmatprep.subr.bf16.mxu0 %v11148_v39 }
 0x286   : > { %9358 = vmatmul.mubr.msk.bf16.gmra.mrb[24].mxu1 %vm327_vm0, %v12394_v45  ;;  %v1471_v45 = vpack.c.bf16 %v1451_v47, %v1450_v16 }
 0x287   : > { %9818 = vmatmul.mubr.msk.bf16.gmra.mrb[4].mxu0 %vm327_vm0, %v12488_v55  ;;  %9361 = vmatprep.mubr.msk.bf16.mxu1 %vm327_vm0, %v12512_v53  ;;  %v6515_v53 = vld [vmem:[%s13350_s3] sm:$0xff] }
 0x288   : > { %9821 = vmatprep.mubr.msk.bf16.mxu0 %vm327_vm0, %v12514_v59  ;;  %9850 = vmatpush3.bf16.msra.mxu0 %v11148_v39  ;;  %v10161_v30 = vpack.c.bf16 %v6516_v63, %v6515_v53 }
 0x289   : > { %9851 = vmatprep.subr.bf16.mxu0 %v11149_v5 }
 0x28c   : > { %9852 = vmatpush3.bf16.msra.mxu0 %v11149_v5 }
 0x28d   : > { %9885 = vmatprep.subr.bf16.mxu0 %v11150_v33 }
 0x28e   : > { %9362 = vmatmul.mubr.msk.bf16.gmra.mrb[28].mxu1 %vm327_vm0, %v1471_v45 }
 0x28f   : > { %9822 = vmatmul.mubr.msk.bf16.gmra.mrb[8].mxu0 %vm327_vm0, %v12516_v62  ;;  %9373 = vmatprep.mubr.msk.bf16.mxu1 %vm327_vm0, %v2702_v19 }
 0x290   : > { %9825 = vmatprep.mubr.msk.bf16.mxu0 %vm327_vm0, %v12531_v42 }
 0x296   : > { %9374 = vmatmul.mubr.msk.bf16.vlgmr.msra.gmra.mrb[0].mxu1 %vm327_vm0, %v11374_v13  ;;  %v11288_v13 = vld [vmem:[%s13348_s1 + $0xf0] sm:$0xff]  }
 0x297   : > { %9826 = vmatmul.mubr.msk.bf16.gmra.mrb[12].mxu0 %vm327_vm0, %v12533_v43  ;;  %9377 = vmatprep.mubr.msk.bf16.mxu1 %vm327_vm0, %v11393_v24  ;;  %v11289_v24 = vld [vmem:[%s13348_s1 + $0xf8] sm:$0xff]  }
 0x298   : > { %9829 = vmatprep.mubr.msk.bf16.mxu0 %vm327_vm0, %v12554_v46  ;;  %10277 = vmatpush3.bf16.msra.mxu1 %v11286_v35 }
 0x299   : > { %10274 = vmatprep.subr.bf16.mxu1 %v11287_v50 }
 0x29c   : > { %10278 = vmatpush3.bf16.msra.mxu1 %v11287_v50 }
 0x29d   : > { %10275 = vmatprep.subr.bf16.mxu1 %v11288_v13 }
 0x29e   : > { %9378 = vmatmul.mubr.msk.bf16.gmra.mrb[4].mxu1 %vm327_vm0, %v11397_v26  ;;  %v5194_v26 = vld [vmem:[%s11360_s10 + $0x184] sm:$0xff] }
 0x29f   : > { %9830 = vmatmul.mubr.msk.bf16.gmra.mrb[16].mxu0 %vm327_vm0, %v12556_v41  ;;  %9381 = vmatprep.mubr.msk.bf16.mxu1 %vm327_vm0, %v11423_v38  ;;  %v5195_v38 = vld [vmem:[%s11360_s10 + $0x18c] sm:$0xff] }
 0x2a0   : > { %9833 = vmatprep.mubr.msk.bf16.mxu0 %vm327_vm0, %v12573_v28  ;;  %10279 = vmatpush3.bf16.msra.mxu1 %v11288_v13 }
 0x2a1   : > { %10276 = vmatprep.subr.bf16.mxu1 %v11289_v24 }
 0x2a4   : > { %10280 = vmatpush3.bf16.msra.mxu1 %v11289_v24 }
 0x2a5   : > { %10162 = vmatprep.subr.bf16.mxu1 %v10161_v30 }
 0x2a6   : > { %9382 = vmatmul.mubr.msk.bf16.gmra.mrb[8].mxu1 %vm327_vm0, %v11427_v40  ;;  %v12698_v40 = vpack.c.bf16 %v5195_v38, %v5194_v26  ;;  %v12924_v26 = vld [vmem:[%s13349_s2] ss:$0 sm:$0xff] }
 0x2a7   : > { %9834 = vmatmul.mubr.msk.bf16.gmra.mrb[20].mxu0 %vm327_vm0, %v12575_v21  ;;  %9385 = vmatprep.mubr.msk.bf16.mxu1 %vm327_vm0, %v11461_v54  ;;  %v11151_v54 = vld [vmem:[%s13348_s1 + $0x268] sm:$0xff]  }
 0x2a8   : > { %9837 = vmatprep.mubr.msk.bf16.mxu0 %vm327_vm0, %v12592_v18 }
 0x2ae   : > { %9386 = vmatmul.mubr.msk.bf16.gmra.mrb[12].mxu1 %vm327_vm0, %v11465_v56  ;;  %v11152_v56 = vld [vmem:[%s13348_s1 + $0x270] sm:$0xff]  }
 0x2af   : > { %9838 = vmatmul.mubr.msk.bf16.gmra.mrb[24].mxu0 %vm327_vm0, %v12594_v27  ;;  %9389 = vmatprep.mubr.msk.bf16.mxu1 %vm327_vm0, %v11492_v4  ;;  %v11153_v4 = vld [vmem:[%s13348_s1 + $0x278] sm:$0xff]  }
 0x2b0   : > { %9841 = vmatprep.mubr.msk.bf16.mxu0 %vm327_vm0, %v12606_v36 }
 0x2b6   : > { %9390 = vmatmul.mubr.msk.bf16.gmra.mrb[16].mxu1 %vm327_vm0, %v11496_v6  ;;  %v11154_v6 = vld [vmem:[%s13348_s1 + $0x300] sm:$0xff]  }
 0x2b7   : > { %9842 = vmatmul.mubr.msk.bf16.gmra.mrb[28].mxu0 %vm327_vm0, %v12698_v40  ;;  %9393 = vmatprep.mubr.msk.bf16.mxu1 %vm327_vm0, %v11517_v17  ;;  %v5196_v17 = vld [vmem:[%s11360_s10 + $0x19c] sm:$0xff] }
 0x2b8   : > { %9853 = vmatprep.mubr.msk.bf16.mxu0 %vm327_vm0, %v12466_v37  ;;  %v5199_v37 = vld [vmem:[%s11360_s10 + $0x1bc] sm:$0xff] }
 0x2be   : > { %9394 = vmatmul.mubr.msk.bf16.gmra.mrb[20].mxu1 %vm327_vm0, %v11608_v11 }
 0x2bf   : > { %9854 = vmatmul.mubr.msk.bf16.vlgmr.msra.gmra.mrb[0].mxu0 %vm327_vm0, %v12486_v61  ;;  %9397 = vmatprep.mubr.msk.bf16.mxu1 %vm327_vm0, %v11613_v60 }
 0x2c0   : > { %9886 = vmatpush3.bf16.msra.mxu0 %v11150_v33  ;;  %9857 = vmatprep.mubr.msk.bf16.mxu0 %vm327_vm0, %v12488_v55 }
 0x2c1   : > { %9887 = vmatprep.subr.bf16.mxu0 %v11151_v54 }
 0x2c4   : > { %9888 = vmatpush3.bf16.msra.mxu0 %v11151_v54 }
 0x2c5   : > { %9889 = vmatprep.subr.bf16.mxu0 %v11152_v56 }
 0x2c6   : > { %9398 = vmatmul.mubr.msk.bf16.gmra.mrb[24].mxu1 %vm327_vm0, %v11630_v2 }
 0x2c7   : > { %9858 = vmatmul.mubr.msk.bf16.gmra.mrb[4].mxu0 %vm327_vm0, %v12514_v59  ;;  %9401 = vmatprep.mubr.msk.bf16.mxu1 %vm327_vm0, %v11632_v7 }
 0x2c8   : > { %9861 = vmatprep.mubr.msk.bf16.mxu0 %vm327_vm0, %v12516_v62  ;;  %9890 = vmatpush3.bf16.msra.mxu0 %v11152_v56 }
 0x2c9   : > { %9891 = vmatprep.subr.bf16.mxu0 %v11153_v4 }
 0x2cc   : > { %9892 = vmatpush3.bf16.msra.mxu0 %v11153_v4 }
 0x2cd   : > { %9925 = vmatprep.subr.bf16.mxu0 %v11154_v6 }
 0x2ce   : > { %9402 = vmatmul.mubr.msk.bf16.gmra.mrb[28].mxu1 %vm327_vm0, %v11646_v14 }
 0x2cf   : > { %9862 = vmatmul.mubr.msk.bf16.gmra.mrb[8].mxu0 %vm327_vm0, %v12531_v42  ;;  %9433 = vmatprep.mubr.msk.bf16.mxu1 %vm327_vm0, %v11608_v11  ;;  %v5197_v11 = vld [vmem:[%s11360_s10 + $0x1a4] sm:$0xff] }
 0x2d0   : > { %9865 = vmatprep.mubr.msk.bf16.mxu0 %vm327_vm0, %v12533_v43 }
 0x2d6   : > { %9434 = vmatmul.mubr.msk.bf16.vlgmr.msra.gmra.mrb[20].mxu1 %vm327_vm0, %v11613_v60  ;;  %v5219_v60 = vpack.c.bf16 %v5197_v11, %v5196_v17 }
 0x2d7   : > { %9866 = vmatmul.mubr.msk.bf16.gmra.mrb[12].mxu0 %vm327_vm0, %v12554_v46  ;;  %9437 = vmatprep.mubr.msk.bf16.mxu1 %vm327_vm0, %v11630_v2  ;;  %v11155_v2 = vld [vmem:[%s13348_s1 + $0x308] sm:$0xff]  }
 0x2d8   : > { %9869 = vmatprep.mubr.msk.bf16.mxu0 %vm327_vm0, %v12556_v41  ;;  %10164 = vmatpush3.bf16.msra.mxu1 %v10161_v30 }
 0x2d9   : > { %10166 = vmatprep.subr.bf16.mxu1 %v10165_v44 }
 0x2dc   : > { %10168 = vmatpush3.bf16.msra.mxu1 %v10165_v44 }
 0x2de   : > { %9438 = vmatmul.mubr.msk.bf16.gmra.mrb[24].mxu1 %vm327_vm0, %v11632_v7  ;;  %v11156_v7 = vld [vmem:[%s13348_s1 + $0x310] sm:$0xff]  }
 0x2df   : > { %9870 = vmatmul.mubr.msk.bf16.gmra.mrb[16].mxu0 %vm327_vm0, %v12573_v28  ;;  %9441 = vmatprep.mubr.msk.bf16.mxu1 %vm327_vm0, %v11646_v14  ;;  %v11157_v14 = vld [vmem:[%s13348_s1 + $0x318] sm:$0xff]  }
 0x2e0   : > { %9873 = vmatprep.mubr.msk.bf16.mxu0 %vm327_vm0, %v12575_v21 }
 0x2e6   : > { %9442 = vmatmul.mubr.msk.bf16.gmra.mrb[28].mxu1 %vm327_vm0, %v11648_v15  ;;  %v5198_v15 = vld [vmem:[%s11360_s10 + $0x1b4] sm:$0xff] }
 0x2e7   : > { %9874 = vmatmul.mubr.msk.bf16.gmra.mrb[20].mxu0 %vm327_vm0, %v12592_v18 }
 0x2e8   : > { %9877 = vmatprep.mubr.msk.bf16.mxu0 %vm327_vm0, %v12594_v27 }
 0x2ef   : > { %9878 = vmatmul.mubr.msk.bf16.gmra.mrb[24].mxu0 %vm327_vm0, %v12606_v36 }
 0x2f0   : > { %9881 = vmatprep.mubr.msk.bf16.mxu0 %vm327_vm0, %v12698_v40 }
 0x2f7   : > { %9882 = vmatmul.mubr.msk.bf16.gmra.mrb[28].mxu0 %vm327_vm0, %v5219_v60 }
 0x2f8   : > { %9893 = vmatprep.mubr.msk.bf16.mxu0 %vm327_vm0, %v12486_v61  ;;  %v5220_v61 = vpack.c.bf16 %v5199_v37, %v5198_v15 }
 0x2ff   : > { %9894 = vmatmul.mubr.msk.bf16.vlgmr.msra.gmra.mrb[0].mxu0 %vm327_vm0, %v12488_v55 }
 0x300   : > { %9926 = vmatpush3.bf16.msra.mxu0 %v11154_v6  ;;  %9897 = vmatprep.mubr.msk.bf16.mxu0 %vm327_vm0, %v12514_v59 }
 0x301   : > { %9927 = vmatprep.subr.bf16.mxu0 %v11155_v2 }
 0x304   : > { %9928 = vmatpush3.bf16.msra.mxu0 %v11155_v2 }
 0x305   : > { %9929 = vmatprep.subr.bf16.mxu0 %v11156_v7 }
 0x307   : > { %9898 = vmatmul.mubr.msk.bf16.gmra.mrb[4].mxu0 %vm327_vm0, %v12516_v62 }
 0x308   : > { %9901 = vmatprep.mubr.msk.bf16.mxu0 %vm327_vm0, %v12531_v42  ;;  %9930 = vmatpush3.bf16.msra.mxu0 %v11156_v7 }
 0x309   : > { %9931 = vmatprep.subr.bf16.mxu0 %v11157_v14 }
 0x30c   : > { %9932 = vmatpush3.bf16.msra.mxu0 %v11157_v14 }
 0x30f   : > { %9902 = vmatmul.mubr.msk.bf16.gmra.mrb[8].mxu0 %vm327_vm0, %v12533_v43 }
 0x310   : > { %9905 = vmatprep.mubr.msk.bf16.mxu0 %vm327_vm0, %v12554_v46 }
 0x317   : > { %9906 = vmatmul.mubr.msk.bf16.gmra.mrb[12].mxu0 %vm327_vm0, %v12556_v41 }
 0x318   : > { %9909 = vmatprep.mubr.msk.bf16.mxu0 %vm327_vm0, %v12573_v28 }
 0x31f   : > { %9910 = vmatmul.mubr.msk.bf16.gmra.mrb[16].mxu0 %vm327_vm0, %v12575_v21 }
 0x320   : > { %9913 = vmatprep.mubr.msk.bf16.mxu0 %vm327_vm0, %v12592_v18 }
 0x327   : > { %9914 = vmatmul.mubr.msk.bf16.gmra.mrb[20].mxu0 %vm327_vm0, %v12594_v27 }
 0x328   : > { %9917 = vmatprep.mubr.msk.bf16.mxu0 %vm327_vm0, %v12606_v36 }
 0x32f   : > { %9918 = vmatmul.mubr.msk.bf16.gmra.mrb[24].mxu0 %vm327_vm0, %v12698_v40 }
 0x330   : > { %9921 = vmatprep.mubr.msk.bf16.mxu0 %vm327_vm0, %v5219_v60 }
 0x337   : > { %9922 = vmatmul.mubr.msk.bf16.gmra.mrb[28].mxu0 %vm327_vm0, %v5220_v61 }
 0x338   : > { %9933 = vmatprep.mubr.msk.bf16.mxu0 %vm327_vm0, %v12488_v55 }
 0x33f   : > { %9934 = vmatmul.mubr.msk.bf16.vlgmr.msra.gmra.mrb[0].mxu0 %vm327_vm0, %v12514_v59 }
 0x340   : > { %9937 = vmatprep.mubr.msk.bf16.mxu0 %vm327_vm0, %v12516_v62 }
 0x347   : > { %9938 = vmatmul.mubr.msk.bf16.gmra.mrb[4].mxu0 %vm327_vm0, %v12531_v42 }
 0x348   : > { %9941 = vmatprep.mubr.msk.bf16.mxu0 %vm327_vm0, %v12533_v43  ;;  %v5200_v43 = vld [vmem:[%s11360_s10 + $0x1cc] sm:$0xff] }
 0x349   : > { %v5221_v34 = vpack.c.bf16 %v5201_v58, %v5200_v43 }
 0x34f   : > { %9942 = vmatmul.mubr.msk.bf16.gmra.mrb[8].mxu0 %vm327_vm0, %v12554_v46 }
 0x350   : > { %9945 = vmatprep.mubr.msk.bf16.mxu0 %vm327_vm0, %v12556_v41 }
 0x357   : > { %9946 = vmatmul.mubr.msk.bf16.gmra.mrb[12].mxu0 %vm327_vm0, %v12573_v28 }
 0x358   : > { %9949 = vmatprep.mubr.msk.bf16.mxu0 %vm327_vm0, %v12575_v21 }
 0x35f   : > { %9950 = vmatmul.mubr.msk.bf16.gmra.mrb[16].mxu0 %vm327_vm0, %v12592_v18  ;;  %v6520_v18 = vld [vmem:[%s13350_s3 + $0x28] sm:$0xff] }
 0x360   : > { %9953 = vmatprep.mubr.msk.bf16.mxu0 %vm327_vm0, %v12594_v27  ;;  %v10169_v27 = vpack.c.bf16 %v6520_v18, %v6519_v51 }
 0x362   : > { %10170 = vmatprep.subr.bf16.mxu1 %v10169_v27 }
 0x363   : > { %10172 = vmatpush3.bf16.msra.mxu1 %v10169_v27 }
 0x367   : > { %9954 = vmatmul.mubr.msk.bf16.gmra.mrb[20].mxu0 %vm327_vm0, %v12606_v36  ;;  %v10173_v36 = vpack.c.bf16 %v6522_v57, %v6521_v49 }
 0x368   : > { %9957 = vmatprep.mubr.msk.bf16.mxu0 %vm327_vm0, %v12698_v40 }
 0x369   : > { %v9375_v55 = vpop.f32.mrb[0].mxu1  ;;  %10174 = vmatprep.subr.bf16.mxu1 %v10173_v36 }
 0x36a   : > { %v2837_v59 = vpop.f32.mrb[1].mxu1  ;;  %10176 = vmatpush3.bf16.msra.mxu1 %v10173_v36 }
 0x36b   : > { %v9376_v62 = vpop.f32.mrb[2].mxu1 }
 0x36c   : > { %v2840_v42 = vpop.f32.mrb[3].mxu1 }
 0x36f   : > { %9958 = vmatmul.mubr.msk.bf16.gmra.mrb[24].mxu0 %vm327_vm0, %v5219_v60 }
 0x370   : > { %9961 = vmatprep.mubr.msk.bf16.mxu0 %vm327_vm0, %v5220_v61 }
 0x371   : > { %v9379_v12 = vpop.f32.mrb[4].mxu1 }
 0x372   : > { %v2853_v25 = vpop.f32.mrb[5].mxu1 }
 0x373   : > { %v12856_v32 = vpop.f32.mrb[6].mxu1 }
 0x374   : > { %v12858_v46 = vpop.f32.mrb[7].mxu1 }
 0x377   : > { %9962 = vmatmul.mubr.msk.bf16.gmra.mrb[28].mxu0 %vm327_vm0, %v5221_v34 }
 0x379   : > { %v12861_v41 = vpop.f32.mrb[8].mxu1 }
 0x37a   : > { %v12863_v48 = vpop.f32.mrb[9].mxu1 }
 0x37b   : > { %v12865_v52 = vpop.f32.mrb[10].mxu1 }
 0x37c   : > { %v12867_v23 = vpop.f32.mrb[11].mxu1 }
 0x381   : > { %v12869_v1 = vpop.f32.mrb[12].mxu1 }
 0x382   : > { %v12871_v8 = vpop.f32.mrb[13].mxu1 }
 0x383   : > { %v12873_v28 = vpop.f32.mrb[14].mxu1 }
 0x384   : > { %v12875_v21 = vpop.f32.mrb[15].mxu1 }
 0x389   : > { %v12877_v35 = vpop.f32.mrb[16].mxu1 }
 0x38a   : > { %v12879_v20 = vpop.f32.mrb[17].mxu1 }
 0x38b   : > { %v12881_v29 = vpop.f32.mrb[18].mxu1 }
 0x38c   : > { %v12883_v31 = vpop.f32.mrb[19].mxu1 }
 0x3a9   : > { %v12897_v9 = vpop.f32.mrb[20].mxu1 }
 0x3aa   : > { %v12899_v39 = vpop.f32.mrb[21].mxu1 }
 0x3ab   : > { %v12901_v5 = vpop.f32.mrb[22].mxu1 }
 0x3ac   : > { %v12903_v16 = vpop.f32.mrb[23].mxu1 }
 0x3b1   : > { %v12905_v47 = vpop.f32.mrb[24].mxu1 }
 0x3b2   : > { %v12907_v22 = vpop.f32.mrb[25].mxu1 }
 0x3b3   : > { %v12909_v0 = vpop.f32.mrb[26].mxu1 }
 0x3b4   : > { %v12911_v33 = vpop.f32.mrb[27].mxu1 }
 0x3b9   : > { %v12913_v45 = vpop.f32.mrb[28].mxu1 }
 0x3ba   : > { %v12915_v19 = vpop.f32.mrb[29].mxu1 }
 0x3bb   : > { %v12917_v50 = vpop.f32.mrb[30].mxu1 }
 0x3bc   : > { %v12919_v13 = vpop.f32.mrb[31].mxu1 }
 0x412   : > { %v9935_v24 = vpop.f32.mrb[0].mxu0 }
 0x413   : > { %v10281_v38 = vadd.f32 %v9935_v24, %v9375_v55  ;;  %v6253_v40 = vpop.f32.mrb[1].mxu0 }
 0x414   : > { %v10282_v54 = vadd.f32 %v6253_v40, %v2837_v59  ;;  %v9936_v56 = vpop.f32.mrb[2].mxu0 }
 0x415   : > { %v6421_v4 = vadd.f32 %v10281_v38, %v12924_v26  ;;  %v10283_v6 = vadd.f32 %v9936_v56, %v9376_v62  ;;  %v6256_v17 = vpop.f32.mrb[3].mxu0 }
 0x416   : > { %v6419_v11 = vadd.f32 %v10282_v54, %v12924_v26  ;;  %v10284_v60 = vadd.f32 %v6256_v17, %v2840_v42 }
 0x417   : > { %v6422_v7 = vadd.f32 %v10283_v6, %v12924_v26  ;;  %v12932_v15 = vmax.f32 %v6421_v4, 0.0 }
 0x418   : > { %v12928_v2 = vmax.f32 %v6419_v11, 0.0  ;;  %v6420_v14 = vadd.f32 %v10284_v60, %v12924_v26 }
 0x419   : > { %v12938_v30 = vmax.f32 %v6422_v7, 0.0  ;;  %v6485_v59 = vmul.f32 %v12932_v15, %v12932_v15 }
 0x41a   : > { %v6483_v37 = vmul.f32 %v12928_v2, %v12928_v2  ;;  %v12936_v61 = vmax.f32 %v6420_v14, 0.0  ;;  %v9939_v53 = vpop.f32.mrb[4].mxu0 }
 0x41b   : > { %v10285_v63 = vadd.f32 %v9939_v53, %v9379_v12  ;;  %v6269_v10 = vpop.f32.mrb[5].mxu0 }
 0x41c   : > { %v6484_v3 = vmul.f32 %v12936_v61, %v12936_v61  ;;  %v10286_v44 = vadd.f32 %v6269_v10, %v2853_v25  ;;  %v9940_v55 = vpop.f32.mrb[6].mxu0  ;;  %9981 = vmatprep.mubr.msk.f32.mxu1 %vm327_vm0, %v6483_v37  ;;  %v6486_v25 = vmul.f32 %v12938_v30, %v12938_v30 }
 0x41d   : > { %v6425_v62 = vadd.f32 %v10285_v63, %v12924_v26  ;;  %v10287_v42 = vadd.f32 %v9940_v55, %v12856_v32  ;;  %v6272_v43 = vpop.f32.mrb[7].mxu0 }
 0x41e   : > { %v6423_v58 = vadd.f32 %v10286_v44, %v12924_v26  ;;  %v10288_v12 = vadd.f32 %v6272_v43, %v12858_v46  ;;  %9982 = vmatmul.mubr.msk.f32.vlgmr.msra.gmra.mrb[32].mxu1 %vm327_vm0, %v6484_v3 }
 0x41f   : > { %9984 = vmatprep.mubr.msk.f32.mxu1 %vm327_vm0, %v6485_v59  ;;  %v6426_v51 = vadd.f32 %v10287_v42, %v12924_v26  ;;  %v12957_v27 = vmax.f32 %v6425_v62, 0.0 }
 0x420   : > { %v12953_v34 = vmax.f32 %v6423_v58, 0.0  ;;  %v6424_v18 = vadd.f32 %v10288_v12, %v12924_v26 }
 0x421   : > { %v12965_v24 = vmax.f32 %v6426_v51, 0.0  ;;  %v6489_v56 = vmul.f32 %v12957_v27, %v12957_v27 }
 0x422   : > { %v6487_v32 = vmul.f32 %v12953_v34, %v12953_v34  ;;  %v12961_v49 = vmax.f32 %v6424_v18, 0.0  ;;  %v9943_v46 = vpop.f32.mrb[8].mxu0  ;;  %9985 = vmatmul.mubr.msk.f32.gmra.mrb[34].mxu1 %vm327_vm0, %v6486_v25 }
 0x423   : > { %v10289_v57 = vadd.f32 %v9943_v46, %v12861_v41  ;;  %v6285_v36 = vpop.f32.mrb[9].mxu0 }
 0x424   : > { %v6488_v38 = vmul.f32 %v12961_v49, %v12961_v49  ;;  %v10290_v40 = vadd.f32 %v6285_v36, %v12863_v48  ;;  %v9944_v54 = vpop.f32.mrb[10].mxu0  ;;  %9987 = vmatprep.mubr.msk.f32.mxu1 %vm327_vm0, %v6487_v32  ;;  %v6490_v48 = vmul.f32 %v12965_v24, %v12965_v24 }
 0x425   : > { %v6429_v4 = vadd.f32 %v10289_v57, %v12924_v26  ;;  %v10291_v6 = vadd.f32 %v9944_v54, %v12865_v52  ;;  %v6288_v17 = vpop.f32.mrb[11].mxu0 }
 0x426   : > { %v6427_v41 = vadd.f32 %v10290_v40, %v12924_v26  ;;  %v10292_v11 = vadd.f32 %v6288_v17, %v12867_v23  ;;  %9988 = vmatmul.mubr.msk.f32.gmra.mrb[36].mxu1 %vm327_vm0, %v6488_v38 }
 0x427   : > { %9990 = vmatprep.mubr.msk.f32.mxu1 %vm327_vm0, %v6489_v56  ;;  %v6430_v7 = vadd.f32 %v10291_v6, %v12924_v26  ;;  %v12985_v37 = vmax.f32 %v6429_v4, 0.0 }
 0x428   : > { %v12981_v60 = vmax.f32 %v6427_v41, 0.0  ;;  %v6428_v14 = vadd.f32 %v10292_v11, %v12924_v26 }
 0x429   : > { %v12993_v3 = vmax.f32 %v6430_v7, 0.0  ;;  %v6493_v62 = vmul.f32 %v12985_v37, %v12985_v37 }
 0x42a   : > { %v6491_v52 = vmul.f32 %v12981_v60, %v12981_v60  ;;  %v12989_v53 = vmax.f32 %v6428_v14, 0.0  ;;  %v9947_v23 = vpop.f32.mrb[12].mxu0  ;;  %9991 = vmatmul.mubr.msk.f32.gmra.mrb[38].mxu1 %vm327_vm0, %v6490_v48 }
 0x42b   : > { %v10293_v63 = vadd.f32 %v9947_v23, %v12869_v1  ;;  %v6301_v10 = vpop.f32.mrb[13].mxu0 }
 0x42c   : > { %v6492_v44 = vmul.f32 %v12989_v53, %v12989_v53  ;;  %v10294_v55 = vadd.f32 %v6301_v10, %v12871_v8  ;;  %v9948_v59 = vpop.f32.mrb[14].mxu0  ;;  %9993 = vmatprep.mubr.msk.f32.mxu1 %vm327_vm0, %v6491_v52  ;;  %v6494_v8 = vmul.f32 %v12993_v3, %v12993_v3 }
 0x42d   : > { %v6433_v42 = vadd.f32 %v10293_v63, %v12924_v26  ;;  %v10295_v43 = vadd.f32 %v9948_v59, %v12873_v28  ;;  %v6304_v58 = vpop.f32.mrb[15].mxu0 }
 0x42e   : > { %v6431_v1 = vadd.f32 %v10294_v55, %v12924_v26  ;;  %v10296_v12 = vadd.f32 %v6304_v58, %v12875_v21  ;;  %9994 = vmatmul.mubr.msk.f32.gmra.mrb[40].mxu1 %vm327_vm0, %v6492_v44 }
 0x42f   : > { %9996 = vmatprep.mubr.msk.f32.mxu1 %vm327_vm0, %v6493_v62  ;;  %v6434_v51 = vadd.f32 %v10295_v43, %v12924_v26  ;;  %v13013_v32 = vmax.f32 %v6433_v42, 0.0 }
 0x430   : > { %v13009_v25 = vmax.f32 %v6431_v1, 0.0  ;;  %v6432_v18 = vadd.f32 %v10296_v12, %v12924_v26 }
 0x431   : > { %v13021_v38 = vmax.f32 %v6434_v51, 0.0  ;;  %v6497_v4 = vmul.f32 %v13013_v32, %v13013_v32 }
 0x432   : > { %v6495_v28 = vmul.f32 %v13009_v25, %v13009_v25  ;;  %v13017_v46 = vmax.f32 %v6432_v18, 0.0  ;;  %v9951_v21 = vpop.f32.mrb[16].mxu0  ;;  %9997 = vmatmul.mubr.msk.f32.gmra.mrb[42].mxu1 %vm327_vm0, %v6494_v8 }
 0x433   : > { %v10297_v57 = vadd.f32 %v9951_v21, %v12877_v35  ;;  %v6317_v36 = vpop.f32.mrb[17].mxu0 }
 0x434   : > { %v6496_v40 = vmul.f32 %v13017_v46, %v13017_v46  ;;  %v10298_v54 = vadd.f32 %v6317_v36, %v12879_v20  ;;  %v9952_v56 = vpop.f32.mrb[18].mxu0  ;;  %9999 = vmatprep.mubr.msk.f32.mxu1 %vm327_vm0, %v6495_v28  ;;  %v6498_v20 = vmul.f32 %v13021_v38, %v13021_v38 }
 0x435   : > { %v6437_v6 = vadd.f32 %v10297_v57, %v12924_v26  ;;  %v10299_v17 = vadd.f32 %v9952_v56, %v12881_v29  ;;  %v6320_v41 = vpop.f32.mrb[19].mxu0 }
 0x436   : > { %v6435_v35 = vadd.f32 %v10298_v54, %v12924_v26  ;;  %v10300_v11 = vadd.f32 %v6320_v41, %v12883_v31  ;;  %10000 = vmatmul.mubr.msk.f32.gmra.mrb[44].mxu1 %vm327_vm0, %v6496_v40 }
 0x437   : > { %10002 = vmatprep.mubr.msk.f32.mxu1 %vm327_vm0, %v6497_v4  ;;  %v6438_v7 = vadd.f32 %v10299_v17, %v12924_v26  ;;  %v13041_v52 = vmax.f32 %v6437_v6, 0.0 }
 0x438   : > { %v13037_v48 = vmax.f32 %v6435_v35, 0.0  ;;  %v6436_v14 = vadd.f32 %v10300_v11, %v12924_v26 }
 0x439   : > { %v13049_v44 = vmax.f32 %v6438_v7, 0.0  ;;  %v6501_v42 = vmul.f32 %v13041_v52, %v13041_v52 }
 0x43a   : > { %v6499_v29 = vmul.f32 %v13037_v48, %v13037_v48  ;;  %v13045_v23 = vmax.f32 %v6436_v14, 0.0  ;;  %v9955_v31 = vpop.f32.mrb[20].mxu0  ;;  %10003 = vmatmul.mubr.msk.f32.gmra.mrb[46].mxu1 %vm327_vm0, %v6498_v20 }
 0x43b   : > { %v10301_v63 = vadd.f32 %v9955_v31, %v12897_v9  ;;  %v6333_v10 = vpop.f32.mrb[21].mxu0 }
 0x43c   : > { %v6500_v55 = vmul.f32 %v13045_v23, %v13045_v23  ;;  %v10302_v59 = vadd.f32 %v6333_v10, %v12899_v39  ;;  %v9956_v62 = vpop.f32.mrb[22].mxu0  ;;  %10005 = vmatprep.mubr.msk.f32.mxu1 %vm327_vm0, %v6499_v29  ;;  %v6502_v39 = vmul.f32 %v13049_v44, %v13049_v44 }
 0x43d   : > { %v6441_v43 = vadd.f32 %v10301_v63, %v12924_v26  ;;  %v10303_v58 = vadd.f32 %v9956_v62, %v12901_v5  ;;  %v6336_v1 = vpop.f32.mrb[23].mxu0 }
 0x43e   : > { %v6439_v9 = vadd.f32 %v10302_v59, %v12924_v26  ;;  %v10304_v12 = vadd.f32 %v6336_v1, %v12903_v16  ;;  %10006 = vmatmul.mubr.msk.f32.gmra.mrb[48].mxu1 %vm327_vm0, %v6500_v55 }
 0x43f   : > { %10008 = vmatprep.mubr.msk.f32.mxu1 %vm327_vm0, %v6501_v42  ;;  %v6442_v51 = vadd.f32 %v10303_v58, %v12924_v26  ;;  %v13069_v28 = vmax.f32 %v6441_v43, 0.0 }
 0x440   : > { %v13065_v8 = vmax.f32 %v6439_v9, 0.0  ;;  %v6440_v18 = vadd.f32 %v10304_v12, %v12924_v26 }
 0x441   : > { %v13077_v40 = vmax.f32 %v6442_v51, 0.0  ;;  %v6505_v6 = vmul.f32 %v13069_v28, %v13069_v28 }
 0x442   : > { %v6503_v5 = vmul.f32 %v13065_v8, %v13065_v8  ;;  %v13073_v21 = vmax.f32 %v6440_v18, 0.0  ;;  %v9959_v16 = vpop.f32.mrb[24].mxu0  ;;  %10009 = vmatmul.mubr.msk.f32.gmra.mrb[50].mxu1 %vm327_vm0, %v6502_v39 }
 0x443   : > { %v10305_v57 = vadd.f32 %v9959_v16, %v12905_v47  ;;  %v6349_v36 = vpop.f32.mrb[25].mxu0 }
 0x444   : > { %v6504_v54 = vmul.f32 %v13073_v21, %v13073_v21  ;;  %v10306_v56 = vadd.f32 %v6349_v36, %v12907_v22  ;;  %v9960_v4 = vpop.f32.mrb[26].mxu0  ;;  %10011 = vmatprep.mubr.msk.f32.mxu1 %vm327_vm0, %v6503_v5  ;;  %v6506_v22 = vmul.f32 %v13077_v40, %v13077_v40 }
 0x445   : > { %v6445_v17 = vadd.f32 %v10305_v57, %v12924_v26  ;;  %v10307_v41 = vadd.f32 %v9960_v4, %v12909_v0  ;;  %v6352_v35 = vpop.f32.mrb[27].mxu0 }
 0x446   : > { %v6443_v47 = vadd.f32 %v10306_v56, %v12924_v26  ;;  %v10308_v11 = vadd.f32 %v6352_v35, %v12911_v33  ;;  %10012 = vmatmul.mubr.msk.f32.gmra.mrb[52].mxu1 %vm327_vm0, %v6504_v54  ;;  %v7132_v54 = vld [vmem:[%s13351_s4] sm:$0xff] }
 0x447   : > { %10014 = vmatprep.mubr.msk.f32.mxu1 %vm327_vm0, %v6505_v6  ;;  %v6446_v7 = vadd.f32 %v10307_v41, %v12924_v26  ;;  %v13097_v29 = vmax.f32 %v6445_v17, 0.0 }
 0x448   : > { %v13093_v20 = vmax.f32 %v6443_v47, 0.0  ;;  %v6444_v14 = vadd.f32 %v10308_v11, %v12924_v26 }
 0x449   : > { %v13105_v55 = vmax.f32 %v6446_v7, 0.0  ;;  %v6509_v43 = vmul.f32 %v13097_v29, %v13097_v29 }
 0x44a   : > { %v6507_v0 = vmul.f32 %v13093_v20, %v13093_v20  ;;  %v13101_v31 = vmax.f32 %v6444_v14, 0.0  ;;  %v9963_v33 = vpop.f32.mrb[28].mxu0  ;;  %10015 = vmatmul.mubr.msk.f32.gmra.mrb[54].mxu1 %vm327_vm0, %v6506_v22 }
 0x44b   : > { %v10309_v63 = vadd.f32 %v9963_v33, %v12913_v45  ;;  %v6365_v10 = vpop.f32.mrb[29].mxu0 }
 0x44c   : > { %v6508_v59 = vmul.f32 %v13101_v31, %v13101_v31  ;;  %v10310_v62 = vadd.f32 %v6365_v10, %v12915_v19  ;;  %v9964_v42 = vpop.f32.mrb[30].mxu0  ;;  %10017 = vmatprep.mubr.msk.f32.mxu1 %vm327_vm0, %v6507_v0  ;;  %v6510_v19 = vmul.f32 %v13105_v55, %v13105_v55 }
 0x44d   : > { %v6449_v58 = vadd.f32 %v10309_v63, %v12924_v26  ;;  %v10311_v1 = vadd.f32 %v9964_v42, %v12917_v50  ;;  %v6368_v9 = vpop.f32.mrb[31].mxu0 }
 0x44e   : > { %v6447_v45 = vadd.f32 %v10310_v62, %v12924_v26  ;;  %v10312_v12 = vadd.f32 %v6368_v9, %v12919_v13  ;;  %10018 = vmatmul.mubr.msk.f32.gmra.mrb[56].mxu1 %vm327_vm0, %v6508_v59 }
 0x44f   : > { %10020 = vmatprep.mubr.msk.f32.mxu1 %vm327_vm0, %v6509_v43  ;;  %v6450_v51 = vadd.f32 %v10311_v1, %v12924_v26  ;;  %v13125_v5 = vmax.f32 %v6449_v58, 0.0 }
 0x450   : > { %v13121_v39 = vmax.f32 %v6447_v45, 0.0  ;;  %v6448_v18 = vadd.f32 %v10312_v12, %v12924_v26 }
 0x451   : > { %v13132_v13 = vmax.f32 %v6450_v51, 0.0  ;;  %v6513_v36 = vmul.f32 %v13125_v5, %v13125_v5 }
 0x452   : > { %v6511_v50 = vmul.f32 %v13121_v39, %v13121_v39  ;;  %v13129_v16 = vmax.f32 %v6448_v18, 0.0  ;;  %10021 = vmatmul.mubr.msk.f32.gmra.mrb[58].mxu1 %vm327_vm0, %v6510_v19 }
 0x453   : > { %v6514_v26 = vmul.f32 %v13132_v13, %v13132_v13 }
 0x454   : > { %v6512_v57 = vmul.f32 %v13129_v16, %v13129_v16  ;;  %10023 = vmatprep.mubr.msk.f32.mxu1 %vm327_vm0, %v6511_v50 }
 0x456   : > { %10024 = vmatmul.mubr.msk.f32.gmra.mrb[60].mxu1 %vm327_vm0, %v6512_v57 }
 0x457   : > { %10026 = vmatprep.mubr.msk.f32.mxu1 %vm327_vm0, %v6513_v36 }
 0x45a   : > { %10027 = vmatmul.mubr.msk.f32.gmra.mrb[62].mxu1 %vm327_vm0, %v6514_v26 }
 0x45b   : > { %10061 = vmatprep.mubr.f32.mxu1 %v7132_v54 }
 0x4f1   : > { %v9983_v56 = vpop.f32.mrb[32].mxu1 }
 0x4f2   : > { %v6845_v4 = vmul.f32 2.7777778e-05, %v9983_v56  ;;  %v6685_v6 = vpop.f32.mrb[33].mxu1 }
 0x4f3   : > { %v6844_v17 = vmul.f32 2.7777778e-05, %v6685_v6 }
 0x4f4   : > { %v6877_v41 = vadd.f32 1.0, %v6845_v4 }
 0x4f5   : > { %v6876_v35 = vadd.f32 1.0, %v6844_v17  ;;  %v9986_v47 = vpop.f32.mrb[34].mxu1 }
 0x4f6   : > { %11158 = vlog2.f32 %v6877_v41  ;;  %v6847_v11 = vmul.f32 2.7777778e-05, %v9986_v47  ;;  %v6695_v22 = vpop.f32.mrb[35].mxu1 }
 0x4f7   : > { %11160 = vlog2.f32 %v6876_v35  ;;  %v6846_v7 = vmul.f32 2.7777778e-05, %v6695_v22 }
 0x4f8   : > { %v6879_v14 = vadd.f32 1.0, %v6847_v11 }
 0x4f9   : > { %v6878_v0 = vadd.f32 1.0, %v6846_v7  ;;  %v9989_v33 = vpop.f32.mrb[36].mxu1 }
 0x4fa   : > { %11162 = vlog2.f32 %v6879_v14  ;;  %v6849_v63 = vmul.f32 2.7777778e-05, %v9989_v33  ;;  %v6705_v10 = vpop.f32.mrb[37].mxu1 }
 0x4fb   : > { %11164 = vlog2.f32 %v6878_v0  ;;  %v6848_v59 = vmul.f32 2.7777778e-05, %v6705_v10 }
 0x4fc   : > { %v6881_v62 = vadd.f32 1.0, %v6849_v63 }
 0x4fd   : > { %v6880_v42 = vadd.f32 1.0, %v6848_v59  ;;  %v9992_v43 = vpop.f32.mrb[38].mxu1 }
 0x4fe   : > { %11166 = vlog2.f32 %v6881_v62  ;;  %v6851_v58 = vmul.f32 2.7777778e-05, %v9992_v43  ;;  %v6715_v1 = vpop.f32.mrb[39].mxu1 }
 0x4ff   : > { %11168 = vlog2.f32 %v6880_v42  ;;  %v6850_v9 = vmul.f32 2.7777778e-05, %v6715_v1 }
 0x500   : > { %v11159_v45 = vpop.eup %11158  ;;  %v6883_v12 = vadd.f32 1.0, %v6851_v58 }
 0x501   : > { %v11161_v19 = vpop.eup %11160  ;;  %v6911_v51 = vmul.f32 0.6931472, %v11159_v45  ;;  %v6882_v18 = vadd.f32 1.0, %v6850_v9  ;;  %v9995_v50 = vpop.f32.mrb[40].mxu1 }
 0x502   : > { %v6909_v57 = vmul.f32 0.6931472, %v11161_v19  ;;  %11170 = vlog2.f32 %v6883_v12  ;;  %v6853_v36 = vmul.f32 2.7777778e-05, %v9995_v50  ;;  %v6725_v26 = vpop.f32.mrb[41].mxu1 }
 0x503   : > { %v6973_v54 = vmul.f32 -0.75, %v6911_v51  ;;  %11172 = vlog2.f32 %v6882_v18  ;;  %v6852_v56 = vmul.f32 2.7777778e-05, %v6725_v26 }
 0x504   : > { %v11163_v4 = vpop.eup %11162  ;;  %v6972_v6 = vmul.f32 -0.75, %v6909_v57  ;;  %v6885_v17 = vadd.f32 1.0, %v6853_v36 }
 0x505   : > { %v11165_v41 = vpop.eup %11164  ;;  %v7006_v35 = vmul.f32 1.442695, %v6973_v54  ;;  %v6915_v47 = vmul.f32 0.6931472, %v11163_v4  ;;  %v6884_v11 = vadd.f32 1.0, %v6852_v56  ;;  %v9998_v22 = vpop.f32.mrb[42].mxu1 }
 0x506   : > { %v7004_v7 = vmul.f32 1.442695, %v6972_v6  ;;  %v6913_v14 = vmul.f32 0.6931472, %v11165_v41  ;;  %11174 = vlog2.f32 %v6885_v17  ;;  %v6855_v0 = vmul.f32 2.7777778e-05, %v9998_v22 }
 0x507   : > { %11176 = vpow2.f32 %v7006_v35  ;;  %v6975_v33 = vmul.f32 -0.75, %v6915_v47  ;;  %v6735_v63 = vpop.f32.mrb[43].mxu1 }
 0x508   : > { %v11167_v10 = vpop.eup %11166  ;;  %11178 = vpow2.f32 %v7004_v7  ;;  %v6974_v59 = vmul.f32 -0.75, %v6913_v14  ;;  %v6887_v62 = vadd.f32 1.0, %v6855_v0  ;;  %v6854_v42 = vmul.f32 2.7777778e-05, %v6735_v63 }
 0x509   : > { %v11169_v43 = vpop.eup %11168  ;;  %v7010_v58 = vmul.f32 1.442695, %v6975_v33  ;;  %v6919_v1 = vmul.f32 0.6931472, %v11167_v10  ;;  %11180 = vlog2.f32 %v6884_v11  ;;  %v10001_v9 = vpop.f32.mrb[44].mxu1 }
 0x50a   : > { %v7008_v45 = vmul.f32 1.442695, %v6974_v59  ;;  %v6917_v12 = vmul.f32 0.6931472, %v11169_v43  ;;  %11182 = vlog2.f32 %v6887_v62  ;;  %v6886_v19 = vadd.f32 1.0, %v6854_v42  ;;  %v6745_v51 = vpop.f32.mrb[45].mxu1 }
 0x50b   : > { %11184 = vpow2.f32 %v7010_v58  ;;  %v6977_v18 = vmul.f32 -0.75, %v6919_v1  ;;  %v6857_v50 = vmul.f32 2.7777778e-05, %v10001_v9  ;;  %v6856_v57 = vmul.f32 2.7777778e-05, %v6745_v51 }
 0x50c   : > { %v11171_v36 = vpop.eup %11170  ;;  %11186 = vpow2.f32 %v7008_v45  ;;  %v6976_v26 = vmul.f32 -0.75, %v6917_v12 }
 0x50d   : > { %v11173_v54 = vpop.eup %11172  ;;  %v7014_v56 = vmul.f32 1.442695, %v6977_v18  ;;  %v6923_v4 = vmul.f32 0.6931472, %v11171_v36  ;;  %11188 = vlog2.f32 %v6886_v19  ;;  %v6889_v6 = vadd.f32 1.0, %v6857_v50  ;;  %v10004_v17 = vpop.f32.mrb[46].mxu1 }
 0x50e   : > { %v7012_v41 = vmul.f32 1.442695, %v6976_v26  ;;  %v6921_v35 = vmul.f32 0.6931472, %v11173_v54  ;;  %v6888_v47 = vadd.f32 1.0, %v6856_v57  ;;  %v6755_v11 = vpop.f32.mrb[47].mxu1 }
 0x50f   : > { %11190 = vpow2.f32 %v7014_v56  ;;  %v6979_v22 = vmul.f32 -0.75, %v6923_v4  ;;  %v6859_v7 = vmul.f32 2.7777778e-05, %v10004_v17  ;;  %v6858_v14 = vmul.f32 2.7777778e-05, %v6755_v11 }
 0x510   : > { %v11175_v0 = vpop.eup %11174  ;;  %11192 = vpow2.f32 %v7012_v41  ;;  %v6978_v33 = vmul.f32 -0.75, %v6921_v35 }
 0x511   : > { %v11177_v63 = vpop.eup %11176  ;;  %v7018_v10 = vmul.f32 1.442695, %v6979_v22  ;;  %v6927_v59 = vmul.f32 0.6931472, %v11175_v0  ;;  %11194 = vlog2.f32 %v6889_v6  ;;  %v6891_v62 = vadd.f32 1.0, %v6859_v7  ;;  %v10007_v42 = vpop.f32.mrb[48].mxu1 }
 0x512   : > { %v11179_v43 = vpop.eup %11178  ;;  %v7069_v58 = vmul.f32 %v11177_v63, %v12936_v61  ;;  %v7016_v1 = vmul.f32 1.442695, %v6978_v33  ;;  %11196 = vlog2.f32 %v6888_v47  ;;  %v6890_v9 = vadd.f32 1.0, %v6858_v14  ;;  %v6765_v45 = vpop.f32.mrb[49].mxu1 }
 0x513   : > { %v11181_v12 = vpop.eup %11180  ;;  %v7068_v19 = vmul.f32 %v11179_v43, %v12928_v2  ;;  %11198 = vpow2.f32 %v7018_v10  ;;  %v6981_v51 = vmul.f32 -0.75, %v6927_v59  ;;  %v6861_v18 = vmul.f32 2.7777778e-05, %v10007_v42 }
 0x514   : > { %v11183_v50 = vpop.eup %11182  ;;  %v7101_v57 = vmax.f32 %v7069_v58, 0.0  ;;  %11200 = vpow2.f32 %v7016_v1  ;;  %v6925_v36 = vmul.f32 0.6931472, %v11181_v12  ;;  %v6860_v26 = vmul.f32 2.7777778e-05, %v6765_v45 }
 0x515   : > { %v11185_v54 = vpop.eup %11184  ;;  %v7100_v56 = vmax.f32 %v7068_v19, 0.0  ;;  %v7022_v4 = vmul.f32 1.442695, %v6981_v51  ;;  %v6931_v6 = vmul.f32 0.6931472, %v11183_v50  ;;  %11202 = vlog2.f32 %v6891_v62  ;;  %v10010_v61 = vpop.f32.mrb[50].mxu1 }
 0x516   : > { %v11187_v17 = vpop.eup %11186  ;;  %v7071_v41 = vmul.f32 %v11185_v54, %v12938_v30  ;;  %v6980_v35 = vmul.f32 -0.75, %v6925_v36  ;;  %11204 = vlog2.f32 %v6890_v9  ;;  %v6893_v2 = vadd.f32 1.0, %v6861_v18  ;;  %v6775_v47 = vpop.f32.mrb[51].mxu1 }
 0x517   : > { %v11189_v11 = vpop.eup %11188  ;;  %v7070_v22 = vmul.f32 %v11187_v17, %v12932_v15  ;;  %11206 = vpow2.f32 %v7022_v4  ;;  %v6983_v7 = vmul.f32 -0.75, %v6931_v6  ;;  %v6892_v14 = vadd.f32 1.0, %v6860_v26 }
 0x518   : > { %v13151_v0 = vmax.f32 %v7101_v57, %v7071_v41  ;;  %v7020_v33 = vmul.f32 1.442695, %v6980_v35  ;;  %v6929_v63 = vmul.f32 0.6931472, %v11189_v11  ;;  %11208 = vlog2.f32 %v6893_v2 }
 0x519   : > { %v11191_v10 = vpop.eup %11190  ;;  %v7116_v59 = vmax.f32 %v7100_v56, %v7070_v22  ;;  %v7026_v62 = vmul.f32 1.442695, %v6983_v7  ;;  %11210 = vlog2.f32 %v6892_v14  ;;  %v6863_v30 = vmul.f32 2.7777778e-05, %v10010_v61  ;;  %v10013_v42 = vpop.f32.mrb[52].mxu1 }
 0x51a   : > { %v11193_v43 = vpop.eup %11192  ;;  %v7073_v58 = vmul.f32 %v11191_v10, %v12961_v49  ;;  %11212 = vpow2.f32 %v7020_v33  ;;  %v6982_v1 = vmul.f32 -0.75, %v6929_v63  ;;  %v6862_v15 = vmul.f32 2.7777778e-05, %v6775_v47  ;;  %v6785_v9 = vpop.f32.mrb[53].mxu1 }
 0x51b   : > { %v11195_v45 = vpop.eup %11194  ;;  %v7072_v12 = vmul.f32 %v11193_v43, %v12953_v34  ;;  %11214 = vpow2.f32 %v7026_v62  ;;  %v6895_v19 = vadd.f32 1.0, %v6863_v30  ;;  %v6865_v51 = vmul.f32 2.7777778e-05, %v10013_v42 }
 0x51c   : > { %v11197_v18 = vpop.eup %11196  ;;  %v7103_v50 = vmax.f32 %v7071_v41, %v7073_v58  ;;  %v7024_v57 = vmul.f32 1.442695, %v6982_v1  ;;  %v6935_v36 = vmul.f32 0.6931472, %v11195_v45  ;;  %v6894_v26 = vadd.f32 1.0, %v6862_v15 }
 0x51d   : > { %v11199_v54 = vpop.eup %11198  ;;  %v7102_v56 = vmax.f32 %v7070_v22, %v7072_v12  ;;  %v6933_v4 = vmul.f32 0.6931472, %v11197_v18  ;;  %11216 = vlog2.f32 %v6895_v19  ;;  %v6897_v49 = vadd.f32 1.0, %v6865_v51  ;;  %v10016_v6 = vpop.f32.mrb[54].mxu1 }
 0x51e   : > { %v11201_v61 = vpop.eup %11200  ;;  %v7075_v17 = vmul.f32 %v11199_v54, %v12965_v24  ;;  %11218 = vpow2.f32 %v7024_v57  ;;  %v6985_v35 = vmul.f32 -0.75, %v6935_v36  ;;  %v6864_v34 = vmul.f32 2.7777778e-05, %v6785_v9  ;;  %v6795_v2 = vpop.f32.mrb[55].mxu1 }
 0x51f   : > { %v11203_v47 = vpop.eup %11202  ;;  %v13157_v11 = vmul.f32 %v11201_v61, %v12957_v27  ;;  %v6984_v41 = vmul.f32 -0.75, %v6933_v4  ;;  %11220 = vlog2.f32 %v6894_v26  ;;  %v6867_v7 = vmul.f32 2.7777778e-05, %v10016_v6 }
 0x520   : > { %v11205_v14 = vpop.eup %11204  ;;  %v13159_v22 = vmax.f32 %v7103_v50, %v7075_v17  ;;  %v7030_v33 = vmul.f32 1.442695, %v6985_v35  ;;  %v6939_v63 = vmul.f32 0.6931472, %v11203_v47  ;;  %11222 = vlog2.f32 %v6897_v49 }
 0x521   : > { %v11207_v10 = vpop.eup %11206  ;;  %v13162_v24 = vmax.f32 %v7102_v56, %v13157_v11  ;;  %v7028_v62 = vmul.f32 1.442695, %v6984_v41  ;;  %v6937_v30 = vmul.f32 0.6931472, %v11205_v14  ;;  %v6896_v42 = vadd.f32 1.0, %v6864_v34  ;;  %v10019_v43 = vpop.f32.mrb[56].mxu1 }
 0x522   : > { %v11209_v58 = vpop.eup %11208  ;;  %v7077_v27 = vmul.f32 %v11207_v10, %v12989_v53  ;;  %11224 = vpow2.f32 %v7030_v33  ;;  %v6987_v1 = vmul.f32 -0.75, %v6939_v63  ;;  %v6899_v15 = vadd.f32 1.0, %v6867_v7  ;;  %v6805_v9 = vpop.f32.mrb[57].mxu1 }
 0x523   : > { %v11211_v45 = vpop.eup %11210  ;;  %11226 = vpow2.f32 %v7028_v62  ;;  %v6986_v12 = vmul.f32 -0.75, %v6937_v30  ;;  %v6943_v19 = vmul.f32 0.6931472, %v11209_v58  ;;  %v13166_v51 = vpack.c.bf16 %v13151_v0, %v7116_v59 }
 0x524   : > { %v11213_v18 = vpop.eup %11212  ;;  %v7105_v50 = vmax.f32 %v7075_v17, %v7077_v27  ;;  %v7034_v57 = vmul.f32 1.442695, %v6987_v1  ;;  %v6941_v36 = vmul.f32 0.6931472, %v11211_v45  ;;  %11228 = vlog2.f32 %v6896_v42 }
 0x525   : > { %v11215_v26 = vpop.eup %11214  ;;  %v7076_v54 = vmul.f32 %v11213_v18, %v12981_v60  ;;  %v7032_v53 = vmul.f32 1.442695, %v6986_v12  ;;  %v6989_v56 = vmul.f32 -0.75, %v6943_v19  ;;  %11230 = vlog2.f32 %v6899_v15  ;;  %10178 = vmatprep.subr.bf16.mxu1 %v13166_v51  ;;  %v10022_v4 = vpop.f32.mrb[58].mxu1 }
 0x526   : > { %v13171_v49 = vmul.f32 %v11215_v26, %v12993_v3  ;;  %11232 = vpow2.f32 %v7034_v57  ;;  %v6988_v0 = vmul.f32 -0.75, %v6941_v36  ;;  %v6866_v59 = vmul.f32 2.7777778e-05, %v6795_v2  ;;  %10180 = vmatpush3.bf16.msra.mxu1 %v13166_v51  ;;  %v6815_v6 = vpop.f32.mrb[59].mxu1 }
 0x527   : > { %v11217_v61 = vpop.eup %11216  ;;  %v7104_v17 = vmax.f32 %v13157_v11, %v7076_v54  ;;  %11234 = vpow2.f32 %v7032_v53  ;;  %v7038_v60 = vmul.f32 1.442695, %v6989_v56  ;;  %v6869_v35 = vmul.f32 2.7777778e-05, %v10019_v43 }
 0x528   : > { %v11219_v34 = vpop.eup %11218  ;;  %v13176_v47 = vmax.f32 %v7105_v50, %v13171_v49  ;;  %v7036_v41 = vmul.f32 1.442695, %v6988_v0  ;;  %v6947_v7 = vmul.f32 0.6931472, %v11217_v61  ;;  %v6898_v3 = vadd.f32 1.0, %v6866_v59 }
 0x529   : > { %v11221_v14 = vpop.eup %11220  ;;  %v7078_v33 = vmul.f32 %v11219_v34, %v12985_v37  ;;  %11236 = vpow2.f32 %v7038_v60  ;;  %v6901_v2 = vadd.f32 1.0, %v6869_v35  ;;  %v6868_v63 = vmul.f32 2.7777778e-05, %v6805_v9  ;;  %v10025_v10 = vpop.f32.mrb[60].mxu1 }
 0x52a   : > { %v11223_v62 = vpop.eup %11222  ;;  %11238 = vpow2.f32 %v7036_v41  ;;  %v6991_v11 = vmul.f32 -0.75, %v6947_v7  ;;  %v6945_v30 = vmul.f32 0.6931472, %v11221_v14  ;;  %v6871_v42 = vmul.f32 2.7777778e-05, %v10022_v4  ;;  %v6825_v43 = vpop.f32.mrb[61].mxu1 }
 0x52b   : > { %v7120_v58 = vmax.f32 %v7104_v17, %v7078_v33  ;;  %v6951_v27 = vmul.f32 0.6931472, %v11223_v62  ;;  %11240 = vlog2.f32 %v6898_v3  ;;  %v6900_v1 = vadd.f32 1.0, %v6868_v63 }
 0x52c   : > { %v11225_v15 = vpop.eup %11224  ;;  %v7042_v45 = vmul.f32 1.442695, %v6991_v11  ;;  %v6990_v12 = vmul.f32 -0.75, %v6945_v30  ;;  %11242 = vlog2.f32 %v6901_v2  ;;  %v6903_v19 = vadd.f32 1.0, %v6871_v42 }
 0x52d   : > { %v11227_v37 = vpop.eup %11226  ;;  %v7081_v18 = vmul.f32 %v11225_v15, %v13017_v46  ;;  %v6993_v9 = vmul.f32 -0.75, %v6951_v27  ;;  %11244 = vlog2.f32 %v6900_v1  ;;  %v13182_v50 = vpack.c.bf16 %v13159_v22, %v13162_v24  ;;  %v10028_v57 = vpop.f32.mrb[62].mxu1 }
 0x52e   : > { %v11229_v36 = vpop.eup %11228  ;;  %v7080_v26 = vmul.f32 %v11227_v37, %v13009_v25  ;;  %11246 = vpow2.f32 %v7042_v45  ;;  %v7040_v54 = vmul.f32 1.442695, %v6990_v12  ;;  %v6870_v53 = vmul.f32 2.7777778e-05, %v6815_v6  ;;  %v6835_v56 = vpop.f32.mrb[63].mxu1 }
 0x52f   : > { %v11231_v4 = vpop.eup %11230  ;;  %v7107_v0 = vmax.f32 %v13171_v49, %v7081_v18  ;;  %v7046_v59 = vmul.f32 1.442695, %v6993_v9  ;;  %v6949_v61 = vmul.f32 0.6931472, %v11229_v36  ;;  %11248 = vlog2.f32 %v6903_v19  ;;  %10182 = vmatprep.subr.bf16.mxu1 %v13182_v50 }
 0x530   : > { %v11233_v46 = vpop.eup %11232  ;;  %v7106_v17 = vmax.f32 %v7078_v33, %v7080_v26  ;;  %11250 = vpow2.f32 %v7040_v54  ;;  %v6955_v22 = vmul.f32 0.6931472, %v11231_v4  ;;  %v6902_v24 = vadd.f32 1.0, %v6870_v53  ;;  %10184 = vmatpush3.bf16.msra.mxu1 %v13182_v50 }
 0x531   : > { %v11235_v25 = vpop.eup %11234  ;;  %v7083_v60 = vmul.f32 %v11233_v46, %v13021_v38  ;;  %11252 = vpow2.f32 %v7046_v59  ;;  %v6992_v6 = vmul.f32 -0.75, %v6949_v61  ;;  %v6873_v35 = vmul.f32 2.7777778e-05, %v10025_v10 }
 0x532   : > { %v7082_v49 = vmul.f32 %v11235_v25, %v13013_v32  ;;  %v6995_v34 = vmul.f32 -0.75, %v6955_v22  ;;  %11254 = vlog2.f32 %v6902_v24  ;;  %v6872_v41 = vmul.f32 2.7777778e-05, %v6825_v43 }
 0x533   : > { %v11237_v7 = vpop.eup %11236  ;;  %v7123_v3 = vmax.f32 %v7107_v0, %v7083_v60  ;;  %v7044_v14 = vmul.f32 1.442695, %v6992_v6  ;;  %v6905_v33 = vadd.f32 1.0, %v6873_v35  ;;  %v6875_v2 = vmul.f32 2.7777778e-05, %v10028_v57 }
 0x534   : > { %v11239_v63 = vpop.eup %11238  ;;  %v7122_v62 = vmax.f32 %v7106_v17, %v7082_v49  ;;  %v7085_v11 = vmul.f32 %v11237_v7, %v13045_v23  ;;  %v7050_v30 = vmul.f32 1.442695, %v6995_v34  ;;  %v6904_v42 = vadd.f32 1.0, %v6872_v41 }
 0x535   : > { %v11241_v38 = vpop.eup %11240  ;;  %v7084_v27 = vmul.f32 %v11239_v63, %v13037_v48  ;;  %11256 = vpow2.f32 %v7044_v14  ;;  %v6907_v10 = vadd.f32 1.0, %v6875_v2  ;;  %v13193_v32 = vpack.c.bf16 %v13176_v47, %v7120_v58 }
 0x536   : > { %v11243_v43 = vpop.eup %11242  ;;  %v7109_v1 = vmax.f32 %v7083_v60, %v7085_v11  ;;  %11258 = vpow2.f32 %v7050_v30  ;;  %v6953_v15 = vmul.f32 0.6931472, %v11241_v38  ;;  %v6874_v45 = vmul.f32 2.7777778e-05, %v6835_v56 }
 0x537   : > { %v11245_v12 = vpop.eup %11244  ;;  %v7108_v19 = vmax.f32 %v7082_v49, %v7084_v27  ;;  %v6959_v37 = vmul.f32 0.6931472, %v11243_v43  ;;  %11260 = vlog2.f32 %v6905_v33  ;;  %10186 = vmatprep.subr.bf16.mxu1 %v13193_v32  ;;  %v13196_v23 = vpack.c.bf16 %v7123_v3, %v7122_v62 }
 0x538   : > { %v11247_v18 = vpop.eup %11246  ;;  %v6994_v48 = vmul.f32 -0.75, %v6953_v15  ;;  %v6957_v9 = vmul.f32 0.6931472, %v11245_v12  ;;  %11262 = vlog2.f32 %v6904_v42  ;;  %v6906_v57 = vadd.f32 1.0, %v6874_v45  ;;  %10188 = vmatpush3.bf16.msra.mxu1 %v13193_v32 }
 0x539   : > { %v11249_v47 = vpop.eup %11248  ;;  %v7087_v58 = vmul.f32 %v11247_v18, %v13049_v44  ;;  %v6997_v36 = vmul.f32 -0.75, %v6959_v37  ;;  %11264 = vlog2.f32 %v6907_v10  ;;  %10190 = vmatprep.subr.bf16.mxu1 %v13196_v23 }
 0x53a   : > { %v11251_v26 = vpop.eup %11250  ;;  %v7048_v54 = vmul.f32 1.442695, %v6994_v48  ;;  %v6996_v53 = vmul.f32 -0.75, %v6957_v9  ;;  %v6963_v56 = vmul.f32 0.6931472, %v11249_v47  ;;  %11266 = vlog2.f32 %v6906_v57 }
 0x53b   : > { %v11253_v4 = vpop.eup %11252  ;;  %v7125_v0 = vmax.f32 %v7109_v1, %v7087_v58  ;;  %v7086_v59 = vmul.f32 %v11251_v26, %v13041_v52  ;;  %v7054_v61 = vmul.f32 1.442695, %v6997_v36 }
 0x53c   : > { %v11255_v46 = vpop.eup %11254  ;;  %v7089_v17 = vmul.f32 %v11253_v4, %v13073_v21  ;;  %11268 = vpow2.f32 %v7048_v54  ;;  %v7052_v22 = vmul.f32 1.442695, %v6996_v53  ;;  %v6999_v44 = vmul.f32 -0.75, %v6963_v56  ;;  %10192 = vmatpush3.bf16.msra.mxu1 %v13196_v23 }
 0x53d   : > { %v7124_v24 = vmax.f32 %v7108_v19, %v7086_v59  ;;  %11270 = vpow2.f32 %v7054_v61  ;;  %v6961_v25 = vmul.f32 0.6931472, %v11255_v46 }
 0x53e   : > { %v7111_v60 = vmax.f32 %v7087_v58, %v7089_v17  ;;  %11272 = vpow2.f32 %v7052_v22  ;;  %v7058_v6 = vmul.f32 1.442695, %v6999_v44 }
 0x53f   : > { %v11257_v35 = vpop.eup %11256  ;;  %v6998_v49 = vmul.f32 -0.75, %v6961_v25  ;;  %v13204_v34 = vpack.c.bf16 %v7125_v0, %v7124_v24 }
 0x540   : > { %v11259_v52 = vpop.eup %11258  ;;  %v7088_v41 = vmul.f32 %v11257_v35, %v13065_v8  ;;  %11274 = vpow2.f32 %v7058_v6  ;;  %v7137_v6 = vld [vmem:[%s13351_s4 + $0x28] sm:$0xff]  ;;  %v7138_v35 = vld [vmem:[%s13351_s4 + $0x30] sm:$0xff] }
 0x541   : > { %v11261_v21 = vpop.eup %11260  ;;  %v7091_v7 = vmul.f32 %v11259_v52, %v13077_v40  ;;  %v7056_v3 = vmul.f32 1.442695, %v6998_v49  ;;  %10194 = vmatprep.subr.bf16.mxu1 %v13204_v34  ;;  %v7139_v49 = vld [vmem:[%s13351_s4 + $0x38] sm:$0xff]  ;;  %v8318_v52 = vld [vmem:[%s13351_s4 + $0x40] sm:$0xff] }
 0x542   : > { %v11263_v14 = vpop.eup %11262  ;;  %v7110_v33 = vmax.f32 %v7086_v59, %v7088_v41  ;;  %v6967_v2 = vmul.f32 0.6931472, %v11261_v21  ;;  %10196 = vmatpush3.bf16.msra.mxu1 %v13204_v34  ;;  %v8319_v41 = vld [vmem:[%s13351_s4 + $0x48] sm:$0xff]  ;;  %v8320_v21 = vld [vmem:[%s13351_s4 + $0x50] sm:$0xff] }
 0x543   : > { %v11265_v63 = vpop.eup %11264  ;;  %v7127_v62 = vmax.f32 %v7111_v60, %v7091_v7  ;;  %11276 = vpow2.f32 %v7056_v3  ;;  %v6965_v11 = vmul.f32 0.6931472, %v11263_v14  ;;  %v8322_v3 = vld [vmem:[%s13351_s4 + $0x60] sm:$0xff]  ;;  %v8323_v14 = vld [vmem:[%s13351_s4 + $0x68] sm:$0xff] }
 0x544   : > { %v11267_v30 = vpop.eup %11266  ;;  %v7001_v42 = vmul.f32 -0.75, %v6967_v2  ;;  %v6971_v38 = vmul.f32 0.6931472, %v11265_v63  ;;  %v8330_v2 = vld [vmem:[%s13351_s4 + $0xa0] sm:$0xff]  ;;  %v8331_v63 = vld [vmem:[%s13351_s4 + $0xa8] sm:$0xff] }
 0x545   : > { %v7000_v8 = vmul.f32 -0.75, %v6965_v11  ;;  %v6969_v27 = vmul.f32 0.6931472, %v11267_v30  ;;  %v8333_v11 = vld [vmem:[%s13351_s4 + $0xb8] sm:$0xff] }
 0x546   : > { %v11269_v10 = vpop.eup %11268  ;;  %v7062_v43 = vmul.f32 1.442695, %v7001_v42  ;;  %v7003_v40 = vmul.f32 -0.75, %v6971_v38 }
 0x547   : > { %v11271_v1 = vpop.eup %11270  ;;  %v7090_v15 = vmul.f32 %v11269_v10, %v13069_v28  ;;  %v7060_v45 = vmul.f32 1.442695, %v7000_v8  ;;  %v7002_v12 = vmul.f32 -0.75, %v6969_v27 }
 0x548   : > { %v11273_v19 = vpop.eup %11272  ;;  %v7093_v37 = vmul.f32 %v11271_v1, %v13101_v31  ;;  %11278 = vpow2.f32 %v7062_v43  ;;  %v7066_v18 = vmul.f32 1.442695, %v7003_v40 }
 0x549   : > { %v7126_v48 = vmax.f32 %v7110_v33, %v7090_v15  ;;  %v7092_v9 = vmul.f32 %v11273_v19, %v13093_v20  ;;  %11280 = vpow2.f32 %v7060_v45  ;;  %v7064_v57 = vmul.f32 1.442695, %v7002_v12  ;;  %v8325_v33 = vld [vmem:[%s13351_s4 + $0x78] sm:$0xff] }
 0x54a   : > { %v11275_v47 = vpop.eup %11274  ;;  %v7113_v58 = vmax.f32 %v7091_v7, %v7093_v37  ;;  %11282 = vpow2.f32 %v7066_v18  ;;  %v8321_v7 = vld [vmem:[%s13351_s4 + $0x58] sm:$0xff] }
 0x54b   : > { %v7112_v36 = vmax.f32 %v7090_v15, %v7092_v9  ;;  %v7095_v26 = vmul.f32 %v11275_v47, %v13105_v55  ;;  %11284 = vpow2.f32 %v7064_v57  ;;  %v13214_v28 = vpack.c.bf16 %v7127_v62, %v7126_v48  ;;  %v8332_v62 = vld [vmem:[%s13351_s4 + $0xb0] sm:$0xff] }
 0x54d   : > { %v11277_v54 = vpop.eup %11276  ;;  %v7129_v53 = vmax.f32 %v7113_v58, %v7095_v26  ;;  %10198 = vmatprep.subr.bf16.mxu1 %v13214_v28 }
 0x54e   : > { %v7094_v31 = vmul.f32 %v11277_v54, %v13097_v29  ;;  %10200 = vmatpush3.bf16.msra.mxu1 %v13214_v28 }
 0x550   : > { %v7128_v20 = vmax.f32 %v7112_v36, %v7094_v31 }
 0x552   : > { %v11279_v56 = vpop.eup %11278  ;;  %v13219_v4 = vpack.c.bf16 %v7129_v53, %v7128_v20 }
 0x553   : > { %v11281_v0 = vpop.eup %11280  ;;  %v7097_v59 = vmul.f32 %v11279_v56, %v13129_v16  ;;  %v7134_v16 = vld [vmem:[%s13351_s4 + $0x10] sm:$0xff] }
 0x554   : > { %v11283_v61 = vpop.eup %11282  ;;  %v7096_v55 = vmul.f32 %v11281_v0, %v13121_v39  ;;  %10202 = vmatprep.subr.bf16.mxu1 %v13219_v4  ;;  %v7133_v39 = vld [vmem:[%s13351_s4 + $0x8] sm:$0xff] }
 0x555   : > { %v11285_v46 = vpop.eup %11284  ;;  %v7115_v17 = vmax.f32 %v7095_v26, %v7097_v59  ;;  %v7099_v22 = vmul.f32 %v11283_v61, %v13132_v13  ;;  %10204 = vmatpush3.bf16.msra.mxu1 %v13219_v4  ;;  %v7136_v13 = vld [vmem:[%s13351_s4 + $0x20] sm:$0xff] }
 0x556   : > { %v7114_v29 = vmax.f32 %v7094_v31, %v7096_v55  ;;  %v7098_v44 = vmul.f32 %v11285_v46, %v13125_v5  ;;  %v7135_v5 = vld [vmem:[%s13351_s4 + $0x18] sm:$0xff] }
 0x557   : > { %v7131_v24 = vmax.f32 %v7115_v17, %v7099_v22 }
 0x558   : > { %v7130_v25 = vmax.f32 %v7114_v29, %v7098_v44 }
 0x55a   : > { %v13227_v60 = vpack.c.bf16 %v7131_v24, %v7130_v25 }
 0x55c   : > { %10206 = vmatprep.subr.bf16.mxu1 %v13227_v60 }
 0x55d   : > { %10208 = vmatpush3.bf16.msra.mxu1 %v13227_v60 }
 0x55e   : > { %10210 = vmatprep.subr.bf16.mxu1 %v13166_v51 }
 0x560   : > { %10062 = vmatmul.mubr.f32.vlgmr.msra.gmra.mrb[64].mxu1 %v7133_v39 }
 0x561   : > { %10212 = vmatpush3.bf16.msra.mxu1 %v13166_v51  ;;  %10064 = vmatprep.mubr.f32.mxu1 %v7134_v16 }
 0x562   : > { %10214 = vmatprep.subr.bf16.mxu1 %v13182_v50 }
 0x564   : > { %10065 = vmatmul.mubr.f32.gmra.mrb[66].mxu1 %v7135_v5 }
 0x565   : > { %10216 = vmatpush3.bf16.msra.mxu1 %v13182_v50  ;;  %10067 = vmatprep.mubr.f32.mxu1 %v7136_v13 }
 0x566   : > { %10218 = vmatprep.subr.bf16.mxu1 %v13193_v32 }
 0x568   : > { %10068 = vmatmul.mubr.f32.gmra.mrb[68].mxu1 %v7137_v6 }
 0x569   : > { %10220 = vmatpush3.bf16.msra.mxu1 %v13193_v32  ;;  %10070 = vmatprep.mubr.f32.mxu1 %v7138_v35 }
 0x56a   : > { %10222 = vmatprep.subr.bf16.mxu1 %v13196_v23 }
 0x56c   : > { %10071 = vmatmul.mubr.f32.gmra.mrb[70].mxu1 %v7139_v49 }
 0x56d   : > { %10224 = vmatpush3.bf16.msra.mxu1 %v13196_v23  ;;  %10105 = vmatprep.mubr.f32.mxu1 %v8318_v52 }
 0x56e   : > { %10226 = vmatprep.subr.bf16.mxu1 %v13204_v34 }
 0x571   : > { %10228 = vmatpush3.bf16.msra.mxu1 %v13204_v34 }
 0x572   : > { %10230 = vmatprep.subr.bf16.mxu1 %v13214_v28 }
 0x575   : > { %10232 = vmatpush3.bf16.msra.mxu1 %v13214_v28 }
 0x576   : > { %10234 = vmatprep.subr.bf16.mxu1 %v13219_v4 }
 0x579   : > { %10236 = vmatpush3.bf16.msra.mxu1 %v13219_v4 }
 0x57a   : > { %10238 = vmatprep.subr.bf16.mxu1 %v13227_v60 }
 0x57d   : > { %10240 = vmatpush3.bf16.msra.mxu1 %v13227_v60 }
 0x57e   : > { %10242 = vmatprep.subr.bf16.mxu1 %v13166_v51 }
 0x580   : > { %10106 = vmatmul.mubr.f32.vlgmr.msra.gmra.mrb[72].mxu1 %v8319_v41 }
 0x581   : > { %10244 = vmatpush3.bf16.msra.mxu1 %v13166_v51  ;;  %10108 = vmatprep.mubr.f32.mxu1 %v8320_v21  ;;  %v8324_v51 = vld [vmem:[%s13351_s4 + $0x70] sm:$0xff] }
 0x582   : > { %10246 = vmatprep.subr.bf16.mxu1 %v13182_v50 }
 0x584   : > { %10109 = vmatmul.mubr.f32.gmra.mrb[74].mxu1 %v8321_v7 }
 0x585   : > { %10248 = vmatpush3.bf16.msra.mxu1 %v13182_v50  ;;  %10111 = vmatprep.mubr.f32.mxu1 %v8322_v3  ;;  %v8326_v50 = vld [vmem:[%s13351_s4 + $0x80] sm:$0xff] }
 0x586   : > { %10250 = vmatprep.subr.bf16.mxu1 %v13193_v32 }
 0x588   : > { %10112 = vmatmul.mubr.f32.gmra.mrb[76].mxu1 %v8323_v14 }
 0x589   : > { %10252 = vmatpush3.bf16.msra.mxu1 %v13193_v32  ;;  %10114 = vmatprep.mubr.f32.mxu1 %v8324_v51  ;;  %v8327_v32 = vld [vmem:[%s13351_s4 + $0x88] sm:$0xff] }
 0x58a   : > { %10254 = vmatprep.subr.bf16.mxu1 %v13196_v23 }
 0x58c   : > { %10115 = vmatmul.mubr.f32.gmra.mrb[78].mxu1 %v8325_v33 }
 0x58d   : > { %10256 = vmatpush3.bf16.msra.mxu1 %v13196_v23  ;;  %10149 = vmatprep.mubr.f32.mxu1 %v8326_v50  ;;  %v8328_v23 = vld [vmem:[%s13351_s4 + $0x90] sm:$0xff] }
 0x58e   : > { %10258 = vmatprep.subr.bf16.mxu1 %v13204_v34 }
 0x591   : > { %10260 = vmatpush3.bf16.msra.mxu1 %v13204_v34  ;;  %v8329_v34 = vld [vmem:[%s13351_s4 + $0x98] sm:$0xff] }
 0x592   : > { %10262 = vmatprep.subr.bf16.mxu1 %v13214_v28 }
 0x595   : > { %10264 = vmatpush3.bf16.msra.mxu1 %v13214_v28 }
 0x596   : > { %10266 = vmatprep.subr.bf16.mxu1 %v13219_v4 }
 0x599   : > { %10268 = vmatpush3.bf16.msra.mxu1 %v13219_v4 }
 0x59a   : > { %10270 = vmatprep.subr.bf16.mxu1 %v13227_v60 }
 0x59d   : > { %10272 = vmatpush3.bf16.msra.mxu1 %v13227_v60 }
 0x5a0   : > { %10150 = vmatmul.mubr.f32.vlgmr.msra.gmra.mrb[80].mxu1 %v8327_v32 }
 0x5a1   : > { %10152 = vmatprep.mubr.f32.mxu1 %v8328_v23 }
 0x5a4   : > { %10153 = vmatmul.mubr.f32.gmra.mrb[82].mxu1 %v8329_v34 }
 0x5a5   : > { %10155 = vmatprep.mubr.f32.mxu1 %v8330_v2 }
 0x5a8   : > { %10156 = vmatmul.mubr.f32.gmra.mrb[84].mxu1 %v8331_v63 }
 0x5a9   : > { %10158 = vmatprep.mubr.f32.mxu1 %v8332_v62 }
 0x5ac   : > { %10159 = vmatmul.mubr.f32.gmra.mrb[86].mxu1 %v8333_v11 }
 0x633   : > { %v10063_v30 = vpop.f32.mrb[64].mxu1 }
 0x634   : > { %v7206_v42 = vpop.f32.mrb[65].mxu1 }
 0x637   : > { %v10066_v38 = vpop.f32.mrb[66].mxu1 }
 0x638   : > { %v7216_v8 = vpop.f32.mrb[67].mxu1 }
 0x63b   : > { %v10069_v27 = vpop.f32.mrb[68].mxu1 }
 0x63c   : > { %v7226_v10 = vpop.f32.mrb[69].mxu1 }
 0x63f   : > { %v10072_v43 = vpop.f32.mrb[70].mxu1 }
 0x640   : > { %v7236_v40 = vpop.f32.mrb[71].mxu1 }
 0x653   : > { %v10107_v1 = vpop.f32.mrb[72].mxu1 }
 0x654   : > { %v7360_v15 = vmax.f32 %v10063_v30, %v10107_v1  ;;  %v7320_v45 = vpop.f32.mrb[73].mxu1 }
 0x655   : > { %v7359_v12 = vmax.f32 %v7206_v42, %v7320_v45 }
 0x657   : > { %v10110_v19 = vpop.f32.mrb[74].mxu1 }
 0x658   : > { %v7362_v37 = vmax.f32 %v10066_v38, %v10110_v19  ;;  %v7330_v18 = vpop.f32.mrb[75].mxu1 }
 0x659   : > { %v7361_v48 = vmax.f32 %v7216_v8, %v7330_v18 }
 0x65b   : > { %v10113_v9 = vpop.f32.mrb[76].mxu1 }
 0x65c   : > { %v7364_v57 = vmax.f32 %v10069_v27, %v10113_v9  ;;  %v7340_v47 = vpop.f32.mrb[77].mxu1 }
 0x65d   : > { %v7363_v58 = vmax.f32 %v7226_v10, %v7340_v47 }
 0x65f   : > { %v10116_v36 = vpop.f32.mrb[78].mxu1 }
 0x660   : > { %v7366_v26 = vmax.f32 %v10072_v43, %v10116_v36  ;;  %v7350_v28 = vpop.f32.mrb[79].mxu1 }
 0x661   : > { %v7365_v54 = vmax.f32 %v7236_v40, %v7350_v28 }
 0x673   : > { %v10151_v53 = vpop.f32.mrb[80].mxu1 }
 0x674   : > { %v7482_v31 = vmax.f32 %v7360_v15, %v10151_v53  ;;  %v7442_v20 = vpop.f32.mrb[81].mxu1 }
 0x675   : > { %v7481_v56 = vmax.f32 %v7359_v12, %v7442_v20 }
 0x676   : > { %v8346_v4 = vpack.c.bf16 %v7482_v31, %v7482_v31 }
 0x677   : > { %v8345_v0 = vpack.c.bf16 %v7481_v56, %v7481_v56  ;;  %v10154_v59 = vpop.f32.mrb[82].mxu1 }
 0x678   : > { %7523 = vst.msk [vmem:[%s224_s8 + $0x4] sm:$0xf] %vm7521_vm1, %v8346_v4  ;;  %v7484_v61 = vmax.f32 %v7362_v37, %v10154_v59  ;;  %v7452_v55 = vpop.f32.mrb[83].mxu1 }
 0x679   : > { %7522 = vst.msk [vmem:[%s224_s8] sm:$0xf] %vm7521_vm1, %v8345_v0  ;;  %v7483_v46 = vmax.f32 %v7361_v48, %v7452_v55 }
 0x67a   : > { %v8348_v17 = vpack.c.bf16 %v7484_v61, %v7484_v61 }
 0x67b   : > { %v8347_v22 = vpack.c.bf16 %v7483_v46, %v7483_v46  ;;  %v10157_v29 = vpop.f32.mrb[84].mxu1 }
 0x67c   : > { %7525 = vst.msk [vmem:[%s224_s8 + $0xc] sm:$0xf] %vm7521_vm1, %v8348_v17  ;;  %v7486_v44 = vmax.f32 %v7364_v57, %v10157_v29  ;;  %v7462_v24 = vpop.f32.mrb[85].mxu1 }
 0x67d   : > { %7524 = vst.msk [vmem:[%s224_s8 + $0x8] sm:$0xf] %vm7521_vm1, %v8347_v22  ;;  %v7485_v25 = vmax.f32 %v7363_v58, %v7462_v24 }
 0x67e   : > { %v8350_v60 = vpack.c.bf16 %v7486_v44, %v7486_v44 }
 0x67f   : > { %v8349_v39 = vpack.c.bf16 %v7485_v25, %v7485_v25  ;;  %v10160_v16 = vpop.f32.mrb[86].mxu1 }
 0x680   : > { %7527 = vst.msk [vmem:[%s224_s8 + $0x14] sm:$0xf] %vm7521_vm1, %v8350_v60  ;;  %v7488_v5 = vmax.f32 %v7366_v26, %v10160_v16  ;;  %v7472_v13 = vpop.f32.mrb[87].mxu1 }
 0x681   : > { %7526 = vst.msk [vmem:[%s224_s8 + $0x10] sm:$0xf] %vm7521_vm1, %v8349_v39  ;;  %v7487_v6 = vmax.f32 %v7365_v54, %v7472_v13 }
 0x682   : > { %v8352_v35 = vpack.c.bf16 %v7488_v5, %v7488_v5 }
 0x683   : > { %v8351_v49 = vpack.c.bf16 %v7487_v6, %v7487_v6 }
 0x684   : > { %7529 = vst.msk [vmem:[%s224_s8 + $0x1c] sm:$0xf] %vm7521_vm1, %v8352_v35 }
 0x685   : > { %7528 = vst.msk [vmem:[%s224_s8 + $0x18] sm:$0xf] %vm7521_vm1, %v8351_v49 }
 0x686 PF: > { %s15_s18 = sadd.s32 1, %s11296_s18  }
 0x687   : > { %p12_p4 = scmp.ge.s32.totalorder %s15_s18, 4  }
 0x689   :  { %14 = sbr.rel (!%p12_p4) target bundleno = 1 (0x1), region = 96 }

// kernel: alexnet_forward.5
= control target key start
LH: loop header
LB: loop body
LE: loop exit
PB: predicated region body
PF: predicated region fallthrough
CT: control target
= control target key end

     0   :  { %v1058_v38 = vlaneseq  ;;  %v9639_v39 = vmov 1966171168   ;;  %s12486_s0 = inlined_call_operand.vmem [shape: bf16[2,4096], index: 0, kind: input, shape index: {}]   ;;  %s12487_s1 = inlined_call_operand.vmem [shape: bf16[4096,384], index: 1, kind: input, shape index: {}]   ;;  %s12488_s2 = inlined_call_operand.vmem [shape: f32[1,384], index: 2, kind: input, shape index: {}]   ;;  %s12489_s3 = inlined_call_operand.vmem [shape: bf16[384,192], index: 3, kind: input, shape index: {}]   ;;  %s12490_s4 = inlined_call_operand.vmem [shape: f32[1,192], index: 4, kind: input, shape index: {}]   ;;  %s12491_s5 = inlined_call_operand.vmem [shape: bf16[192,128], index: 5, kind: input, shape index: {}]   ;;  %s12492_s6 = inlined_call_operand.vmem [shape: f32[1,128], index: 6, kind: input, shape index: {}]   ;;  %s12493_s7 = inlined_call_operand.hbm [shape: f32[2,128], index: 7, kind: output, shape index: {}]  }
   0x1   :  { %v8502_v0 = vld [vmem:[%s12487_s1 + $0x4] ss:$12 sps:$4 sm:$0xff]   ;;  %v8506_v2 = vld [vmem:[%s12487_s1] ss:$12 sps:$4 sm:$0xff]   ;;  %v8508_v4 = vld [vmem:[%s12487_s1 + $0x1c] ss:$12 sps:$4 sm:$0xff]   ;;  %v1079_v40 = vunpack.c.l.s4 %v9639_v39 }
   0x2   :  { %v8504_v1 = vld [vmem:[%s12487_s1 + $0x484] ss:$12 sps:$4 sm:$0xff]   ;;  %5401 = vmatprep.subr.bf16.mxu1 %v8502_v0  ;;  %v8507_v3 = vld [vmem:[%s12487_s1 + $0x480] ss:$12 sps:$4 sm:$0xff]   ;;  %v8510_v5 = vld [vmem:[%s12487_s1 + $0x49c] ss:$12 sps:$4 sm:$0xff]  }
   0x3   :  { %5524 = vmatprep.subr.bf16.mxu0 %v8504_v1  ;;  %5402 = vmatpush1.bf16.msra.mxu1 %v8506_v2  ;;  %v8512_v6 = vld [vmem:[%s12487_s1 + $0x18] ss:$12 sps:$4 sm:$0xff]   ;;  %v8514_v8 = vld [vmem:[%s12487_s1 + $0x34] ss:$12 sps:$4 sm:$0xff]   ;;  %v8518_v10 = vld [vmem:[%s12487_s1 + $0x30] ss:$12 sps:$4 sm:$0xff]   ;;  %v1080_v46 = vunpack.c.0.s8 %v1079_v40 }
   0x4   :  { %5525 = vmatpush1.bf16.msra.mxu0 %v8507_v3  ;;  %5403 = vmatprep.subr.bf16.mxu1 %v8508_v4  ;;  %v8513_v7 = vld [vmem:[%s12487_s1 + $0x498] ss:$12 sps:$4 sm:$0xff]   ;;  %v8516_v9 = vld [vmem:[%s12487_s1 + $0x4b4] ss:$12 sps:$4 sm:$0xff]   ;;  %v8519_v11 = vld [vmem:[%s12487_s1 + $0x4b0] ss:$12 sps:$4 sm:$0xff]  }
   0x5   :  { %5526 = vmatprep.subr.bf16.mxu0 %v8510_v5  ;;  %v8520_v12 = vld [vmem:[%s12487_s1 + $0x4c] ss:$12 sps:$4 sm:$0xff]   ;;  %v8524_v14 = vld [vmem:[%s12487_s1 + $0x48] ss:$12 sps:$4 sm:$0xff]   ;;  %v8526_v16 = vld [vmem:[%s12487_s1 + $0x64] ss:$12 sps:$4 sm:$0xff]  }
   0x6   :  { %v8522_v13 = vld [vmem:[%s12487_s1 + $0x4cc] ss:$12 sps:$4 sm:$0xff]   ;;  %v8525_v15 = vld [vmem:[%s12487_s1 + $0x4c8] ss:$12 sps:$4 sm:$0xff]   ;;  %v8528_v17 = vld [vmem:[%s12487_s1 + $0x4e4] ss:$12 sps:$4 sm:$0xff]  }
   0x7   :  { %5404 = vmatpush1.bf16.msra.mxu1 %v8512_v6  ;;  %v8530_v18 = vld [vmem:[%s12487_s1 + $0x60] ss:$12 sps:$4 sm:$0xff]   ;;  %v8532_v20 = vld [vmem:[%s12487_s1 + $0x7c] ss:$12 sps:$4 sm:$0xff]   ;;  %v8536_v22 = vld [vmem:[%s12487_s1 + $0x78] ss:$12 sps:$4 sm:$0xff]  }
   0x8   :  { %5527 = vmatpush1.bf16.msra.mxu0 %v8513_v7  ;;  %5405 = vmatprep.subr.bf16.mxu1 %v8514_v8  ;;  %v8531_v19 = vld [vmem:[%s12487_s1 + $0x4e0] ss:$12 sps:$4 sm:$0xff]   ;;  %v8534_v21 = vld [vmem:[%s12487_s1 + $0x4fc] ss:$12 sps:$4 sm:$0xff]   ;;  %v8537_v23 = vld [vmem:[%s12487_s1 + $0x4f8] ss:$12 sps:$4 sm:$0xff]  }
   0x9   :  { %5528 = vmatprep.subr.bf16.mxu0 %v8516_v9  ;;  %v8538_v24 = vld [vmem:[%s12487_s1 + $0x94] ss:$12 sps:$4 sm:$0xff]   ;;  %v8542_v26 = vld [vmem:[%s12487_s1 + $0x90] ss:$12 sps:$4 sm:$0xff]   ;;  %v8544_v28 = vld [vmem:[%s12487_s1 + $0xac] ss:$12 sps:$4 sm:$0xff]  }
   0xa   :  { %v8540_v25 = vld [vmem:[%s12487_s1 + $0x514] ss:$12 sps:$4 sm:$0xff]   ;;  %v8543_v27 = vld [vmem:[%s12487_s1 + $0x510] ss:$12 sps:$4 sm:$0xff]   ;;  %v8546_v29 = vld [vmem:[%s12487_s1 + $0x52c] ss:$12 sps:$4 sm:$0xff]  }
   0xb   :  { %5406 = vmatpush1.bf16.msra.mxu1 %v8518_v10  ;;  %v8548_v30 = vld [vmem:[%s12487_s1 + $0xa8] ss:$12 sps:$4 sm:$0xff]   ;;  %v8550_v32 = vld [vmem:[%s12487_s1 + $0xc4] ss:$12 sps:$4 sm:$0xff]   ;;  %v8554_v34 = vld [vmem:[%s12487_s1 + $0xc0] ss:$12 sps:$4 sm:$0xff]  }
   0xc   :  { %5529 = vmatpush1.bf16.msra.mxu0 %v8519_v11  ;;  %5407 = vmatprep.subr.bf16.mxu1 %v8520_v12  ;;  %v8549_v31 = vld [vmem:[%s12487_s1 + $0x528] ss:$12 sps:$4 sm:$0xff]   ;;  %v8552_v33 = vld [vmem:[%s12487_s1 + $0x544] ss:$12 sps:$4 sm:$0xff]   ;;  %v8555_v35 = vld [vmem:[%s12487_s1 + $0x540] ss:$12 sps:$4 sm:$0xff]  }
   0xd   :  { %5530 = vmatprep.subr.bf16.mxu0 %v8522_v13  ;;  %v8556_v36 = vld [vmem:[%s12487_s1 + $0xdc] ss:$12 sps:$4 sm:$0xff]   ;;  %v8560_v41 = vld [vmem:[%s12487_s1 + $0xd8] ss:$12 sps:$4 sm:$0xff]   ;;  %v8562_v43 = vld [vmem:[%s12487_s1 + $0xf4] ss:$12 sps:$4 sm:$0xff]  }
   0xe   :  { %v8558_v37 = vld [vmem:[%s12487_s1 + $0x55c] ss:$12 sps:$4 sm:$0xff]   ;;  %v8561_v42 = vld [vmem:[%s12487_s1 + $0x558] ss:$12 sps:$4 sm:$0xff]   ;;  %v8564_v44 = vld [vmem:[%s12487_s1 + $0x574] ss:$12 sps:$4 sm:$0xff]  }
   0xf   :  { %5408 = vmatpush1.bf16.msra.mxu1 %v8524_v14  ;;  %v9808_v45 = vshrl.u32 %v1058_v38, 7  ;;  %v8566_v47 = vld [vmem:[%s12487_s1 + $0xf0] ss:$12 sps:$4 sm:$0xff]   ;;  %v8568_v49 = vld [vmem:[%s12487_s1 + $0x10c] ss:$12 sps:$4 sm:$0xff]   ;;  %v28_v52 = vld [vmem:[%s12486_s0] sm:$0xff] }
  0x10   :  { %5531 = vmatpush1.bf16.msra.mxu0 %v8525_v15  ;;  %5409 = vmatprep.subr.bf16.mxu1 %v8526_v16  ;;  %v8567_v48 = vld [vmem:[%s12487_s1 + $0x570] ss:$12 sps:$4 sm:$0xff]   ;;  %v8570_v50 = vld [vmem:[%s12487_s1 + $0x58c] ss:$12 sps:$4 sm:$0xff]   ;;  %v8572_v53 = vld [vmem:[%s12487_s1 + $0x108] ss:$12 sps:$4 sm:$0xff]   ;;  %v1077_v54 = vcombine.high %v28_v52, %v28_v52 }
  0x11   :  { %5532 = vmatprep.subr.bf16.mxu0 %v8528_v17  ;;  %v9823_v51 = vsub.s32 %v1080_v46, %v9808_v45  ;;  %v8573_v56 = vld [vmem:[%s12487_s1 + $0x588] ss:$12 sps:$4 sm:$0xff]   ;;  %v8574_v57 = vld [vmem:[%s12487_s1 + $0x124] ss:$12 sps:$4 sm:$0xff]   ;;  %v8578_v61 = vld [vmem:[%s12487_s1 + $0x120] ss:$12 sps:$4 sm:$0xff]  }
  0x12   :  { %v8576_v58 = vld [vmem:[%s12487_s1 + $0x5a4] ss:$12 sps:$4 sm:$0xff]   ;;  %v8579_v0 = vld [vmem:[%s12487_s1 + $0x5a0] ss:$12 sps:$4 sm:$0xff]   ;;  %v8580_v1 = vld [vmem:[%s12487_s1 + $0x13c] ss:$12 sps:$4 sm:$0xff]  }
  0x13   :  { %5410 = vmatpush1.bf16.msra.mxu1 %v8530_v18  ;;  %v1084_v55 = vrot.slane %v28_v52, %v9823_v51  ;;  %v1091_v60 = vrot.slane %v1077_v54, %v9823_v51  ;;  %v8582_v2 = vld [vmem:[%s12487_s1 + $0x5bc] ss:$12 sps:$4 sm:$0xff]   ;;  %v8584_v4 = vld [vmem:[%s12487_s1 + $0x138] ss:$12 sps:$4 sm:$0xff]   ;;  %v8586_v7 = vld [vmem:[%s12487_s1 + $0x154] ss:$12 sps:$4 sm:$0xff]  }
  0x14   :  { %5533 = vmatpush1.bf16.msra.mxu0 %v8531_v19  ;;  %5411 = vmatprep.subr.bf16.mxu1 %v8532_v20  ;;  %v8585_v6 = vld [vmem:[%s12487_s1 + $0x5b8] ss:$12 sps:$4 sm:$0xff]   ;;  %v8588_v8 = vld [vmem:[%s12487_s1 + $0x5d4] ss:$12 sps:$4 sm:$0xff]   ;;  %v8590_v9 = vld [vmem:[%s12487_s1 + $0x150] ss:$12 sps:$4 sm:$0xff]  }
  0x15   :  { %5534 = vmatprep.subr.bf16.mxu0 %v8534_v21  ;;  %v1092_v59 = vcombine.high %v1084_v55, %v1084_v55  ;;  %v1093_v63 = vcombine.high %v1091_v60, %v1091_v60  ;;  %v8591_v10 = vld [vmem:[%s12487_s1 + $0x5d0] ss:$12 sps:$4 sm:$0xff]   ;;  %v8592_v11 = vld [vmem:[%s12487_s1 + $0x16c] ss:$12 sps:$4 sm:$0xff]   ;;  %v8596_v13 = vld [vmem:[%s12487_s1 + $0x168] ss:$12 sps:$4 sm:$0xff]   ;;  %v9894_v14 = vrot.slane %v1091_v60, %v9823_v51  ;;  %v9909_v19 = vrot.slane %v1084_v55, %v9823_v51 }
  0x16   :  { %v8594_v12 = vld [vmem:[%s12487_s1 + $0x5ec] ss:$12 sps:$4 sm:$0xff]   ;;  %v8597_v15 = vld [vmem:[%s12487_s1 + $0x5e8] ss:$12 sps:$4 sm:$0xff]   ;;  %v8601_v16 = vld [vmem:[%s12487_s1 + $0x184] ss:$12 sps:$4 sm:$0xff]  }
  0x17   :  { %5412 = vmatpush1.bf16.msra.mxu1 %v8536_v22  ;;  %v9846_v62 = vrot.slane %v1092_v59, %v9823_v51  ;;  %v9858_v3 = vrot.slane %v1093_v63, %v9823_v51  ;;  %v8604_v17 = vld [vmem:[%s12487_s1 + $0x604] ss:$12 sps:$4 sm:$0xff]   ;;  %v8599_v18 = vld [vmem:[%s12487_s1 + $0x180] ss:$12 sps:$4 sm:$0xff]   ;;  %v9913_v20 = vcombine.high %v9894_v14, %v9894_v14  ;;  %v8607_v22 = vld [vmem:[%s12487_s1 + $0x19c] ss:$12 sps:$4 sm:$0xff]  }
  0x18   :  { %5535 = vmatpush1.bf16.msra.mxu0 %v8537_v23  ;;  %5413 = vmatprep.subr.bf16.mxu1 %v8538_v24  ;;  %v8602_v21 = vld [vmem:[%s12487_s1 + $0x600] ss:$12 sps:$4 sm:$0xff]   ;;  %v8610_v23 = vld [vmem:[%s12487_s1 + $0x61c] ss:$12 sps:$4 sm:$0xff]  }
  0x19   :  { %5536 = vmatprep.subr.bf16.mxu0 %v8540_v25  ;;  %5433 = vmatprep.mubr.bf16.mxu1 %v9846_v62  ;;  %v9866_v5 = vcombine.high %v9858_v3, %v9858_v3  ;;  %v9926_v24 = vcombine.high %v9846_v62, %v9846_v62  ;;  %v8605_v25 = vld [vmem:[%s12487_s1 + $0x198] ss:$12 sps:$4 sm:$0xff]   ;;  %v8626_v38 = vld [vmem:[%s12487_s1 + $0x660] ss:$12 sps:$4 sm:$0xff]   ;;  %v8631_v39 = vld [vmem:[%s12487_s1 + $0x1fc] ss:$12 sps:$4 sm:$0xff]  }
  0x1a   :  { %v8634_v40 = vld [vmem:[%s12487_s1 + $0x67c] ss:$12 sps:$4 sm:$0xff]   ;;  %v8646_v52 = vld [vmem:[%s12487_s1 + $0x6ac] ss:$12 sps:$4 sm:$0xff]  }
  0x1b   :  { %5414 = vmatpush1.bf16.msra.mxu1 %v8542_v26  ;;  %5556 = vmatprep.mubr.bf16.mxu0 %v9866_v5  ;;  %v8608_v26 = vld [vmem:[%s12487_s1 + $0x618] ss:$12 sps:$4 sm:$0xff]   ;;  %v9994_v46 = vld [vmem:[%s12486_s0 + $0x8] sm:$0xff] }
  0x1c   :  { %5537 = vmatpush1.bf16.msra.mxu0 %v8543_v27  ;;  %5415 = vmatprep.subr.bf16.mxu1 %v8544_v28  ;;  %v8613_v27 = vld [vmem:[%s12487_s1 + $0x1b4] ss:$12 sps:$4 sm:$0xff]   ;;  %v8658_v63 = vld [vmem:[%s12487_s1 + $0x6dc] ss:$12 sps:$4 sm:$0xff]  }
  0x1d   :  { %5538 = vmatprep.subr.bf16.mxu0 %v8546_v29  ;;  %v8616_v28 = vld [vmem:[%s12487_s1 + $0x634] ss:$12 sps:$4 sm:$0xff]   ;;  %v8611_v29 = vld [vmem:[%s12487_s1 + $0x1b0] ss:$12 sps:$4 sm:$0xff]  }
  0x1e   :  { %v8641_v54 = vld [vmem:[%s12487_s1 + $0x228] ss:$12 sps:$4 sm:$0xff]   ;;  %v8647_v59 = vld [vmem:[%s12487_s1 + $0x240] ss:$12 sps:$4 sm:$0xff]  }
  0x1f   :  { %5416 = vmatpush1.bf16.msra.mxu1 %v8548_v30  ;;  %v8614_v30 = vld [vmem:[%s12487_s1 + $0x630] ss:$12 sps:$4 sm:$0xff]   ;;  %v8644_v55 = vld [vmem:[%s12487_s1 + $0x6a8] ss:$12 sps:$4 sm:$0xff]   ;;  %v8650_v60 = vld [vmem:[%s12487_s1 + $0x6c0] ss:$12 sps:$4 sm:$0xff]  }
  0x20   :  { %5539 = vmatpush1.bf16.msra.mxu0 %v8549_v31  ;;  %5417 = vmatprep.subr.bf16.mxu1 %v8550_v32  ;;  %v8619_v31 = vld [vmem:[%s12487_s1 + $0x1cc] ss:$12 sps:$4 sm:$0xff]  }
  0x21   :  { %5540 = vmatprep.subr.bf16.mxu0 %v8552_v33  ;;  %v8622_v32 = vld [vmem:[%s12487_s1 + $0x64c] ss:$12 sps:$4 sm:$0xff]   ;;  %v8617_v33 = vld [vmem:[%s12487_s1 + $0x1c8] ss:$12 sps:$4 sm:$0xff]  }
  0x23   :  { %5418 = vmatpush1.bf16.msra.mxu1 %v8554_v34  ;;  %v8620_v34 = vld [vmem:[%s12487_s1 + $0x648] ss:$12 sps:$4 sm:$0xff]  }
  0x24   :  { %5541 = vmatpush1.bf16.msra.mxu0 %v8555_v35  ;;  %5419 = vmatprep.subr.bf16.mxu1 %v8556_v36  ;;  %v8625_v35 = vld [vmem:[%s12487_s1 + $0x1e4] ss:$12 sps:$4 sm:$0xff]  }
  0x25   :  { %5542 = vmatprep.subr.bf16.mxu0 %v8558_v37  ;;  %v8628_v36 = vld [vmem:[%s12487_s1 + $0x664] ss:$12 sps:$4 sm:$0xff]   ;;  %v8623_v37 = vld [vmem:[%s12487_s1 + $0x1e0] ss:$12 sps:$4 sm:$0xff]  }
  0x27   :  { %5420 = vmatpush1.bf16.msra.mxu1 %v8560_v41  ;;  %v8629_v41 = vld [vmem:[%s12487_s1 + $0x1f8] ss:$12 sps:$4 sm:$0xff]  }
  0x28   :  { %5543 = vmatpush1.bf16.msra.mxu0 %v8561_v42  ;;  %5421 = vmatprep.subr.bf16.mxu1 %v8562_v43  ;;  %v8632_v42 = vld [vmem:[%s12487_s1 + $0x678] ss:$12 sps:$4 sm:$0xff]   ;;  %v8637_v43 = vld [vmem:[%s12487_s1 + $0x214] ss:$12 sps:$4 sm:$0xff]  }
  0x29   :  { %5544 = vmatprep.subr.bf16.mxu0 %v8564_v44  ;;  %v8640_v44 = vld [vmem:[%s12487_s1 + $0x694] ss:$12 sps:$4 sm:$0xff]  }
  0x2b   :  { %5422 = vmatpush1.bf16.msra.mxu1 %v8566_v47  ;;  %v8635_v47 = vld [vmem:[%s12487_s1 + $0x210] ss:$12 sps:$4 sm:$0xff]  }
  0x2c   :  { %5545 = vmatpush1.bf16.msra.mxu0 %v8567_v48  ;;  %5423 = vmatprep.subr.bf16.mxu1 %v8568_v49  ;;  %v8638_v48 = vld [vmem:[%s12487_s1 + $0x690] ss:$12 sps:$4 sm:$0xff]   ;;  %v10004_v49 = vrot.slane %v9994_v46, %v9823_v51 }
  0x2d   :  { %5546 = vmatprep.subr.bf16.mxu0 %v8570_v50  ;;  %v8643_v50 = vld [vmem:[%s12487_s1 + $0x22c] ss:$12 sps:$4 sm:$0xff]  }
  0x2f   :  { %5424 = vmatpush1.bf16.msra.mxu1 %v8572_v53  ;;  %v1141_v53 = vcombine.high %v10004_v49, %v10004_v49 }
  0x30   :  { %5547 = vmatpush1.bf16.msra.mxu0 %v8573_v56  ;;  %5425 = vmatprep.subr.bf16.mxu1 %v8574_v57  ;;  %v8649_v57 = vld [vmem:[%s12487_s1 + $0x244] ss:$12 sps:$4 sm:$0xff]  }
  0x31   :  { %5548 = vmatprep.subr.bf16.mxu0 %v8576_v58  ;;  %v10021_v56 = vrot.slane %v1141_v53, %v9823_v51  ;;  %v8652_v58 = vld [vmem:[%s12487_s1 + $0x6c4] ss:$12 sps:$4 sm:$0xff]   ;;  %v8716_v53 = vld [vmem:[%s12487_s1 + $0x7c8] ss:$12 sps:$4 sm:$0xff]  }
  0x33   :  { %5426 = vmatpush1.bf16.msra.mxu1 %v8578_v61  ;;  %v8655_v61 = vld [vmem:[%s12487_s1 + $0x25c] ss:$12 sps:$4 sm:$0xff]  }
  0x34   :  { %5549 = vmatpush1.bf16.msra.mxu0 %v8579_v0  ;;  %5427 = vmatprep.subr.bf16.mxu1 %v8580_v1  ;;  %v8653_v0 = vld [vmem:[%s12487_s1 + $0x258] ss:$12 sps:$4 sm:$0xff]  }
  0x35   :  { %5550 = vmatprep.subr.bf16.mxu0 %v8582_v2  ;;  %v8656_v1 = vld [vmem:[%s12487_s1 + $0x6d8] ss:$12 sps:$4 sm:$0xff]   ;;  %v8661_v2 = vld [vmem:[%s12487_s1 + $0x274] ss:$12 sps:$4 sm:$0xff]  }
  0x37   :  { %5428 = vmatpush1.bf16.msra.mxu1 %v8584_v4  ;;  %v8664_v4 = vld [vmem:[%s12487_s1 + $0x6f4] ss:$12 sps:$4 sm:$0xff]  }
  0x38   :  { %5551 = vmatpush1.bf16.msra.mxu0 %v8585_v6  ;;  %5429 = vmatprep.subr.bf16.mxu1 %v8586_v7  ;;  %v8659_v6 = vld [vmem:[%s12487_s1 + $0x270] ss:$12 sps:$4 sm:$0xff]  }
  0x39   :  { %5552 = vmatprep.subr.bf16.mxu0 %v8588_v8  ;;  %v8662_v7 = vld [vmem:[%s12487_s1 + $0x6f0] ss:$12 sps:$4 sm:$0xff]   ;;  %v8667_v8 = vld [vmem:[%s12487_s1 + $0x28c] ss:$12 sps:$4 sm:$0xff]  }
  0x3b   :  { %5430 = vmatpush1.bf16.msra.mxu1 %v8590_v9  ;;  %v8670_v9 = vld [vmem:[%s12487_s1 + $0x70c] ss:$12 sps:$4 sm:$0xff]  }
  0x3c   :  { %5553 = vmatpush1.bf16.msra.mxu0 %v8591_v10  ;;  %5431 = vmatprep.subr.bf16.mxu1 %v8592_v11  ;;  %v8665_v10 = vld [vmem:[%s12487_s1 + $0x288] ss:$12 sps:$4 sm:$0xff]  }
  0x3d   :  { %5554 = vmatprep.subr.bf16.mxu0 %v8594_v12  ;;  %v8668_v11 = vld [vmem:[%s12487_s1 + $0x708] ss:$12 sps:$4 sm:$0xff]   ;;  %v8673_v12 = vld [vmem:[%s12487_s1 + $0x2a4] ss:$12 sps:$4 sm:$0xff]  }
  0x3f   :  { %5432 = vmatpush1.bf16.msra.mxu1 %v8596_v13  ;;  %v8676_v13 = vld [vmem:[%s12487_s1 + $0x724] ss:$12 sps:$4 sm:$0xff]  }
  0x40   :  { %5555 = vmatpush1.bf16.msra.mxu0 %v8597_v15  ;;  %5442 = vmatprep.subr.bf16.mxu1 %v8601_v16  ;;  %v8671_v15 = vld [vmem:[%s12487_s1 + $0x2a0] ss:$12 sps:$4 sm:$0xff]  }
  0x41   :  { %5565 = vmatprep.subr.bf16.mxu0 %v8604_v17  ;;  %v8674_v16 = vld [vmem:[%s12487_s1 + $0x720] ss:$12 sps:$4 sm:$0xff]   ;;  %v8679_v17 = vld [vmem:[%s12487_s1 + $0x2bc] ss:$12 sps:$4 sm:$0xff]  }
  0x42   :  { %5434 = vmatmul.mubr.bf16.vlgmr.msra.gmra.mrb[0].mxu1 %v9909_v19 }
  0x43   :  { %5557 = vmatmul.mubr.bf16.vlgmr.msra.gmra.mrb[0].mxu0 %v9913_v20  ;;  %5443 = vmatpush1.bf16.msra.mxu1 %v8599_v18  ;;  %v8682_v18 = vld [vmem:[%s12487_s1 + $0x73c] ss:$12 sps:$4 sm:$0xff]  }
  0x44   :  { %5566 = vmatpush1.bf16.msra.mxu0 %v8602_v21  ;;  %5444 = vmatprep.subr.bf16.mxu1 %v8607_v22  ;;  %v8677_v21 = vld [vmem:[%s12487_s1 + $0x2b8] ss:$12 sps:$4 sm:$0xff]  }
  0x45   :  { %5567 = vmatprep.subr.bf16.mxu0 %v8610_v23  ;;  %5474 = vmatprep.mubr.bf16.mxu1 %v9926_v24  ;;  %v8680_v22 = vld [vmem:[%s12487_s1 + $0x738] ss:$12 sps:$4 sm:$0xff]   ;;  %v8685_v23 = vld [vmem:[%s12487_s1 + $0x2d4] ss:$12 sps:$4 sm:$0xff]  }
  0x46   :  { %5597 = vmatprep.mubr.bf16.mxu0 %v10021_v56 }
  0x47   :  { %5445 = vmatpush1.bf16.msra.mxu1 %v8605_v25  ;;  %v8688_v25 = vld [vmem:[%s12487_s1 + $0x754] ss:$12 sps:$4 sm:$0xff]  }
  0x48   :  { %5568 = vmatpush1.bf16.msra.mxu0 %v8608_v26  ;;  %5446 = vmatprep.subr.bf16.mxu1 %v8613_v27  ;;  %v8683_v26 = vld [vmem:[%s12487_s1 + $0x2d0] ss:$12 sps:$4 sm:$0xff]  }
  0x49   :  { %5569 = vmatprep.subr.bf16.mxu0 %v8616_v28  ;;  %v8686_v27 = vld [vmem:[%s12487_s1 + $0x750] ss:$12 sps:$4 sm:$0xff]   ;;  %v8691_v28 = vld [vmem:[%s12487_s1 + $0x2ec] ss:$12 sps:$4 sm:$0xff]  }
  0x4b   :  { %5447 = vmatpush1.bf16.msra.mxu1 %v8611_v29  ;;  %v8694_v29 = vld [vmem:[%s12487_s1 + $0x76c] ss:$12 sps:$4 sm:$0xff]  }
  0x4c   :  { %5570 = vmatpush1.bf16.msra.mxu0 %v8614_v30  ;;  %5448 = vmatprep.subr.bf16.mxu1 %v8619_v31  ;;  %v8689_v30 = vld [vmem:[%s12487_s1 + $0x2e8] ss:$12 sps:$4 sm:$0xff]  }
  0x4d   :  { %5571 = vmatprep.subr.bf16.mxu0 %v8622_v32  ;;  %v8692_v31 = vld [vmem:[%s12487_s1 + $0x768] ss:$12 sps:$4 sm:$0xff]   ;;  %v8697_v32 = vld [vmem:[%s12487_s1 + $0x304] ss:$12 sps:$4 sm:$0xff]  }
  0x4f   :  { %5449 = vmatpush1.bf16.msra.mxu1 %v8617_v33  ;;  %v8700_v33 = vld [vmem:[%s12487_s1 + $0x784] ss:$12 sps:$4 sm:$0xff]  }
  0x50   :  { %5572 = vmatpush1.bf16.msra.mxu0 %v8620_v34  ;;  %5450 = vmatprep.subr.bf16.mxu1 %v8625_v35  ;;  %v10128_v34 = vcombine.high %v9909_v19, %v9909_v19  ;;  %v10132_v35 = vrot.slane %v10004_v49, %v9823_v51  ;;  %v8715_v49 = vld [vmem:[%s12487_s1 + $0x34c] ss:$12 sps:$4 sm:$0xff]  }
  0x51   :  { %5573 = vmatprep.subr.bf16.mxu0 %v8628_v36  ;;  %v8695_v36 = vld [vmem:[%s12487_s1 + $0x300] ss:$12 sps:$4 sm:$0xff]  }
  0x53   :  { %5451 = vmatpush1.bf16.msra.mxu1 %v8623_v37  ;;  %v8698_v37 = vld [vmem:[%s12487_s1 + $0x780] ss:$12 sps:$4 sm:$0xff]  }
  0x54   :  { %5574 = vmatpush1.bf16.msra.mxu0 %v8626_v38  ;;  %5452 = vmatprep.subr.bf16.mxu1 %v8631_v39  ;;  %v8703_v38 = vld [vmem:[%s12487_s1 + $0x31c] ss:$12 sps:$4 sm:$0xff]  }
  0x55   :  { %5575 = vmatprep.subr.bf16.mxu0 %v8634_v40  ;;  %v8706_v39 = vld [vmem:[%s12487_s1 + $0x79c] ss:$12 sps:$4 sm:$0xff]   ;;  %v8701_v40 = vld [vmem:[%s12487_s1 + $0x318] ss:$12 sps:$4 sm:$0xff]  }
  0x57   :  { %5453 = vmatpush1.bf16.msra.mxu1 %v8629_v41  ;;  %v10151_v41 = vcombine.high %v10021_v56, %v10021_v56 }
  0x58   :  { %5576 = vmatpush1.bf16.msra.mxu0 %v8632_v42  ;;  %5454 = vmatprep.subr.bf16.mxu1 %v8637_v43  ;;  %v8704_v42 = vld [vmem:[%s12487_s1 + $0x798] ss:$12 sps:$4 sm:$0xff]   ;;  %v8709_v43 = vld [vmem:[%s12487_s1 + $0x334] ss:$12 sps:$4 sm:$0xff]  }
  0x59   :  { %5577 = vmatprep.subr.bf16.mxu0 %v8640_v44  ;;  %v8712_v44 = vld [vmem:[%s12487_s1 + $0x7b4] ss:$12 sps:$4 sm:$0xff]  }
  0x5b   :  { %5455 = vmatpush1.bf16.msra.mxu1 %v8635_v47  ;;  %v8707_v47 = vld [vmem:[%s12487_s1 + $0x330] ss:$12 sps:$4 sm:$0xff]  }
  0x5c   :  { %5578 = vmatpush1.bf16.msra.mxu0 %v8638_v48  ;;  %5456 = vmatprep.subr.bf16.mxu1 %v8643_v50  ;;  %v8710_v48 = vld [vmem:[%s12487_s1 + $0x7b0] ss:$12 sps:$4 sm:$0xff]   ;;  %v8718_v50 = vld [vmem:[%s12487_s1 + $0x7cc] ss:$12 sps:$4 sm:$0xff]  }
  0x5d   :  { %5579 = vmatprep.subr.bf16.mxu0 %v8646_v52  ;;  %v8713_v52 = vld [vmem:[%s12487_s1 + $0x348] ss:$12 sps:$4 sm:$0xff]  }
  0x5f   :  { %5457 = vmatpush1.bf16.msra.mxu1 %v8641_v54  ;;  %v8721_v54 = vld [vmem:[%s12487_s1 + $0x364] ss:$12 sps:$4 sm:$0xff]  }
  0x60   :  { %5580 = vmatpush1.bf16.msra.mxu0 %v8644_v55  ;;  %5458 = vmatprep.subr.bf16.mxu1 %v8649_v57  ;;  %v8724_v55 = vld [vmem:[%s12487_s1 + $0x7e4] ss:$12 sps:$4 sm:$0xff]   ;;  %v8719_v57 = vld [vmem:[%s12487_s1 + $0x360] ss:$12 sps:$4 sm:$0xff]  }
  0x61   :  { %5581 = vmatprep.subr.bf16.mxu0 %v8652_v58  ;;  %v8722_v58 = vld [vmem:[%s12487_s1 + $0x7e0] ss:$12 sps:$4 sm:$0xff]  }
  0x63   :  { %5459 = vmatpush1.bf16.msra.mxu1 %v8647_v59  ;;  %v8727_v59 = vld [vmem:[%s12487_s1 + $0x37c] ss:$12 sps:$4 sm:$0xff]  }
  0x64   :  { %5582 = vmatpush1.bf16.msra.mxu0 %v8650_v60  ;;  %5460 = vmatprep.subr.bf16.mxu1 %v8655_v61  ;;  %v8730_v60 = vld [vmem:[%s12487_s1 + $0x7fc] ss:$12 sps:$4 sm:$0xff]   ;;  %v8725_v61 = vld [vmem:[%s12487_s1 + $0x378] ss:$12 sps:$4 sm:$0xff]  }
  0x65   :  { %5583 = vmatprep.subr.bf16.mxu0 %v8658_v63  ;;  %v8728_v63 = vld [vmem:[%s12487_s1 + $0x7f8] ss:$12 sps:$4 sm:$0xff]  }
  0x67   :  { %5461 = vmatpush1.bf16.msra.mxu1 %v8653_v0  ;;  %v8733_v0 = vld [vmem:[%s12487_s1 + $0x394] ss:$12 sps:$4 sm:$0xff]  }
  0x68   :  { %5584 = vmatpush1.bf16.msra.mxu0 %v8656_v1  ;;  %5462 = vmatprep.subr.bf16.mxu1 %v8661_v2  ;;  %v8736_v1 = vld [vmem:[%s12487_s1 + $0x814] ss:$12 sps:$4 sm:$0xff]   ;;  %v8731_v2 = vld [vmem:[%s12487_s1 + $0x390] ss:$12 sps:$4 sm:$0xff]  }
  0x69   :  { %5585 = vmatprep.subr.bf16.mxu0 %v8664_v4  ;;  %v8734_v4 = vld [vmem:[%s12487_s1 + $0x810] ss:$12 sps:$4 sm:$0xff]  }
  0x6b   :  { %5463 = vmatpush1.bf16.msra.mxu1 %v8659_v6  ;;  %v8739_v6 = vld [vmem:[%s12487_s1 + $0x3ac] ss:$12 sps:$4 sm:$0xff]  }
  0x6c   :  { %5586 = vmatpush1.bf16.msra.mxu0 %v8662_v7  ;;  %5464 = vmatprep.subr.bf16.mxu1 %v8667_v8  ;;  %v8742_v7 = vld [vmem:[%s12487_s1 + $0x82c] ss:$12 sps:$4 sm:$0xff]   ;;  %v8737_v8 = vld [vmem:[%s12487_s1 + $0x3a8] ss:$12 sps:$4 sm:$0xff]  }
  0x6d   :  { %5587 = vmatprep.subr.bf16.mxu0 %v8670_v9  ;;  %v8740_v9 = vld [vmem:[%s12487_s1 + $0x828] ss:$12 sps:$4 sm:$0xff]  }
  0x6f   :  { %5465 = vmatpush1.bf16.msra.mxu1 %v8665_v10  ;;  %v8745_v10 = vld [vmem:[%s12487_s1 + $0x3c4] ss:$12 sps:$4 sm:$0xff]  }
  0x70   :  { %5588 = vmatpush1.bf16.msra.mxu0 %v8668_v11  ;;  %5466 = vmatprep.subr.bf16.mxu1 %v8673_v12  ;;  %v8748_v11 = vld [vmem:[%s12487_s1 + $0x844] ss:$12 sps:$4 sm:$0xff]   ;;  %v8743_v12 = vld [vmem:[%s12487_s1 + $0x3c0] ss:$12 sps:$4 sm:$0xff]  }
  0x71   :  { %5589 = vmatprep.subr.bf16.mxu0 %v8676_v13  ;;  %v8746_v13 = vld [vmem:[%s12487_s1 + $0x840] ss:$12 sps:$4 sm:$0xff]  }
  0x73   :  { %5467 = vmatpush1.bf16.msra.mxu1 %v8671_v15  ;;  %v8751_v15 = vld [vmem:[%s12487_s1 + $0x3dc] ss:$12 sps:$4 sm:$0xff]  }
  0x74   :  { %5590 = vmatpush1.bf16.msra.mxu0 %v8674_v16  ;;  %5468 = vmatprep.subr.bf16.mxu1 %v8679_v17  ;;  %v8754_v16 = vld [vmem:[%s12487_s1 + $0x85c] ss:$12 sps:$4 sm:$0xff]   ;;  %v8749_v17 = vld [vmem:[%s12487_s1 + $0x3d8] ss:$12 sps:$4 sm:$0xff]  }
  0x75   :  { %5591 = vmatprep.subr.bf16.mxu0 %v8682_v18  ;;  %v8752_v18 = vld [vmem:[%s12487_s1 + $0x858] ss:$12 sps:$4 sm:$0xff]  }
  0x77   :  { %5469 = vmatpush1.bf16.msra.mxu1 %v8677_v21  ;;  %v8757_v21 = vld [vmem:[%s12487_s1 + $0x3f4] ss:$12 sps:$4 sm:$0xff]  }
  0x78   :  { %5592 = vmatpush1.bf16.msra.mxu0 %v8680_v22  ;;  %5470 = vmatprep.subr.bf16.mxu1 %v8685_v23  ;;  %v8760_v22 = vld [vmem:[%s12487_s1 + $0x874] ss:$12 sps:$4 sm:$0xff]   ;;  %v8755_v23 = vld [vmem:[%s12487_s1 + $0x3f0] ss:$12 sps:$4 sm:$0xff]  }
  0x79   :  { %5593 = vmatprep.subr.bf16.mxu0 %v8688_v25  ;;  %v8758_v25 = vld [vmem:[%s12487_s1 + $0x870] ss:$12 sps:$4 sm:$0xff]  }
  0x7b   :  { %5471 = vmatpush1.bf16.msra.mxu1 %v8683_v26  ;;  %v8763_v26 = vld [vmem:[%s12487_s1 + $0x40c] ss:$12 sps:$4 sm:$0xff]  }
  0x7c   :  { %5594 = vmatpush1.bf16.msra.mxu0 %v8686_v27  ;;  %5472 = vmatprep.subr.bf16.mxu1 %v8691_v28  ;;  %v8766_v27 = vld [vmem:[%s12487_s1 + $0x88c] ss:$12 sps:$4 sm:$0xff]   ;;  %v8761_v28 = vld [vmem:[%s12487_s1 + $0x408] ss:$12 sps:$4 sm:$0xff]  }
  0x7d   :  { %5595 = vmatprep.subr.bf16.mxu0 %v8694_v29  ;;  %v8764_v29 = vld [vmem:[%s12487_s1 + $0x888] ss:$12 sps:$4 sm:$0xff]  }
  0x7f   :  { %5473 = vmatpush1.bf16.msra.mxu1 %v8689_v30  ;;  %v8769_v30 = vld [vmem:[%s12487_s1 + $0x424] ss:$12 sps:$4 sm:$0xff]  }
  0x80   :  { %5596 = vmatpush1.bf16.msra.mxu0 %v8692_v31  ;;  %5483 = vmatprep.subr.bf16.mxu1 %v8697_v32  ;;  %v8772_v31 = vld [vmem:[%s12487_s1 + $0x8a4] ss:$12 sps:$4 sm:$0xff]   ;;  %v8767_v32 = vld [vmem:[%s12487_s1 + $0x420] ss:$12 sps:$4 sm:$0xff]  }
  0x81   :  { %5606 = vmatprep.subr.bf16.mxu0 %v8700_v33  ;;  %v8770_v33 = vld [vmem:[%s12487_s1 + $0x8a0] ss:$12 sps:$4 sm:$0xff]  }
  0x82   :  { %5475 = vmatmul.mubr.bf16.vlgmr.msra.gmra.mrb[0].mxu1 %v10128_v34 }
  0x83   :  { %5598 = vmatmul.mubr.bf16.vlgmr.msra.gmra.mrb[0].mxu0 %v10132_v35  ;;  %5484 = vmatpush1.bf16.msra.mxu1 %v8695_v36  ;;  %v8775_v36 = vld [vmem:[%s12487_s1 + $0x43c] ss:$12 sps:$4 sm:$0xff]  }
  0x84   :  { %5607 = vmatpush1.bf16.msra.mxu0 %v8698_v37  ;;  %5485 = vmatprep.subr.bf16.mxu1 %v8703_v38  ;;  %v8778_v37 = vld [vmem:[%s12487_s1 + $0x8bc] ss:$12 sps:$4 sm:$0xff]   ;;  %v8773_v38 = vld [vmem:[%s12487_s1 + $0x438] ss:$12 sps:$4 sm:$0xff]  }
  0x85   :  { %5608 = vmatprep.subr.bf16.mxu0 %v8706_v39  ;;  %5515 = vmatprep.mubr.bf16.mxu1 %v9858_v3  ;;  %v8776_v39 = vld [vmem:[%s12487_s1 + $0x8b8] ss:$12 sps:$4 sm:$0xff]  }
  0x86   :  { %5638 = vmatprep.mubr.bf16.mxu0 %v10151_v41 }
  0x87   :  { %5486 = vmatpush1.bf16.msra.mxu1 %v8701_v40  ;;  %v8781_v40 = vld [vmem:[%s12487_s1 + $0x454] ss:$12 sps:$4 sm:$0xff]  }
  0x88   :  { %5609 = vmatpush1.bf16.msra.mxu0 %v8704_v42  ;;  %5487 = vmatprep.subr.bf16.mxu1 %v8709_v43  ;;  %v8784_v42 = vld [vmem:[%s12487_s1 + $0x8d4] ss:$12 sps:$4 sm:$0xff]   ;;  %v8779_v43 = vld [vmem:[%s12487_s1 + $0x450] ss:$12 sps:$4 sm:$0xff]  }
  0x89   :  { %5610 = vmatprep.subr.bf16.mxu0 %v8712_v44  ;;  %v1126_v44 = vcombine.high %v9994_v46, %v9994_v46  ;;  %v8785_v46 = vld [vmem:[%s12487_s1 + $0x468] ss:$12 sps:$4 sm:$0xff]  }
  0x8b   :  { %5488 = vmatpush1.bf16.msra.mxu1 %v8707_v47  ;;  %v8782_v47 = vld [vmem:[%s12487_s1 + $0x8d0] ss:$12 sps:$4 sm:$0xff]  }
  0x8c   :  { %5611 = vmatpush1.bf16.msra.mxu0 %v8710_v48  ;;  %5489 = vmatprep.subr.bf16.mxu1 %v8715_v49  ;;  %v8787_v48 = vld [vmem:[%s12487_s1 + $0x46c] ss:$12 sps:$4 sm:$0xff]  }
  0x8d   :  { %5612 = vmatprep.subr.bf16.mxu0 %v8718_v50  ;;  %v8790_v49 = vld [vmem:[%s12487_s1 + $0x8ec] ss:$12 sps:$4 sm:$0xff]   ;;  %v10325_v50 = vrot.slane %v1126_v44, %v9823_v51 }
  0x8e   :  { %v8845_v44 = vld [vmem:[%s12487_s1 + $0x1b8] ss:$12 sps:$4 sm:$0xff]  }
  0x8f   :  { %5490 = vmatpush1.bf16.msra.mxu1 %v8713_v52  ;;  %v8788_v52 = vld [vmem:[%s12487_s1 + $0x8e8] ss:$12 sps:$4 sm:$0xff]  }
  0x90   :  { %5613 = vmatpush1.bf16.msra.mxu0 %v8716_v53  ;;  %5491 = vmatprep.subr.bf16.mxu1 %v8721_v54  ;;  %v8793_v53 = vld [vmem:[%s12487_s1 + $0x904] ss:$12 sps:$4 sm:$0xff]   ;;  %v8794_v54 = vld [vmem:[%s12487_s1 + $0xc8] ss:$12 sps:$4 sm:$0xff]  }
  0x91   :  { %5614 = vmatprep.subr.bf16.mxu0 %v8724_v55  ;;  %v8791_v55 = vld [vmem:[%s12487_s1 + $0x900] ss:$12 sps:$4 sm:$0xff]  }
  0x93   :  { %5492 = vmatpush1.bf16.msra.mxu1 %v8719_v57  ;;  %v1142_v57 = vcombine.high %v10325_v50, %v10325_v50 }
  0x94   :  { %5615 = vmatpush1.bf16.msra.mxu0 %v8722_v58  ;;  %5493 = vmatprep.subr.bf16.mxu1 %v8727_v59  ;;  %v10346_v58 = vcombine.high %v10132_v35, %v10132_v35  ;;  %v8795_v59 = vld [vmem:[%s12487_s1 + $0x8] ss:$12 sps:$4 sm:$0xff]  }
  0x95   :  { %5616 = vmatprep.subr.bf16.mxu0 %v8730_v60  ;;  %v8798_v60 = vld [vmem:[%s12487_s1 + $0x91c] ss:$12 sps:$4 sm:$0xff]  }
  0x97   :  { %5494 = vmatpush1.bf16.msra.mxu1 %v8725_v61  ;;  %v8799_v61 = vld [vmem:[%s12487_s1 + $0xe0] ss:$12 sps:$4 sm:$0xff]  }
  0x98   :  { %5617 = vmatpush1.bf16.msra.mxu0 %v8728_v63  ;;  %5495 = vmatprep.subr.bf16.mxu1 %v8733_v0  ;;  %v10358_v63 = vrot.slane %v1142_v57, %v9823_v51  ;;  %v8796_v0 = vld [vmem:[%s12487_s1 + $0x918] ss:$12 sps:$4 sm:$0xff]   ;;  %v8859_v57 = vld [vmem:[%s12487_s1 + $0x2c0] ss:$12 sps:$4 sm:$0xff]  }
  0x99   :  { %5618 = vmatprep.subr.bf16.mxu0 %v8736_v1  ;;  %v8800_v1 = vld [vmem:[%s12487_s1 + $0x20] ss:$12 sps:$4 sm:$0xff]  }
  0x9b   :  { %5496 = vmatpush1.bf16.msra.mxu1 %v8731_v2  ;;  %v8803_v2 = vld [vmem:[%s12487_s1 + $0x934] ss:$12 sps:$4 sm:$0xff]  }
  0x9c   :  { %5619 = vmatpush1.bf16.msra.mxu0 %v8734_v4  ;;  %5497 = vmatprep.subr.bf16.mxu1 %v8739_v6  ;;  %v8804_v4 = vld [vmem:[%s12487_s1 + $0xf8] ss:$12 sps:$4 sm:$0xff]   ;;  %v8801_v6 = vld [vmem:[%s12487_s1 + $0x930] ss:$12 sps:$4 sm:$0xff]  }
  0x9d   :  { %5620 = vmatprep.subr.bf16.mxu0 %v8742_v7  ;;  %v8805_v7 = vld [vmem:[%s12487_s1 + $0x38] ss:$12 sps:$4 sm:$0xff]  }
  0x9f   :  { %5498 = vmatpush1.bf16.msra.mxu1 %v8737_v8  ;;  %v8808_v8 = vld [vmem:[%s12487_s1 + $0x94c] ss:$12 sps:$4 sm:$0xff]  }
  0xa0   :  { %5621 = vmatpush1.bf16.msra.mxu0 %v8740_v9  ;;  %5499 = vmatprep.subr.bf16.mxu1 %v8745_v10  ;;  %v8806_v9 = vld [vmem:[%s12487_s1 + $0x948] ss:$12 sps:$4 sm:$0xff]   ;;  %v8810_v10 = vld [vmem:[%s12487_s1 + $0x50] ss:$12 sps:$4 sm:$0xff]  }
  0xa1   :  { %5622 = vmatprep.subr.bf16.mxu0 %v8748_v11  ;;  %v8813_v11 = vld [vmem:[%s12487_s1 + $0x964] ss:$12 sps:$4 sm:$0xff]  }
  0xa3   :  { %5500 = vmatpush1.bf16.msra.mxu1 %v8743_v12  ;;  %v8814_v12 = vld [vmem:[%s12487_s1 + $0x128] ss:$12 sps:$4 sm:$0xff]  }
  0xa4   :  { %5623 = vmatpush1.bf16.msra.mxu0 %v8746_v13  ;;  %5501 = vmatprep.subr.bf16.mxu1 %v8751_v15  ;;  %v8811_v13 = vld [vmem:[%s12487_s1 + $0x960] ss:$12 sps:$4 sm:$0xff]   ;;  %v8815_v15 = vld [vmem:[%s12487_s1 + $0x68] ss:$12 sps:$4 sm:$0xff]  }
  0xa5   :  { %5624 = vmatprep.subr.bf16.mxu0 %v8754_v16  ;;  %v8818_v16 = vld [vmem:[%s12487_s1 + $0x97c] ss:$12 sps:$4 sm:$0xff]  }
  0xa7   :  { %5502 = vmatpush1.bf16.msra.mxu1 %v8749_v17  ;;  %v8819_v17 = vld [vmem:[%s12487_s1 + $0x140] ss:$12 sps:$4 sm:$0xff]  }
  0xa8   :  { %5625 = vmatpush1.bf16.msra.mxu0 %v8752_v18  ;;  %5503 = vmatprep.subr.bf16.mxu1 %v8757_v21  ;;  %v8816_v18 = vld [vmem:[%s12487_s1 + $0x978] ss:$12 sps:$4 sm:$0xff]   ;;  %v8820_v21 = vld [vmem:[%s12487_s1 + $0x80] ss:$12 sps:$4 sm:$0xff]  }
  0xa9   :  { %5626 = vmatprep.subr.bf16.mxu0 %v8760_v22  ;;  %v8823_v22 = vld [vmem:[%s12487_s1 + $0x994] ss:$12 sps:$4 sm:$0xff]  }
  0xab   :  { %5504 = vmatpush1.bf16.msra.mxu1 %v8755_v23  ;;  %v8824_v23 = vld [vmem:[%s12487_s1 + $0x158] ss:$12 sps:$4 sm:$0xff]  }
  0xac   :  { %5627 = vmatpush1.bf16.msra.mxu0 %v8758_v25  ;;  %5505 = vmatprep.subr.bf16.mxu1 %v8763_v26  ;;  %v8821_v25 = vld [vmem:[%s12487_s1 + $0x990] ss:$12 sps:$4 sm:$0xff]   ;;  %v8825_v26 = vld [vmem:[%s12487_s1 + $0x98] ss:$12 sps:$4 sm:$0xff]  }
  0xad   :  { %5628 = vmatprep.subr.bf16.mxu0 %v8766_v27  ;;  %v8828_v27 = vld [vmem:[%s12487_s1 + $0x9ac] ss:$12 sps:$4 sm:$0xff]  }
  0xaf   :  { %5506 = vmatpush1.bf16.msra.mxu1 %v8761_v28  ;;  %v8829_v28 = vld [vmem:[%s12487_s1 + $0x170] ss:$12 sps:$4 sm:$0xff]  }
  0xb0   :  { %5629 = vmatpush1.bf16.msra.mxu0 %v8764_v29  ;;  %5507 = vmatprep.subr.bf16.mxu1 %v8769_v30  ;;  %v8826_v29 = vld [vmem:[%s12487_s1 + $0x9a8] ss:$12 sps:$4 sm:$0xff]   ;;  %v8830_v30 = vld [vmem:[%s12487_s1 + $0xb0] ss:$12 sps:$4 sm:$0xff]  }
  0xb1   :  { %5630 = vmatprep.subr.bf16.mxu0 %v8772_v31  ;;  %v8833_v31 = vld [vmem:[%s12487_s1 + $0x9c4] ss:$12 sps:$4 sm:$0xff]  }
  0xb3   :  { %5508 = vmatpush1.bf16.msra.mxu1 %v8767_v32  ;;  %v8834_v32 = vld [vmem:[%s12487_s1 + $0x248] ss:$12 sps:$4 sm:$0xff]  }
  0xb4   :  { %5631 = vmatpush1.bf16.msra.mxu0 %v8770_v33  ;;  %5509 = vmatprep.subr.bf16.mxu1 %v8775_v36  ;;  %v8831_v33 = vld [vmem:[%s12487_s1 + $0x9c0] ss:$12 sps:$4 sm:$0xff]   ;;  %v8835_v36 = vld [vmem:[%s12487_s1 + $0x188] ss:$12 sps:$4 sm:$0xff]  }
  0xb5   :  { %5632 = vmatprep.subr.bf16.mxu0 %v8778_v37  ;;  %v8838_v37 = vld [vmem:[%s12487_s1 + $0x9dc] ss:$12 sps:$4 sm:$0xff]  }
  0xb7   :  { %5510 = vmatpush1.bf16.msra.mxu1 %v8773_v38  ;;  %v8839_v38 = vld [vmem:[%s12487_s1 + $0x260] ss:$12 sps:$4 sm:$0xff]  }
  0xb8   :  { %5633 = vmatpush1.bf16.msra.mxu0 %v8776_v39  ;;  %5511 = vmatprep.subr.bf16.mxu1 %v8781_v40  ;;  %v8836_v39 = vld [vmem:[%s12487_s1 + $0x9d8] ss:$12 sps:$4 sm:$0xff]   ;;  %v8840_v40 = vld [vmem:[%s12487_s1 + $0x1a0] ss:$12 sps:$4 sm:$0xff]  }
  0xb9   :  { %5634 = vmatprep.subr.bf16.mxu0 %v8784_v42  ;;  %v8843_v42 = vld [vmem:[%s12487_s1 + $0x9f4] ss:$12 sps:$4 sm:$0xff]  }
  0xbb   :  { %5512 = vmatpush1.bf16.msra.mxu1 %v8779_v43  ;;  %v8841_v43 = vld [vmem:[%s12487_s1 + $0x9f0] ss:$12 sps:$4 sm:$0xff]  }
  0xbc   :  { %5635 = vmatpush1.bf16.msra.mxu0 %v8782_v47  ;;  %5513 = vmatprep.subr.bf16.mxu1 %v8787_v48  ;;  %v8848_v47 = vld [vmem:[%s12487_s1 + $0xa0c] ss:$12 sps:$4 sm:$0xff]   ;;  %v8849_v48 = vld [vmem:[%s12487_s1 + $0x290] ss:$12 sps:$4 sm:$0xff]  }
  0xbd   :  { %5636 = vmatprep.subr.bf16.mxu0 %v8790_v49  ;;  %v8850_v49 = vld [vmem:[%s12487_s1 + $0x1d0] ss:$12 sps:$4 sm:$0xff]  }
  0xbf   :  { %5514 = vmatpush1.bf16.msra.mxu1 %v8785_v46  ;;  %v8853_v46 = vld [vmem:[%s12487_s1 + $0xa24] ss:$12 sps:$4 sm:$0xff]  }
  0xc0   :  { %5637 = vmatpush1.bf16.msra.mxu0 %v8788_v52  ;;  %8081 = vmatprep.subr.bf16.mxu1 %v8794_v54  ;;  %v8854_v52 = vld [vmem:[%s12487_s1 + $0x2a8] ss:$12 sps:$4 sm:$0xff]  }
  0xc1   :  { %5647 = vmatprep.subr.bf16.mxu0 %v8793_v53  ;;  %v8851_v53 = vld [vmem:[%s12487_s1 + $0xa20] ss:$12 sps:$4 sm:$0xff]   ;;  %v8855_v54 = vld [vmem:[%s12487_s1 + $0x1e8] ss:$12 sps:$4 sm:$0xff]  }
  0xc2   :  { %5516 = vmatmul.mubr.bf16.vlgmr.msra.gmra.mrb[0].mxu1 %v9894_v14 }
  0xc3   :  { %5639 = vmatmul.mubr.bf16.vlgmr.msra.gmra.mrb[0].mxu0 %v10346_v58  ;;  %8082 = vmatpush3.bf16.msra.mxu1 %v8795_v59  ;;  %v8856_v59 = vld [vmem:[%s12487_s1 + $0xa38] ss:$12 sps:$4 sm:$0xff]  }
  0xc4   :  { %5648 = vmatpush1.bf16.msra.mxu0 %v8791_v55  ;;  %8083 = vmatprep.subr.bf16.mxu1 %v8799_v61  ;;  %v8858_v55 = vld [vmem:[%s12487_s1 + $0xa3c] ss:$12 sps:$4 sm:$0xff]   ;;  %v8863_v61 = vld [vmem:[%s12487_s1 + $0xa54] ss:$12 sps:$4 sm:$0xff]  }
  0xc5   :  { %5649 = vmatprep.subr.bf16.mxu0 %v8798_v60  ;;  %6089 = vmatprep.mubr.bf16.mxu1 %v9846_v62  ;;  %v8809_v62 = vld [vmem:[%s12487_s1 + $0x110] ss:$12 sps:$4 sm:$0xff]   ;;  %v8860_v60 = vld [vmem:[%s12487_s1 + $0x200] ss:$12 sps:$4 sm:$0xff]  }
  0xc6   :  { %5679 = vmatprep.mubr.bf16.mxu0 %v10358_v63 }
  0xc7   :  { %8084 = vmatpush3.bf16.msra.mxu1 %v8800_v1  ;;  %v8861_v1 = vld [vmem:[%s12487_s1 + $0xa50] ss:$12 sps:$4 sm:$0xff]  }
  0xc8   :  { %5650 = vmatpush1.bf16.msra.mxu0 %v8796_v0  ;;  %8085 = vmatprep.subr.bf16.mxu1 %v8804_v4  ;;  %v8864_v0 = vld [vmem:[%s12487_s1 + $0x2d8] ss:$12 sps:$4 sm:$0xff]  }
  0xc9   :  { %5651 = vmatprep.subr.bf16.mxu0 %v8803_v2  ;;  %v8865_v2 = vld [vmem:[%s12487_s1 + $0x218] ss:$12 sps:$4 sm:$0xff]  }
  0xca   :  { %v8868_v4 = vld [vmem:[%s12487_s1 + $0xa6c] ss:$12 sps:$4 sm:$0xff]  }
  0xcb   :  { %8086 = vmatpush3.bf16.msra.mxu1 %v8805_v7  ;;  %v8866_v7 = vld [vmem:[%s12487_s1 + $0xa68] ss:$12 sps:$4 sm:$0xff]  }
  0xcc   :  { %5652 = vmatpush1.bf16.msra.mxu0 %v8801_v6  ;;  %8087 = vmatprep.subr.bf16.mxu1 %v8809_v62  ;;  %v8869_v6 = vld [vmem:[%s12487_s1 + $0x2f0] ss:$12 sps:$4 sm:$0xff]  }
  0xcd   :  { %5653 = vmatprep.subr.bf16.mxu0 %v8808_v8  ;;  %v8870_v8 = vld [vmem:[%s12487_s1 + $0x230] ss:$12 sps:$4 sm:$0xff]  }
  0xce   :  { %v8874_v62 = vld [vmem:[%s12487_s1 + $0xa84] ss:$12 sps:$4 sm:$0xff]  }
  0xcf   :  { %8088 = vmatpush3.bf16.msra.mxu1 %v8810_v10  ;;  %v8872_v10 = vld [vmem:[%s12487_s1 + $0xa80] ss:$12 sps:$4 sm:$0xff]  }
  0xd0   :  { %5654 = vmatpush1.bf16.msra.mxu0 %v8806_v9  ;;  %8089 = vmatprep.subr.bf16.mxu1 %v8814_v12  ;;  %v8875_v9 = vld [vmem:[%s12487_s1 + $0x3c8] ss:$12 sps:$4 sm:$0xff]  }
  0xd1   :  { %5655 = vmatprep.subr.bf16.mxu0 %v8813_v11  ;;  %v10551_v11 = vrot.slane %v10325_v50, %v9823_v51  ;;  %v8876_v12 = vld [vmem:[%s12487_s1 + $0x308] ss:$12 sps:$4 sm:$0xff]   ;;  %v10564_v50 = vcombine.high %v10358_v63, %v10358_v63 }
  0xd3   :  { %8090 = vmatpush3.bf16.msra.mxu1 %v8815_v15  ;;  %v8880_v15 = vld [vmem:[%s12487_s1 + $0x3e0] ss:$12 sps:$4 sm:$0xff]  }
  0xd4   :  { %5656 = vmatpush1.bf16.msra.mxu0 %v8811_v13  ;;  %8091 = vmatprep.subr.bf16.mxu1 %v8819_v17  ;;  %v8879_v13 = vld [vmem:[%s12487_s1 + $0xa9c] ss:$12 sps:$4 sm:$0xff]   ;;  %v8881_v17 = vld [vmem:[%s12487_s1 + $0x320] ss:$12 sps:$4 sm:$0xff]  }
  0xd5   :  { %5657 = vmatprep.subr.bf16.mxu0 %v8818_v16  ;;  %v8877_v16 = vld [vmem:[%s12487_s1 + $0xa98] ss:$12 sps:$4 sm:$0xff]  }
  0xd7   :  { %8092 = vmatpush3.bf16.msra.mxu1 %v8820_v21  ;;  %v8882_v21 = vld [vmem:[%s12487_s1 + $0xab0] ss:$12 sps:$4 sm:$0xff]  }
  0xd8   :  { %5658 = vmatpush1.bf16.msra.mxu0 %v8816_v18  ;;  %8093 = vmatprep.subr.bf16.mxu1 %v8824_v23  ;;  %v8884_v18 = vld [vmem:[%s12487_s1 + $0xab4] ss:$12 sps:$4 sm:$0xff]   ;;  %v8889_v23 = vld [vmem:[%s12487_s1 + $0xacc] ss:$12 sps:$4 sm:$0xff]  }
  0xd9   :  { %5659 = vmatprep.subr.bf16.mxu0 %v8823_v22  ;;  %v8886_v22 = vld [vmem:[%s12487_s1 + $0x338] ss:$12 sps:$4 sm:$0xff]  }
  0xdb   :  { %8094 = vmatpush3.bf16.msra.mxu1 %v8825_v26  ;;  %v8891_v26 = vld [vmem:[%s12487_s1 + $0x350] ss:$12 sps:$4 sm:$0xff]  }
  0xdc   :  { %5660 = vmatpush1.bf16.msra.mxu0 %v8821_v25  ;;  %8095 = vmatprep.subr.bf16.mxu1 %v8829_v28  ;;  %v8890_v25 = vld [vmem:[%s12487_s1 + $0x410] ss:$12 sps:$4 sm:$0xff]   ;;  %v8895_v28 = vld [vmem:[%s12487_s1 + $0x428] ss:$12 sps:$4 sm:$0xff]  }
  0xdd   :  { %5661 = vmatprep.subr.bf16.mxu0 %v8828_v27  ;;  %v8894_v27 = vld [vmem:[%s12487_s1 + $0xae4] ss:$12 sps:$4 sm:$0xff]  }
  0xdf   :  { %8096 = vmatpush3.bf16.msra.mxu1 %v8830_v30  ;;  %v8896_v30 = vld [vmem:[%s12487_s1 + $0x368] ss:$12 sps:$4 sm:$0xff]  }
  0xe0   :  { %5662 = vmatpush1.bf16.msra.mxu0 %v8826_v29  ;;  %8103 = vmatprep.subr.bf16.mxu1 %v8834_v32  ;;  %v8892_v29 = vld [vmem:[%s12487_s1 + $0xae0] ss:$12 sps:$4 sm:$0xff]  }
  0xe1   :  { %5663 = vmatprep.subr.bf16.mxu0 %v8833_v31  ;;  %v8899_v31 = vld [vmem:[%s12487_s1 + $0xafc] ss:$12 sps:$4 sm:$0xff]   ;;  %v8900_v32 = vld [vmem:[%s12487_s1 + $0x440] ss:$12 sps:$4 sm:$0xff]  }
  0xe2   :  { %6090 = vmatmul.mubr.bf16.vlgmr.msra.gmra.mrb[4].mxu1 %v9909_v19  ;;  %v8844_v19 = vld [vmem:[%s12487_s1 + $0x278] ss:$12 sps:$4 sm:$0xff]  }
  0xe3   :  { %8104 = vmatpush3.bf16.msra.mxu1 %v8835_v36  ;;  %6129 = vmatprep.mubr.bf16.mxu1 %v9926_v24  ;;  %v8846_v24 = vld [vmem:[%s12487_s1 + $0xa08] ss:$12 sps:$4 sm:$0xff]   ;;  %v8901_v36 = vld [vmem:[%s12487_s1 + $0x380] ss:$12 sps:$4 sm:$0xff]  }
  0xe4   :  { %5664 = vmatpush1.bf16.msra.mxu0 %v8831_v33  ;;  %8105 = vmatprep.subr.bf16.mxu1 %v8839_v38  ;;  %v8897_v33 = vld [vmem:[%s12487_s1 + $0xaf8] ss:$12 sps:$4 sm:$0xff]  }
  0xe5   :  { %5665 = vmatprep.subr.bf16.mxu0 %v8838_v37  ;;  %v8904_v37 = vld [vmem:[%s12487_s1 + $0xb14] ss:$12 sps:$4 sm:$0xff]   ;;  %v8905_v38 = vld [vmem:[%s12487_s1 + $0x458] ss:$12 sps:$4 sm:$0xff]  }
  0xe7   :  { %8106 = vmatpush3.bf16.msra.mxu1 %v8840_v40  ;;  %v8906_v40 = vld [vmem:[%s12487_s1 + $0x398] ss:$12 sps:$4 sm:$0xff]  }
  0xe8   :  { %5666 = vmatpush1.bf16.msra.mxu0 %v8836_v39  ;;  %8107 = vmatprep.subr.bf16.mxu1 %v8844_v19  ;;  %v8902_v39 = vld [vmem:[%s12487_s1 + $0xb10] ss:$12 sps:$4 sm:$0xff]  }
  0xe9   :  { %5667 = vmatprep.subr.bf16.mxu0 %v8843_v42  ;;  %v8909_v42 = vld [vmem:[%s12487_s1 + $0xb2c] ss:$12 sps:$4 sm:$0xff]   ;;  %v8910_v19 = vld [vmem:[%s12487_s1 + $0x470] ss:$12 sps:$4 sm:$0xff]  }
  0xeb   :  { %8108 = vmatpush3.bf16.msra.mxu1 %v8845_v44  ;;  %v8911_v44 = vld [vmem:[%s12487_s1 + $0x3b0] ss:$12 sps:$4 sm:$0xff]  }
  0xec   :  { %5668 = vmatpush1.bf16.msra.mxu0 %v8841_v43  ;;  %8109 = vmatprep.subr.bf16.mxu1 %v8849_v48  ;;  %v8907_v43 = vld [vmem:[%s12487_s1 + $0xb28] ss:$12 sps:$4 sm:$0xff]  }
  0xed   :  { %5669 = vmatprep.subr.bf16.mxu0 %v8848_v47  ;;  %v8914_v47 = vld [vmem:[%s12487_s1 + $0xb44] ss:$12 sps:$4 sm:$0xff]   ;;  %v8915_v48 = vld [vmem:[%s12487_s1 + $0x548] ss:$12 sps:$4 sm:$0xff]  }
  0xef   :  { %8110 = vmatpush3.bf16.msra.mxu1 %v8850_v49  ;;  %v8916_v49 = vld [vmem:[%s12487_s1 + $0x488] ss:$12 sps:$4 sm:$0xff]  }
  0xf0   :  { %5670 = vmatpush1.bf16.msra.mxu0 %v8846_v24  ;;  %8111 = vmatprep.subr.bf16.mxu1 %v8854_v52  ;;  %v8912_v24 = vld [vmem:[%s12487_s1 + $0xb40] ss:$12 sps:$4 sm:$0xff]  }
  0xf1   :  { %5671 = vmatprep.subr.bf16.mxu0 %v8853_v46  ;;  %v8919_v46 = vld [vmem:[%s12487_s1 + $0xb5c] ss:$12 sps:$4 sm:$0xff]   ;;  %v8920_v52 = vld [vmem:[%s12487_s1 + $0x560] ss:$12 sps:$4 sm:$0xff]  }
  0xf3   :  { %8112 = vmatpush3.bf16.msra.mxu1 %v8855_v54  ;;  %v8921_v54 = vld [vmem:[%s12487_s1 + $0x4a0] ss:$12 sps:$4 sm:$0xff]  }
  0xf4   :  { %5672 = vmatpush1.bf16.msra.mxu0 %v8851_v53  ;;  %8113 = vmatprep.subr.bf16.mxu1 %v8859_v57  ;;  %v8917_v53 = vld [vmem:[%s12487_s1 + $0xb58] ss:$12 sps:$4 sm:$0xff]   ;;  %v8922_v57 = vld [vmem:[%s12487_s1 + $0xb70] ss:$12 sps:$4 sm:$0xff]  }
  0xf5   :  { %5673 = vmatprep.subr.bf16.mxu0 %v8858_v55  ;;  %v8924_v55 = vld [vmem:[%s12487_s1 + $0xb74] ss:$12 sps:$4 sm:$0xff]  }
  0xf7   :  { %8114 = vmatpush3.bf16.msra.mxu1 %v8860_v60  ;;  %v8929_v60 = vld [vmem:[%s12487_s1 + $0xb8c] ss:$12 sps:$4 sm:$0xff]  }
  0xf8   :  { %5674 = vmatpush1.bf16.msra.mxu0 %v8856_v59  ;;  %8115 = vmatprep.subr.bf16.mxu1 %v8864_v0  ;;  %v8926_v59 = vld [vmem:[%s12487_s1 + $0x4b8] ss:$12 sps:$4 sm:$0xff]   ;;  %v8931_v0 = vld [vmem:[%s12487_s1 + $0x4d0] ss:$12 sps:$4 sm:$0xff]  }
  0xf9   :  { %5675 = vmatprep.subr.bf16.mxu0 %v8863_v61  ;;  %v8927_v61 = vld [vmem:[%s12487_s1 + $0xb88] ss:$12 sps:$4 sm:$0xff]  }
  0xfb   :  { %8116 = vmatpush3.bf16.msra.mxu1 %v8865_v2  ;;  %v8935_v2 = vld [vmem:[%s12487_s1 + $0x5a8] ss:$12 sps:$4 sm:$0xff]  }
  0xfc   :  { %5676 = vmatpush1.bf16.msra.mxu0 %v8861_v1  ;;  %8117 = vmatprep.subr.bf16.mxu1 %v8869_v6  ;;  %v8934_v1 = vld [vmem:[%s12487_s1 + $0xba4] ss:$12 sps:$4 sm:$0xff]   ;;  %v8936_v6 = vld [vmem:[%s12487_s1 + $0x4e8] ss:$12 sps:$4 sm:$0xff]  }
  0xfd   :  { %5677 = vmatprep.subr.bf16.mxu0 %v8868_v4  ;;  %v8932_v4 = vld [vmem:[%s12487_s1 + $0xba0] ss:$12 sps:$4 sm:$0xff]  }
  0xff   :  { %8118 = vmatpush3.bf16.msra.mxu1 %v8870_v8  ;;  %v8940_v8 = vld [vmem:[%s12487_s1 + $0x5c0] ss:$12 sps:$4 sm:$0xff]  }
 0x100   :  { %5678 = vmatpush1.bf16.msra.mxu0 %v8866_v7  ;;  %8125 = vmatprep.subr.bf16.mxu1 %v8875_v9  ;;  %v8939_v7 = vld [vmem:[%s12487_s1 + $0xbbc] ss:$12 sps:$4 sm:$0xff]   ;;  %v8941_v9 = vld [vmem:[%s12487_s1 + $0x500] ss:$12 sps:$4 sm:$0xff]  }
 0x101   :  { %5688 = vmatprep.subr.bf16.mxu0 %v8874_v62  ;;  %v8937_v62 = vld [vmem:[%s12487_s1 + $0xbb8] ss:$12 sps:$4 sm:$0xff]  }
 0x102   :  { %6130 = vmatmul.mubr.bf16.vlgmr.msra.gmra.mrb[8].mxu1 %v10128_v34  ;;  %v8885_v34 = vld [vmem:[%s12487_s1 + $0x3f8] ss:$12 sps:$4 sm:$0xff]  }
 0x103   :  { %5680 = vmatmul.mubr.bf16.vlgmr.msra.gmra.mrb[0].mxu0 %v10551_v11  ;;  %8126 = vmatpush3.bf16.msra.mxu1 %v8876_v12  ;;  %v8945_v12 = vld [vmem:[%s12487_s1 + $0x5d8] ss:$12 sps:$4 sm:$0xff]  }
 0x104   :  { %5689 = vmatpush1.bf16.msra.mxu0 %v8872_v10  ;;  %8127 = vmatprep.subr.bf16.mxu1 %v8880_v15  ;;  %v8944_v10 = vld [vmem:[%s12487_s1 + $0xbd4] ss:$12 sps:$4 sm:$0xff]  }
 0x105   :  { %5690 = vmatprep.subr.bf16.mxu0 %v8879_v13  ;;  %6169 = vmatprep.mubr.bf16.mxu1 %v9858_v3  ;;  %v8887_v3 = vld [vmem:[%s12487_s1 + $0xac8] ss:$12 sps:$4 sm:$0xff]   ;;  %v8942_v13 = vld [vmem:[%s12487_s1 + $0xbd0] ss:$12 sps:$4 sm:$0xff]  }
 0x106   :  { %5720 = vmatprep.mubr.bf16.mxu0 %v10564_v50  ;;  %v10734_v15 = vld [vmem:[%s12486_s0 + $0x10] sm:$0xff] }
 0x107   :  { %8128 = vmatpush3.bf16.msra.mxu1 %v8881_v17  ;;  %v8949_v17 = vld [vmem:[%s12487_s1 + $0xbec] ss:$12 sps:$4 sm:$0xff]  }
 0x108   :  { %5691 = vmatpush1.bf16.msra.mxu0 %v8877_v16  ;;  %8129 = vmatprep.subr.bf16.mxu1 %v8885_v34  ;;  %v8946_v16 = vld [vmem:[%s12487_s1 + $0x518] ss:$12 sps:$4 sm:$0xff]   ;;  %v10747_v34 = vrot.slane %v10734_v15, %v9823_v51 }
 0x109   :  { %5692 = vmatprep.subr.bf16.mxu0 %v8884_v18  ;;  %v8950_v18 = vld [vmem:[%s12487_s1 + $0x5f0] ss:$12 sps:$4 sm:$0xff]  }
 0x10b   :  { %8130 = vmatpush3.bf16.msra.mxu1 %v8886_v22  ;;  %v8951_v22 = vld [vmem:[%s12487_s1 + $0x530] ss:$12 sps:$4 sm:$0xff]  }
 0x10c   :  { %5693 = vmatpush1.bf16.msra.mxu0 %v8882_v21  ;;  %8131 = vmatprep.subr.bf16.mxu1 %v8890_v25  ;;  %v8947_v21 = vld [vmem:[%s12487_s1 + $0xbe8] ss:$12 sps:$4 sm:$0xff]  }
 0x10d   :  { %5694 = vmatprep.subr.bf16.mxu0 %v8889_v23  ;;  %v8954_v23 = vld [vmem:[%s12487_s1 + $0xc04] ss:$12 sps:$4 sm:$0xff]   ;;  %v8955_v25 = vld [vmem:[%s12487_s1 + $0x6c8] ss:$12 sps:$4 sm:$0xff]  }
 0x10f   :  { %8132 = vmatpush3.bf16.msra.mxu1 %v8891_v26  ;;  %v1190_v26 = vcombine.high %v10747_v34, %v10747_v34 }
 0x110   :  { %5695 = vmatpush1.bf16.msra.mxu0 %v8887_v3  ;;  %8133 = vmatprep.subr.bf16.mxu1 %v8895_v28  ;;  %v8952_v3 = vld [vmem:[%s12487_s1 + $0xc00] ss:$12 sps:$4 sm:$0xff]   ;;  %v8956_v28 = vld [vmem:[%s12487_s1 + $0x608] ss:$12 sps:$4 sm:$0xff]  }
 0x111   :  { %5696 = vmatprep.subr.bf16.mxu0 %v8894_v27  ;;  %v10768_v27 = vcombine.high %v10551_v11, %v10551_v11 }
 0x113   :  { %8134 = vmatpush3.bf16.msra.mxu1 %v8896_v30  ;;  %v8960_v30 = vld [vmem:[%s12487_s1 + $0x6e0] ss:$12 sps:$4 sm:$0xff]  }
 0x114   :  { %5697 = vmatpush1.bf16.msra.mxu0 %v8892_v29  ;;  %8135 = vmatprep.subr.bf16.mxu1 %v8900_v32  ;;  %v8959_v29 = vld [vmem:[%s12487_s1 + $0xc1c] ss:$12 sps:$4 sm:$0xff]   ;;  %v8957_v32 = vld [vmem:[%s12487_s1 + $0xc18] ss:$12 sps:$4 sm:$0xff]  }
 0x115   :  { %5698 = vmatprep.subr.bf16.mxu0 %v8899_v31  ;;  %v10780_v31 = vrot.slane %v1190_v26, %v9823_v51  ;;  %v9024_v26 = vld [vmem:[%s12487_s1 + $0xd54] ss:$12 sps:$4 sm:$0xff]  }
 0x117   :  { %8136 = vmatpush3.bf16.msra.mxu1 %v8901_v36  ;;  %v8964_v36 = vld [vmem:[%s12487_s1 + $0xc34] ss:$12 sps:$4 sm:$0xff]  }
 0x118   :  { %5699 = vmatpush1.bf16.msra.mxu0 %v8897_v33  ;;  %8137 = vmatprep.subr.bf16.mxu1 %v8905_v38  ;;  %v8961_v33 = vld [vmem:[%s12487_s1 + $0x620] ss:$12 sps:$4 sm:$0xff]   ;;  %v8966_v38 = vld [vmem:[%s12487_s1 + $0x638] ss:$12 sps:$4 sm:$0xff]  }
 0x119   :  { %5700 = vmatprep.subr.bf16.mxu0 %v8904_v37  ;;  %v8962_v37 = vld [vmem:[%s12487_s1 + $0xc30] ss:$12 sps:$4 sm:$0xff]  }
 0x11b   :  { %8138 = vmatpush3.bf16.msra.mxu1 %v8906_v40  ;;  %v8970_v40 = vld [vmem:[%s12487_s1 + $0x710] ss:$12 sps:$4 sm:$0xff]  }
 0x11c   :  { %5701 = vmatpush1.bf16.msra.mxu0 %v8902_v39  ;;  %8139 = vmatprep.subr.bf16.mxu1 %v8910_v19  ;;  %v8969_v39 = vld [vmem:[%s12487_s1 + $0xc4c] ss:$12 sps:$4 sm:$0xff]   ;;  %v8974_v19 = vld [vmem:[%s12487_s1 + $0xc64] ss:$12 sps:$4 sm:$0xff]  }
 0x11d   :  { %5702 = vmatprep.subr.bf16.mxu0 %v8909_v42  ;;  %v8971_v42 = vld [vmem:[%s12487_s1 + $0x650] ss:$12 sps:$4 sm:$0xff]  }
 0x11f   :  { %8140 = vmatpush3.bf16.msra.mxu1 %v8911_v44  ;;  %v8972_v44 = vld [vmem:[%s12487_s1 + $0xc60] ss:$12 sps:$4 sm:$0xff]  }
 0x120   :  { %5703 = vmatpush1.bf16.msra.mxu0 %v8907_v43  ;;  %8147 = vmatprep.subr.bf16.mxu1 %v8915_v48  ;;  %v8975_v43 = vld [vmem:[%s12487_s1 + $0x728] ss:$12 sps:$4 sm:$0xff]  }
 0x121   :  { %5704 = vmatprep.subr.bf16.mxu0 %v8914_v47  ;;  %v8976_v47 = vld [vmem:[%s12487_s1 + $0x668] ss:$12 sps:$4 sm:$0xff]  }
 0x122   :  { %6170 = vmatmul.mubr.bf16.vlgmr.msra.gmra.mrb[12].mxu1 %v9894_v14  ;;  %v8925_v14 = vld [vmem:[%s12487_s1 + $0x578] ss:$12 sps:$4 sm:$0xff]   ;;  %v8979_v48 = vld [vmem:[%s12487_s1 + $0xc7c] ss:$12 sps:$4 sm:$0xff]  }
 0x123   :  { %8148 = vmatpush3.bf16.msra.mxu1 %v8916_v49  ;;  %6209 = vmatprep.mubr.bf16.mxu1 %v9866_v5  ;;  %v8930_v5 = vld [vmem:[%s12487_s1 + $0x590] ss:$12 sps:$4 sm:$0xff]   ;;  %v8977_v49 = vld [vmem:[%s12487_s1 + $0xc78] ss:$12 sps:$4 sm:$0xff]  }
 0x124   :  { %5705 = vmatpush1.bf16.msra.mxu0 %v8912_v24  ;;  %8149 = vmatprep.subr.bf16.mxu1 %v8920_v52  ;;  %v8980_v24 = vld [vmem:[%s12487_s1 + $0x740] ss:$12 sps:$4 sm:$0xff]  }
 0x125   :  { %5706 = vmatprep.subr.bf16.mxu0 %v8919_v46  ;;  %v8981_v46 = vld [vmem:[%s12487_s1 + $0x680] ss:$12 sps:$4 sm:$0xff]  }
 0x126   :  { %v8984_v52 = vld [vmem:[%s12487_s1 + $0xc94] ss:$12 sps:$4 sm:$0xff]  }
 0x127   :  { %8150 = vmatpush3.bf16.msra.mxu1 %v8921_v54  ;;  %v8982_v54 = vld [vmem:[%s12487_s1 + $0xc90] ss:$12 sps:$4 sm:$0xff]  }
 0x128   :  { %5707 = vmatpush1.bf16.msra.mxu0 %v8917_v53  ;;  %8151 = vmatprep.subr.bf16.mxu1 %v8925_v14  ;;  %v8985_v53 = vld [vmem:[%s12487_s1 + $0x758] ss:$12 sps:$4 sm:$0xff]  }
 0x129   :  { %5708 = vmatprep.subr.bf16.mxu0 %v8924_v55  ;;  %v8986_v55 = vld [vmem:[%s12487_s1 + $0x698] ss:$12 sps:$4 sm:$0xff]  }
 0x12a   :  { %v8989_v14 = vld [vmem:[%s12487_s1 + $0xcac] ss:$12 sps:$4 sm:$0xff]  }
 0x12b   :  { %8152 = vmatpush3.bf16.msra.mxu1 %v8926_v59  ;;  %v8987_v59 = vld [vmem:[%s12487_s1 + $0xca8] ss:$12 sps:$4 sm:$0xff]  }
 0x12c   :  { %5709 = vmatpush1.bf16.msra.mxu0 %v8922_v57  ;;  %8153 = vmatprep.subr.bf16.mxu1 %v8930_v5  ;;  %v8990_v57 = vld [vmem:[%s12487_s1 + $0x770] ss:$12 sps:$4 sm:$0xff]  }
 0x12d   :  { %5710 = vmatprep.subr.bf16.mxu0 %v8929_v60  ;;  %v8991_v60 = vld [vmem:[%s12487_s1 + $0x6b0] ss:$12 sps:$4 sm:$0xff]  }
 0x12e   :  { %v8994_v5 = vld [vmem:[%s12487_s1 + $0xcc4] ss:$12 sps:$4 sm:$0xff]  }
 0x12f   :  { %8154 = vmatpush3.bf16.msra.mxu1 %v8931_v0  ;;  %v8992_v0 = vld [vmem:[%s12487_s1 + $0xcc0] ss:$12 sps:$4 sm:$0xff]  }
 0x130   :  { %5711 = vmatpush1.bf16.msra.mxu0 %v8927_v61  ;;  %8155 = vmatprep.subr.bf16.mxu1 %v8935_v2  ;;  %v8995_v61 = vld [vmem:[%s12487_s1 + $0x848] ss:$12 sps:$4 sm:$0xff]  }
 0x131   :  { %5712 = vmatprep.subr.bf16.mxu0 %v8934_v1  ;;  %v8996_v1 = vld [vmem:[%s12487_s1 + $0x788] ss:$12 sps:$4 sm:$0xff]  }
 0x132   :  { %v8999_v2 = vld [vmem:[%s12487_s1 + $0xcdc] ss:$12 sps:$4 sm:$0xff]  }
 0x133   :  { %8156 = vmatpush3.bf16.msra.mxu1 %v8936_v6  ;;  %v8997_v6 = vld [vmem:[%s12487_s1 + $0xcd8] ss:$12 sps:$4 sm:$0xff]  }
 0x134   :  { %5713 = vmatpush1.bf16.msra.mxu0 %v8932_v4  ;;  %8157 = vmatprep.subr.bf16.mxu1 %v8940_v8  ;;  %v9000_v4 = vld [vmem:[%s12487_s1 + $0x860] ss:$12 sps:$4 sm:$0xff]  }
 0x135   :  { %5714 = vmatprep.subr.bf16.mxu0 %v8939_v7  ;;  %v9001_v7 = vld [vmem:[%s12487_s1 + $0x7a0] ss:$12 sps:$4 sm:$0xff]  }
 0x136   :  { %v9004_v8 = vld [vmem:[%s12487_s1 + $0xcf4] ss:$12 sps:$4 sm:$0xff]  }
 0x137   :  { %8158 = vmatpush3.bf16.msra.mxu1 %v8941_v9  ;;  %v9006_v9 = vld [vmem:[%s12487_s1 + $0x7b8] ss:$12 sps:$4 sm:$0xff]  }
 0x138   :  { %5715 = vmatpush1.bf16.msra.mxu0 %v8937_v62  ;;  %8159 = vmatprep.subr.bf16.mxu1 %v8945_v12  ;;  %v9005_v62 = vld [vmem:[%s12487_s1 + $0x878] ss:$12 sps:$4 sm:$0xff]   ;;  %v9007_v12 = vld [vmem:[%s12487_s1 + $0xd08] ss:$12 sps:$4 sm:$0xff]  }
 0x139   :  { %5716 = vmatprep.subr.bf16.mxu0 %v8944_v10  ;;  %v9009_v10 = vld [vmem:[%s12487_s1 + $0xd0c] ss:$12 sps:$4 sm:$0xff]  }
 0x13b   :  { %8160 = vmatpush3.bf16.msra.mxu1 %v8946_v16  ;;  %v9014_v16 = vld [vmem:[%s12487_s1 + $0xd24] ss:$12 sps:$4 sm:$0xff]  }
 0x13c   :  { %5717 = vmatpush1.bf16.msra.mxu0 %v8942_v13  ;;  %8161 = vmatprep.subr.bf16.mxu1 %v8950_v18  ;;  %v9011_v13 = vld [vmem:[%s12487_s1 + $0x7d0] ss:$12 sps:$4 sm:$0xff]   ;;  %v9012_v18 = vld [vmem:[%s12487_s1 + $0xd20] ss:$12 sps:$4 sm:$0xff]  }
 0x13d   :  { %5718 = vmatprep.subr.bf16.mxu0 %v8949_v17  ;;  %v9015_v17 = vld [vmem:[%s12487_s1 + $0x8a8] ss:$12 sps:$4 sm:$0xff]  }
 0x13f   :  { %8162 = vmatpush3.bf16.msra.mxu1 %v8951_v22  ;;  %v9019_v22 = vld [vmem:[%s12487_s1 + $0xd3c] ss:$12 sps:$4 sm:$0xff]  }
 0x140   :  { %5719 = vmatpush1.bf16.msra.mxu0 %v8947_v21  ;;  %8169 = vmatprep.subr.bf16.mxu1 %v8955_v25  ;;  %v9016_v21 = vld [vmem:[%s12487_s1 + $0x7e8] ss:$12 sps:$4 sm:$0xff]   ;;  %v9017_v25 = vld [vmem:[%s12487_s1 + $0xd38] ss:$12 sps:$4 sm:$0xff]  }
 0x141   :  { %5729 = vmatprep.subr.bf16.mxu0 %v8954_v23  ;;  %v9020_v23 = vld [vmem:[%s12487_s1 + $0x8c0] ss:$12 sps:$4 sm:$0xff]  }
 0x142   :  { %6210 = vmatmul.mubr.bf16.vlgmr.msra.gmra.mrb[16].mxu1 %v9913_v20  ;;  %v8965_v20 = vld [vmem:[%s12487_s1 + $0x6f8] ss:$12 sps:$4 sm:$0xff]  }
 0x143   :  { %5721 = vmatmul.mubr.bf16.vlgmr.msra.gmra.mrb[0].mxu0 %v10768_v27  ;;  %8170 = vmatpush3.bf16.msra.mxu1 %v8956_v28  ;;  %v9025_v28 = vld [vmem:[%s12487_s1 + $0x8d8] ss:$12 sps:$4 sm:$0xff]  }
 0x144   :  { %5730 = vmatpush1.bf16.msra.mxu0 %v8952_v3  ;;  %8171 = vmatprep.subr.bf16.mxu1 %v8960_v30  ;;  %v9021_v3 = vld [vmem:[%s12487_s1 + $0x800] ss:$12 sps:$4 sm:$0xff]   ;;  %v9026_v30 = vld [vmem:[%s12487_s1 + $0x818] ss:$12 sps:$4 sm:$0xff]  }
 0x145   :  { %5731 = vmatprep.subr.bf16.mxu0 %v8959_v29  ;;  %6249 = vmatprep.mubr.bf16.mxu1 %v10021_v56  ;;  %v8967_v56 = vld [vmem:[%s12487_s1 + $0xc48] ss:$12 sps:$4 sm:$0xff]   ;;  %v9022_v29 = vld [vmem:[%s12487_s1 + $0xd50] ss:$12 sps:$4 sm:$0xff]  }
 0x146   :  { %5761 = vmatprep.mubr.bf16.mxu0 %v10780_v31 }
 0x147   :  { %8172 = vmatpush3.bf16.msra.mxu1 %v8961_v33  ;;  %v9030_v33 = vld [vmem:[%s12487_s1 + $0x8f0] ss:$12 sps:$4 sm:$0xff]  }
 0x148   :  { %5732 = vmatpush1.bf16.msra.mxu0 %v8957_v32  ;;  %8173 = vmatprep.subr.bf16.mxu1 %v8965_v20  ;;  %v9029_v32 = vld [vmem:[%s12487_s1 + $0xd6c] ss:$12 sps:$4 sm:$0xff]   ;;  %v9031_v20 = vld [vmem:[%s12487_s1 + $0x830] ss:$12 sps:$4 sm:$0xff]  }
 0x149   :  { %5733 = vmatprep.subr.bf16.mxu0 %v8964_v36  ;;  %v9027_v36 = vld [vmem:[%s12487_s1 + $0xd68] ss:$12 sps:$4 sm:$0xff]  }
 0x14b   :  { %8174 = vmatpush3.bf16.msra.mxu1 %v8966_v38  ;;  %v9035_v38 = vld [vmem:[%s12487_s1 + $0x9c8] ss:$12 sps:$4 sm:$0xff]  }
 0x14c   :  { %5734 = vmatpush1.bf16.msra.mxu0 %v8962_v37  ;;  %8175 = vmatprep.subr.bf16.mxu1 %v8970_v40  ;;  %v9034_v37 = vld [vmem:[%s12487_s1 + $0xd84] ss:$12 sps:$4 sm:$0xff]   ;;  %v10973_v40 = vrot.slane %v10747_v34, %v9823_v51 }
 0x14d   :  { %5735 = vmatprep.subr.bf16.mxu0 %v8969_v39  ;;  %v9032_v39 = vld [vmem:[%s12487_s1 + $0xd80] ss:$12 sps:$4 sm:$0xff]   ;;  %v9037_v34 = vld [vmem:[%s12487_s1 + $0xd98] ss:$12 sps:$4 sm:$0xff]  }
 0x14f   :  { %8176 = vmatpush3.bf16.msra.mxu1 %v8971_v42  ;;  %v9039_v42 = vld [vmem:[%s12487_s1 + $0xd9c] ss:$12 sps:$4 sm:$0xff]  }
 0x150   :  { %5736 = vmatpush1.bf16.msra.mxu0 %v8967_v56  ;;  %8177 = vmatprep.subr.bf16.mxu1 %v8975_v43  ;;  %v9036_v56 = vld [vmem:[%s12487_s1 + $0x908] ss:$12 sps:$4 sm:$0xff]   ;;  %v10989_v43 = vcombine.high %v10780_v31, %v10780_v31 }
 0x151   :  { %5737 = vmatprep.subr.bf16.mxu0 %v8974_v19  ;;  %v9040_v19 = vld [vmem:[%s12487_s1 + $0x9e0] ss:$12 sps:$4 sm:$0xff]  }
 0x153   :  { %8178 = vmatpush3.bf16.msra.mxu1 %v8976_v47  ;;  %v9044_v47 = vld [vmem:[%s12487_s1 + $0xdb4] ss:$12 sps:$4 sm:$0xff]  }
 0x154   :  { %5738 = vmatpush1.bf16.msra.mxu0 %v8972_v44  ;;  %8179 = vmatprep.subr.bf16.mxu1 %v8980_v24  ;;  %v9041_v44 = vld [vmem:[%s12487_s1 + $0x920] ss:$12 sps:$4 sm:$0xff]   ;;  %v9046_v24 = vld [vmem:[%s12487_s1 + $0x938] ss:$12 sps:$4 sm:$0xff]  }
 0x155   :  { %5739 = vmatprep.subr.bf16.mxu0 %v8979_v48  ;;  %v9045_v48 = vld [vmem:[%s12487_s1 + $0x9f8] ss:$12 sps:$4 sm:$0xff]  }
 0x157   :  { %8180 = vmatpush3.bf16.msra.mxu1 %v8981_v46  ;;  %v9047_v46 = vld [vmem:[%s12487_s1 + $0xdc8] ss:$12 sps:$4 sm:$0xff]  }
 0x158   :  { %5740 = vmatpush1.bf16.msra.mxu0 %v8977_v49  ;;  %8181 = vmatprep.subr.bf16.mxu1 %v8985_v53  ;;  %v9049_v49 = vld [vmem:[%s12487_s1 + $0xdcc] ss:$12 sps:$4 sm:$0xff]   ;;  %v9054_v53 = vld [vmem:[%s12487_s1 + $0xde4] ss:$12 sps:$4 sm:$0xff]  }
 0x159   :  { %5741 = vmatprep.subr.bf16.mxu0 %v8984_v52  ;;  %v9051_v52 = vld [vmem:[%s12487_s1 + $0x950] ss:$12 sps:$4 sm:$0xff]  }
 0x15b   :  { %8182 = vmatpush3.bf16.msra.mxu1 %v8986_v55  ;;  %v9052_v55 = vld [vmem:[%s12487_s1 + $0xde0] ss:$12 sps:$4 sm:$0xff]  }
 0x15c   :  { %5742 = vmatpush1.bf16.msra.mxu0 %v8982_v54  ;;  %8183 = vmatprep.subr.bf16.mxu1 %v8990_v57  ;;  %v9055_v54 = vld [vmem:[%s12487_s1 + $0xa28] ss:$12 sps:$4 sm:$0xff]  }
 0x15d   :  { %5743 = vmatprep.subr.bf16.mxu0 %v8989_v14  ;;  %v9056_v14 = vld [vmem:[%s12487_s1 + $0x968] ss:$12 sps:$4 sm:$0xff]  }
 0x15e   :  { %v9059_v57 = vld [vmem:[%s12487_s1 + $0xdfc] ss:$12 sps:$4 sm:$0xff]  }
 0x15f   :  { %8184 = vmatpush3.bf16.msra.mxu1 %v8991_v60  ;;  %v9057_v60 = vld [vmem:[%s12487_s1 + $0xdf8] ss:$12 sps:$4 sm:$0xff]  }
 0x160   :  { %5744 = vmatpush1.bf16.msra.mxu0 %v8987_v59  ;;  %8191 = vmatprep.subr.bf16.mxu1 %v8995_v61  ;;  %v9060_v59 = vld [vmem:[%s12487_s1 + $0xa40] ss:$12 sps:$4 sm:$0xff]  }
 0x161   :  { %5745 = vmatprep.subr.bf16.mxu0 %v8994_v5  ;;  %v9061_v5 = vld [vmem:[%s12487_s1 + $0x980] ss:$12 sps:$4 sm:$0xff]  }
 0x162   :  { %6250 = vmatmul.mubr.bf16.vlgmr.msra.gmra.mrb[20].mxu1 %v10132_v35  ;;  %v9002_v35 = vld [vmem:[%s12487_s1 + $0xcf0] ss:$12 sps:$4 sm:$0xff]   ;;  %v9064_v61 = vld [vmem:[%s12487_s1 + $0xe14] ss:$12 sps:$4 sm:$0xff]  }
 0x163   :  { %8192 = vmatpush3.bf16.msra.mxu1 %v8996_v1  ;;  %6289 = vmatprep.mubr.bf16.mxu1 %v10151_v41  ;;  %v9010_v41 = vld [vmem:[%s12487_s1 + $0x890] ss:$12 sps:$4 sm:$0xff]  }
 0x164   :  { %5746 = vmatpush1.bf16.msra.mxu0 %v8992_v0  ;;  %8193 = vmatprep.subr.bf16.mxu1 %v9000_v4  ;;  %v9065_v0 = vld [vmem:[%s12487_s1 + $0xa58] ss:$12 sps:$4 sm:$0xff]   ;;  %v9062_v1 = vld [vmem:[%s12487_s1 + $0xe10] ss:$12 sps:$4 sm:$0xff]  }
 0x165   :  { %5747 = vmatprep.subr.bf16.mxu0 %v8999_v2  ;;  %v9066_v2 = vld [vmem:[%s12487_s1 + $0x998] ss:$12 sps:$4 sm:$0xff]  }
 0x167   :  { %8194 = vmatpush3.bf16.msra.mxu1 %v9001_v7 }
 0x168   :  { %5748 = vmatpush1.bf16.msra.mxu0 %v8997_v6  ;;  %8195 = vmatprep.subr.bf16.mxu1 %v9005_v62  ;;  %v9069_v6 = vld [vmem:[%s12487_s1 + $0xe2c] ss:$12 sps:$4 sm:$0xff]  }
 0x169   :  { %5749 = vmatprep.subr.bf16.mxu0 %v9004_v8  ;;  %v9070_v8 = vld [vmem:[%s12487_s1 + $0xa70] ss:$12 sps:$4 sm:$0xff]  }
 0x16b   :  { %8196 = vmatpush3.bf16.msra.mxu1 %v9006_v9  ;;  %v9067_v9 = vld [vmem:[%s12487_s1 + $0xe28] ss:$12 sps:$4 sm:$0xff]  }
 0x16c   :  { %5750 = vmatpush1.bf16.msra.mxu0 %v9002_v35  ;;  %8197 = vmatprep.subr.bf16.mxu1 %v9010_v41  ;;  %v9074_v41 = vld [vmem:[%s12487_s1 + $0xe44] ss:$12 sps:$4 sm:$0xff]  }
 0x16d   :  { %5751 = vmatprep.subr.bf16.mxu0 %v9009_v10  ;;  %v9071_v10 = vld [vmem:[%s12487_s1 + $0x9b0] ss:$12 sps:$4 sm:$0xff]  }
 0x16f   :  { %8198 = vmatpush3.bf16.msra.mxu1 %v9011_v13  ;;  %v9072_v13 = vld [vmem:[%s12487_s1 + $0xe40] ss:$12 sps:$4 sm:$0xff]  }
 0x170   :  { %5752 = vmatpush1.bf16.msra.mxu0 %v9007_v12  ;;  %8199 = vmatprep.subr.bf16.mxu1 %v9015_v17  ;;  %v9075_v12 = vld [vmem:[%s12487_s1 + $0xb48] ss:$12 sps:$4 sm:$0xff]  }
 0x171   :  { %5753 = vmatprep.subr.bf16.mxu0 %v9014_v16  ;;  %v9076_v16 = vld [vmem:[%s12487_s1 + $0xa88] ss:$12 sps:$4 sm:$0xff]  }
 0x172   :  { %v9079_v17 = vld [vmem:[%s12487_s1 + $0xe5c] ss:$12 sps:$4 sm:$0xff]  }
 0x173   :  { %8200 = vmatpush3.bf16.msra.mxu1 %v9016_v21  ;;  %v9077_v21 = vld [vmem:[%s12487_s1 + $0xe58] ss:$12 sps:$4 sm:$0xff]  }
 0x174   :  { %5754 = vmatpush1.bf16.msra.mxu0 %v9012_v18  ;;  %8201 = vmatprep.subr.bf16.mxu1 %v9020_v23  ;;  %v9080_v18 = vld [vmem:[%s12487_s1 + $0xb60] ss:$12 sps:$4 sm:$0xff]  }
 0x175   :  { %5755 = vmatprep.subr.bf16.mxu0 %v9019_v22  ;;  %v9081_v22 = vld [vmem:[%s12487_s1 + $0xaa0] ss:$12 sps:$4 sm:$0xff]  }
 0x176   :  { %v9084_v23 = vld [vmem:[%s12487_s1 + $0xe74] ss:$12 sps:$4 sm:$0xff]  }
 0x177   :  { %8202 = vmatpush3.bf16.msra.mxu1 %v9021_v3  ;;  %v9086_v3 = vld [vmem:[%s12487_s1 + $0xab8] ss:$12 sps:$4 sm:$0xff]  }
 0x178   :  { %5756 = vmatpush1.bf16.msra.mxu0 %v9017_v25  ;;  %8203 = vmatprep.subr.bf16.mxu1 %v9025_v28  ;;  %v9082_v25 = vld [vmem:[%s12487_s1 + $0xe70] ss:$12 sps:$4 sm:$0xff]   ;;  %v9087_v28 = vld [vmem:[%s12487_s1 + $0xe88] ss:$12 sps:$4 sm:$0xff]  }
 0x179   :  { %5757 = vmatprep.subr.bf16.mxu0 %v9024_v26  ;;  %v9089_v26 = vld [vmem:[%s12487_s1 + $0xe8c] ss:$12 sps:$4 sm:$0xff]  }
 0x17b   :  { %8204 = vmatpush3.bf16.msra.mxu1 %v9026_v30  ;;  %v9094_v30 = vld [vmem:[%s12487_s1 + $0xea4] ss:$12 sps:$4 sm:$0xff]  }
 0x17c   :  { %5758 = vmatpush1.bf16.msra.mxu0 %v9022_v29  ;;  %8205 = vmatprep.subr.bf16.mxu1 %v9030_v33  ;;  %v9091_v29 = vld [vmem:[%s12487_s1 + $0xad0] ss:$12 sps:$4 sm:$0xff]   ;;  %v9092_v33 = vld [vmem:[%s12487_s1 + $0xea0] ss:$12 sps:$4 sm:$0xff]  }
 0x17d   :  { %5759 = vmatprep.subr.bf16.mxu0 %v9029_v32  ;;  %v9095_v32 = vld [vmem:[%s12487_s1 + $0xba8] ss:$12 sps:$4 sm:$0xff]  }
 0x17f   :  { %8206 = vmatpush3.bf16.msra.mxu1 %v9031_v20  ;;  %v9099_v20 = vld [vmem:[%s12487_s1 + $0xebc] ss:$12 sps:$4 sm:$0xff]  }
 0x180   :  { %5760 = vmatpush1.bf16.msra.mxu0 %v9027_v36  ;;  %8213 = vmatprep.subr.bf16.mxu1 %v9035_v38  ;;  %v9096_v36 = vld [vmem:[%s12487_s1 + $0xae8] ss:$12 sps:$4 sm:$0xff]   ;;  %v9097_v38 = vld [vmem:[%s12487_s1 + $0xeb8] ss:$12 sps:$4 sm:$0xff]  }
 0x181   :  { %5770 = vmatprep.subr.bf16.mxu0 %v9034_v37  ;;  %v9100_v37 = vld [vmem:[%s12487_s1 + $0xbc0] ss:$12 sps:$4 sm:$0xff]  }
 0x182   :  { %6290 = vmatmul.mubr.bf16.vlgmr.msra.gmra.mrb[24].mxu1 %v10346_v58  ;;  %v9042_v58 = vld [vmem:[%s12487_s1 + $0xdb0] ss:$12 sps:$4 sm:$0xff]  }
 0x183   :  { %5762 = vmatmul.mubr.bf16.vlgmr.msra.gmra.mrb[0].mxu0 %v10973_v40  ;;  %8214 = vmatpush3.bf16.msra.mxu1 %v9036_v56  ;;  %v9104_v56 = vld [vmem:[%s12487_s1 + $0xed4] ss:$12 sps:$4 sm:$0xff]  }
 0x184   :  { %5771 = vmatpush1.bf16.msra.mxu0 %v9032_v39  ;;  %8215 = vmatprep.subr.bf16.mxu1 %v9040_v19  ;;  %v9101_v39 = vld [vmem:[%s12487_s1 + $0xb00] ss:$12 sps:$4 sm:$0xff]   ;;  %v1175_v19 = vcombine.high %v10734_v15, %v10734_v15  ;;  %v9110_v15 = vld [vmem:[%s12487_s1 + $0xbf0] ss:$12 sps:$4 sm:$0xff]  }
 0x185   :  { %5772 = vmatprep.subr.bf16.mxu0 %v9039_v42  ;;  %6329 = vmatprep.mubr.bf16.mxu1 %v10358_v63  ;;  %v9050_v63 = vld [vmem:[%s12487_s1 + $0xa10] ss:$12 sps:$4 sm:$0xff]   ;;  %v9105_v42 = vld [vmem:[%s12487_s1 + $0xbd8] ss:$12 sps:$4 sm:$0xff]  }
 0x186   :  { %5802 = vmatprep.mubr.bf16.mxu0 %v10989_v43 }
 0x187   :  { %8216 = vmatpush3.bf16.msra.mxu1 %v9041_v44  ;;  %v9106_v44 = vld [vmem:[%s12487_s1 + $0xb18] ss:$12 sps:$4 sm:$0xff]  }
 0x188   :  { %5773 = vmatpush1.bf16.msra.mxu0 %v9037_v34  ;;  %8217 = vmatprep.subr.bf16.mxu1 %v9045_v48  ;;  %v9102_v34 = vld [vmem:[%s12487_s1 + $0xed0] ss:$12 sps:$4 sm:$0xff]   ;;  %v11169_v48 = vrot.slane %v1175_v19, %v9823_v51 }
 0x189   :  { %5774 = vmatprep.subr.bf16.mxu0 %v9044_v47  ;;  %v9109_v47 = vld [vmem:[%s12487_s1 + $0xeec] ss:$12 sps:$4 sm:$0xff]   ;;  %v9154_v19 = vld [vmem:[%s12487_s1 + $0xfc4] ss:$12 sps:$4 sm:$0xff]  }
 0x18b   :  { %8218 = vmatpush3.bf16.msra.mxu1 %v9046_v24  ;;  %v9111_v24 = vld [vmem:[%s12487_s1 + $0xb30] ss:$12 sps:$4 sm:$0xff]  }
 0x18c   :  { %5775 = vmatpush1.bf16.msra.mxu0 %v9042_v58  ;;  %8219 = vmatprep.subr.bf16.mxu1 %v9050_v63  ;;  %v9107_v58 = vld [vmem:[%s12487_s1 + $0xee8] ss:$12 sps:$4 sm:$0xff]  }
 0x18d   :  { %5776 = vmatprep.subr.bf16.mxu0 %v9049_v49  ;;  %v9114_v49 = vld [vmem:[%s12487_s1 + $0xf04] ss:$12 sps:$4 sm:$0xff]   ;;  %v9115_v63 = vld [vmem:[%s12487_s1 + $0xcc8] ss:$12 sps:$4 sm:$0xff]  }
 0x18f   :  { %8220 = vmatpush3.bf16.msra.mxu1 %v9051_v52  ;;  %v1191_v52 = vcombine.high %v11169_v48, %v11169_v48 }
 0x190   :  { %5777 = vmatpush1.bf16.msra.mxu0 %v9047_v46  ;;  %8221 = vmatprep.subr.bf16.mxu1 %v9055_v54  ;;  %v9112_v46 = vld [vmem:[%s12487_s1 + $0xf00] ss:$12 sps:$4 sm:$0xff]   ;;  %v9116_v54 = vld [vmem:[%s12487_s1 + $0xc08] ss:$12 sps:$4 sm:$0xff]  }
 0x191   :  { %5778 = vmatprep.subr.bf16.mxu0 %v9054_v53  ;;  %v11190_v53 = vcombine.high %v10973_v40, %v10973_v40 }
 0x193   :  { %8222 = vmatpush3.bf16.msra.mxu1 %v9056_v14  ;;  %v9120_v14 = vld [vmem:[%s12487_s1 + $0xce0] ss:$12 sps:$4 sm:$0xff]  }
 0x194   :  { %5779 = vmatpush1.bf16.msra.mxu0 %v9052_v55  ;;  %8223 = vmatprep.subr.bf16.mxu1 %v9060_v59  ;;  %v9119_v55 = vld [vmem:[%s12487_s1 + $0xf1c] ss:$12 sps:$4 sm:$0xff]   ;;  %v9117_v59 = vld [vmem:[%s12487_s1 + $0xf18] ss:$12 sps:$4 sm:$0xff]  }
 0x195   :  { %5780 = vmatprep.subr.bf16.mxu0 %v9059_v57  ;;  %v11058_v4 = vpop.f32.mrb[0].mxu1  ;;  %v11202_v57 = vrot.slane %v1191_v52, %v9823_v51  ;;  %v9166_v52 = vld [vmem:[%s12487_s1 + $0xdb8] ss:$12 sps:$4 sm:$0xff]  }
 0x196   :  { %v11063_v7 = vpop.f32.mrb[1].mxu1 }
 0x197   :  { %8224 = vmatpush3.bf16.msra.mxu1 %v9061_v5  ;;  %v5521_v62 = vpop.f32.mrb[2].mxu1  ;;  %v9124_v5 = vld [vmem:[%s12487_s1 + $0xf34] ss:$12 sps:$4 sm:$0xff]  }
 0x198   :  { %5781 = vmatpush1.bf16.msra.mxu0 %v9057_v60  ;;  %8225 = vmatprep.subr.bf16.mxu1 %v9065_v0  ;;  %v5522_v35 = vpop.f32.mrb[3].mxu1  ;;  %v9121_v60 = vld [vmem:[%s12487_s1 + $0xc20] ss:$12 sps:$4 sm:$0xff]   ;;  %v9126_v0 = vld [vmem:[%s12487_s1 + $0xc38] ss:$12 sps:$4 sm:$0xff]  }
 0x199   :  { %5782 = vmatprep.subr.bf16.mxu0 %v9064_v61  ;;  %v9122_v61 = vld [vmem:[%s12487_s1 + $0xf30] ss:$12 sps:$4 sm:$0xff]   ;;  %v9127_v35 = vld [vmem:[%s12487_s1 + $0xf48] ss:$12 sps:$4 sm:$0xff]  }
 0x19b   :  { %8226 = vmatpush3.bf16.msra.mxu1 %v9066_v2 }
 0x19c   :  { %5783 = vmatpush1.bf16.msra.mxu0 %v9062_v1  ;;  %8227 = vmatprep.subr.bf16.mxu1 %v9070_v8  ;;  %v9129_v1 = vld [vmem:[%s12487_s1 + $0xf4c] ss:$12 sps:$4 sm:$0xff]  }
 0x19d   :  { %5784 = vmatprep.subr.bf16.mxu0 %v9069_v6  ;;  %v9130_v6 = vld [vmem:[%s12487_s1 + $0xd10] ss:$12 sps:$4 sm:$0xff]  }
 0x19f   :  { %8228 = vmatpush3.bf16.msra.mxu1 %v9071_v10  ;;  %v9134_v10 = vld [vmem:[%s12487_s1 + $0xf64] ss:$12 sps:$4 sm:$0xff]  }
 0x1a0   :  { %5785 = vmatpush1.bf16.msra.mxu0 %v9067_v9  ;;  %8235 = vmatprep.subr.bf16.mxu1 %v9075_v12  ;;  %v9131_v9 = vld [vmem:[%s12487_s1 + $0xc50] ss:$12 sps:$4 sm:$0xff]   ;;  %v9135_v12 = vld [vmem:[%s12487_s1 + $0xd28] ss:$12 sps:$4 sm:$0xff]  }
 0x1a1   :  { %5786 = vmatprep.subr.bf16.mxu0 %v9074_v41 }
 0x1a2   :  { %6330 = vmatmul.mubr.bf16.vlgmr.msra.gmra.mrb[28].mxu1 %v10551_v11  ;;  %v9085_v11 = vld [vmem:[%s12487_s1 + $0xb78] ss:$12 sps:$4 sm:$0xff]  }
 0x1a3   :  { %8236 = vmatpush3.bf16.msra.mxu1 %v9076_v16  ;;  %6369 = vmatprep.mubr.bf16.mxu1 %v10564_v50  ;;  %v9090_v50 = vld [vmem:[%s12487_s1 + $0xb90] ss:$12 sps:$4 sm:$0xff]   ;;  %v1068_v16 = vsub.s32 2, %v9808_v45 }
 0x1a4   :  { %5787 = vmatpush1.bf16.msra.mxu0 %v9072_v13  ;;  %8237 = vmatprep.subr.bf16.mxu1 %v9080_v18  ;;  %v9132_v13 = vld [vmem:[%s12487_s1 + $0xf60] ss:$12 sps:$4 sm:$0xff]   ;;  %v9136_v18 = vld [vmem:[%s12487_s1 + $0xc68] ss:$12 sps:$4 sm:$0xff]  }
 0x1a5   :  { %5788 = vmatprep.subr.bf16.mxu0 %v9079_v17  ;;  %v1056_v17 = vld [vmem:[%s12488_s2] sm:$0x7] }
 0x1a7   :  { %8238 = vmatpush3.bf16.msra.mxu1 %v9081_v22  ;;  %v9140_v22 = vld [vmem:[%s12487_s1 + $0xd40] ss:$12 sps:$4 sm:$0xff]  }
 0x1a8   :  { %5789 = vmatpush1.bf16.msra.mxu0 %v9077_v21  ;;  %8239 = vmatprep.subr.bf16.mxu1 %v9085_v11  ;;  %v9139_v21 = vld [vmem:[%s12487_s1 + $0xf7c] ss:$12 sps:$4 sm:$0xff]   ;;  %v1069_v11 = vrot.slane %v1056_v17, %v1068_v16 }
 0x1a9   :  { %5790 = vmatprep.subr.bf16.mxu0 %v9084_v23  ;;  %v9137_v23 = vld [vmem:[%s12487_s1 + $0xf78] ss:$12 sps:$4 sm:$0xff]   ;;  %v9187_v17 = vld [vmem:[%s12487_s1 + $0x1068] ss:$12 sps:$4 sm:$0xff]  }
 0x1ab   :  { %8240 = vmatpush3.bf16.msra.mxu1 %v9086_v3  ;;  %v9144_v3 = vld [vmem:[%s12487_s1 + $0xf94] ss:$12 sps:$4 sm:$0xff]  }
 0x1ac   :  { %5791 = vmatpush1.bf16.msra.mxu0 %v9082_v25  ;;  %8241 = vmatprep.subr.bf16.mxu1 %v9090_v50  ;;  %v9141_v25 = vld [vmem:[%s12487_s1 + $0xc80] ss:$12 sps:$4 sm:$0xff]   ;;  %v9142_v50 = vld [vmem:[%s12487_s1 + $0xf90] ss:$12 sps:$4 sm:$0xff]  }
 0x1ad   :  { %5792 = vmatprep.subr.bf16.mxu0 %v9089_v26  ;;  %v9145_v26 = vld [vmem:[%s12487_s1 + $0xd58] ss:$12 sps:$4 sm:$0xff]  }
 0x1af   :  { %8242 = vmatpush3.bf16.msra.mxu1 %v9091_v29 }
 0x1b0   :  { %5793 = vmatpush1.bf16.msra.mxu0 %v9087_v28  ;;  %8243 = vmatprep.subr.bf16.mxu1 %v9095_v32  ;;  %v9146_v32 = vld [vmem:[%s12487_s1 + $0xc98] ss:$12 sps:$4 sm:$0xff]  }
 0x1b1   :  { %5794 = vmatprep.subr.bf16.mxu0 %v9094_v30 }
 0x1b3   :  { %8244 = vmatpush3.bf16.msra.mxu1 %v9096_v36 }
 0x1b4   :  { %5795 = vmatpush1.bf16.msra.mxu0 %v9092_v33  ;;  %8245 = vmatprep.subr.bf16.mxu1 %v9100_v37  ;;  %v9149_v33 = vld [vmem:[%s12487_s1 + $0xfac] ss:$12 sps:$4 sm:$0xff]   ;;  %v9150_v37 = vld [vmem:[%s12487_s1 + $0xd70] ss:$12 sps:$4 sm:$0xff]  }
 0x1b5   :  { %5796 = vmatprep.subr.bf16.mxu0 %v9099_v20  ;;  %v8097_v2 = vpop.f32.mrb[4].mxu1 }
 0x1b7   :  { %8246 = vmatpush3.bf16.msra.mxu1 %v9101_v39 }
 0x1b8   :  { %5797 = vmatpush1.bf16.msra.mxu0 %v9097_v38  ;;  %8247 = vmatprep.subr.bf16.mxu1 %v9105_v42  ;;  %v9151_v42 = vld [vmem:[%s12487_s1 + $0xcb0] ss:$12 sps:$4 sm:$0xff]  }
 0x1b9   :  { %5798 = vmatprep.subr.bf16.mxu0 %v9104_v56  ;;  %v9147_v56 = vld [vmem:[%s12487_s1 + $0xfa8] ss:$12 sps:$4 sm:$0xff]  }
 0x1bb   :  { %8248 = vmatpush3.bf16.msra.mxu1 %v9106_v44  ;;  %v9152_v44 = vld [vmem:[%s12487_s1 + $0xfc0] ss:$12 sps:$4 sm:$0xff]  }
 0x1bc   :  { %5799 = vmatpush1.bf16.msra.mxu0 %v9102_v34  ;;  %8249 = vmatprep.subr.bf16.mxu1 %v9110_v15  ;;  %v9155_v34 = vld [vmem:[%s12487_s1 + $0xe48] ss:$12 sps:$4 sm:$0xff]  }
 0x1bd   :  { %5800 = vmatprep.subr.bf16.mxu0 %v9109_v47  ;;  %v9156_v47 = vld [vmem:[%s12487_s1 + $0xd88] ss:$12 sps:$4 sm:$0xff]  }
 0x1be   :  { %v9159_v15 = vld [vmem:[%s12487_s1 + $0xfdc] ss:$12 sps:$4 sm:$0xff]  }
 0x1bf   :  { %8250 = vmatpush3.bf16.msra.mxu1 %v9111_v24  ;;  %v9157_v24 = vld [vmem:[%s12487_s1 + $0xfd8] ss:$12 sps:$4 sm:$0xff]  }
 0x1c0   :  { %5801 = vmatpush1.bf16.msra.mxu0 %v9107_v58  ;;  %8257 = vmatprep.subr.bf16.mxu1 %v9115_v63  ;;  %v9160_v58 = vld [vmem:[%s12487_s1 + $0xe60] ss:$12 sps:$4 sm:$0xff]  }
 0x1c1   :  { %5811 = vmatprep.subr.bf16.mxu0 %v9114_v49  ;;  %v9161_v49 = vld [vmem:[%s12487_s1 + $0xda0] ss:$12 sps:$4 sm:$0xff]  }
 0x1c2   :  { %6370 = vmatmul.mubr.bf16.vlgmr.msra.gmra.mrb[32].mxu1 %v10768_v27  ;;  %v9125_v27 = vld [vmem:[%s12487_s1 + $0xcf8] ss:$12 sps:$4 sm:$0xff]   ;;  %v9164_v63 = vld [vmem:[%s12487_s1 + $0xff4] ss:$12 sps:$4 sm:$0xff]  }
 0x1c3   :  { %5803 = vmatmul.mubr.bf16.vlgmr.msra.gmra.mrb[0].mxu0 %v11190_v53  ;;  %8258 = vmatpush3.bf16.msra.mxu1 %v9116_v54  ;;  %v9169_v54 = vld [vmem:[%s12487_s1 + $0x100c] ss:$12 sps:$4 sm:$0xff]  }
 0x1c4   :  { %5812 = vmatpush1.bf16.msra.mxu0 %v9112_v46  ;;  %8259 = vmatprep.subr.bf16.mxu1 %v9120_v14  ;;  %v9165_v46 = vld [vmem:[%s12487_s1 + $0xe78] ss:$12 sps:$4 sm:$0xff]   ;;  %v9171_v14 = vld [vmem:[%s12487_s1 + $0xdd0] ss:$12 sps:$4 sm:$0xff]  }
 0x1c5   :  { %5813 = vmatprep.subr.bf16.mxu0 %v9119_v55  ;;  %6409 = vmatprep.mubr.bf16.mxu1 %v10780_v31  ;;  %v8098_v31 = vpop.f32.mrb[5].mxu1  ;;  %v9170_v55 = vld [vmem:[%s12487_s1 + $0xe90] ss:$12 sps:$4 sm:$0xff]  }
 0x1c6   :  { %5843 = vmatprep.mubr.bf16.mxu0 %v11202_v57  ;;  %v8099_v8 = vadd.f32 %v8098_v31, %v8097_v2  ;;  %v8100_v62 = vpop.f32.mrb[6].mxu1  ;;  %v9181_v2 = vld [vmem:[%s12487_s1 + $0xe00] ss:$12 sps:$4 sm:$0xff]   ;;  %v9185_v31 = vld [vmem:[%s12487_s1 + $0xed8] ss:$12 sps:$4 sm:$0xff]  }
 0x1c7   :  { %8260 = vmatpush3.bf16.msra.mxu1 %v9121_v60  ;;  %v8101_v41 = vpop.f32.mrb[7].mxu1  ;;  %v9175_v60 = vld [vmem:[%s12487_s1 + $0xea8] ss:$12 sps:$4 sm:$0xff]   ;;  %v9186_v62 = vld [vmem:[%s12487_s1 + $0xe18] ss:$12 sps:$4 sm:$0xff]  }
 0x1c8   :  { %5814 = vmatpush1.bf16.msra.mxu0 %v9117_v59  ;;  %8261 = vmatprep.subr.bf16.mxu1 %v9125_v27  ;;  %v6092_v28 = vadd.f32 %v8099_v8, %v1069_v11  ;;  %v9174_v59 = vld [vmem:[%s12487_s1 + $0x1024] ss:$12 sps:$4 sm:$0xff]   ;;  %v9176_v27 = vld [vmem:[%s12487_s1 + $0xde8] ss:$12 sps:$4 sm:$0xff]   ;;  %v9193_v11 = vld [vmem:[%s12487_s1 + $0x1080] ss:$12 sps:$4 sm:$0xff]  }
 0x1c9   :  { %5815 = vmatprep.subr.bf16.mxu0 %v9124_v5  ;;  %v9172_v5 = vld [vmem:[%s12487_s1 + $0x1020] ss:$12 sps:$4 sm:$0xff]   ;;  %v9182_v8 = vld [vmem:[%s12487_s1 + $0x1050] ss:$12 sps:$4 sm:$0xff]  }
 0x1cb   :  { %8262 = vmatpush3.bf16.msra.mxu1 %v9126_v0  ;;  %v9180_v0 = vld [vmem:[%s12487_s1 + $0xec0] ss:$12 sps:$4 sm:$0xff]  }
 0x1cc   :  { %5816 = vmatpush1.bf16.msra.mxu0 %v9122_v61  ;;  %8263 = vmatprep.subr.bf16.mxu1 %v9130_v6  ;;  %v9179_v61 = vld [vmem:[%s12487_s1 + $0x103c] ss:$12 sps:$4 sm:$0xff]   ;;  %v9184_v6 = vld [vmem:[%s12487_s1 + $0x1054] ss:$12 sps:$4 sm:$0xff]  }
 0x1cd   :  { %5817 = vmatprep.subr.bf16.mxu0 %v9129_v1  ;;  %v9177_v1 = vld [vmem:[%s12487_s1 + $0x1038] ss:$12 sps:$4 sm:$0xff]  }
 0x1cf   :  { %8264 = vmatpush3.bf16.msra.mxu1 %v9131_v9 }
 0x1d0   :  { %5818 = vmatpush1.bf16.msra.mxu0 %v9127_v35  ;;  %8265 = vmatprep.subr.bf16.mxu1 %v9135_v12  ;;  %v9189_v12 = vld [vmem:[%s12487_s1 + $0x106c] ss:$12 sps:$4 sm:$0xff]  }
 0x1d1   :  { %5819 = vmatprep.subr.bf16.mxu0 %v9134_v10 }
 0x1d3   :  { %8266 = vmatpush3.bf16.msra.mxu1 %v9136_v18 }
 0x1d4   :  { %5820 = vmatpush1.bf16.msra.mxu0 %v9132_v13  ;;  %8267 = vmatprep.subr.bf16.mxu1 %v9140_v22  ;;  %v9190_v13 = vld [vmem:[%s12487_s1 + $0xef0] ss:$12 sps:$4 sm:$0xff]  }
 0x1d5   :  { %5821 = vmatprep.subr.bf16.mxu0 %v9139_v21  ;;  %v8119_v29 = vpop.f32.mrb[8].mxu1  ;;  %v9191_v21 = vld [vmem:[%s12487_s1 + $0xe30] ss:$12 sps:$4 sm:$0xff]  }
 0x1d6   :  { %v8120_v30 = vpop.f32.mrb[9].mxu1  ;;  %v9195_v22 = vld [vmem:[%s12487_s1 + $0x1084] ss:$12 sps:$4 sm:$0xff]  }
 0x1d7   :  { %8268 = vmatpush3.bf16.msra.mxu1 %v9141_v25  ;;  %v8121_v36 = vadd.f32 %v8120_v30, %v8119_v29  ;;  %v8122_v20 = vpop.f32.mrb[10].mxu1  ;;  %v11404_v25 = vrot.slane %v11169_v48, %v9823_v51  ;;  %v9198_v48 = vld [vmem:[%s12487_s1 + $0x1098] ss:$12 sps:$4 sm:$0xff]   ;;  %v9202_v29 = vld [vmem:[%s12487_s1 + $0xf20] ss:$12 sps:$4 sm:$0xff]  }
 0x1d8   :  { %5822 = vmatpush1.bf16.msra.mxu0 %v9137_v23  ;;  %8269 = vmatprep.subr.bf16.mxu1 %v9145_v26  ;;  %v8123_v38 = vpop.f32.mrb[11].mxu1  ;;  %v9196_v23 = vld [vmem:[%s12487_s1 + $0xfc8] ss:$12 sps:$4 sm:$0xff]   ;;  %v9211_v20 = vld [vmem:[%s12487_s1 + $0x1010] ss:$12 sps:$4 sm:$0xff]  }
 0x1d9   :  { %5823 = vmatprep.subr.bf16.mxu0 %v9144_v3  ;;  %v11284_v39 = vadd.f32 %v8121_v36, %v6092_v28  ;;  %v9197_v3 = vld [vmem:[%s12487_s1 + $0xf08] ss:$12 sps:$4 sm:$0xff]   ;;  %v11420_v28 = vcombine.high %v11202_v57, %v11202_v57  ;;  %v9210_v36 = vld [vmem:[%s12487_s1 + $0x10cc] ss:$12 sps:$4 sm:$0xff]   ;;  %v9215_v38 = vld [vmem:[%s12487_s1 + $0x10e4] ss:$12 sps:$4 sm:$0xff]  }
 0x1da   :  { %v9200_v26 = vld [vmem:[%s12487_s1 + $0x109c] ss:$12 sps:$4 sm:$0xff]   ;;  %v9205_v30 = vld [vmem:[%s12487_s1 + $0x10b4] ss:$12 sps:$4 sm:$0xff]  }
 0x1db   :  { %8270 = vmatpush3.bf16.msra.mxu1 %v9146_v32  ;;  %v9206_v32 = vld [vmem:[%s12487_s1 + $0xff8] ss:$12 sps:$4 sm:$0xff]  }
 0x1dc   :  { %5824 = vmatpush1.bf16.msra.mxu0 %v9142_v50  ;;  %8271 = vmatprep.subr.bf16.mxu1 %v9150_v37  ;;  %v9201_v50 = vld [vmem:[%s12487_s1 + $0xfe0] ss:$12 sps:$4 sm:$0xff]   ;;  %v9212_v37 = vld [vmem:[%s12487_s1 + $0xf50] ss:$12 sps:$4 sm:$0xff]  }
 0x1dd   :  { %5825 = vmatprep.subr.bf16.mxu0 %v9149_v33  ;;  %v9207_v33 = vld [vmem:[%s12487_s1 + $0xf38] ss:$12 sps:$4 sm:$0xff]  }
 0x1df   :  { %8272 = vmatpush3.bf16.msra.mxu1 %v9151_v42  ;;  %v9217_v42 = vld [vmem:[%s12487_s1 + $0xf68] ss:$12 sps:$4 sm:$0xff]  }
 0x1e0   :  { %5826 = vmatpush1.bf16.msra.mxu0 %v9147_v56  ;;  %8279 = vmatprep.subr.bf16.mxu1 %v9155_v34  ;;  %v9213_v56 = vld [vmem:[%s12487_s1 + $0x10e0] ss:$12 sps:$4 sm:$0xff]  }
 0x1e1   :  { %5827 = vmatprep.subr.bf16.mxu0 %v9154_v19  ;;  %v9220_v19 = vld [vmem:[%s12487_s1 + $0x10fc] ss:$12 sps:$4 sm:$0xff]   ;;  %v9221_v34 = vld [vmem:[%s12487_s1 + $0x1040] ss:$12 sps:$4 sm:$0xff]  }
 0x1e2   :  { %6410 = vmatmul.mubr.bf16.vlgmr.msra.gmra.mrb[36].mxu1 %v10973_v40  ;;  %v9162_v40 = vld [vmem:[%s12487_s1 + $0xff0] ss:$12 sps:$4 sm:$0xff]  }
 0x1e3   :  { %8280 = vmatpush3.bf16.msra.mxu1 %v9156_v47  ;;  %6449 = vmatprep.mubr.bf16.mxu1 %v10989_v43  ;;  %v9167_v43 = vld [vmem:[%s12487_s1 + $0x1008] ss:$12 sps:$4 sm:$0xff]   ;;  %v9222_v47 = vld [vmem:[%s12487_s1 + $0xf80] ss:$12 sps:$4 sm:$0xff]  }
 0x1e4   :  { %5828 = vmatpush1.bf16.msra.mxu0 %v9152_v44  ;;  %8281 = vmatprep.subr.bf16.mxu1 %v9160_v58  ;;  %v9218_v44 = vld [vmem:[%s12487_s1 + $0x10f8] ss:$12 sps:$4 sm:$0xff]  }
 0x1e5   :  { %5829 = vmatprep.subr.bf16.mxu0 %v9159_v15  ;;  %v9225_v15 = vld [vmem:[%s12487_s1 + $0x1114] ss:$12 sps:$4 sm:$0xff]   ;;  %v9226_v58 = vld [vmem:[%s12487_s1 + $0x1058] ss:$12 sps:$4 sm:$0xff]  }
 0x1e7   :  { %8282 = vmatpush3.bf16.msra.mxu1 %v9161_v49  ;;  %v9227_v49 = vld [vmem:[%s12487_s1 + $0xf98] ss:$12 sps:$4 sm:$0xff]  }
 0x1e8   :  { %5830 = vmatpush1.bf16.msra.mxu0 %v9157_v24  ;;  %8283 = vmatprep.subr.bf16.mxu1 %v9165_v46  ;;  %v9223_v24 = vld [vmem:[%s12487_s1 + $0x1110] ss:$12 sps:$4 sm:$0xff]  }
 0x1e9   :  { %5831 = vmatprep.subr.bf16.mxu0 %v9164_v63 }
 0x1eb   :  { %8284 = vmatpush3.bf16.msra.mxu1 %v9166_v52 }
 0x1ec   :  { %5832 = vmatpush1.bf16.msra.mxu0 %v9162_v40  ;;  %8285 = vmatprep.subr.bf16.mxu1 %v9170_v55  ;;  %v9231_v55 = vld [vmem:[%s12487_s1 + $0x1070] ss:$12 sps:$4 sm:$0xff]  }
 0x1ed   :  { %5833 = vmatprep.subr.bf16.mxu0 %v9169_v54  ;;  %v9230_v54 = vld [vmem:[%s12487_s1 + $0x112c] ss:$12 sps:$4 sm:$0xff]  }
 0x1ef   :  { %8286 = vmatpush3.bf16.msra.mxu1 %v9171_v14  ;;  %v9228_v14 = vld [vmem:[%s12487_s1 + $0x1128] ss:$12 sps:$4 sm:$0xff]  }
 0x1f0   :  { %5834 = vmatpush1.bf16.msra.mxu0 %v9167_v43  ;;  %8287 = vmatprep.subr.bf16.mxu1 %v9175_v60  ;;  %v9232_v60 = vld [vmem:[%s12487_s1 + $0xfb0] ss:$12 sps:$4 sm:$0xff]  }
 0x1f1   :  { %5835 = vmatprep.subr.bf16.mxu0 %v9174_v59 }
 0x1f3   :  { %8288 = vmatpush3.bf16.msra.mxu1 %v9176_v27  ;;  %v9236_v27 = vld [vmem:[%s12487_s1 + $0x1148] ss:$12 sps:$4 sm:$0xff]  }
 0x1f4   :  { %5836 = vmatpush1.bf16.msra.mxu0 %v9172_v5  ;;  %8289 = vmatprep.subr.bf16.mxu1 %v9180_v0  ;;  %v9235_v5 = vld [vmem:[%s12487_s1 + $0x1144] ss:$12 sps:$4 sm:$0xff]   ;;  %v9237_v0 = vld [vmem:[%s12487_s1 + $0x1088] ss:$12 sps:$4 sm:$0xff]  }
 0x1f5   :  { %5837 = vmatprep.subr.bf16.mxu0 %v9179_v61  ;;  %v8141_v35 = vpop.f32.mrb[12].mxu1  ;;  %v9233_v61 = vld [vmem:[%s12487_s1 + $0x1140] ss:$12 sps:$4 sm:$0xff]  }
 0x1f6   :  { %v8142_v9 = vpop.f32.mrb[13].mxu1 }
 0x1f7   :  { %8290 = vmatpush3.bf16.msra.mxu1 %v9181_v2  ;;  %v8143_v10 = vadd.f32 %v8142_v9, %v8141_v35  ;;  %v8144_v41 = vpop.f32.mrb[14].mxu1  ;;  %v9241_v2 = vld [vmem:[%s12487_s1 + $0x1160] ss:$12 sps:$4 sm:$0xff]   ;;  %v9243_v35 = vld [vmem:[%s12487_s1 + $0x1170] ss:$12 sps:$4 sm:$0xff]  }
 0x1f8   :  { %5838 = vmatpush1.bf16.msra.mxu0 %v9177_v1  ;;  %8291 = vmatprep.subr.bf16.mxu1 %v9185_v31  ;;  %v8145_v16 = vpop.f32.mrb[15].mxu1  ;;  %v9240_v1 = vld [vmem:[%s12487_s1 + $0x115c] ss:$12 sps:$4 sm:$0xff]   ;;  %v9242_v31 = vld [vmem:[%s12487_s1 + $0x10a0] ss:$12 sps:$4 sm:$0xff]  }
 0x1f9   :  { %5839 = vmatprep.subr.bf16.mxu0 %v9184_v6  ;;  %v11388_v18 = vadd.f32 %v8143_v10, %v11284_v39  ;;  %v9216_v39 = vld [vmem:[%s12487_s1 + $0x1028] ss:$12 sps:$4 sm:$0xff]   ;;  %v9238_v6 = vld [vmem:[%s12487_s1 + $0x1158] ss:$12 sps:$4 sm:$0xff]   ;;  %v9251_v41 = vld [vmem:[%s12487_s1 + $0x1190] ss:$12 sps:$4 sm:$0xff]  }
 0x1fa   :  { %v9247_v9 = vld [vmem:[%s12487_s1 + $0x10b8] ss:$12 sps:$4 sm:$0xff]  }
 0x1fb   :  { %8292 = vmatpush3.bf16.msra.mxu1 %v9186_v62  ;;  %v9246_v62 = vld [vmem:[%s12487_s1 + $0x1178] ss:$12 sps:$4 sm:$0xff]  }
 0x1fc   :  { %5840 = vmatpush1.bf16.msra.mxu0 %v9182_v8  ;;  %8293 = vmatprep.subr.bf16.mxu1 %v9190_v13  ;;  %v9245_v8 = vld [vmem:[%s12487_s1 + $0x1174] ss:$12 sps:$4 sm:$0xff]   ;;  %v9250_v10 = vld [vmem:[%s12487_s1 + $0x118c] ss:$12 sps:$4 sm:$0xff]   ;;  %v9252_v13 = vld [vmem:[%s12487_s1 + $0x10d0] ss:$12 sps:$4 sm:$0xff]  }
 0x1fd   :  { %5841 = vmatprep.subr.bf16.mxu0 %v9189_v12  ;;  %v9248_v12 = vld [vmem:[%s12487_s1 + $0x1188] ss:$12 sps:$4 sm:$0xff]   ;;  %v9255_v16 = vld [vmem:[%s12487_s1 + $0x11a4] ss:$12 sps:$4 sm:$0xff]  }
 0x1ff   :  { %8294 = vmatpush3.bf16.msra.mxu1 %v9191_v21  ;;  %v9257_v21 = vld [vmem:[%s12487_s1 + $0x10e8] ss:$12 sps:$4 sm:$0xff]  }
 0x200   :  { %5842 = vmatpush1.bf16.msra.mxu0 %v9187_v17  ;;  %8301 = vmatprep.subr.bf16.mxu1 %v9196_v23  ;;  %v9256_v17 = vld [vmem:[%s12487_s1 + $0x11a8] ss:$12 sps:$4 sm:$0xff]   ;;  %v9261_v23 = vld [vmem:[%s12487_s1 + $0x11c0] ss:$12 sps:$4 sm:$0xff]  }
 0x201   :  { %5852 = vmatprep.subr.bf16.mxu0 %v9195_v22  ;;  %v9260_v22 = vld [vmem:[%s12487_s1 + $0x11bc] ss:$12 sps:$4 sm:$0xff]  }
 0x202   :  { %6450 = vmatmul.mubr.bf16.vlgmr.msra.gmra.mrb[40].mxu1 %v11190_v53  ;;  %v9203_v53 = vld [vmem:[%s12487_s1 + $0x10b0] ss:$12 sps:$4 sm:$0xff]  }
 0x203   :  { %5844 = vmatmul.mubr.bf16.vlgmr.msra.gmra.mrb[0].mxu0 %v11404_v25  ;;  %8302 = vmatpush3.bf16.msra.mxu1 %v9197_v3  ;;  %v9262_v3 = vld [vmem:[%s12487_s1 + $0x1100] ss:$12 sps:$4 sm:$0xff]  }
 0x204   :  { %5853 = vmatpush1.bf16.msra.mxu0 %v9193_v11  ;;  %8303 = vmatprep.subr.bf16.mxu1 %v9201_v50  ;;  %v9258_v11 = vld [vmem:[%s12487_s1 + $0x11b8] ss:$12 sps:$4 sm:$0xff]  }
 0x205   :  { %5854 = vmatprep.subr.bf16.mxu0 %v9200_v26  ;;  %6489 = vmatprep.mubr.bf16.mxu1 %v11202_v57  ;;  %v9208_v57 = vld [vmem:[%s12487_s1 + $0x10c8] ss:$12 sps:$4 sm:$0xff]   ;;  %v9266_v50 = vld [vmem:[%s12487_s1 + $0x11d8] ss:$12 sps:$4 sm:$0xff]  }
 0x206   :  { %5884 = vmatprep.mubr.bf16.mxu0 %v11420_v28  ;;  %v9265_v26 = vld [vmem:[%s12487_s1 + $0x11d4] ss:$12 sps:$4 sm:$0xff]  }
 0x207   :  { %8304 = vmatpush3.bf16.msra.mxu1 %v9202_v29 }
 0x208   :  { %5855 = vmatpush1.bf16.msra.mxu0 %v9198_v48  ;;  %8305 = vmatprep.subr.bf16.mxu1 %v9206_v32  ;;  %v9263_v48 = vld [vmem:[%s12487_s1 + $0x11d0] ss:$12 sps:$4 sm:$0xff]  }
 0x209   :  { %5856 = vmatprep.subr.bf16.mxu0 %v9205_v30  ;;  %v11593_v30 = vld [vmem:[%s12486_s0 + $0x18] sm:$0xff] }
 0x20b   :  { %8306 = vmatpush3.bf16.msra.mxu1 %v9207_v33 }
 0x20c   :  { %5857 = vmatpush1.bf16.msra.mxu0 %v9203_v53  ;;  %8307 = vmatprep.subr.bf16.mxu1 %v9211_v20  ;;  %v9271_v20 = vld [vmem:[%s12487_s1 + $0x11f0] ss:$12 sps:$4 sm:$0xff]  }
 0x20d   :  { %5858 = vmatprep.subr.bf16.mxu0 %v9210_v36  ;;  %v9270_v36 = vld [vmem:[%s12487_s1 + $0x11ec] ss:$12 sps:$4 sm:$0xff]  }
 0x20f   :  { %8308 = vmatpush3.bf16.msra.mxu1 %v9212_v37  ;;  %v9268_v37 = vld [vmem:[%s12487_s1 + $0x11e8] ss:$12 sps:$4 sm:$0xff]  }
 0x210   :  { %5859 = vmatpush1.bf16.msra.mxu0 %v9208_v57  ;;  %8309 = vmatprep.subr.bf16.mxu1 %v9216_v39  ;;  %v11609_v39 = vrot.slane %v11593_v30, %v9823_v51 }
 0x211   :  { %5860 = vmatprep.subr.bf16.mxu0 %v9215_v38 }
 0x213   :  { %8310 = vmatpush3.bf16.msra.mxu1 %v9217_v42  ;;  %v9275_v42 = vld [vmem:[%s12487_s1 + $0x1204] ss:$12 sps:$4 sm:$0xff]  }
 0x214   :  { %5861 = vmatpush1.bf16.msra.mxu0 %v9213_v56  ;;  %8311 = vmatprep.subr.bf16.mxu1 %v9221_v34  ;;  %v9272_v56 = vld [vmem:[%s12487_s1 + $0x1130] ss:$12 sps:$4 sm:$0xff]   ;;  %v9273_v34 = vld [vmem:[%s12487_s1 + $0x1200] ss:$12 sps:$4 sm:$0xff]  }
 0x215   :  { %5862 = vmatprep.subr.bf16.mxu0 %v9220_v19  ;;  %v8163_v63 = vpop.f32.mrb[16].mxu1  ;;  %v9276_v19 = vld [vmem:[%s12487_s1 + $0x12c8] ss:$12 sps:$4 sm:$0xff]  }
 0x216   :  { %v8164_v46 = vpop.f32.mrb[17].mxu1 }
 0x217   :  { %8312 = vmatpush3.bf16.msra.mxu1 %v9222_v47  ;;  %v8165_v40 = vadd.f32 %v8164_v46, %v8163_v63  ;;  %v8166_v52 = vpop.f32.mrb[18].mxu1  ;;  %v1239_v47 = vcombine.high %v11609_v39, %v11609_v39  ;;  %v9285_v46 = vld [vmem:[%s12487_s1 + $0x1234] ss:$12 sps:$4 sm:$0xff]  }
 0x218   :  { %5863 = vmatpush1.bf16.msra.mxu0 %v9218_v44  ;;  %8313 = vmatprep.subr.bf16.mxu1 %v9226_v58  ;;  %v8167_v43 = vpop.f32.mrb[19].mxu1  ;;  %v9277_v44 = vld [vmem:[%s12487_s1 + $0x1208] ss:$12 sps:$4 sm:$0xff]   ;;  %v9283_v52 = vld [vmem:[%s12487_s1 + $0x1230] ss:$12 sps:$4 sm:$0xff]  }
 0x219   :  { %5864 = vmatprep.subr.bf16.mxu0 %v9225_v15  ;;  %v11499_v59 = vadd.f32 %v8165_v40, %v11388_v18  ;;  %v9253_v18 = vld [vmem:[%s12487_s1 + $0x11a0] ss:$12 sps:$4 sm:$0xff]   ;;  %v1221_v15 = vcombine.high %v11404_v25, %v11404_v25  ;;  %v9280_v58 = vld [vmem:[%s12487_s1 + $0x121c] ss:$12 sps:$4 sm:$0xff]   ;;  %v11643_v63 = vrot.slane %v1239_v47, %v9823_v51  ;;  %v9286_v40 = vld [vmem:[%s12487_s1 + $0x12f8] ss:$12 sps:$4 sm:$0xff]  }
 0x21a   :  { %v9291_v43 = vld [vmem:[%s12487_s1 + $0x1310] ss:$12 sps:$4 sm:$0xff]  }
 0x21b   :  { %8314 = vmatpush3.bf16.msra.mxu1 %v9227_v49  ;;  %v9278_v49 = vld [vmem:[%s12487_s1 + $0x1218] ss:$12 sps:$4 sm:$0xff]  }
 0x21c   :  { %5865 = vmatpush1.bf16.msra.mxu0 %v9223_v24  ;;  %8315 = vmatprep.subr.bf16.mxu1 %v9231_v55  ;;  %v9281_v24 = vld [vmem:[%s12487_s1 + $0x12e0] ss:$12 sps:$4 sm:$0xff]  }
 0x21d   :  { %5866 = vmatprep.subr.bf16.mxu0 %v9230_v54  ;;  %v9287_v54 = vld [vmem:[%s12487_s1 + $0x1238] ss:$12 sps:$4 sm:$0xff]  }
 0x21e   :  { %v9290_v55 = vld [vmem:[%s12487_s1 + $0x124c] ss:$12 sps:$4 sm:$0xff]  }
 0x21f   :  { %8316 = vmatpush3.bf16.msra.mxu1 %v9232_v60  ;;  %v9295_v60 = vld [vmem:[%s12487_s1 + $0x1264] ss:$12 sps:$4 sm:$0xff]  }
 0x220   :  { %5867 = vmatpush1.bf16.msra.mxu0 %v9228_v14  ;;  %8323 = vmatprep.subr.bf16.mxu1 %v9236_v27  ;;  %v9288_v14 = vld [vmem:[%s12487_s1 + $0x1248] ss:$12 sps:$4 sm:$0xff]   ;;  %v9293_v27 = vld [vmem:[%s12487_s1 + $0x1260] ss:$12 sps:$4 sm:$0xff]  }
 0x221   :  { %5868 = vmatprep.subr.bf16.mxu0 %v9235_v5  ;;  %v9296_v5 = vld [vmem:[%s12487_s1 + $0x1328] ss:$12 sps:$4 sm:$0xff]  }
 0x222   :  { %6490 = vmatmul.mubr.bf16.vlgmr.msra.gmra.mrb[44].mxu1 %v11404_v25  ;;  %v9282_v25 = vld [vmem:[%s12487_s1 + $0x1220] ss:$12 sps:$4 sm:$0xff]  }
 0x223   :  { %8324 = vmatpush3.bf16.msra.mxu1 %v9237_v0  ;;  %6529 = vmatprep.mubr.bf16.mxu1 %v11420_v28  ;;  %v9267_v28 = vld [vmem:[%s12487_s1 + $0x1118] ss:$12 sps:$4 sm:$0xff]   ;;  %v9300_v0 = vld [vmem:[%s12487_s1 + $0x127c] ss:$12 sps:$4 sm:$0xff]  }
 0x224   :  { %5869 = vmatpush1.bf16.msra.mxu0 %v9233_v61  ;;  %8325 = vmatprep.subr.bf16.mxu1 %v9241_v2  ;;  %v9297_v61 = vld [vmem:[%s12487_s1 + $0x1268] ss:$12 sps:$4 sm:$0xff]   ;;  %v9298_v2 = vld [vmem:[%s12487_s1 + $0x1278] ss:$12 sps:$4 sm:$0xff]  }
 0x225   :  { %5870 = vmatprep.subr.bf16.mxu0 %v9240_v1  ;;  %v9301_v1 = vld [vmem:[%s12487_s1 + $0x1340] ss:$12 sps:$4 sm:$0xff]  }
 0x227   :  { %8326 = vmatpush3.bf16.msra.mxu1 %v9242_v31  ;;  %v9305_v31 = vld [vmem:[%s12487_s1 + $0x1294] ss:$12 sps:$4 sm:$0xff]  }
 0x228   :  { %5871 = vmatpush1.bf16.msra.mxu0 %v9238_v6  ;;  %8327 = vmatprep.subr.bf16.mxu1 %v9246_v62  ;;  %v9302_v6 = vld [vmem:[%s12487_s1 + $0x1280] ss:$12 sps:$4 sm:$0xff]   ;;  %v9303_v62 = vld [vmem:[%s12487_s1 + $0x1290] ss:$12 sps:$4 sm:$0xff]  }
 0x229   :  { %5872 = vmatprep.subr.bf16.mxu0 %v9245_v8  ;;  %v9306_v8 = vld [vmem:[%s12487_s1 + $0x1358] ss:$12 sps:$4 sm:$0xff]  }
 0x22b   :  { %8328 = vmatpush3.bf16.msra.mxu1 %v9247_v9 }
 0x22c   :  { %5873 = vmatpush1.bf16.msra.mxu0 %v9243_v35  ;;  %8329 = vmatprep.subr.bf16.mxu1 %v9251_v41  ;;  %v9307_v35 = vld [vmem:[%s12487_s1 + $0x1298] ss:$12 sps:$4 sm:$0xff]  }
 0x22d   :  { %5874 = vmatprep.subr.bf16.mxu0 %v9250_v10  ;;  %v9310_v10 = vld [vmem:[%s12487_s1 + $0x12ac] ss:$12 sps:$4 sm:$0xff]  }
 0x22f   :  { %8330 = vmatpush3.bf16.msra.mxu1 %v9252_v13 }
 0x230   :  { %5875 = vmatpush1.bf16.msra.mxu0 %v9248_v12  ;;  %8331 = vmatprep.subr.bf16.mxu1 %v9256_v17 }
 0x231   :  { %5876 = vmatprep.subr.bf16.mxu0 %v9255_v16  ;;  %v9311_v16 = vld [vmem:[%s12487_s1 + $0x1370] ss:$12 sps:$4 sm:$0xff]  }
 0x233   :  { %8332 = vmatpush3.bf16.msra.mxu1 %v9257_v21 }
 0x234   :  { %5877 = vmatpush1.bf16.msra.mxu0 %v9253_v18  ;;  %8333 = vmatprep.subr.bf16.mxu1 %v9261_v23  ;;  %v9308_v18 = vld [vmem:[%s12487_s1 + $0x12a8] ss:$12 sps:$4 sm:$0xff]   ;;  %v9315_v23 = vld [vmem:[%s12487_s1 + $0x12c4] ss:$12 sps:$4 sm:$0xff]  }
 0x235   :  { %5878 = vmatprep.subr.bf16.mxu0 %v9260_v22  ;;  %v8185_v29 = vpop.f32.mrb[20].mxu1  ;;  %v9312_v22 = vld [vmem:[%s12487_s1 + $0x12b0] ss:$12 sps:$4 sm:$0xff]  }
 0x236   :  { %v8186_v32 = vpop.f32.mrb[21].mxu1 }
 0x237   :  { %8334 = vmatpush3.bf16.msra.mxu1 %v9262_v3  ;;  %v8187_v53 = vadd.f32 %v8186_v32, %v8185_v29  ;;  %v8188_v33 = vpop.f32.mrb[22].mxu1  ;;  %v9313_v3 = vld [vmem:[%s12487_s1 + $0x12c0] ss:$12 sps:$4 sm:$0xff]  }
 0x238   :  { %5879 = vmatpush1.bf16.msra.mxu0 %v9258_v11  ;;  %8335 = vmatprep.subr.bf16.mxu1 %v9266_v50  ;;  %v8189_v57 = vpop.f32.mrb[23].mxu1  ;;  %v9316_v11 = vld [vmem:[%s12487_s1 + $0x1448] ss:$12 sps:$4 sm:$0xff]  }
 0x239   :  { %5880 = vmatprep.subr.bf16.mxu0 %v9265_v26  ;;  %v11605_v38 = vadd.f32 %v8187_v53, %v11499_v59  ;;  %v9292_v59 = vld [vmem:[%s12487_s1 + $0x1250] ss:$12 sps:$4 sm:$0xff]   ;;  %v11733_v26 = vrot.slane %v11609_v39, %v9823_v51  ;;  %v9317_v50 = vld [vmem:[%s12487_s1 + $0x1388] ss:$12 sps:$4 sm:$0xff]  }
 0x23b   :  { %8336 = vmatpush3.bf16.msra.mxu1 %v9267_v28  ;;  %v9321_v28 = vld [vmem:[%s12487_s1 + $0x1460] ss:$12 sps:$4 sm:$0xff]  }
 0x23c   :  { %5881 = vmatpush1.bf16.msra.mxu0 %v9263_v48  ;;  %8337 = vmatprep.subr.bf16.mxu1 %v9271_v20  ;;  %v9320_v48 = vld [vmem:[%s12487_s1 + $0x12dc] ss:$12 sps:$4 sm:$0xff]  }
 0x23d   :  { %5882 = vmatprep.subr.bf16.mxu0 %v9270_v36 }
 0x23f   :  { %8338 = vmatpush3.bf16.msra.mxu1 %v9272_v56 }
 0x240   :  { %5883 = vmatpush1.bf16.msra.mxu0 %v9268_v37  ;;  %8345 = vmatprep.subr.bf16.mxu1 %v9276_v19 }
 0x241   :  { %5893 = vmatprep.subr.bf16.mxu0 %v9275_v42 }
 0x242   :  { %6530 = vmatmul.mubr.bf16.vlgmr.msra.gmra.mrb[48].mxu1 %v1221_v15 }
 0x243   :  { %5885 = vmatmul.mubr.bf16.vlgmr.msra.gmra.mrb[0].mxu0 %v1221_v15  ;;  %8346 = vmatpush3.bf16.msra.mxu1 %v9277_v44 }
 0x244   :  { %5894 = vmatpush1.bf16.msra.mxu0 %v9273_v34  ;;  %8347 = vmatprep.subr.bf16.mxu1 %v9281_v24 }
 0x245   :  { %5895 = vmatprep.subr.bf16.mxu0 %v9280_v58  ;;  %6569 = vmatprep.mubr.bf16.mxu1 %v11643_v63 }
 0x246   :  { %5925 = vmatprep.mubr.bf16.mxu0 %v11643_v63 }
 0x247   :  { %8348 = vmatpush3.bf16.msra.mxu1 %v9282_v25 }
 0x248   :  { %5896 = vmatpush1.bf16.msra.mxu0 %v9278_v49  ;;  %8349 = vmatprep.subr.bf16.mxu1 %v9286_v40 }
 0x249   :  { %5897 = vmatprep.subr.bf16.mxu0 %v9285_v46 }
 0x24b   :  { %8350 = vmatpush3.bf16.msra.mxu1 %v9287_v54 }
 0x24c   :  { %5898 = vmatpush1.bf16.msra.mxu0 %v9283_v52  ;;  %8351 = vmatprep.subr.bf16.mxu1 %v9291_v43 }
 0x24d   :  { %5899 = vmatprep.subr.bf16.mxu0 %v9290_v55 }
 0x24f   :  { %8352 = vmatpush3.bf16.msra.mxu1 %v9292_v59 }
 0x250   :  { %5900 = vmatpush1.bf16.msra.mxu0 %v9288_v14  ;;  %8353 = vmatprep.subr.bf16.mxu1 %v9296_v5 }
 0x251   :  { %5901 = vmatprep.subr.bf16.mxu0 %v9295_v60 }
 0x253   :  { %8354 = vmatpush3.bf16.msra.mxu1 %v9297_v61 }
 0x254   :  { %5902 = vmatpush1.bf16.msra.mxu0 %v9293_v27  ;;  %8355 = vmatprep.subr.bf16.mxu1 %v9301_v1 }
 0x255   :  { %5903 = vmatprep.subr.bf16.mxu0 %v9300_v0  ;;  %v8207_v9 = vpop.f32.mrb[24].mxu1 }
 0x256   :  { %v8208_v41 = vpop.f32.mrb[25].mxu1 }
 0x257   :  { %8356 = vmatpush3.bf16.msra.mxu1 %v9302_v6  ;;  %v8209_v12 = vadd.f32 %v8208_v41, %v8207_v9  ;;  %v8210_v13 = vpop.f32.mrb[26].mxu1 }
 0x258   :  { %5904 = vmatpush1.bf16.msra.mxu0 %v9298_v2  ;;  %8357 = vmatprep.subr.bf16.mxu1 %v9306_v8  ;;  %v8211_v17 = vpop.f32.mrb[27].mxu1 }
 0x259   :  { %5905 = vmatprep.subr.bf16.mxu0 %v9305_v31  ;;  %v11717_v21 = vadd.f32 %v8209_v12, %v11605_v38 }
 0x25b   :  { %8358 = vmatpush3.bf16.msra.mxu1 %v9307_v35 }
 0x25c   :  { %5906 = vmatpush1.bf16.msra.mxu0 %v9303_v62  ;;  %8359 = vmatprep.subr.bf16.mxu1 %v9311_v16 }
 0x25d   :  { %5907 = vmatprep.subr.bf16.mxu0 %v9310_v10 }
 0x25f   :  { %8360 = vmatpush3.bf16.msra.mxu1 %v9312_v22 }
 0x260   :  { %5908 = vmatpush1.bf16.msra.mxu0 %v9308_v18  ;;  %8367 = vmatprep.subr.bf16.mxu1 %v9316_v11 }
 0x261   :  { %5909 = vmatprep.subr.bf16.mxu0 %v9315_v23 }
 0x262   :  { %12 = vsyncpa [#allocation3], 0  ;;  %v11746_v29 = vcombine.high %v11643_v63, %v11643_v63  ;;  %6570 = vmatmul.mubr.bf16.vlgmr.msra.gmra.mrb[52].mxu1 %v11733_v26  ;;  %v9318_v32 = vld [vmem:[%s12487_s1 + $0x12d8] ss:$12 sps:$4 sm:$0xff]   ;;  %v9322_v53 = vld [vmem:[%s12487_s1 + $0x13a0] ss:$12 sps:$4 sm:$0xff]   ;;  %v1224_v46 = vcombine.high %v11593_v30, %v11593_v30  ;;  %v11846_v6 = vcombine.high %v11733_v26, %v11733_v26 }
 0x263   :  { %8368 = vmatpush3.bf16.msra.mxu1 %v9317_v50  ;;  %v9325_v33 = vld [vmem:[%s12487_s1 + $0x12f4] ss:$12 sps:$4 sm:$0xff]   ;;  %v9326_v36 = vld [vmem:[%s12487_s1 + $0x1478] ss:$12 sps:$4 sm:$0xff]   ;;  %v9323_v20 = vld [vmem:[%s12487_s1 + $0x12f0] ss:$12 sps:$4 sm:$0xff]  }
 0x264   :  { %5910 = vmatpush1.bf16.msra.mxu0 %v9313_v3  ;;  %8369 = vmatprep.subr.bf16.mxu1 %v9321_v28  ;;  %v9327_v57 = vld [vmem:[%s12487_s1 + $0x13b8] ss:$12 sps:$4 sm:$0xff]   ;;  %v9331_v38 = vld [vmem:[%s12487_s1 + $0x1490] ss:$12 sps:$4 sm:$0xff]   ;;  %v9328_v39 = vld [vmem:[%s12487_s1 + $0x1308] ss:$12 sps:$4 sm:$0xff]   ;;  %v11828_v5 = vrot.slane %v1224_v46, %v9823_v51 }
 0x265   :  { %5911 = vmatprep.subr.bf16.mxu0 %v9320_v48  ;;  %6609 = vmatprep.mubr.bf16.mxu1 %v11746_v29  ;;  %v9330_v37 = vld [vmem:[%s12487_s1 + $0x130c] ss:$12 sps:$4 sm:$0xff]   ;;  %v9332_v56 = vld [vmem:[%s12487_s1 + $0x13d0] ss:$12 sps:$4 sm:$0xff]   ;;  %v9336_v19 = vld [vmem:[%s12487_s1 + $0x14a8] ss:$12 sps:$4 sm:$0xff]  }
 0x266   :  { %v9335_v42 = vld [vmem:[%s12487_s1 + $0x1324] ss:$12 sps:$4 sm:$0xff]   ;;  %v9333_v34 = vld [vmem:[%s12487_s1 + $0x1320] ss:$12 sps:$4 sm:$0xff]   ;;  %v9337_v44 = vld [vmem:[%s12487_s1 + $0x13e8] ss:$12 sps:$4 sm:$0xff]   ;;  %v1240_v2 = vcombine.high %v11828_v5, %v11828_v5 }
 0x267   :  { %8370 = vmatpush3.bf16.msra.mxu1 %v9322_v53  ;;  %v9340_v47 = vld [vmem:[%s12487_s1 + $0x133c] ss:$12 sps:$4 sm:$0xff]   ;;  %v9341_v15 = vld [vmem:[%s12487_s1 + $0x14c0] ss:$12 sps:$4 sm:$0xff]   ;;  %v9338_v58 = vld [vmem:[%s12487_s1 + $0x1338] ss:$12 sps:$4 sm:$0xff]  }
 0x268   :  { %5912 = vmatpush1.bf16.msra.mxu0 %v9318_v32  ;;  %8371 = vmatprep.subr.bf16.mxu1 %v9326_v36  ;;  %v9342_v24 = vld [vmem:[%s12487_s1 + $0x1400] ss:$12 sps:$4 sm:$0xff]   ;;  %v9346_v25 = vld [vmem:[%s12487_s1 + $0x14d8] ss:$12 sps:$4 sm:$0xff]   ;;  %v9343_v54 = vld [vmem:[%s12487_s1 + $0x1350] ss:$12 sps:$4 sm:$0xff]   ;;  %v11861_v9 = vrot.slane %v1240_v2, %v9823_v51 }
 0x269   :  { %5913 = vmatprep.subr.bf16.mxu0 %v9325_v33  ;;  %v9345_v49 = vld [vmem:[%s12487_s1 + $0x1354] ss:$12 sps:$4 sm:$0xff]   ;;  %v9347_v55 = vld [vmem:[%s12487_s1 + $0x1418] ss:$12 sps:$4 sm:$0xff]   ;;  %v9351_v30 = vld [vmem:[%s12487_s1 + $0x14f0] ss:$12 sps:$4 sm:$0xff]  }
 0x26a   :  { %v9350_v14 = vld [vmem:[%s12487_s1 + $0x136c] ss:$12 sps:$4 sm:$0xff]   ;;  %v9348_v27 = vld [vmem:[%s12487_s1 + $0x1368] ss:$12 sps:$4 sm:$0xff]   ;;  %v9352_v61 = vld [vmem:[%s12487_s1 + $0x1430] ss:$12 sps:$4 sm:$0xff]   ;;  %v11972_v46 = vcombine.high %v11861_v9, %v11861_v9 }
 0x26b   :  { %8372 = vmatpush3.bf16.msra.mxu1 %v9327_v57  ;;  %v9355_v0 = vld [vmem:[%s12487_s1 + $0x1384] ss:$12 sps:$4 sm:$0xff]   ;;  %v9356_v1 = vld [vmem:[%s12487_s1 + $0x15c8] ss:$12 sps:$4 sm:$0xff]   ;;  %v9353_v31 = vld [vmem:[%s12487_s1 + $0x1380] ss:$12 sps:$4 sm:$0xff]  }
 0x26c   :  { %5914 = vmatpush1.bf16.msra.mxu0 %v9323_v20  ;;  %8373 = vmatprep.subr.bf16.mxu1 %v9331_v38  ;;  %v9357_v8 = vld [vmem:[%s12487_s1 + $0x1508] ss:$12 sps:$4 sm:$0xff]   ;;  %v9361_v35 = vld [vmem:[%s12487_s1 + $0x15e0] ss:$12 sps:$4 sm:$0xff]   ;;  %v9358_v10 = vld [vmem:[%s12487_s1 + $0x1398] ss:$12 sps:$4 sm:$0xff]  }
 0x26d   :  { %5915 = vmatprep.subr.bf16.mxu0 %v9330_v37  ;;  %v9360_v62 = vld [vmem:[%s12487_s1 + $0x139c] ss:$12 sps:$4 sm:$0xff]   ;;  %v9362_v41 = vld [vmem:[%s12487_s1 + $0x1520] ss:$12 sps:$4 sm:$0xff]   ;;  %v9366_v13 = vld [vmem:[%s12487_s1 + $0x15f8] ss:$12 sps:$4 sm:$0xff]  }
 0x26e   :  { %v9365_v12 = vld [vmem:[%s12487_s1 + $0x13b4] ss:$12 sps:$4 sm:$0xff]   ;;  %v9363_v16 = vld [vmem:[%s12487_s1 + $0x13b0] ss:$12 sps:$4 sm:$0xff]   ;;  %v9367_v17 = vld [vmem:[%s12487_s1 + $0x1538] ss:$12 sps:$4 sm:$0xff]  }
 0x26f   :  { %8374 = vmatpush3.bf16.msra.mxu1 %v9332_v56  ;;  %v9370_v18 = vld [vmem:[%s12487_s1 + $0x13cc] ss:$12 sps:$4 sm:$0xff]   ;;  %v9368_v22 = vld [vmem:[%s12487_s1 + $0x13c8] ss:$12 sps:$4 sm:$0xff]   ;;  %v9372_v23 = vld [vmem:[%s12487_s1 + $0x1550] ss:$12 sps:$4 sm:$0xff]  }
 0x270   :  { %5916 = vmatpush1.bf16.msra.mxu0 %v9328_v39  ;;  %8375 = vmatprep.subr.bf16.mxu1 %v9336_v19  ;;  %v9375_v11 = vld [vmem:[%s12487_s1 + $0x13e4] ss:$12 sps:$4 sm:$0xff]   ;;  %v9376_v3 = vld [vmem:[%s12487_s1 + $0x1628] ss:$12 sps:$4 sm:$0xff]   ;;  %v9381_v28 = vld [vmem:[%s12487_s1 + $0x1640] ss:$12 sps:$4 sm:$0xff]  }
 0x271   :  { %5917 = vmatprep.subr.bf16.mxu0 %v9335_v42  ;;  %v9377_v50 = vld [vmem:[%s12487_s1 + $0x1568] ss:$12 sps:$4 sm:$0xff]   ;;  %v9382_v32 = vld [vmem:[%s12487_s1 + $0x1580] ss:$12 sps:$4 sm:$0xff]   ;;  %v9386_v33 = vld [vmem:[%s12487_s1 + $0x1658] ss:$12 sps:$4 sm:$0xff]  }
 0x272   :  { %v9380_v48 = vld [vmem:[%s12487_s1 + $0x13fc] ss:$12 sps:$4 sm:$0xff]   ;;  %v9385_v53 = vld [vmem:[%s12487_s1 + $0x1414] ss:$12 sps:$4 sm:$0xff]   ;;  %v9387_v38 = vld [vmem:[%s12487_s1 + $0x1598] ss:$12 sps:$4 sm:$0xff]  }
 0x273   :  { %8376 = vmatpush3.bf16.msra.mxu1 %v9337_v44  ;;  %v9383_v37 = vld [vmem:[%s12487_s1 + $0x1410] ss:$12 sps:$4 sm:$0xff]   ;;  %v9390_v56 = vld [vmem:[%s12487_s1 + $0x142c] ss:$12 sps:$4 sm:$0xff]   ;;  %v9388_v44 = vld [vmem:[%s12487_s1 + $0x1428] ss:$12 sps:$4 sm:$0xff]  }
 0x274   :  { %5918 = vmatpush1.bf16.msra.mxu0 %v9333_v34  ;;  %8377 = vmatprep.subr.bf16.mxu1 %v9341_v15  ;;  %v9391_v42 = vld [vmem:[%s12487_s1 + $0x1670] ss:$12 sps:$4 sm:$0xff]   ;;  %vm7192_vm0 = vcmask 523264   ;;  %s9641_s9 = smov [#allocation2]  }
 0x275   :  { %5919 = vmatprep.subr.bf16.mxu0 %v9340_v47  ;;  %v8229_v63 = vpop.f32.mrb[28].mxu1  ;;  %v9392_v47 = vld [vmem:[%s12487_s1 + $0x15b0] ss:$12 sps:$4 sm:$0xff]   ;;  %s7243_s10 = sshll.u32 %s9641_s9, 4  ;;  %s7244_s10 = int_to_ptr.vmem [resolvable:$true] %s7243_s10 }
 0x276   :  { %v8230_v40 = vpop.f32.mrb[29].mxu1  ;;  %v9396_v15 = vld [vmem:[%s12487_s1 + $0x1444] ss:$12 sps:$4 sm:$0xff]   ;;  %v9421_v2 = vld [vmem:[%s12487_s1 + $0x14bc] ss:$12 sps:$4 sm:$0xff]   ;;  %s9615_s0 = scalar_lea.vmem %s7244_s10, 32  ;;  %p9620_p1 = scmp.lt.s32.totalorder %s7244_s10, %s7244_s10 }
 0x277   :  { %v8231_v52 = vadd.f32 %v8230_v40, %v8229_v63  ;;  %8378 = vmatpush3.bf16.msra.mxu1 %v9342_v24  ;;  %v8232_v43 = vpop.f32.mrb[30].mxu1  ;;  %v11956_v24 = vrot.slane %v11828_v5, %v9823_v51  ;;  %v9401_v63 = vld [vmem:[%s12487_s1 + $0x145c] ss:$12 sps:$4 sm:$0xff]   ;;  %v9402_v51 = vld [vmem:[%s12487_s1 + $0x1760] ss:$12 sps:$4 sm:$0xff]   ;;  %p9616_p0 = scmp.ne.s32.totalorder %s7244_s10, %s9615_s0  ;;  %p9621_p2 = scmp.lt.s32.totalorder %s9615_s0, %s9615_s0 }
 0x278   :  { %5920 = vmatpush1.bf16.msra.mxu0 %v9338_v58  ;;  %8379 = vmatprep.subr.bf16.mxu1 %v9346_v25  ;;  %v8233_v59 = vpop.f32.mrb[31].mxu1  ;;  %v9397_v58 = vld [vmem:[%s12487_s1 + $0x1748] ss:$12 sps:$4 sm:$0xff]   ;;  %v9399_v40 = vld [vmem:[%s12487_s1 + $0x1458] ss:$12 sps:$4 sm:$0xff]  }
 0x279   :  { %5921 = vmatprep.subr.bf16.mxu0 %v9345_v49  ;;  %v11825_v60 = vadd.f32 %v8231_v52, %v11717_v21  ;;  %v9371_v21 = vld [vmem:[%s12487_s1 + $0x1610] ss:$12 sps:$4 sm:$0xff]   ;;  %v9394_v49 = vld [vmem:[%s12487_s1 + $0x1440] ss:$12 sps:$4 sm:$0xff]   ;;  %v9398_v25 = vld [vmem:[%s12487_s1 + $0x1688] ss:$12 sps:$4 sm:$0xff]   ;;  %p9622_p3 = por %p9621_p2, %p9620_p1 }
 0x27a   :  { %v9403_v52 = vld [vmem:[%s12487_s1 + $0x16a0] ss:$12 sps:$4 sm:$0xff]   ;;  %v9404_v43 = vld [vmem:[%s12487_s1 + $0x1470] ss:$12 sps:$4 sm:$0xff]  }
 0x27b   :  { %8380 = vmatpush3.bf16.msra.mxu1 %v9347_v55  ;;  %v9407_v55 = vld [vmem:[%s12487_s1 + $0x1778] ss:$12 sps:$4 sm:$0xff]   ;;  %v9412_v59 = vld [vmem:[%s12487_s1 + $0x1790] ss:$12 sps:$4 sm:$0xff]   ;;  %p9623_p4 = pnand %p9622_p3, %p9616_p0 }
 0x27c   :  { %5922 = vmatpush1.bf16.msra.mxu0 %v9343_v54  ;;  %8381 = vmatprep.subr.bf16.mxu1 %v9351_v30  ;;  %v9406_v54 = vld [vmem:[%s12487_s1 + $0x1474] ss:$12 sps:$4 sm:$0xff]   ;;  %v9411_v30 = vld [vmem:[%s12487_s1 + $0x148c] ss:$12 sps:$4 sm:$0xff]   ;;  %v9413_v5 = vld [vmem:[%s12487_s1 + $0x16d0] ss:$12 sps:$4 sm:$0xff]  }
 0x27d   :  { %5923 = vmatprep.subr.bf16.mxu0 %v9350_v14  ;;  %v9408_v14 = vld [vmem:[%s12487_s1 + $0x16b8] ss:$12 sps:$4 sm:$0xff]  }
 0x27f   :  { %8382 = vmatpush3.bf16.msra.mxu1 %v9352_v61  ;;  %v9417_v61 = vld [vmem:[%s12487_s1 + $0x17a8] ss:$12 sps:$4 sm:$0xff]  }
 0x280   :  { %5924 = vmatpush1.bf16.msra.mxu0 %v9348_v27  ;;  %8389 = vmatprep.subr.bf16.mxu1 %v9356_v1  ;;  %v9416_v27 = vld [vmem:[%s12487_s1 + $0x14a4] ss:$12 sps:$4 sm:$0xff]   ;;  %v9418_v1 = vld [vmem:[%s12487_s1 + $0x16e8] ss:$12 sps:$4 sm:$0xff]  }
 0x281   :  { %5934 = vmatprep.subr.bf16.mxu0 %v9355_v0  ;;  %v9414_v0 = vld [vmem:[%s12487_s1 + $0x14a0] ss:$12 sps:$4 sm:$0xff]  }
 0x282   :  { %6610 = vmatmul.mubr.bf16.vlgmr.msra.gmra.mrb[56].mxu1 %v11846_v6 }
 0x283   :  { %5926 = vmatmul.mubr.bf16.vlgmr.msra.gmra.mrb[0].mxu0 %v11733_v26  ;;  %8390 = vmatpush3.bf16.msra.mxu1 %v9357_v8  ;;  %v9373_v26 = vld [vmem:[%s12487_s1 + $0x13e0] ss:$12 sps:$4 sm:$0xff]   ;;  %v9419_v8 = vld [vmem:[%s12487_s1 + $0x14b8] ss:$12 sps:$4 sm:$0xff]  }
 0x284   :  { %5935 = vmatpush1.bf16.msra.mxu0 %v9353_v31  ;;  %8391 = vmatprep.subr.bf16.mxu1 %v9361_v35  ;;  %v9422_v31 = vld [vmem:[%s12487_s1 + $0x17c0] ss:$12 sps:$4 sm:$0xff]  }
 0x285   :  { %5936 = vmatprep.subr.bf16.mxu0 %v9360_v62  ;;  %6649 = vmatprep.mubr.bf16.mxu1 %v11861_v9  ;;  %v9423_v62 = vld [vmem:[%s12487_s1 + $0x1700] ss:$12 sps:$4 sm:$0xff]  }
 0x286   :  { %5966 = vmatprep.mubr.bf16.mxu0 %v11746_v29  ;;  %v9378_v29 = vld [vmem:[%s12487_s1 + $0x13f8] ss:$12 sps:$4 sm:$0xff]   ;;  %v9426_v35 = vld [vmem:[%s12487_s1 + $0x14d4] ss:$12 sps:$4 sm:$0xff]  }
 0x287   :  { %8392 = vmatpush3.bf16.msra.mxu1 %v9362_v41 }
 0x288   :  { %5937 = vmatpush1.bf16.msra.mxu0 %v9358_v10  ;;  %8393 = vmatprep.subr.bf16.mxu1 %v9366_v13  ;;  %v9427_v10 = vld [vmem:[%s12487_s1 + $0x17d8] ss:$12 sps:$4 sm:$0xff]  }
 0x289   :  { %5938 = vmatprep.subr.bf16.mxu0 %v9365_v12 }
 0x28b   :  { %8394 = vmatpush3.bf16.msra.mxu1 %v9367_v17  ;;  %v9428_v17 = vld [vmem:[%s12487_s1 + $0x1718] ss:$12 sps:$4 sm:$0xff]  }
 0x28c   :  { %5939 = vmatpush1.bf16.msra.mxu0 %v9363_v16  ;;  %8395 = vmatprep.subr.bf16.mxu1 %v9371_v21  ;;  %v9424_v16 = vld [vmem:[%s12487_s1 + $0x14d0] ss:$12 sps:$4 sm:$0xff]   ;;  %v9431_v21 = vld [vmem:[%s12487_s1 + $0x14ec] ss:$12 sps:$4 sm:$0xff]  }
 0x28d   :  { %5940 = vmatprep.subr.bf16.mxu0 %v9370_v18 }
 0x28f   :  { %8396 = vmatpush3.bf16.msra.mxu1 %v9372_v23 }
 0x290   :  { %5941 = vmatpush1.bf16.msra.mxu0 %v9368_v22  ;;  %8397 = vmatprep.subr.bf16.mxu1 %v9376_v3  ;;  %v9432_v22 = vld [vmem:[%s12487_s1 + $0x17f0] ss:$12 sps:$4 sm:$0xff]   ;;  %v9429_v3 = vld [vmem:[%s12487_s1 + $0x14e8] ss:$12 sps:$4 sm:$0xff]  }
 0x291   :  { %5942 = vmatprep.subr.bf16.mxu0 %v9375_v11 }
 0x293   :  { %8398 = vmatpush3.bf16.msra.mxu1 %v9377_v50  ;;  %v9436_v50 = vld [vmem:[%s12487_s1 + $0x1504] ss:$12 sps:$4 sm:$0xff]  }
 0x294   :  { %5943 = vmatpush1.bf16.msra.mxu0 %v9373_v26  ;;  %8399 = vmatprep.subr.bf16.mxu1 %v9381_v28  ;;  %v9433_v26 = vld [vmem:[%s12487_s1 + $0x1730] ss:$12 sps:$4 sm:$0xff]   ;;  %v9434_v28 = vld [vmem:[%s12487_s1 + $0x1500] ss:$12 sps:$4 sm:$0xff]  }
 0x295   :  { %5944 = vmatprep.subr.bf16.mxu0 %v9380_v48  ;;  %v8251_v36 = vpop.f32.mrb[32].mxu1  ;;  %v12060_v48 = vcombine.high %v11956_v24, %v11956_v24 }
 0x296   :  { %v8252_v20 = vpop.f32.mrb[33].mxu1 }
 0x297   :  { %v8253_v57 = vadd.f32 %v8252_v20, %v8251_v36  ;;  %8400 = vmatpush3.bf16.msra.mxu1 %v9382_v32  ;;  %v8254_v39 = vpop.f32.mrb[34].mxu1  ;;  %v9437_v32 = vld [vmem:[%s12487_s1 + $0x1518] ss:$12 sps:$4 sm:$0xff]   ;;  %v9446_v20 = vld [vmem:[%s12487_s1 + $0x1560] ss:$12 sps:$4 sm:$0xff]  }
 0x298   :  { %5945 = vmatpush1.bf16.msra.mxu0 %v9378_v29  ;;  %8401 = vmatprep.subr.bf16.mxu1 %v9386_v33  ;;  %v8255_v19 = vpop.f32.mrb[35].mxu1  ;;  %v9439_v29 = vld [vmem:[%s12487_s1 + $0x151c] ss:$12 sps:$4 sm:$0xff]   ;;  %v9448_v36 = vld [vmem:[%s12487_s1 + $0x1564] ss:$12 sps:$4 sm:$0xff]  }
 0x299   :  { %5946 = vmatprep.subr.bf16.mxu0 %v9385_v53  ;;  %v11940_v34 = vadd.f32 %v8253_v57, %v11825_v60  ;;  %v9409_v60 = vld [vmem:[%s12487_s1 + $0x1488] ss:$12 sps:$4 sm:$0xff]   ;;  %v9440_v33 = vld [vmem:[%s12487_s1 + $0x1530] ss:$12 sps:$4 sm:$0xff]  }
 0x29a   :  { %v9442_v53 = vld [vmem:[%s12487_s1 + $0x1534] ss:$12 sps:$4 sm:$0xff]   ;;  %v9451_v57 = vld [vmem:[%s12487_s1 + $0x157c] ss:$12 sps:$4 sm:$0xff]  }
 0x29b   :  { %8402 = vmatpush3.bf16.msra.mxu1 %v9387_v38  ;;  %v9454_v38 = vld [vmem:[%s12487_s1 + $0x1594] ss:$12 sps:$4 sm:$0xff]   ;;  %v9452_v19 = vld [vmem:[%s12487_s1 + $0x1590] ss:$12 sps:$4 sm:$0xff]  }
 0x29c   :  { %5947 = vmatpush1.bf16.msra.mxu0 %v9383_v37  ;;  %8403 = vmatprep.subr.bf16.mxu1 %v9391_v42  ;;  %v9449_v37 = vld [vmem:[%s12487_s1 + $0x1578] ss:$12 sps:$4 sm:$0xff]  }
 0x29d   :  { %5948 = vmatprep.subr.bf16.mxu0 %v9390_v56 }
 0x29f   :  { %8404 = vmatpush3.bf16.msra.mxu1 %v9392_v47 }
 0x2a0   :  { %5949 = vmatpush1.bf16.msra.mxu0 %v9388_v44  ;;  %8411 = vmatprep.subr.bf16.mxu1 %v9397_v58  ;;  %v9457_v44 = vld [vmem:[%s12487_s1 + $0x15ac] ss:$12 sps:$4 sm:$0xff]   ;;  %v9455_v58 = vld [vmem:[%s12487_s1 + $0x15a8] ss:$12 sps:$4 sm:$0xff]  }
 0x2a1   :  { %5950 = vmatprep.subr.bf16.mxu0 %v9396_v15 }
 0x2a2   :  { %6650 = vmatmul.mubr.bf16.vlgmr.msra.gmra.mrb[60].mxu1 %v11956_v24 }
 0x2a3   :  { %8412 = vmatpush3.bf16.msra.mxu1 %v9398_v25  ;;  %6689 = vmatprep.mubr.bf16.mxu1 %v11972_v46  ;;  %v9458_v25 = vld [vmem:[%s12487_s1 + $0x15c0] ss:$12 sps:$4 sm:$0xff]  }
 0x2a4   :  { %5951 = vmatpush1.bf16.msra.mxu0 %v9394_v49  ;;  %8413 = vmatprep.subr.bf16.mxu1 %v9402_v51  ;;  %v9460_v49 = vld [vmem:[%s12487_s1 + $0x15c4] ss:$12 sps:$4 sm:$0xff]  }
 0x2a5   :  { %5952 = vmatprep.subr.bf16.mxu0 %v9401_v63  ;;  %v9463_v63 = vld [vmem:[%s12487_s1 + $0x15dc] ss:$12 sps:$4 sm:$0xff]   ;;  %v9461_v51 = vld [vmem:[%s12487_s1 + $0x15d8] ss:$12 sps:$4 sm:$0xff]  }
 0x2a7   :  { %8414 = vmatpush3.bf16.msra.mxu1 %v9403_v52  ;;  %v9464_v52 = vld [vmem:[%s12487_s1 + $0x15f0] ss:$12 sps:$4 sm:$0xff]  }
 0x2a8   :  { %5953 = vmatpush1.bf16.msra.mxu0 %v9399_v40  ;;  %8415 = vmatprep.subr.bf16.mxu1 %v9407_v55  ;;  %v9466_v40 = vld [vmem:[%s12487_s1 + $0x15f4] ss:$12 sps:$4 sm:$0xff]  }
 0x2a9   :  { %5954 = vmatprep.subr.bf16.mxu0 %v9406_v54  ;;  %v9469_v54 = vld [vmem:[%s12487_s1 + $0x160c] ss:$12 sps:$4 sm:$0xff]   ;;  %v9467_v55 = vld [vmem:[%s12487_s1 + $0x1608] ss:$12 sps:$4 sm:$0xff]  }
 0x2ab   :  { %8416 = vmatpush3.bf16.msra.mxu1 %v9408_v14  ;;  %v9470_v14 = vld [vmem:[%s12487_s1 + $0x1620] ss:$12 sps:$4 sm:$0xff]  }
 0x2ac   :  { %5955 = vmatpush1.bf16.msra.mxu0 %v9404_v43  ;;  %8417 = vmatprep.subr.bf16.mxu1 %v9412_v59  ;;  %v9472_v43 = vld [vmem:[%s12487_s1 + $0x1624] ss:$12 sps:$4 sm:$0xff]  }
 0x2ad   :  { %5956 = vmatprep.subr.bf16.mxu0 %v9411_v30  ;;  %v9475_v30 = vld [vmem:[%s12487_s1 + $0x163c] ss:$12 sps:$4 sm:$0xff]   ;;  %v9473_v59 = vld [vmem:[%s12487_s1 + $0x1638] ss:$12 sps:$4 sm:$0xff]  }
 0x2af   :  { %8418 = vmatpush3.bf16.msra.mxu1 %v9413_v5 }
 0x2b0   :  { %5957 = vmatpush1.bf16.msra.mxu0 %v9409_v60  ;;  %8419 = vmatprep.subr.bf16.mxu1 %v9417_v61  ;;  %v9478_v60 = vld [vmem:[%s12487_s1 + $0x1654] ss:$12 sps:$4 sm:$0xff]  }
 0x2b1   :  { %5958 = vmatprep.subr.bf16.mxu0 %v9416_v27 }
 0x2b3   :  { %8420 = vmatpush3.bf16.msra.mxu1 %v9418_v1 }
 0x2b4   :  { %5959 = vmatpush1.bf16.msra.mxu0 %v9414_v0  ;;  %8421 = vmatprep.subr.bf16.mxu1 %v9422_v31  ;;  %v9476_v0 = vld [vmem:[%s12487_s1 + $0x1650] ss:$12 sps:$4 sm:$0xff]  }
 0x2b5   :  { %5960 = vmatprep.subr.bf16.mxu0 %v9421_v2  ;;  %v8273_v41 = vpop.f32.mrb[36].mxu1  ;;  %v9481_v2 = vld [vmem:[%s12487_s1 + $0x166c] ss:$12 sps:$4 sm:$0xff]  }
 0x2b6   :  { %v8274_v12 = vpop.f32.mrb[37].mxu1 }
 0x2b7   :  { %v8275_v13 = vadd.f32 %v8274_v12, %v8273_v41  ;;  %8422 = vmatpush3.bf16.msra.mxu1 %v9423_v62  ;;  %v8276_v18 = vpop.f32.mrb[38].mxu1  ;;  %v9479_v62 = vld [vmem:[%s12487_s1 + $0x1668] ss:$12 sps:$4 sm:$0xff]   ;;  %v9485_v12 = vld [vmem:[%s12487_s1 + $0x1698] ss:$12 sps:$4 sm:$0xff]  }
 0x2b8   :  { %5961 = vmatpush1.bf16.msra.mxu0 %v9419_v8  ;;  %8423 = vmatprep.subr.bf16.mxu1 %v9427_v10  ;;  %v8277_v23 = vpop.f32.mrb[39].mxu1  ;;  %v9482_v10 = vld [vmem:[%s12487_s1 + $0x1680] ss:$12 sps:$4 sm:$0xff]   ;;  %v9487_v41 = vld [vmem:[%s12487_s1 + $0x169c] ss:$12 sps:$4 sm:$0xff]  }
 0x2b9   :  { %5962 = vmatprep.subr.bf16.mxu0 %v9426_v35  ;;  %v6412_v11 = vadd.f32 %v8275_v13, %v11940_v34  ;;  %v9484_v35 = vld [vmem:[%s12487_s1 + $0x1684] ss:$12 sps:$4 sm:$0xff]   ;;  %v9490_v13 = vld [vmem:[%s12487_s1 + $0x16b4] ss:$12 sps:$4 sm:$0xff]  }
 0x2ba   :  { %v9494_v18 = vld [vmem:[%s12487_s1 + $0x16e0] ss:$12 sps:$4 sm:$0xff]  }
 0x2bb   :  { %8424 = vmatpush3.bf16.msra.mxu1 %v9428_v17  ;;  %v9496_v17 = vld [vmem:[%s12487_s1 + $0x16e4] ss:$12 sps:$4 sm:$0xff]   ;;  %v9502_v23 = vld [vmem:[%s12487_s1 + $0x1714] ss:$12 sps:$4 sm:$0xff]  }
 0x2bc   :  { %5963 = vmatpush1.bf16.msra.mxu0 %v9424_v16  ;;  %8425 = vmatprep.subr.bf16.mxu1 %v9432_v22  ;;  %v9488_v16 = vld [vmem:[%s12487_s1 + $0x16b0] ss:$12 sps:$4 sm:$0xff]   ;;  %v9497_v22 = vld [vmem:[%s12487_s1 + $0x16f8] ss:$12 sps:$4 sm:$0xff]  }
 0x2bd   :  { %5964 = vmatprep.subr.bf16.mxu0 %v9431_v21  ;;  %v9499_v21 = vld [vmem:[%s12487_s1 + $0x16fc] ss:$12 sps:$4 sm:$0xff]  }
 0x2bf   :  { %8426 = vmatpush3.bf16.msra.mxu1 %v9433_v26 }
 0x2c0   :  { %5965 = vmatpush1.bf16.msra.mxu0 %v9429_v3 }
 0x2c1   :  { %5975 = vmatprep.subr.bf16.mxu0 %v9436_v50  ;;  %v9500_v50 = vld [vmem:[%s12487_s1 + $0x1710] ss:$12 sps:$4 sm:$0xff]  }
 0x2c2   :  { %6690 = vmatmul.mubr.bf16.vlgmr.msra.gmra.mrb[64].mxu1 %v12060_v48 }
 0x2c3   :  { %5967 = vmatmul.mubr.bf16.vlgmr.msra.gmra.mrb[0].mxu0 %v11846_v6  ;;  %v9445_v6 = vld [vmem:[%s12487_s1 + $0x154c] ss:$12 sps:$4 sm:$0xff]  }
 0x2c4   :  { %5976 = vmatpush1.bf16.msra.mxu0 %v9434_v28  ;;  %6007 = vmatprep.mubr.bf16.mxu0 %v11861_v9  ;;  %v9443_v9 = vld [vmem:[%s12487_s1 + $0x1548] ss:$12 sps:$4 sm:$0xff]  }
 0x2c5   :  { %5977 = vmatprep.subr.bf16.mxu0 %v9439_v29  ;;  %v9505_v29 = vld [vmem:[%s12487_s1 + $0x172c] ss:$12 sps:$4 sm:$0xff]  }
 0x2c8   :  { %5978 = vmatpush1.bf16.msra.mxu0 %v9437_v32 }
 0x2c9   :  { %5979 = vmatprep.subr.bf16.mxu0 %v9442_v53 }
 0x2cc   :  { %5980 = vmatpush1.bf16.msra.mxu0 %v9440_v33  ;;  %v9503_v33 = vld [vmem:[%s12487_s1 + $0x1728] ss:$12 sps:$4 sm:$0xff]  }
 0x2cd   :  { %5981 = vmatprep.subr.bf16.mxu0 %v9445_v6  ;;  %v9508_v6 = vld [vmem:[%s12487_s1 + $0x1744] ss:$12 sps:$4 sm:$0xff]  }
 0x2d0   :  { %5982 = vmatpush1.bf16.msra.mxu0 %v9443_v9  ;;  %v9530_v9 = vld [vmem:[%s12489_s3] ss:$8 sps:$4 sm:$0xff]  }
 0x2d1   :  { %5983 = vmatprep.subr.bf16.mxu0 %v9448_v36  ;;  %v9532_v36 = vld [vmem:[%s12489_s3 + $0x4] ss:$8 sps:$4 sm:$0xff]  }
 0x2d2   :  { %7003 = vmatprep.subr.bf16.mxu1 %v9532_v36  ;;  %v9572_v36 = vld [vmem:[%s12489_s3 + $0xe0] ss:$8 sps:$4 sm:$0xff]  }
 0x2d3   :  { %7004 = vmatpush1.bf16.msra.mxu1 %v9530_v9  ;;  %v9574_v9 = vld [vmem:[%s12489_s3 + $0xe4] ss:$8 sps:$4 sm:$0xff]  }
 0x2d4   :  { %5984 = vmatpush1.bf16.msra.mxu0 %v9446_v20  ;;  %v9535_v20 = vld [vmem:[%s12489_s3 + $0x14] ss:$8 sps:$4 sm:$0xff]  }
 0x2d5   :  { %5985 = vmatprep.subr.bf16.mxu0 %v9451_v57  ;;  %v8295_v39 = vpop.f32.mrb[40].mxu1  ;;  %v9506_v57 = vld [vmem:[%s12487_s1 + $0x1740] ss:$12 sps:$4 sm:$0xff]   ;;  %7005 = vmatprep.subr.bf16.mxu1 %v9535_v20 }
 0x2d6   :  { %v8296_v56 = vpop.f32.mrb[41].mxu1 }
 0x2d7   :  { %v8297_v42 = vadd.f32 %v8296_v56, %v8295_v39  ;;  %v8298_v34 = vpop.f32.mrb[42].mxu1  ;;  %v9538_v39 = vld [vmem:[%s12489_s3 + $0x24] ss:$8 sps:$4 sm:$0xff]  }
 0x2d8   :  { %5986 = vmatpush1.bf16.msra.mxu0 %v9449_v37  ;;  %v8299_v47 = vpop.f32.mrb[43].mxu1  ;;  %v9511_v37 = vld [vmem:[%s12487_s1 + $0x175c] ss:$12 sps:$4 sm:$0xff]   ;;  %v9509_v56 = vld [vmem:[%s12487_s1 + $0x1758] ss:$12 sps:$4 sm:$0xff]  }
 0x2d9   :  { %5987 = vmatprep.subr.bf16.mxu0 %v9454_v38  ;;  %v6452_v15 = vadd.f32 %v8297_v42, %v6412_v11  ;;  %v9533_v38 = vld [vmem:[%s12489_s3 + $0x10] ss:$8 sps:$4 sm:$0xff]   ;;  %v9514_v42 = vld [vmem:[%s12487_s1 + $0x1774] ss:$12 sps:$4 sm:$0xff]  }
 0x2da   :  { %7006 = vmatpush1.bf16.msra.mxu1 %v9533_v38  ;;  %v9541_v34 = vld [vmem:[%s12489_s3 + $0x34] ss:$8 sps:$4 sm:$0xff]   ;;  %v9517_v47 = vld [vmem:[%s12487_s1 + $0x178c] ss:$12 sps:$4 sm:$0xff]  }
 0x2db   :  { %7007 = vmatprep.subr.bf16.mxu1 %v9538_v39  ;;  %v9577_v38 = vld [vmem:[%s12489_s3 + $0xf4] ss:$8 sps:$4 sm:$0xff]  }
 0x2dc   :  { %5988 = vmatpush1.bf16.msra.mxu0 %v9452_v19  ;;  %v9536_v19 = vld [vmem:[%s12489_s3 + $0x20] ss:$8 sps:$4 sm:$0xff]  }
 0x2dd   :  { %5989 = vmatprep.subr.bf16.mxu0 %v9457_v44  ;;  %v9512_v44 = vld [vmem:[%s12487_s1 + $0x1770] ss:$12 sps:$4 sm:$0xff]  }
 0x2de   :  { %7008 = vmatpush1.bf16.msra.mxu1 %v9536_v19 }
 0x2df   :  { %7009 = vmatprep.subr.bf16.mxu1 %v9541_v34  ;;  %v9580_v34 = vld [vmem:[%s12489_s3 + $0x104] ss:$8 sps:$4 sm:$0xff]  }
 0x2e0   :  { %5990 = vmatpush1.bf16.msra.mxu0 %v9455_v58  ;;  %v9544_v58 = vld [vmem:[%s12489_s3 + $0x44] ss:$8 sps:$4 sm:$0xff]  }
 0x2e1   :  { %5991 = vmatprep.subr.bf16.mxu0 %v9460_v49  ;;  %v9515_v49 = vld [vmem:[%s12487_s1 + $0x1788] ss:$12 sps:$4 sm:$0xff]  }
 0x2e4   :  { %5992 = vmatpush1.bf16.msra.mxu0 %v9458_v25  ;;  %v9520_v25 = vld [vmem:[%s12487_s1 + $0x17a4] ss:$12 sps:$4 sm:$0xff]  }
 0x2e5   :  { %5993 = vmatprep.subr.bf16.mxu0 %v9463_v63  ;;  %v9542_v63 = vld [vmem:[%s12489_s3 + $0x40] ss:$8 sps:$4 sm:$0xff]  }
 0x2e8   :  { %5994 = vmatpush1.bf16.msra.mxu0 %v9461_v51  ;;  %v9547_v51 = vld [vmem:[%s12489_s3 + $0x54] ss:$8 sps:$4 sm:$0xff]  }
 0x2e9   :  { %5995 = vmatprep.subr.bf16.mxu0 %v9466_v40  ;;  %v9518_v40 = vld [vmem:[%s12487_s1 + $0x17a0] ss:$12 sps:$4 sm:$0xff]  }
 0x2ec   :  { %5996 = vmatpush1.bf16.msra.mxu0 %v9464_v52  ;;  %v9523_v52 = vld [vmem:[%s12487_s1 + $0x17bc] ss:$12 sps:$4 sm:$0xff]  }
 0x2ed   :  { %5997 = vmatprep.subr.bf16.mxu0 %v9469_v54  ;;  %v9545_v54 = vld [vmem:[%s12489_s3 + $0x50] ss:$8 sps:$4 sm:$0xff]  }
 0x2f0   :  { %5998 = vmatpush1.bf16.msra.mxu0 %v9467_v55  ;;  %v9550_v55 = vld [vmem:[%s12489_s3 + $0x64] ss:$8 sps:$4 sm:$0xff]  }
 0x2f1   :  { %5999 = vmatprep.subr.bf16.mxu0 %v9472_v43  ;;  %v9521_v43 = vld [vmem:[%s12487_s1 + $0x17b8] ss:$12 sps:$4 sm:$0xff]  }
 0x2f4   :  { %6000 = vmatpush1.bf16.msra.mxu0 %v9470_v14  ;;  %v9526_v14 = vld [vmem:[%s12487_s1 + $0x17d4] ss:$12 sps:$4 sm:$0xff]  }
 0x2f5   :  { %6001 = vmatprep.subr.bf16.mxu0 %v9475_v30  ;;  %v8317_v5 = vpop.f32.mrb[44].mxu1  ;;  %v9548_v30 = vld [vmem:[%s12489_s3 + $0x60] ss:$8 sps:$4 sm:$0xff]  }
 0x2f6   :  { %v8318_v27 = vpop.f32.mrb[45].mxu1 }
 0x2f7   :  { %v8319_v61 = vadd.f32 %v8318_v27, %v8317_v5  ;;  %v8320_v1 = vpop.f32.mrb[46].mxu1 }
 0x2f8   :  { %6002 = vmatpush1.bf16.msra.mxu0 %v9473_v59  ;;  %v8321_v31 = vpop.f32.mrb[47].mxu1  ;;  %v9529_v1 = vld [vmem:[%s12487_s1 + $0x17ec] ss:$12 sps:$4 sm:$0xff]  }
 0x2f9   :  { %6003 = vmatprep.subr.bf16.mxu0 %v9478_v60  ;;  %v6492_v8 = vadd.f32 %v8319_v61, %v6452_v15  ;;  %v9539_v15 = vld [vmem:[%s12489_s3 + $0x30] ss:$8 sps:$4 sm:$0xff]   ;;  %v9553_v60 = vld [vmem:[%s12489_s3 + $0x74] ss:$8 sps:$4 sm:$0xff]  }
 0x2fa   :  { %7010 = vmatpush1.bf16.msra.mxu1 %v9539_v15  ;;  %v9524_v61 = vld [vmem:[%s12487_s1 + $0x17d0] ss:$12 sps:$4 sm:$0xff]   ;;  %v9614_v15 = vld [vmem:[%s12488_s2] sm:$0x7] }
 0x2fb   :  { %7011 = vmatprep.subr.bf16.mxu1 %v9544_v58  ;;  %v9551_v31 = vld [vmem:[%s12489_s3 + $0x70] ss:$8 sps:$4 sm:$0xff]  }
 0x2fc   :  { %6004 = vmatpush1.bf16.msra.mxu0 %v9476_v0 }
 0x2fd   :  { %6005 = vmatprep.subr.bf16.mxu0 %v9481_v2 }
 0x2fe   :  { %7012 = vmatpush1.bf16.msra.mxu1 %v9542_v63 }
 0x2ff   :  { %7013 = vmatprep.subr.bf16.mxu1 %v9547_v51 }
 0x300   :  { %6006 = vmatpush1.bf16.msra.mxu0 %v9479_v62  ;;  %v9556_v62 = vld [vmem:[%s12489_s3 + $0x84] ss:$8 sps:$4 sm:$0xff]  }
 0x301   :  { %6016 = vmatprep.subr.bf16.mxu0 %v9484_v35  ;;  %v9527_v35 = vld [vmem:[%s12487_s1 + $0x17e8] ss:$12 sps:$4 sm:$0xff]  }
 0x302   :  { %7014 = vmatpush1.bf16.msra.mxu1 %v9545_v54 }
 0x303   :  { %6008 = vmatmul.mubr.bf16.vlgmr.msra.gmra.mrb[0].mxu0 %v11956_v24  ;;  %v9493_v24 = vld [vmem:[%s12487_s1 + $0x16cc] ss:$12 sps:$4 sm:$0xff]   ;;  %7015 = vmatprep.subr.bf16.mxu1 %v9550_v55 }
 0x304   :  { %6017 = vmatpush1.bf16.msra.mxu0 %v9482_v10  ;;  %6048 = vmatprep.mubr.bf16.mxu0 %v11972_v46  ;;  %v9491_v46 = vld [vmem:[%s12487_s1 + $0x16c8] ss:$12 sps:$4 sm:$0xff]  }
 0x305   :  { %6018 = vmatprep.subr.bf16.mxu0 %v9487_v41  ;;  %v9554_v10 = vld [vmem:[%s12489_s3 + $0x80] ss:$8 sps:$4 sm:$0xff]   ;;  %v9559_v41 = vld [vmem:[%s12489_s3 + $0x94] ss:$8 sps:$4 sm:$0xff]  }
 0x306   :  { %7016 = vmatpush1.bf16.msra.mxu1 %v9548_v30 }
 0x307   :  { %7017 = vmatprep.subr.bf16.mxu1 %v9553_v60  ;;  %v9578_v60 = vld [vmem:[%s12489_s3 + $0x100] ss:$8 sps:$4 sm:$0xff]  }
 0x308   :  { %6019 = vmatpush1.bf16.msra.mxu0 %v9485_v12  ;;  %v9557_v12 = vld [vmem:[%s12489_s3 + $0x90] ss:$8 sps:$4 sm:$0xff]  }
 0x309   :  { %6020 = vmatprep.subr.bf16.mxu0 %v9490_v13  ;;  %v9562_v13 = vld [vmem:[%s12489_s3 + $0xa4] ss:$8 sps:$4 sm:$0xff]  }
 0x30a   :  { %7018 = vmatpush1.bf16.msra.mxu1 %v9551_v31  ;;  %v9592_v31 = vld [vmem:[%s12489_s3 + $0x144] ss:$8 sps:$4 sm:$0xff]  }
 0x30b   :  { %7019 = vmatprep.subr.bf16.mxu1 %v9556_v62  ;;  %v9595_v62 = vld [vmem:[%s12489_s3 + $0x154] ss:$8 sps:$4 sm:$0xff]  }
 0x30c   :  { %6021 = vmatpush1.bf16.msra.mxu0 %v9488_v16  ;;  %v9560_v16 = vld [vmem:[%s12489_s3 + $0xa0] ss:$8 sps:$4 sm:$0xff]  }
 0x30d   :  { %6022 = vmatprep.subr.bf16.mxu0 %v9493_v24  ;;  %v9565_v24 = vld [vmem:[%s12489_s3 + $0xb4] ss:$8 sps:$4 sm:$0xff]  }
 0x30e   :  { %7020 = vmatpush1.bf16.msra.mxu1 %v9554_v10  ;;  %v9598_v10 = vld [vmem:[%s12489_s3 + $0x164] ss:$8 sps:$4 sm:$0xff]  }
 0x30f   :  { %7021 = vmatprep.subr.bf16.mxu1 %v9559_v41  ;;  %v9596_v41 = vld [vmem:[%s12489_s3 + $0x160] ss:$8 sps:$4 sm:$0xff]  }
 0x310   :  { %6023 = vmatpush1.bf16.msra.mxu0 %v9491_v46  ;;  %v9563_v46 = vld [vmem:[%s12489_s3 + $0xb0] ss:$8 sps:$4 sm:$0xff]  }
 0x311   :  { %6024 = vmatprep.subr.bf16.mxu0 %v9496_v17  ;;  %v9566_v17 = vld [vmem:[%s12489_s3 + $0xc0] ss:$8 sps:$4 sm:$0xff]  }
 0x312   :  { %7022 = vmatpush1.bf16.msra.mxu1 %v9557_v12  ;;  %v9601_v12 = vld [vmem:[%s12489_s3 + $0x174] ss:$8 sps:$4 sm:$0xff]  }
 0x313   :  { %7023 = vmatprep.subr.bf16.mxu1 %v9562_v13  ;;  %v9599_v13 = vld [vmem:[%s12489_s3 + $0x170] ss:$8 sps:$4 sm:$0xff]  }
 0x314   :  { %6025 = vmatpush1.bf16.msra.mxu0 %v9494_v18  ;;  %v9571_v18 = vld [vmem:[%s12489_s3 + $0xd4] ss:$8 sps:$4 sm:$0xff]  }
 0x315   :  { %6026 = vmatprep.subr.bf16.mxu0 %v9499_v21  ;;  %v8339_v11 = vpop.f32.mrb[48].mxu1  ;;  %v9569_v21 = vld [vmem:[%s12489_s3 + $0xd0] ss:$8 sps:$4 sm:$0xff]  }
 0x316   :  { %v8340_v3 = vpop.f32.mrb[49].mxu1  ;;  %7024 = vmatpush1.bf16.msra.mxu1 %v9560_v16 }
 0x317   :  { %v8341_v26 = vadd.f32 %v8340_v3, %v8339_v11  ;;  %v8342_v28 = vpop.f32.mrb[50].mxu1  ;;  %7025 = vmatprep.subr.bf16.mxu1 %v9565_v24  ;;  %v9602_v24 = vld [vmem:[%s12491_s5] sm:$0xff]  }
 0x318   :  { %6027 = vmatpush1.bf16.msra.mxu0 %v9497_v22  ;;  %v8343_v32 = vpop.f32.mrb[51].mxu1 }
 0x319   :  { %6028 = vmatprep.subr.bf16.mxu0 %v9502_v23  ;;  %v12205_v53 = vadd.f32 %v8341_v26, %v6492_v8 }
 0x31a   :  { %7026 = vmatpush1.bf16.msra.mxu1 %v9563_v46 }
 0x31c   :  { %6029 = vmatpush1.bf16.msra.mxu0 %v9500_v50 }
 0x31d   :  { %6030 = vmatprep.subr.bf16.mxu0 %v9505_v29 }
 0x320   :  { %6031 = vmatpush1.bf16.msra.mxu0 %v9503_v33 }
 0x321   :  { %6032 = vmatprep.subr.bf16.mxu0 %v9508_v6 }
 0x324   :  { %6033 = vmatpush1.bf16.msra.mxu0 %v9506_v57 }
 0x325   :  { %6034 = vmatprep.subr.bf16.mxu0 %v9511_v37 }
 0x328   :  { %6035 = vmatpush1.bf16.msra.mxu0 %v9509_v56  ;;  %v9575_v56 = vld [vmem:[%s12489_s3 + $0xf0] ss:$8 sps:$4 sm:$0xff]  }
 0x329   :  { %6036 = vmatprep.subr.bf16.mxu0 %v9514_v42 }
 0x32c   :  { %6037 = vmatpush1.bf16.msra.mxu0 %v9512_v44  ;;  %v1060_v44 = vsub.s32 0, %v9808_v45 }
 0x32d   :  { %6038 = vmatprep.subr.bf16.mxu0 %v9517_v47  ;;  %v1064_v47 = vsub.s32 1, %v9808_v45 }
 0x32e   :  { %v1061_v58 = vrot.slane %v9614_v15, %v1060_v44 }
 0x330   :  { %6039 = vmatpush1.bf16.msra.mxu0 %v9515_v49  ;;  %v1065_v49 = vrot.slane %v9614_v15, %v1064_v47 }
 0x331   :  { %6040 = vmatprep.subr.bf16.mxu0 %v9520_v25  ;;  %v8433_v25 = vadd.f32 %v11058_v4, %v1061_v58  ;;  %v9583_v4 = vld [vmem:[%s12489_s3 + $0x114] ss:$8 sps:$4 sm:$0xff]  }
 0x332   :  { %v8435_v63 = vadd.f32 %v11063_v7, %v1065_v49  ;;  %v9581_v7 = vld [vmem:[%s12489_s3 + $0x110] ss:$8 sps:$4 sm:$0xff]  }
 0x334   :  { %6041 = vmatpush1.bf16.msra.mxu0 %v9518_v40 }
 0x335   :  { %6042 = vmatprep.subr.bf16.mxu0 %v9523_v52  ;;  %v8361_v59 = vpop.f32.mrb[52].mxu1 }
 0x336   :  { %v8362_v5 = vpop.f32.mrb[53].mxu1 }
 0x337   :  { %v8363_v27 = vadd.f32 %v8362_v5, %v8361_v59  ;;  %v8364_v0 = vpop.f32.mrb[54].mxu1 }
 0x338   :  { %6043 = vmatpush1.bf16.msra.mxu0 %v9521_v43  ;;  %v8365_v2 = vpop.f32.mrb[55].mxu1  ;;  %v9584_v0 = vld [vmem:[%s12489_s3 + $0x120] ss:$8 sps:$4 sm:$0xff]  }
 0x339   :  { %6044 = vmatprep.subr.bf16.mxu0 %v9526_v14  ;;  %v6572_v8 = vadd.f32 %v8363_v27, %v12205_v53  ;;  %v9640_v27 = vmov 0   ;;  %v9587_v2 = vld [vmem:[%s12489_s3 + $0x130] ss:$8 sps:$4 sm:$0xff]  }
 0x33c   :  { %6045 = vmatpush1.bf16.msra.mxu0 %v9524_v61  ;;  %v9586_v61 = vld [vmem:[%s12489_s3 + $0x124] ss:$8 sps:$4 sm:$0xff]  }
 0x33d   :  { %6046 = vmatprep.subr.bf16.mxu0 %v9529_v1  ;;  %v9589_v1 = vld [vmem:[%s12489_s3 + $0x134] ss:$8 sps:$4 sm:$0xff]  }
 0x340   :  { %6047 = vmatpush1.bf16.msra.mxu0 %v9527_v35  ;;  %v9593_v35 = vld [vmem:[%s12489_s3 + $0x150] ss:$8 sps:$4 sm:$0xff]  }
 0x343   :  { %6049 = vmatmul.mubr.bf16.vlgmr.msra.gmra.mrb[0].mxu0 %v12060_v48  ;;  %v9568_v48 = vld [vmem:[%s12489_s3 + $0xc4] ss:$8 sps:$4 sm:$0xff]  }
 0x344   :  { %7027 = vmatprep.subr.bf16.mxu1 %v9568_v48  ;;  %v9603_v48 = vld [vmem:[%s12491_s5 + $0x8] sm:$0xff]  }
 0x345   :  { %7028 = vmatpush1.bf16.msra.mxu1 %v9566_v17  ;;  %v9604_v17 = vld [vmem:[%s12491_s5 + $0x10] sm:$0xff]  }
 0x346   :  { %7029 = vmatprep.subr.bf16.mxu1 %v9571_v18  ;;  %v9605_v18 = vld [vmem:[%s12491_s5 + $0x18] sm:$0xff]  }
 0x349   :  { %7030 = vmatpush1.bf16.msra.mxu1 %v9569_v21  ;;  %v9606_v21 = vld [vmem:[%s12491_s5 + $0x20] sm:$0xff]  }
 0x34a   :  { %7031 = vmatprep.subr.bf16.mxu1 %v9574_v9 }
 0x34d   :  { %7032 = vmatpush1.bf16.msra.mxu1 %v9572_v36 }
 0x34e   :  { %7033 = vmatprep.subr.bf16.mxu1 %v9577_v38 }
 0x351   :  { %7034 = vmatpush1.bf16.msra.mxu1 %v9575_v56 }
 0x352   :  { %7044 = vmatprep.subr.bf16.mxu1 %v9580_v34 }
 0x355   :  { %v8383_v22 = vpop.f32.mrb[56].mxu1 }
 0x356   :  { %v8384_v23 = vpop.f32.mrb[57].mxu1 }
 0x357   :  { %v8385_v11 = vadd.f32 %v8384_v23, %v8383_v22  ;;  %v8386_v3 = vpop.f32.mrb[58].mxu1  ;;  %v9607_v22 = vld [vmem:[%s12491_s5 + $0x28] sm:$0xff]   ;;  %v9608_v23 = vld [vmem:[%s12491_s5 + $0x30] sm:$0xff]  }
 0x358   :  { %v8387_v26 = vpop.f32.mrb[59].mxu1  ;;  %v9610_v3 = vld [vmem:[%s12491_s5 + $0x40] sm:$0xff]  }
 0x359   :  { %v6612_v50 = vadd.f32 %v8385_v11, %v6572_v8  ;;  %v9590_v8 = vld [vmem:[%s12489_s3 + $0x140] ss:$8 sps:$4 sm:$0xff]   ;;  %v9609_v11 = vld [vmem:[%s12491_s5 + $0x38] sm:$0xff]  }
 0x35a   :  { %v9611_v26 = vld [vmem:[%s12491_s5 + $0x48] sm:$0xff]  }
 0x375   :  { %v8405_v28 = vpop.f32.mrb[60].mxu1 }
 0x376   :  { %v8406_v29 = vpop.f32.mrb[61].mxu1 }
 0x377   :  { %v8407_v32 = vadd.f32 %v8406_v29, %v8405_v28  ;;  %v8408_v53 = vpop.f32.mrb[62].mxu1  ;;  %v9613_v28 = vld [vmem:[%s12491_s5 + $0x58] sm:$0xff]   ;;  %v6751_v29 = vld [vmem:[%s12490_s4] sm:$0x3] }
 0x378   :  { %v8409_v33 = vpop.f32.mrb[63].mxu1  ;;  %v6760_v53 = vrot.slane %v6751_v29, %v1064_v47 }
 0x379   :  { %v6652_v6 = vadd.f32 %v8407_v32, %v6612_v50  ;;  %v9612_v50 = vld [vmem:[%s12491_s5 + $0x50] sm:$0xff]   ;;  %v6756_v32 = vrot.slane %v6751_v29, %v1060_v44 }
 0x395   :  { %v8427_v20 = vpop.f32.mrb[64].mxu1 }
 0x396   :  { %v8428_v57 = vpop.f32.mrb[65].mxu1 }
 0x397   :  { %v8429_v37 = vadd.f32 %v8428_v57, %v8427_v20  ;;  %v8430_v39 = vpop.f32.mrb[66].mxu1 }
 0x398   :  { %v8431_v42 = vpop.f32.mrb[67].mxu1 }
 0x399   :  { %v6692_v19 = vadd.f32 %v8429_v37, %v6652_v6  ;;  %v8067_v42 = vld [vmem:[%s12492_s6] ss:$0 sm:$0xff] }
 0x39b   :  { %v6699_v16 = vmax.f32 %v6692_v19, 0.0 }
 0x39d   :  { %v6702_v46 = vpack.c.bf16 %v6699_v16, %v6699_v16 }
 0x416   :  { %v6050_v51 = vpop.f32.mrb[0].mxu0 }
 0x417   :  { %v8434_v40 = vadd.f32 %v8433_v25, %v6050_v51  ;;  %v6052_v52 = vpop.f32.mrb[1].mxu0 }
 0x418   :  { %v8436_v54 = vadd.f32 %v8435_v63, %v6052_v52  ;;  %v6054_v55 = vpop.f32.mrb[2].mxu0 }
 0x419   :  { %v6697_v43 = vmax.f32 %v8434_v40, 0.0  ;;  %v6055_v14 = vpop.f32.mrb[3].mxu0 }
 0x41a   :  { %v6698_v30 = vmax.f32 %v8436_v54, 0.0 }
 0x41b   :  { %v6700_v5 = vpack.c.bf16 %v6697_v43, %v6697_v43 }
 0x41c   :  { %v6701_v59 = vpack.c.bf16 %v6698_v30, %v6698_v30 }
 0x41e   :  { %7035 = vmatprep.mubr.bf16.mxu1 %v6701_v59 }
 0x41f   :  { %7036 = vmatmul.mubr.bf16.vlgmr.msra.gmra.mrb[68].mxu1 %v6700_v5 }
 0x420   :  { %7045 = vmatpush1.bf16.msra.mxu1 %v9578_v60  ;;  %7076 = vmatprep.mubr.bf16.mxu1 %v9640_v27 }
 0x421   :  { %7046 = vmatprep.subr.bf16.mxu1 %v9583_v4 }
 0x424   :  { %7047 = vmatpush1.bf16.msra.mxu1 %v9581_v7 }
 0x425   :  { %7048 = vmatprep.subr.bf16.mxu1 %v9586_v61 }
 0x428   :  { %7049 = vmatpush1.bf16.msra.mxu1 %v9584_v0 }
 0x429   :  { %7050 = vmatprep.subr.bf16.mxu1 %v9589_v1 }
 0x42c   :  { %7051 = vmatpush1.bf16.msra.mxu1 %v9587_v2 }
 0x42d   :  { %7052 = vmatprep.subr.bf16.mxu1 %v9592_v31 }
 0x430   :  { %7053 = vmatpush1.bf16.msra.mxu1 %v9590_v8 }
 0x431   :  { %7054 = vmatprep.subr.bf16.mxu1 %v9595_v62 }
 0x434   :  { %7055 = vmatpush1.bf16.msra.mxu1 %v9593_v35 }
 0x435   :  { %7056 = vmatprep.subr.bf16.mxu1 %v9598_v10 }
 0x438   :  { %7057 = vmatpush1.bf16.msra.mxu1 %v9596_v41 }
 0x439   :  { %7058 = vmatprep.subr.bf16.mxu1 %v9601_v12 }
 0x43c   :  { %7059 = vmatpush1.bf16.msra.mxu1 %v9599_v13 }
 0x43d   :  { %7196 = vmatprep.subr.bf16.mxu1 %v9640_v27 }
 0x43f   :  { %7077 = vmatmul.mubr.bf16.vlgmr.msra.gmra.mrb[68].mxu1 %v6702_v46 }
 0x440   :  { %7197 = vmatpush1.bf16.msra.mxu1 %v9602_v24 }
 0x441   :  { %7198 = vmatprep.subr.bf16.mxu1 %v9640_v27 }
 0x444   :  { %7199 = vmatpush1.bf16.msra.mxu1 %v9603_v48 }
 0x445   :  { %7200 = vmatprep.subr.bf16.mxu1 %v9640_v27 }
 0x448   :  { %7201 = vmatpush1.bf16.msra.mxu1 %v9604_v17 }
 0x449   :  { %7202 = vmatprep.subr.bf16.mxu1 %v9640_v27 }
 0x44c   :  { %7203 = vmatpush1.bf16.msra.mxu1 %v9605_v18 }
 0x44d   :  { %7204 = vmatprep.subr.bf16.mxu1 %v9640_v27 }
 0x450   :  { %7205 = vmatpush1.bf16.msra.mxu1 %v9606_v21 }
 0x451   :  { %7206 = vmatprep.subr.bf16.mxu1 %v9640_v27 }
 0x454   :  { %7207 = vmatpush1.bf16.msra.mxu1 %v9607_v22 }
 0x455   :  { %7208 = vmatprep.subr.bf16.mxu1 %v9640_v27 }
 0x458   :  { %7209 = vmatpush1.bf16.msra.mxu1 %v9608_v23 }
 0x459   :  { %7210 = vmatprep.subr.bf16.mxu1 %v9640_v27 }
 0x45c   :  { %7211 = vmatpush1.bf16.msra.mxu1 %v9609_v11 }
 0x45d   :  { %7212 = vmatprep.subr.bf16.mxu1 %v9640_v27 }
 0x460   :  { %7213 = vmatpush1.bf16.msra.mxu1 %v9610_v3 }
 0x461   :  { %7214 = vmatprep.subr.bf16.mxu1 %v9640_v27 }
 0x464   :  { %7215 = vmatpush1.bf16.msra.mxu1 %v9611_v26 }
 0x465   :  { %7216 = vmatprep.subr.bf16.mxu1 %v9640_v27 }
 0x468   :  { %7217 = vmatpush1.bf16.msra.mxu1 %v9612_v50 }
 0x469   :  { %7218 = vmatprep.subr.bf16.mxu1 %v9640_v27 }
 0x46c   :  { %7219 = vmatpush1.bf16.msra.mxu1 %v9613_v28 }
 0x512   :  { %v7078_v33 = vpop.f32.mrb[68].mxu1 }
 0x513   :  { %v8437_v6 = vadd.f32 %v7078_v33, %v6756_v32  ;;  %v7080_v9 = vpop.f32.mrb[69].mxu1 }
 0x514   :  { %v8438_v36 = vadd.f32 %v7080_v9, %v6760_v53  ;;  %v7082_v20 = vpop.f32.mrb[70].mxu1 }
 0x515   :  { %v7085_v57 = vmax.f32 %v8437_v6, 0.0  ;;  %v7083_v37 = vpop.f32.mrb[71].mxu1 }
 0x516   :  { %v7086_v38 = vmax.f32 %v8438_v36, 0.0 }
 0x517   :  { %v7087_v56 = vpack.c.bf16 %v7085_v57, %v7085_v57 }
 0x518   :  { %v7088_v39 = vpack.c.bf16 %v7086_v38, %v7086_v38 }
 0x51a   :  { %8080 = vmatprep.mubr.msk.bf16.mxu1 %vm7192_vm0, %v7088_v39 }
 0x51b   :  { %7229 = vmatmul.mubr.bf16.vlgmr.msra.gmra.mrb[72].mxu1 %v7087_v56 }
 0x5ee   :  { %v7230_v45 = vpop.f32.mrb[72].mxu1 }
 0x5ef   :  { %v7231_v19 = vadd.f32 %v8067_v42, %v7230_v45  ;;  %v7232_v34 = vpop.f32.mrb[73].mxu1 }
 0x5f0   :  { %v7233_v44 = vpop.f32.mrb[74].mxu1 }
 0x5f1   :  { %7236 = vst [vmem:[#allocation2] sm:$0x3] %v7231_v19  ;;  %v7234_v47 = vpop.f32.mrb[75].mxu1 }
 0x5f2   :  { %9626 = shalt.err (!%p9623_p4)
}
 0x5f3   :  { %s9627_s6 = scalar_lea.hbm %s12493_s7, 32 }
 0x5f4   :  { %p9628_p5 = scmp.ne.s32.totalorder %s12493_s7, %s9627_s6  ;;  %p9631_p6 = scmp.lt.u32.totalorder %s9627_s6, %s12493_s7 }
 0x5f6   :  { %p9633_p7 = pnand %p9631_p6, %p9628_p5 }
 0x5f8   :  { %9636 = shalt.err (!%p9633_p7)
}
 0x5f9   :  { %7246 = dma.vmem_to_hbm [thread:$0]  %s7244_s10, 32, %s12493_s7, [#allocation3]  }
 0x5fa   :  { %9637 = dma.done.wait [#allocation3], 32  }
 0x5fb   :  { %9638 = vsyncadd [#allocation3], 4294967264 }
 0x5fc   :  { %7250 = vsyncpa [#allocation3], 1 }

</bundles_post_ra>
